<compile_context>
chip_gen: v7x
topology: tpu7x:2x2x1
jax: 0.10.0
libtpu: 0.0.40
codegen_flags: <defaults>
</compile_context>

<pallas_src>
import functools

import jax
import jax.numpy as jnp
from jax.experimental import pallas as pl
from jax.experimental.pallas import tpu as pltpu


# -----------------------------------------------------------------------------
# Pallas kernel: full-K GEMM tile + fused (scale * acc + bias) [+ LeakyReLU].
# -----------------------------------------------------------------------------
def _gemm_epilogue_kernel(a_ref, b_ref, scale_ref, bias_ref, o_ref, *, neg_slope):
    acc = jnp.dot(a_ref[...], b_ref[...], preferred_element_type=jnp.float32)
    y = acc * scale_ref[...] + bias_ref[...]
    if neg_slope is not None:                       # Python-level specialization
        y = jnp.where(y >= 0, y, neg_slope * y)
    o_ref[...] = y.astype(o_ref.dtype)


def _round_up(x, m):
    return ((x + m - 1) // m) * m


def _pad_to(x, m, axis):
    pad = (-x.shape[axis]) % m
    if pad == 0:
        return x
    widths = [(0, 0)] * x.ndim
    widths[axis] = (0, pad)
    return jnp.pad(x, widths)


def fused_gemm(a, w, scale, bias, *, neg_slope=None, out_dtype=jnp.float32):
    """y = act(scale * (a @ w) + bias).  a:[M,K], w:[K,N]; bf16 operands,
    f32 accumulation and epilogue, output in `out_dtype`."""
    M, K = a.shape
    Kw, N = w.shape
    assert K == Kw

    # Shape-adaptive tiling: full-K blocks (single reduction step), M tile
    # rounded to the bf16 sublane tile, N tile sized so wide layers expose
    # multiple parallel blocks (feeds both TensorCores on v7x).
    tm = min(_round_up(M, 16), 256)
    tn = 128 if N <= 256 else 256
    tk = _round_up(K, 128)
    # If the parallel grid would be 1x1 and M is splittable, split M so the
    # second TensorCore is not idle.
    if _round_up(M, tm) // tm == 1 and _round_up(N, tn) // tn == 1 and tm >= 32:
        tm //= 2

    a_p = _pad_to(_pad_to(a.astype(jnp.bfloat16), tm, 0), tk, 1)
    b_p = _pad_to(_pad_to(w.astype(jnp.bfloat16), tk, 0), tn, 1)
    s_p = _pad_to(scale.reshape(1, N).astype(jnp.float32), tn, 1)
    c_p = _pad_to(bias.reshape(1, N).astype(jnp.float32), tn, 1)
    Mp, Kp = a_p.shape
    Np = b_p.shape[1]
    grid = (Mp // tm, Np // tn)

    out = pl.pallas_call(
        functools.partial(_gemm_epilogue_kernel, neg_slope=neg_slope),
        out_shape=jax.ShapeDtypeStruct((Mp, Np), out_dtype),
        grid_spec=pltpu.PrefetchScalarGridSpec(
            num_scalar_prefetch=0,
            grid=grid,
            in_specs=[
                pl.BlockSpec((tm, tk), lambda i, j: (i, 0)),
                pl.BlockSpec((tk, tn), lambda i, j: (0, j)),
                pl.BlockSpec((1, tn), lambda i, j: (0, j)),
                pl.BlockSpec((1, tn), lambda i, j: (0, j)),
            ],
            out_specs=pl.BlockSpec((tm, tn), lambda i, j: (i, j)),
        ),
        compiler_params=pltpu.CompilerParams(
            dimension_semantics=("parallel", "parallel")),
    )(a_p, b_p, s_p, c_p)
    return out[:M, :N]


# -----------------------------------------------------------------------------
# Conv glue (patch extraction in plain JAX; GEMM in Pallas).
# -----------------------------------------------------------------------------
def _im2col(x, k, stride, pad_lo, pad_hi):
    """x: NHWC -> (patches [N*Ho*Wo, k*k*C], Ho, Wo)."""
    N, H, W, C = x.shape
    xp = jnp.pad(x, ((0, 0), (pad_lo, pad_hi), (pad_lo, pad_hi), (0, 0)))
    Ho = (H + pad_lo + pad_hi - k) // stride + 1
    Wo = (W + pad_lo + pad_hi - k) // stride + 1
    cols = []
    for di in range(k):
        for dj in range(k):
            cols.append(xp[:, di:di + stride * Ho:stride,
                           dj:dj + stride * Wo:stride, :])
    patches = jnp.stack(cols, axis=3)          # (N, Ho, Wo, k*k, C)
    return patches.reshape(N * Ho * Wo, k * k * C), Ho, Wo


def conv2d(x, w, scale, bias, stride, pad, neg_slope, out_dtype):
    """x: NHWC (bf16/f32), w: PyTorch layout (Cout, Cin, K, K)."""
    Cout, Cin, K, _ = w.shape
    patches, Ho, Wo = _im2col(x, K, stride, pad, pad)
    wmat = jnp.transpose(w, (2, 3, 1, 0)).reshape(K * K * Cin, Cout)
    y = fused_gemm(patches, wmat, scale, bias,
                   neg_slope=neg_slope, out_dtype=out_dtype)
    return y.reshape(x.shape[0], Ho, Wo, Cout)


def conv_transpose2d(x, w, b, out_dtype):
    """Sub-pixel (phase-decomposed) ConvTranspose2d(K=3, stride=2, pad=1, out_pad=1).

    x: NHWC, w: PyTorch ConvTranspose2d layout (Cin, Cout, 3, 3).
    out[2i+py, 2j+px] only touches x[i..i+1, j..j+1], so one GEMM over the
    undilated input computes all four parity phases (no zero-dilated input).
    """
    Cin, Cout, K, _ = w.shape
    N, H, W, C = x.shape
    assert C == Cin and K == 3

    zW = jnp.zeros((N, H, 1, Cin), x.dtype)
    zH = jnp.zeros((N, 1, W, Cin), x.dtype)
    x_w = jnp.concatenate([x[:, :, 1:, :], zW], axis=2)        # x[i,   j+1]
    x_h = jnp.concatenate([x[:, 1:, :, :], zH], axis=1)        # x[i+1, j  ]
    x_hw = jnp.concatenate([x_h[:, :, 1:, :], zW], axis=2)     # x[i+1, j+1]
    taps = jnp.concatenate([x, x_w, x_h, x_hw], axis=-1)       # (N,H,W,4*Cin)
    patches = taps.reshape(N * H * W, 4 * Cin)

    z = jnp.zeros((Cin, Cout), w.dtype)
    wk = lambda kh, kw: w[:, :, kh, kw]                        # (Cin, Cout)
    # rows ordered [x(i,j) | x(i,j+1) | x(i+1,j) | x(i+1,j+1)] (Cin each);
    # columns ordered [phase(0,0) | (0,1) | (1,0) | (1,1)] (Cout each).
    w_p00 = jnp.concatenate([wk(1, 1), z,        z,        z       ], axis=0)
    w_p01 = jnp.concatenate([wk(1, 2), wk(1, 0), z,        z       ], axis=0)
    w_p10 = jnp.concatenate([wk(2, 1), z,        wk(0, 1), z       ], axis=0)
    w_p11 = jnp.concatenate([wk(2, 2), wk(2, 0), wk(0, 2), wk(0, 0)], axis=0)
    wmat = jnp.concatenate([w_p00, w_p01, w_p10, w_p11], axis=1)   # (4Cin, 4Cout)

    scale = jnp.ones((4 * Cout,), jnp.float32)
    bias = jnp.tile(b.astype(jnp.float32), 4)
    y = fused_gemm(patches, wmat, scale, bias,
                   neg_slope=None, out_dtype=out_dtype)            # no activation
    y = y.reshape(N, H, W, 2, 2, Cout)                             # (n,i,j,py,px,c)
    y = jnp.transpose(y, (0, 1, 3, 2, 4, 5)).reshape(N, 2 * H, 2 * W, Cout)
    return y


# -----------------------------------------------------------------------------
# Parameters (deterministic synthetic init matching the module's shapes).
# -----------------------------------------------------------------------------
def init_params(key):
    keys = iter(jax.random.split(key, 32))
    enc_channels = [(3, 64), (64, 128), (128, 256), (256, 512)]
    encoder = []
    for cin, cout in enc_channels:
        w = jax.random.normal(next(keys), (cout, cin, 3, 3), jnp.float32) * 0.05
        b = jax.random.normal(next(keys), (cout,), jnp.float32) * 0.01
        gamma = jnp.ones((cout,), jnp.float32)
        beta = jnp.zeros((cout,), jnp.float32)
        rmean = jnp.zeros((cout,), jnp.float32)
        rvar = jnp.ones((cout,), jnp.float32)
        encoder.append((w, b, gamma, beta, rmean, rvar))

    dec_channels = [512, 256, 128, 64]
    decoder = []
    for c in dec_channels:
        w = jax.random.normal(next(keys), (c, c // 2, 3, 3), jnp.float32) * 0.05
        b = jax.random.normal(next(keys), (c // 2,), jnp.float32) * 0.01
        decoder.append((w, b))

    wf = jax.random.normal(next(keys), (3, 32, 3, 3), jnp.float32) * 0.05
    bf = jax.random.normal(next(keys), (3,), jnp.float32) * 0.01
    return {"encoder": encoder, "decoder": decoder, "final": (wf, bf)}


# -----------------------------------------------------------------------------
# Autoencoder forward (NCHW in / NCHW out, same as the PyTorch module).
# -----------------------------------------------------------------------------
def autoencoder_forward(params, x_nchw):
    eps = 1e-5
    # NHWC, bf16 activations between layers (f32 epilogue math inside kernels).
    x = jnp.transpose(x_nchw, (0, 2, 3, 1)).astype(jnp.bfloat16)

    # encoder: 4 x (Conv2d(3x3, s=2, p=1) + BatchNorm2d(eval) + LeakyReLU(0.01))
    for (w, b, gamma, beta, rmean, rvar) in params["encoder"]:
        scale = gamma / jnp.sqrt(rvar + eps)
        bias = scale * (b - rmean) + beta
        x = conv2d(x, w, scale, bias, stride=2, pad=1,
                   neg_slope=0.01, out_dtype=jnp.bfloat16)

    # decoder: 4 x ConvTranspose2d(3x3, s=2, p=1, op=1), channels halved
    for (w, b) in params["decoder"]:
        x = conv_transpose2d(x, w, b, out_dtype=jnp.bfloat16)

    # final Conv2d(32, 3, 3, 1, 1), no activation
    wf, bf = params["final"]
    x = conv2d(x, wf, jnp.ones((wf.shape[0],), jnp.float32), bf,
               stride=1, pad=1, neg_slope=None, out_dtype=jnp.float32)

    return jnp.transpose(x, (0, 3, 1, 2))                         # -> NCHW


if __name__ == "__main__":
    key = jax.random.PRNGKey(0)
    pkey, xkey = jax.random.split(key)
    params = init_params(pkey)

    # small shape consistent with the module: NCHW, 3 input channels,
    # spatial divisible by 16 (4 stride-2 downsamples) -> 16x16.
    x = jax.random.normal(xkey, (2, 3, 16, 16), jnp.float32)

    out = jax.jit(autoencoder_forward)(params, x)
    out = jax.block_until_ready(out)

    assert out.shape == (2, 3, 16, 16), out.shape
    assert out.dtype == jnp.float32
    assert bool(jnp.all(jnp.isfinite(out)))
    print("KERNEL_OK")
</pallas_src>

<mosaic_0001>
module attributes {stable_mosaic.version = 11 : i64} {
  func.func @_gemm_epilogue_kernel(%arg0: i32, %arg1: i32, %arg2: memref<64x128xbf16, #tpu.memory_space<vmem>>, %arg3: memref<128x128xbf16, #tpu.memory_space<vmem>>, %arg4: memref<1x128xf32, #tpu.memory_space<vmem>>, %arg5: memref<1x128xf32, #tpu.memory_space<vmem>>, %arg6: memref<64x128xbf16, #tpu.memory_space<vmem>>) attributes {dimension_semantics = [#tpu.dimension_semantics<parallel>, #tpu.dimension_semantics<parallel>], iteration_bounds = array<i64: 2, 1>, scalar_prefetch = 0 : i64, scratch_operands = 0 : i64, tpu.core_type = #tpu.core_type<tc>, window_params = [{transform_indices = @transform_0, window_bounds = array<i64: 64, 128>}, {transform_indices = @transform_1, window_bounds = array<i64: 128, 128>}, {transform_indices = @transform_2, window_bounds = array<i64: 1, 128>}, {transform_indices = @transform_3, window_bounds = array<i64: 1, 128>}, {transform_indices = @transform_4, window_bounds = array<i64: 64, 128>}]} {
    %c0 = arith.constant 0 : index
    %c0_0 = arith.constant 0 : index
    %0 = vector.load %arg2[%c0, %c0_0] : memref<64x128xbf16, #tpu.memory_space<vmem>>, vector<64x128xbf16>
    %c0_1 = arith.constant 0 : index
    %c0_2 = arith.constant 0 : index
    %1 = vector.load %arg3[%c0_1, %c0_2] : memref<128x128xbf16, #tpu.memory_space<vmem>>, vector<128x128xbf16>
    %cst = arith.constant dense<0.000000e+00> : vector<64x128xf32>
    %2 = tpu.matmul %0, %1, %cst {dimension_numbers = #tpu.dot_dimension_numbers<[1], [0], [0], [1], [0, 0, 1, 1], [], []>} : vector<64x128xbf16>, vector<128x128xbf16>, vector<64x128xf32> -> vector<64x128xf32>
    %c0_3 = arith.constant 0 : index
    %c0_4 = arith.constant 0 : index
    %3 = vector.load %arg4[%c0_3, %c0_4] : memref<1x128xf32, #tpu.memory_space<vmem>>, vector<1x128xf32>
    %4 = vector.broadcast %3 : vector<1x128xf32> to vector<64x128xf32>
    %5 = arith.mulf %2, %4 : vector<64x128xf32>
    %c0_5 = arith.constant 0 : index
    %c0_6 = arith.constant 0 : index
    %6 = vector.load %arg5[%c0_5, %c0_6] : memref<1x128xf32, #tpu.memory_space<vmem>>, vector<1x128xf32>
    %7 = vector.broadcast %6 : vector<1x128xf32> to vector<64x128xf32>
    %8 = arith.addf %5, %7 : vector<64x128xf32>
    %cst_7 = arith.constant 0.000000e+00 : f32
    %9 = vector.broadcast %cst_7 : f32 to vector<64x128xf32>
    %10 = arith.cmpf oge, %8, %9 : vector<64x128xf32>
    %cst_8 = arith.constant 0.00999999977 : f32
    %11 = vector.broadcast %cst_8 : f32 to vector<64x128xf32>
    %12 = arith.mulf %11, %8 : vector<64x128xf32>
    %13 = arith.select %10, %8, %12 : vector<64x128xi1>, vector<64x128xf32>
    %14 = arith.truncf %13 : vector<64x128xf32> to vector<64x128xbf16>
    %c0_9 = arith.constant 0 : index
    %c0_10 = arith.constant 0 : index
    %15 = vector.load %arg6[%c0_9, %c0_10] : memref<64x128xbf16, #tpu.memory_space<vmem>>, vector<64x128xbf16>
    tpu.vector_store %arg6[%c0_9, %c0_10], %14 {strides = array<i32>} : memref<64x128xbf16, #tpu.memory_space<vmem>>, vector<64x128xbf16>,
    return
  }
  func.func @transform_0(%arg0: i32, %arg1: i32) -> (i32, i32) {
    %c0_i32 = arith.constant 0 : i32
    %c0_i32_0 = arith.constant 0 : i32
    return %arg0, %c0_i32 : i32, i32
  }
  func.func @transform_1(%arg0: i32, %arg1: i32) -> (i32, i32) {
    %c0_i32 = arith.constant 0 : i32
    %c0_i32_0 = arith.constant 0 : i32
    return %c0_i32, %arg1 : i32, i32
  }
  func.func @transform_2(%arg0: i32, %arg1: i32) -> (i32, i32) {
    %c0_i32 = arith.constant 0 : i32
    %c0_i32_0 = arith.constant 0 : i32
    return %c0_i32, %arg1 : i32, i32
  }
  func.func @transform_3(%arg0: i32, %arg1: i32) -> (i32, i32) {
    %c0_i32 = arith.constant 0 : i32
    %c0_i32_0 = arith.constant 0 : i32
    return %c0_i32, %arg1 : i32, i32
  }
  func.func @transform_4(%arg0: i32, %arg1: i32) -> (i32, i32) {
    %c0_i32 = arith.constant 0 : i32
    return %arg0, %arg1 : i32, i32
  }
}

module attributes {stable_mosaic.version = 11 : i64} {
  func.func @_gemm_epilogue_kernel(%arg0: i32, %arg1: i32, %arg2: memref<16x640xbf16, #tpu.memory_space<vmem>>, %arg3: memref<640x128xbf16, #tpu.memory_space<vmem>>, %arg4: memref<1x128xf32, #tpu.memory_space<vmem>>, %arg5: memref<1x128xf32, #tpu.memory_space<vmem>>, %arg6: memref<16x128xbf16, #tpu.memory_space<vmem>>) attributes {dimension_semantics = [#tpu.dimension_semantics<parallel>, #tpu.dimension_semantics<parallel>], iteration_bounds = array<i64: 2, 1>, scalar_prefetch = 0 : i64, scratch_operands = 0 : i64, tpu.core_type = #tpu.core_type<tc>, window_params = [{transform_indices = @transform_0, window_bounds = array<i64: 16, 640>}, {transform_indices = @transform_1, window_bounds = array<i64: 640, 128>}, {transform_indices = @transform_2, window_bounds = array<i64: 1, 128>}, {transform_indices = @transform_3, window_bounds = array<i64: 1, 128>}, {transform_indices = @transform_4, window_bounds = array<i64: 16, 128>}]} {
    %c0 = arith.constant 0 : index
    %c0_0 = arith.constant 0 : index
    %0 = vector.load %arg2[%c0, %c0_0] : memref<16x640xbf16, #tpu.memory_space<vmem>>, vector<16x640xbf16>
    %c0_1 = arith.constant 0 : index
    %c0_2 = arith.constant 0 : index
    %1 = vector.load %arg3[%c0_1, %c0_2] : memref<640x128xbf16, #tpu.memory_space<vmem>>, vector<640x128xbf16>
    %cst = arith.constant dense<0.000000e+00> : vector<16x128xf32>
    %2 = tpu.matmul %0, %1, %cst {dimension_numbers = #tpu.dot_dimension_numbers<[1], [0], [0], [1], [0, 0, 1, 1], [], []>} : vector<16x640xbf16>, vector<640x128xbf16>, vector<16x128xf32> -> vector<16x128xf32>
    %c0_3 = arith.constant 0 : index
    %c0_4 = arith.constant 0 : index
    %3 = vector.load %arg4[%c0_3, %c0_4] : memref<1x128xf32, #tpu.memory_space<vmem>>, vector<1x128xf32>
    %4 = vector.broadcast %3 : vector<1x128xf32> to vector<16x128xf32>
    %5 = arith.mulf %2, %4 : vector<16x128xf32>
    %c0_5 = arith.constant 0 : index
    %c0_6 = arith.constant 0 : index
    %6 = vector.load %arg5[%c0_5, %c0_6] : memref<1x128xf32, #tpu.memory_space<vmem>>, vector<1x128xf32>
    %7 = vector.broadcast %6 : vector<1x128xf32> to vector<16x128xf32>
    %8 = arith.addf %5, %7 : vector<16x128xf32>
    %cst_7 = arith.constant 0.000000e+00 : f32
    %9 = vector.broadcast %cst_7 : f32 to vector<16x128xf32>
    %10 = arith.cmpf oge, %8, %9 : vector<16x128xf32>
    %cst_8 = arith.constant 0.00999999977 : f32
    %11 = vector.broadcast %cst_8 : f32 to vector<16x128xf32>
    %12 = arith.mulf %11, %8 : vector<16x128xf32>
    %13 = arith.select %10, %8, %12 : vector<16x128xi1>, vector<16x128xf32>
    %14 = arith.truncf %13 : vector<16x128xf32> to vector<16x128xbf16>
    %c0_9 = arith.constant 0 : index
    %c0_10 = arith.constant 0 : index
    %15 = vector.load %arg6[%c0_9, %c0_10] : memref<16x128xbf16, #tpu.memory_space<vmem>>, vector<16x128xbf16>
    tpu.vector_store %arg6[%c0_9, %c0_10], %14 {strides = array<i32>} : memref<16x128xbf16, #tpu.memory_space<vmem>>, vector<16x128xbf16>,
    return
  }
  func.func @transform_0(%arg0: i32, %arg1: i32) -> (i32, i32) {
    %c0_i32 = arith.constant 0 : i32
    %c0_i32_0 = arith.constant 0 : i32
    return %arg0, %c0_i32 : i32, i32
  }
  func.func @transform_1(%arg0: i32, %arg1: i32) -> (i32, i32) {
    %c0_i32 = arith.constant 0 : i32
    %c0_i32_0 = arith.constant 0 : i32
    return %c0_i32, %arg1 : i32, i32
  }
  func.func @transform_2(%arg0: i32, %arg1: i32) -> (i32, i32) {
    %c0_i32 = arith.constant 0 : i32
    %c0_i32_0 = arith.constant 0 : i32
    return %c0_i32, %arg1 : i32, i32
  }
  func.func @transform_3(%arg0: i32, %arg1: i32) -> (i32, i32) {
    %c0_i32 = arith.constant 0 : i32
    %c0_i32_0 = arith.constant 0 : i32
    return %c0_i32, %arg1 : i32, i32
  }
  func.func @transform_4(%arg0: i32, %arg1: i32) -> (i32, i32) {
    %c0_i32 = arith.constant 0 : i32
    return %arg0, %arg1 : i32, i32
  }
}

module attributes {stable_mosaic.version = 11 : i64} {
  func.func @_gemm_epilogue_kernel(%arg0: i32, %arg1: i32, %arg2: memref<16x1152xbf16, #tpu.memory_space<vmem>>, %arg3: memref<1152x128xbf16, #tpu.memory_space<vmem>>, %arg4: memref<1x128xf32, #tpu.memory_space<vmem>>, %arg5: memref<1x128xf32, #tpu.memory_space<vmem>>, %arg6: memref<16x128xbf16, #tpu.memory_space<vmem>>) attributes {dimension_semantics = [#tpu.dimension_semantics<parallel>, #tpu.dimension_semantics<parallel>], iteration_bounds = array<i64: 1, 2>, scalar_prefetch = 0 : i64, scratch_operands = 0 : i64, tpu.core_type = #tpu.core_type<tc>, window_params = [{transform_indices = @transform_0, window_bounds = array<i64: 16, 1152>}, {transform_indices = @transform_1, window_bounds = array<i64: 1152, 128>}, {transform_indices = @transform_2, window_bounds = array<i64: 1, 128>}, {transform_indices = @transform_3, window_bounds = array<i64: 1, 128>}, {transform_indices = @transform_4, window_bounds = array<i64: 16, 128>}]} {
    %c0 = arith.constant 0 : index
    %c0_0 = arith.constant 0 : index
    %0 = vector.load %arg2[%c0, %c0_0] : memref<16x1152xbf16, #tpu.memory_space<vmem>>, vector<16x1152xbf16>
    %c0_1 = arith.constant 0 : index
    %c0_2 = arith.constant 0 : index
    %1 = vector.load %arg3[%c0_1, %c0_2] : memref<1152x128xbf16, #tpu.memory_space<vmem>>, vector<1152x128xbf16>
    %cst = arith.constant dense<0.000000e+00> : vector<16x128xf32>
    %2 = tpu.matmul %0, %1, %cst {dimension_numbers = #tpu.dot_dimension_numbers<[1], [0], [0], [1], [0, 0, 1, 1], [], []>} : vector<16x1152xbf16>, vector<1152x128xbf16>, vector<16x128xf32> -> vector<16x128xf32>
    %c0_3 = arith.constant 0 : index
    %c0_4 = arith.constant 0 : index
    %3 = vector.load %arg4[%c0_3, %c0_4] : memref<1x128xf32, #tpu.memory_space<vmem>>, vector<1x128xf32>
    %4 = vector.broadcast %3 : vector<1x128xf32> to vector<16x128xf32>
    %5 = arith.mulf %2, %4 : vector<16x128xf32>
    %c0_5 = arith.constant 0 : index
    %c0_6 = arith.constant 0 : index
    %6 = vector.load %arg5[%c0_5, %c0_6] : memref<1x128xf32, #tpu.memory_space<vmem>>, vector<1x128xf32>
    %7 = vector.broadcast %6 : vector<1x128xf32> to vector<16x128xf32>
    %8 = arith.addf %5, %7 : vector<16x128xf32>
    %cst_7 = arith.constant 0.000000e+00 : f32
    %9 = vector.broadcast %cst_7 : f32 to vector<16x128xf32>
    %10 = arith.cmpf oge, %8, %9 : vector<16x128xf32>
    %cst_8 = arith.constant 0.00999999977 : f32
    %11 = vector.broadcast %cst_8 : f32 to vector<16x128xf32>
    %12 = arith.mulf %11, %8 : vector<16x128xf32>
    %13 = arith.select %10, %8, %12 : vector<16x128xi1>, vector<16x128xf32>
    %14 = arith.truncf %13 : vector<16x128xf32> to vector<16x128xbf16>
    %c0_9 = arith.constant 0 : index
    %c0_10 = arith.constant 0 : index
    %15 = vector.load %arg6[%c0_9, %c0_10] : memref<16x128xbf16, #tpu.memory_space<vmem>>, vector<16x128xbf16>
    tpu.vector_store %arg6[%c0_9, %c0_10], %14 {strides = array<i32>} : memref<16x128xbf16, #tpu.memory_space<vmem>>, vector<16x128xbf16>,
    return
  }
  func.func @transform_0(%arg0: i32, %arg1: i32) -> (i32, i32) {
    %c0_i32 = arith.constant 0 : i32
    %c0_i32_0 = arith.constant 0 : i32
    return %arg0, %c0_i32 : i32, i32
  }
  func.func @transform_1(%arg0: i32, %arg1: i32) -> (i32, i32) {
    %c0_i32 = arith.constant 0 : i32
    %c0_i32_0 = arith.constant 0 : i32
    return %c0_i32, %arg1 : i32, i32
  }
  func.func @transform_2(%arg0: i32, %arg1: i32) -> (i32, i32) {
    %c0_i32 = arith.constant 0 : i32
    %c0_i32_0 = arith.constant 0 : i32
    return %c0_i32, %arg1 : i32, i32
  }
  func.func @transform_3(%arg0: i32, %arg1: i32) -> (i32, i32) {
    %c0_i32 = arith.constant 0 : i32
    %c0_i32_0 = arith.constant 0 : i32
    return %c0_i32, %arg1 : i32, i32
  }
  func.func @transform_4(%arg0: i32, %arg1: i32) -> (i32, i32) {
    %c0_i32 = arith.constant 0 : i32
    return %arg0, %arg1 : i32, i32
  }
}

module attributes {stable_mosaic.version = 11 : i64} {
  func.func @_gemm_epilogue_kernel(%arg0: i32, %arg1: i32, %arg2: memref<16x2304xbf16, #tpu.memory_space<vmem>>, %arg3: memref<2304x256xbf16, #tpu.memory_space<vmem>>, %arg4: memref<1x256xf32, #tpu.memory_space<vmem>>, %arg5: memref<1x256xf32, #tpu.memory_space<vmem>>, %arg6: memref<16x256xbf16, #tpu.memory_space<vmem>>) attributes {dimension_semantics = [#tpu.dimension_semantics<parallel>, #tpu.dimension_semantics<parallel>], iteration_bounds = array<i64: 1, 2>, scalar_prefetch = 0 : i64, scratch_operands = 0 : i64, tpu.core_type = #tpu.core_type<tc>, window_params = [{transform_indices = @transform_0, window_bounds = array<i64: 16, 2304>}, {transform_indices = @transform_1, window_bounds = array<i64: 2304, 256>}, {transform_indices = @transform_2, window_bounds = array<i64: 1, 256>}, {transform_indices = @transform_3, window_bounds = array<i64: 1, 256>}, {transform_indices = @transform_4, window_bounds = array<i64: 16, 256>}]} {
    %c0 = arith.constant 0 : index
    %c0_0 = arith.constant 0 : index
    %0 = vector.load %arg2[%c0, %c0_0] : memref<16x2304xbf16, #tpu.memory_space<vmem>>, vector<16x2304xbf16>
    %c0_1 = arith.constant 0 : index
    %c0_2 = arith.constant 0 : index
    %1 = vector.load %arg3[%c0_1, %c0_2] : memref<2304x256xbf16, #tpu.memory_space<vmem>>, vector<2304x256xbf16>
    %cst = arith.constant dense<0.000000e+00> : vector<16x256xf32>
    %2 = tpu.matmul %0, %1, %cst {dimension_numbers = #tpu.dot_dimension_numbers<[1], [0], [0], [1], [0, 0, 1, 1], [], []>} : vector<16x2304xbf16>, vector<2304x256xbf16>, vector<16x256xf32> -> vector<16x256xf32>
    %c0_3 = arith.constant 0 : index
    %c0_4 = arith.constant 0 : index
    %3 = vector.load %arg4[%c0_3, %c0_4] : memref<1x256xf32, #tpu.memory_space<vmem>>, vector<1x256xf32>
    %4 = vector.broadcast %3 : vector<1x256xf32> to vector<16x256xf32>
    %5 = arith.mulf %2, %4 : vector<16x256xf32>
    %c0_5 = arith.constant 0 : index
    %c0_6 = arith.constant 0 : index
    %6 = vector.load %arg5[%c0_5, %c0_6] : memref<1x256xf32, #tpu.memory_space<vmem>>, vector<1x256xf32>
    %7 = vector.broadcast %6 : vector<1x256xf32> to vector<16x256xf32>
    %8 = arith.addf %5, %7 : vector<16x256xf32>
    %cst_7 = arith.constant 0.000000e+00 : f32
    %9 = vector.broadcast %cst_7 : f32 to vector<16x256xf32>
    %10 = arith.cmpf oge, %8, %9 : vector<16x256xf32>
    %cst_8 = arith.constant 0.00999999977 : f32
    %11 = vector.broadcast %cst_8 : f32 to vector<16x256xf32>
    %12 = arith.mulf %11, %8 : vector<16x256xf32>
    %13 = arith.select %10, %8, %12 : vector<16x256xi1>, vector<16x256xf32>
    %14 = arith.truncf %13 : vector<16x256xf32> to vector<16x256xbf16>
    %c0_9 = arith.constant 0 : index
    %c0_10 = arith.constant 0 : index
    %15 = vector.load %arg6[%c0_9, %c0_10] : memref<16x256xbf16, #tpu.memory_space<vmem>>, vector<16x256xbf16>
    tpu.vector_store %arg6[%c0_9, %c0_10], %14 {strides = array<i32>} : memref<16x256xbf16, #tpu.memory_space<vmem>>, vector<16x256xbf16>,
    return
  }
  func.func @transform_0(%arg0: i32, %arg1: i32) -> (i32, i32) {
    %c0_i32 = arith.constant 0 : i32
    %c0_i32_0 = arith.constant 0 : i32
    return %arg0, %c0_i32 : i32, i32
  }
  func.func @transform_1(%arg0: i32, %arg1: i32) -> (i32, i32) {
    %c0_i32 = arith.constant 0 : i32
    %c0_i32_0 = arith.constant 0 : i32
    return %c0_i32, %arg1 : i32, i32
  }
  func.func @transform_2(%arg0: i32, %arg1: i32) -> (i32, i32) {
    %c0_i32 = arith.constant 0 : i32
    %c0_i32_0 = arith.constant 0 : i32
    return %c0_i32, %arg1 : i32, i32
  }
  func.func @transform_3(%arg0: i32, %arg1: i32) -> (i32, i32) {
    %c0_i32 = arith.constant 0 : i32
    %c0_i32_0 = arith.constant 0 : i32
    return %c0_i32, %arg1 : i32, i32
  }
  func.func @transform_4(%arg0: i32, %arg1: i32) -> (i32, i32) {
    %c0_i32 = arith.constant 0 : i32
    return %arg0, %arg1 : i32, i32
  }
}

module attributes {stable_mosaic.version = 11 : i64} {
  func.func @_gemm_epilogue_kernel(%arg0: i32, %arg1: i32, %arg2: memref<16x2048xbf16, #tpu.memory_space<vmem>>, %arg3: memref<2048x256xbf16, #tpu.memory_space<vmem>>, %arg4: memref<1x256xf32, #tpu.memory_space<vmem>>, %arg5: memref<1x256xf32, #tpu.memory_space<vmem>>, %arg6: memref<16x256xbf16, #tpu.memory_space<vmem>>) attributes {dimension_semantics = [#tpu.dimension_semantics<parallel>, #tpu.dimension_semantics<parallel>], iteration_bounds = array<i64: 1, 4>, scalar_prefetch = 0 : i64, scratch_operands = 0 : i64, tpu.core_type = #tpu.core_type<tc>, window_params = [{transform_indices = @transform_0, window_bounds = array<i64: 16, 2048>}, {transform_indices = @transform_1, window_bounds = array<i64: 2048, 256>}, {transform_indices = @transform_2, window_bounds = array<i64: 1, 256>}, {transform_indices = @transform_3, window_bounds = array<i64: 1, 256>}, {transform_indices = @transform_4, window_bounds = array<i64: 16, 256>}]} {
    %c0 = arith.constant 0 : index
    %c0_0 = arith.constant 0 : index
    %0 = vector.load %arg2[%c0, %c0_0] : memref<16x2048xbf16, #tpu.memory_space<vmem>>, vector<16x2048xbf16>
    %c0_1 = arith.constant 0 : index
    %c0_2 = arith.constant 0 : index
    %1 = vector.load %arg3[%c0_1, %c0_2] : memref<2048x256xbf16, #tpu.memory_space<vmem>>, vector<2048x256xbf16>
    %cst = arith.constant dense<0.000000e+00> : vector<16x256xf32>
    %2 = tpu.matmul %0, %1, %cst {dimension_numbers = #tpu.dot_dimension_numbers<[1], [0], [0], [1], [0, 0, 1, 1], [], []>} : vector<16x2048xbf16>, vector<2048x256xbf16>, vector<16x256xf32> -> vector<16x256xf32>
    %c0_3 = arith.constant 0 : index
    %c0_4 = arith.constant 0 : index
    %3 = vector.load %arg4[%c0_3, %c0_4] : memref<1x256xf32, #tpu.memory_space<vmem>>, vector<1x256xf32>
    %4 = vector.broadcast %3 : vector<1x256xf32> to vector<16x256xf32>
    %5 = arith.mulf %2, %4 : vector<16x256xf32>
    %c0_5 = arith.constant 0 : index
    %c0_6 = arith.constant 0 : index
    %6 = vector.load %arg5[%c0_5, %c0_6] : memref<1x256xf32, #tpu.memory_space<vmem>>, vector<1x256xf32>
    %7 = vector.broadcast %6 : vector<1x256xf32> to vector<16x256xf32>
    %8 = arith.addf %5, %7 : vector<16x256xf32>
    %9 = arith.truncf %8 : vector<16x256xf32> to vector<16x256xbf16>
    %c0_7 = arith.constant 0 : index
    %c0_8 = arith.constant 0 : index
    %10 = vector.load %arg6[%c0_7, %c0_8] : memref<16x256xbf16, #tpu.memory_space<vmem>>, vector<16x256xbf16>
    tpu.vector_store %arg6[%c0_7, %c0_8], %9 {strides = array<i32>} : memref<16x256xbf16, #tpu.memory_space<vmem>>, vector<16x256xbf16>,
    return
  }
  func.func @transform_0(%arg0: i32, %arg1: i32) -> (i32, i32) {
    %c0_i32 = arith.constant 0 : i32
    %c0_i32_0 = arith.constant 0 : i32
    return %arg0, %c0_i32 : i32, i32
  }
  func.func @transform_1(%arg0: i32, %arg1: i32) -> (i32, i32) {
    %c0_i32 = arith.constant 0 : i32
    %c0_i32_0 = arith.constant 0 : i32
    return %c0_i32, %arg1 : i32, i32
  }
  func.func @transform_2(%arg0: i32, %arg1: i32) -> (i32, i32) {
    %c0_i32 = arith.constant 0 : i32
    %c0_i32_0 = arith.constant 0 : i32
    return %c0_i32, %arg1 : i32, i32
  }
  func.func @transform_3(%arg0: i32, %arg1: i32) -> (i32, i32) {
    %c0_i32 = arith.constant 0 : i32
    %c0_i32_0 = arith.constant 0 : i32
    return %c0_i32, %arg1 : i32, i32
  }
  func.func @transform_4(%arg0: i32, %arg1: i32) -> (i32, i32) {
    %c0_i32 = arith.constant 0 : i32
    return %arg0, %arg1 : i32, i32
  }
}

module attributes {stable_mosaic.version = 11 : i64} {
  func.func @_gemm_epilogue_kernel(%arg0: i32, %arg1: i32, %arg2: memref<16x1024xbf16, #tpu.memory_space<vmem>>, %arg3: memref<1024x256xbf16, #tpu.memory_space<vmem>>, %arg4: memref<1x256xf32, #tpu.memory_space<vmem>>, %arg5: memref<1x256xf32, #tpu.memory_space<vmem>>, %arg6: memref<16x256xbf16, #tpu.memory_space<vmem>>) attributes {dimension_semantics = [#tpu.dimension_semantics<parallel>, #tpu.dimension_semantics<parallel>], iteration_bounds = array<i64: 1, 2>, scalar_prefetch = 0 : i64, scratch_operands = 0 : i64, tpu.core_type = #tpu.core_type<tc>, window_params = [{transform_indices = @transform_0, window_bounds = array<i64: 16, 1024>}, {transform_indices = @transform_1, window_bounds = array<i64: 1024, 256>}, {transform_indices = @transform_2, window_bounds = array<i64: 1, 256>}, {transform_indices = @transform_3, window_bounds = array<i64: 1, 256>}, {transform_indices = @transform_4, window_bounds = array<i64: 16, 256>}]} {
    %c0 = arith.constant 0 : index
    %c0_0 = arith.constant 0 : index
    %0 = vector.load %arg2[%c0, %c0_0] : memref<16x1024xbf16, #tpu.memory_space<vmem>>, vector<16x1024xbf16>
    %c0_1 = arith.constant 0 : index
    %c0_2 = arith.constant 0 : index
    %1 = vector.load %arg3[%c0_1, %c0_2] : memref<1024x256xbf16, #tpu.memory_space<vmem>>, vector<1024x256xbf16>
    %cst = arith.constant dense<0.000000e+00> : vector<16x256xf32>
    %2 = tpu.matmul %0, %1, %cst {dimension_numbers = #tpu.dot_dimension_numbers<[1], [0], [0], [1], [0, 0, 1, 1], [], []>} : vector<16x1024xbf16>, vector<1024x256xbf16>, vector<16x256xf32> -> vector<16x256xf32>
    %c0_3 = arith.constant 0 : index
    %c0_4 = arith.constant 0 : index
    %3 = vector.load %arg4[%c0_3, %c0_4] : memref<1x256xf32, #tpu.memory_space<vmem>>, vector<1x256xf32>
    %4 = vector.broadcast %3 : vector<1x256xf32> to vector<16x256xf32>
    %5 = arith.mulf %2, %4 : vector<16x256xf32>
    %c0_5 = arith.constant 0 : index
    %c0_6 = arith.constant 0 : index
    %6 = vector.load %arg5[%c0_5, %c0_6] : memref<1x256xf32, #tpu.memory_space<vmem>>, vector<1x256xf32>
    %7 = vector.broadcast %6 : vector<1x256xf32> to vector<16x256xf32>
    %8 = arith.addf %5, %7 : vector<16x256xf32>
    %9 = arith.truncf %8 : vector<16x256xf32> to vector<16x256xbf16>
    %c0_7 = arith.constant 0 : index
    %c0_8 = arith.constant 0 : index
    %10 = vector.load %arg6[%c0_7, %c0_8] : memref<16x256xbf16, #tpu.memory_space<vmem>>, vector<16x256xbf16>
    tpu.vector_store %arg6[%c0_7, %c0_8], %9 {strides = array<i32>} : memref<16x256xbf16, #tpu.memory_space<vmem>>, vector<16x256xbf16>,
    return
  }
  func.func @transform_0(%arg0: i32, %arg1: i32) -> (i32, i32) {
    %c0_i32 = arith.constant 0 : i32
    %c0_i32_0 = arith.constant 0 : i32
    return %arg0, %c0_i32 : i32, i32
  }
  func.func @transform_1(%arg0: i32, %arg1: i32) -> (i32, i32) {
    %c0_i32 = arith.constant 0 : i32
    %c0_i32_0 = arith.constant 0 : i32
    return %c0_i32, %arg1 : i32, i32
  }
  func.func @transform_2(%arg0: i32, %arg1: i32) -> (i32, i32) {
    %c0_i32 = arith.constant 0 : i32
    %c0_i32_0 = arith.constant 0 : i32
    return %c0_i32, %arg1 : i32, i32
  }
  func.func @transform_3(%arg0: i32, %arg1: i32) -> (i32, i32) {
    %c0_i32 = arith.constant 0 : i32
    %c0_i32_0 = arith.constant 0 : i32
    return %c0_i32, %arg1 : i32, i32
  }
  func.func @transform_4(%arg0: i32, %arg1: i32) -> (i32, i32) {
    %c0_i32 = arith.constant 0 : i32
    return %arg0, %arg1 : i32, i32
  }
}

module attributes {stable_mosaic.version = 11 : i64} {
  func.func @_gemm_epilogue_kernel(%arg0: i32, %arg1: i32, %arg2: memref<32x512xbf16, #tpu.memory_space<vmem>>, %arg3: memref<512x128xbf16, #tpu.memory_space<vmem>>, %arg4: memref<1x128xf32, #tpu.memory_space<vmem>>, %arg5: memref<1x128xf32, #tpu.memory_space<vmem>>, %arg6: memref<32x128xbf16, #tpu.memory_space<vmem>>) attributes {dimension_semantics = [#tpu.dimension_semantics<parallel>, #tpu.dimension_semantics<parallel>], iteration_bounds = array<i64: 1, 2>, scalar_prefetch = 0 : i64, scratch_operands = 0 : i64, tpu.core_type = #tpu.core_type<tc>, window_params = [{transform_indices = @transform_0, window_bounds = array<i64: 32, 512>}, {transform_indices = @transform_1, window_bounds = array<i64: 512, 128>}, {transform_indices = @transform_2, window_bounds = array<i64: 1, 128>}, {transform_indices = @transform_3, window_bounds = array<i64: 1, 128>}, {transform_indices = @transform_4, window_bounds = array<i64: 32, 128>}]} {
    %c0 = arith.constant 0 : index
    %c0_0 = arith.constant 0 : index
    %0 = vector.load %arg2[%c0, %c0_0] : memref<32x512xbf16, #tpu.memory_space<vmem>>, vector<32x512xbf16>
    %c0_1 = arith.constant 0 : index
    %c0_2 = arith.constant 0 : index
    %1 = vector.load %arg3[%c0_1, %c0_2] : memref<512x128xbf16, #tpu.memory_space<vmem>>, vector<512x128xbf16>
    %cst = arith.constant dense<0.000000e+00> : vector<32x128xf32>
    %2 = tpu.matmul %0, %1, %cst {dimension_numbers = #tpu.dot_dimension_numbers<[1], [0], [0], [1], [0, 0, 1, 1], [], []>} : vector<32x512xbf16>, vector<512x128xbf16>, vector<32x128xf32> -> vector<32x128xf32>
    %c0_3 = arith.constant 0 : index
    %c0_4 = arith.constant 0 : index
    %3 = vector.load %arg4[%c0_3, %c0_4] : memref<1x128xf32, #tpu.memory_space<vmem>>, vector<1x128xf32>
    %4 = vector.broadcast %3 : vector<1x128xf32> to vector<32x128xf32>
    %5 = arith.mulf %2, %4 : vector<32x128xf32>
    %c0_5 = arith.constant 0 : index
    %c0_6 = arith.constant 0 : index
    %6 = vector.load %arg5[%c0_5, %c0_6] : memref<1x128xf32, #tpu.memory_space<vmem>>, vector<1x128xf32>
    %7 = vector.broadcast %6 : vector<1x128xf32> to vector<32x128xf32>
    %8 = arith.addf %5, %7 : vector<32x128xf32>
    %9 = arith.truncf %8 : vector<32x128xf32> to vector<32x128xbf16>
    %c0_7 = arith.constant 0 : index
    %c0_8 = arith.constant 0 : index
    %10 = vector.load %arg6[%c0_7, %c0_8] : memref<32x128xbf16, #tpu.memory_space<vmem>>, vector<32x128xbf16>
    tpu.vector_store %arg6[%c0_7, %c0_8], %9 {strides = array<i32>} : memref<32x128xbf16, #tpu.memory_space<vmem>>, vector<32x128xbf16>,
    return
  }
  func.func @transform_0(%arg0: i32, %arg1: i32) -> (i32, i32) {
    %c0_i32 = arith.constant 0 : i32
    %c0_i32_0 = arith.constant 0 : i32
    return %arg0, %c0_i32 : i32, i32
  }
  func.func @transform_1(%arg0: i32, %arg1: i32) -> (i32, i32) {
    %c0_i32 = arith.constant 0 : i32
    %c0_i32_0 = arith.constant 0 : i32
    return %c0_i32, %arg1 : i32, i32
  }
  func.func @transform_2(%arg0: i32, %arg1: i32) -> (i32, i32) {
    %c0_i32 = arith.constant 0 : i32
    %c0_i32_0 = arith.constant 0 : i32
    return %c0_i32, %arg1 : i32, i32
  }
  func.func @transform_3(%arg0: i32, %arg1: i32) -> (i32, i32) {
    %c0_i32 = arith.constant 0 : i32
    %c0_i32_0 = arith.constant 0 : i32
    return %c0_i32, %arg1 : i32, i32
  }
  func.func @transform_4(%arg0: i32, %arg1: i32) -> (i32, i32) {
    %c0_i32 = arith.constant 0 : i32
    return %arg0, %arg1 : i32, i32
  }
}

module attributes {stable_mosaic.version = 11 : i64} {
  func.func @_gemm_epilogue_kernel(%arg0: i32, %arg1: i32, %arg2: memref<64x256xbf16, #tpu.memory_space<vmem>>, %arg3: memref<256x128xbf16, #tpu.memory_space<vmem>>, %arg4: memref<1x128xf32, #tpu.memory_space<vmem>>, %arg5: memref<1x128xf32, #tpu.memory_space<vmem>>, %arg6: memref<64x128xbf16, #tpu.memory_space<vmem>>) attributes {dimension_semantics = [#tpu.dimension_semantics<parallel>, #tpu.dimension_semantics<parallel>], iteration_bounds = array<i64: 2, 1>, scalar_prefetch = 0 : i64, scratch_operands = 0 : i64, tpu.core_type = #tpu.core_type<tc>, window_params = [{transform_indices = @transform_0, window_bounds = array<i64: 64, 256>}, {transform_indices = @transform_1, window_bounds = array<i64: 256, 128>}, {transform_indices = @transform_2, window_bounds = array<i64: 1, 128>}, {transform_indices = @transform_3, window_bounds = array<i64: 1, 128>}, {transform_indices = @transform_4, window_bounds = array<i64: 64, 128>}]} {
    %c0 = arith.constant 0 : index
    %c0_0 = arith.constant 0 : index
    %0 = vector.load %arg2[%c0, %c0_0] : memref<64x256xbf16, #tpu.memory_space<vmem>>, vector<64x256xbf16>
    %c0_1 = arith.constant 0 : index
    %c0_2 = arith.constant 0 : index
    %1 = vector.load %arg3[%c0_1, %c0_2] : memref<256x128xbf16, #tpu.memory_space<vmem>>, vector<256x128xbf16>
    %cst = arith.constant dense<0.000000e+00> : vector<64x128xf32>
    %2 = tpu.matmul %0, %1, %cst {dimension_numbers = #tpu.dot_dimension_numbers<[1], [0], [0], [1], [0, 0, 1, 1], [], []>} : vector<64x256xbf16>, vector<256x128xbf16>, vector<64x128xf32> -> vector<64x128xf32>
    %c0_3 = arith.constant 0 : index
    %c0_4 = arith.constant 0 : index
    %3 = vector.load %arg4[%c0_3, %c0_4] : memref<1x128xf32, #tpu.memory_space<vmem>>, vector<1x128xf32>
    %4 = vector.broadcast %3 : vector<1x128xf32> to vector<64x128xf32>
    %5 = arith.mulf %2, %4 : vector<64x128xf32>
    %c0_5 = arith.constant 0 : index
    %c0_6 = arith.constant 0 : index
    %6 = vector.load %arg5[%c0_5, %c0_6] : memref<1x128xf32, #tpu.memory_space<vmem>>, vector<1x128xf32>
    %7 = vector.broadcast %6 : vector<1x128xf32> to vector<64x128xf32>
    %8 = arith.addf %5, %7 : vector<64x128xf32>
    %9 = arith.truncf %8 : vector<64x128xf32> to vector<64x128xbf16>
    %c0_7 = arith.constant 0 : index
    %c0_8 = arith.constant 0 : index
    %10 = vector.load %arg6[%c0_7, %c0_8] : memref<64x128xbf16, #tpu.memory_space<vmem>>, vector<64x128xbf16>
    tpu.vector_store %arg6[%c0_7, %c0_8], %9 {strides = array<i32>} : memref<64x128xbf16, #tpu.memory_space<vmem>>, vector<64x128xbf16>,
    return
  }
  func.func @transform_0(%arg0: i32, %arg1: i32) -> (i32, i32) {
    %c0_i32 = arith.constant 0 : i32
    %c0_i32_0 = arith.constant 0 : i32
    return %arg0, %c0_i32 : i32, i32
  }
  func.func @transform_1(%arg0: i32, %arg1: i32) -> (i32, i32) {
    %c0_i32 = arith.constant 0 : i32
    %c0_i32_0 = arith.constant 0 : i32
    return %c0_i32, %arg1 : i32, i32
  }
  func.func @transform_2(%arg0: i32, %arg1: i32) -> (i32, i32) {
    %c0_i32 = arith.constant 0 : i32
    %c0_i32_0 = arith.constant 0 : i32
    return %c0_i32, %arg1 : i32, i32
  }
  func.func @transform_3(%arg0: i32, %arg1: i32) -> (i32, i32) {
    %c0_i32 = arith.constant 0 : i32
    %c0_i32_0 = arith.constant 0 : i32
    return %c0_i32, %arg1 : i32, i32
  }
  func.func @transform_4(%arg0: i32, %arg1: i32) -> (i32, i32) {
    %c0_i32 = arith.constant 0 : i32
    return %arg0, %arg1 : i32, i32
  }
}

module attributes {stable_mosaic.version = 11 : i64} {
  func.func @_gemm_epilogue_kernel(%arg0: i32, %arg1: i32, %arg2: memref<256x384xbf16, #tpu.memory_space<vmem>>, %arg3: memref<384x128xbf16, #tpu.memory_space<vmem>>, %arg4: memref<1x128xf32, #tpu.memory_space<vmem>>, %arg5: memref<1x128xf32, #tpu.memory_space<vmem>>, %arg6: memref<256x128xf32, #tpu.memory_space<vmem>>) attributes {dimension_semantics = [#tpu.dimension_semantics<parallel>, #tpu.dimension_semantics<parallel>], iteration_bounds = array<i64: 2, 1>, scalar_prefetch = 0 : i64, scratch_operands = 0 : i64, tpu.core_type = #tpu.core_type<tc>, window_params = [{transform_indices = @transform_0, window_bounds = array<i64: 256, 384>}, {transform_indices = @transform_1, window_bounds = array<i64: 384, 128>}, {transform_indices = @transform_2, window_bounds = array<i64: 1, 128>}, {transform_indices = @transform_3, window_bounds = array<i64: 1, 128>}, {transform_indices = @transform_4, window_bounds = array<i64: 256, 128>}]} {
    %c0 = arith.constant 0 : index
    %c0_0 = arith.constant 0 : index
    %0 = vector.load %arg2[%c0, %c0_0] : memref<256x384xbf16, #tpu.memory_space<vmem>>, vector<256x384xbf16>
    %c0_1 = arith.constant 0 : index
    %c0_2 = arith.constant 0 : index
    %1 = vector.load %arg3[%c0_1, %c0_2] : memref<384x128xbf16, #tpu.memory_space<vmem>>, vector<384x128xbf16>
    %cst = arith.constant dense<0.000000e+00> : vector<256x128xf32>
    %2 = tpu.matmul %0, %1, %cst {dimension_numbers = #tpu.dot_dimension_numbers<[1], [0], [0], [1], [0, 0, 1, 1], [], []>} : vector<256x384xbf16>, vector<384x128xbf16>, vector<256x128xf32> -> vector<256x128xf32>
    %c0_3 = arith.constant 0 : index
    %c0_4 = arith.constant 0 : index
    %3 = vector.load %arg4[%c0_3, %c0_4] : memref<1x128xf32, #tpu.memory_space<vmem>>, vector<1x128xf32>
    %4 = vector.broadcast %3 : vector<1x128xf32> to vector<256x128xf32>
    %5 = arith.mulf %2, %4 : vector<256x128xf32>
    %c0_5 = arith.constant 0 : index
    %c0_6 = arith.constant 0 : index
    %6 = vector.load %arg5[%c0_5, %c0_6] : memref<1x128xf32, #tpu.memory_space<vmem>>, vector<1x128xf32>
    %7 = vector.broadcast %6 : vector<1x128xf32> to vector<256x128xf32>
    %8 = arith.addf %5, %7 : vector<256x128xf32>
    %c0_7 = arith.constant 0 : index
    %c0_8 = arith.constant 0 : index
    %9 = vector.load %arg6[%c0_7, %c0_8] : memref<256x128xf32, #tpu.memory_space<vmem>>, vector<256x128xf32>
    tpu.vector_store %arg6[%c0_7, %c0_8], %8 {strides = array<i32>} : memref<256x128xf32, #tpu.memory_space<vmem>>, vector<256x128xf32>,
    return
  }
  func.func @transform_0(%arg0: i32, %arg1: i32) -> (i32, i32) {
    %c0_i32 = arith.constant 0 : i32
    %c0_i32_0 = arith.constant 0 : i32
    return %arg0, %c0_i32 : i32, i32
  }
  func.func @transform_1(%arg0: i32, %arg1: i32) -> (i32, i32) {
    %c0_i32 = arith.constant 0 : i32
    %c0_i32_0 = arith.constant 0 : i32
    return %c0_i32, %arg1 : i32, i32
  }
  func.func @transform_2(%arg0: i32, %arg1: i32) -> (i32, i32) {
    %c0_i32 = arith.constant 0 : i32
    %c0_i32_0 = arith.constant 0 : i32
    return %c0_i32, %arg1 : i32, i32
  }
  func.func @transform_3(%arg0: i32, %arg1: i32) -> (i32, i32) {
    %c0_i32 = arith.constant 0 : i32
    %c0_i32_0 = arith.constant 0 : i32
    return %c0_i32, %arg1 : i32, i32
  }
  func.func @transform_4(%arg0: i32, %arg1: i32) -> (i32, i32) {
    %c0_i32 = arith.constant 0 : i32
    return %arg0, %arg1 : i32, i32
  }
}

</mosaic_0001>

<bundles_post_ra>
// kernel: autoencoder_forward.9
= control target key start
LH: loop header
LB: loop body
LE: loop exit
PB: predicated region body
PF: predicated region fallthrough
CT: control target
= control target key end

     0   :  { %s840_s15 = smov 0   ;;  %s842_s16 = smov 0   ;;  %s918_s0 = inlined_call_operand.vmem [shape: bf16[128,128], index: 0, kind: input, shape index: {}]   ;;  %s919_s1 = inlined_call_operand.vmem [shape: bf16[128,128], index: 1, kind: input, shape index: {}]   ;;  %s920_s2 = inlined_call_operand.vmem [shape: f32[1,128], index: 2, kind: input, shape index: {}]   ;;  %s921_s3 = inlined_call_operand.vmem [shape: f32[1,128], index: 3, kind: input, shape index: {}]   ;;  %s922_s4 = inlined_call_operand.vmem [shape: bf16[128,128], index: 4, kind: output, shape index: {}]  }
   0x1   :  { %s844_s17 = smov 0  }
   0x2 LB: > { %s26_s18 = sadd.s32 1, %s809_s16  ;;  %p643_p0 = scmp.ge.s32.totalorder %s813_s17, 1  ;;  %s813_s17 = sphi %s844_s17, %s14_s17   ;;  %s809_s16 = sphi %s842_s16, %s924_s16   ;;  %s805_s15 = sphi %s840_s15, %s923_s15  }
   0x3   : > { %p28_p1 = scmp.ge.s32.totalorder %s26_s18, 2  ;;  %p202_p2 = scmp.lt.s32.totalorder %s813_s17, 3 }
   0x5   : > { %s926_s18 = smov (%p28_p1, %s26_s18), 0  ;;  %p203_p3 = pnand %p643_p0, %p202_p2 }
   0x6   : > { %v779_v0 = vld [vmem:[%s919_s1] sm:$0xff] (!%p203_p3)   ;;  %s644_s21 = sshll.u32 (!%p203_p3), %s805_s15, 3  ;;  %v780_v1 = vld [vmem:[%s919_s1 + $0x8] sm:$0xff] (!%p203_p3)   ;;  %v781_v2 = vld [vmem:[%s919_s1 + $0x10] sm:$0xff] (!%p203_p3)  }
   0x7   : > { %206 = sbr.rel (%p203_p3) target bundleno = 266 (0x10a), region = 36  ;;  %p242_p4 = scmp.lt.s32.totalorder (!%p203_p3), %s644_s21, 15  ;;  %715 = vmatprep.subr.bf16.mxu0 (!%p203_p3), %v779_v0  ;;  %739 = vmatprep.subr.bf16.mxu1 (!%p203_p3), %v779_v0  ;;  %v782_v3 = vld [vmem:[%s919_s1 + $0x18] sm:$0xff] (!%p203_p3)   ;;  %v783_v6 = vld [vmem:[%s919_s1 + $0x20] sm:$0xff] (!%p203_p3)   ;;  %v784_v7 = vld [vmem:[%s919_s1 + $0x28] sm:$0xff] (!%p203_p3)  }
   0x8   : > { %716 = vmatpush3.bf16.msra.mxu0 (!%p203_p3), %v779_v0  ;;  %747 = vmatpush3.bf16.msra.mxu1 (!%p203_p3), %v779_v0  ;;  %v785_v8 = vld [vmem:[%s919_s1 + $0x30] sm:$0xff] (!%p203_p3)   ;;  %v786_v9 = vld [vmem:[%s919_s1 + $0x38] sm:$0xff] (!%p203_p3)   ;;  %v660_v12 = vld [vmem:[%s920_s2] ss:$0 sm:$0xff] (!%p203_p3) }
   0x9   : > { %717 = vmatprep.subr.bf16.mxu0 (!%p203_p3), %v780_v1  ;;  %740 = vmatprep.subr.bf16.mxu1 (!%p203_p3), %v780_v1  ;;  %v661_v14 = vld [vmem:[%s921_s3] ss:$0 sm:$0xff] (!%p203_p3) }
   0xc   : > { %718 = vmatpush3.bf16.msra.mxu0 (!%p203_p3), %v780_v1  ;;  %748 = vmatpush3.bf16.msra.mxu1 (!%p203_p3), %v780_v1 }
   0xd   : > { %719 = vmatprep.subr.bf16.mxu0 (!%p203_p3), %v781_v2  ;;  %741 = vmatprep.subr.bf16.mxu1 (!%p203_p3), %v781_v2 }
   0xe   : > { %s928_s21 = smov (!%p242_p4, %s644_s21), 15 }
   0xf   : > { %s645_s26 = sshll.u32 %s928_s21, 2 }
  0x10   : > { %s875_s29 = scalar_lea.vmem %s918_s0, %s645_s26  ;;  %720 = vmatpush3.bf16.msra.mxu0 %v781_v2  ;;  %749 = vmatpush3.bf16.msra.mxu1 %v781_v2  ;;  %s264_s24 = scalar_lea.vmem %s922_s4, %s645_s26 }
  0x11   : > { %v787_v4 = vld [vmem:[%s875_s29] sm:$0xff]   ;;  %v788_v5 = vld [vmem:[%s875_s29 + $0x10] sm:$0xff]   ;;  %721 = vmatprep.subr.bf16.mxu0 %v782_v3  ;;  %742 = vmatprep.subr.bf16.mxu1 %v782_v3  ;;  %v789_v10 = vld [vmem:[%s875_s29 + $0x8] sm:$0xff]  }
  0x12   : > { %731 = vmatprep.mubr.bf16.mxu0 %v787_v4  ;;  %735 = vmatprep.mubr.bf16.mxu1 %v788_v5  ;;  %v790_v11 = vld [vmem:[%s875_s29 + $0x18] sm:$0xff]  }
  0x14   : > { %722 = vmatpush3.bf16.msra.mxu0 %v782_v3  ;;  %750 = vmatpush3.bf16.msra.mxu1 %v782_v3 }
  0x15   : > { %723 = vmatprep.subr.bf16.mxu0 %v783_v6  ;;  %743 = vmatprep.subr.bf16.mxu1 %v783_v6 }
  0x18   : > { %724 = vmatpush3.bf16.msra.mxu0 %v783_v6  ;;  %751 = vmatpush3.bf16.msra.mxu1 %v783_v6 }
  0x19   : > { %725 = vmatprep.subr.bf16.mxu0 %v784_v7  ;;  %744 = vmatprep.subr.bf16.mxu1 %v784_v7 }
  0x1c   : > { %726 = vmatpush3.bf16.msra.mxu0 %v784_v7  ;;  %752 = vmatpush3.bf16.msra.mxu1 %v784_v7 }
  0x1d   : > { %727 = vmatprep.subr.bf16.mxu0 %v785_v8  ;;  %745 = vmatprep.subr.bf16.mxu1 %v785_v8 }
  0x20   : > { %728 = vmatpush3.bf16.msra.mxu0 %v785_v8  ;;  %753 = vmatpush3.bf16.msra.mxu1 %v785_v8 }
  0x21   : > { %729 = vmatprep.subr.bf16.mxu0 %v786_v9  ;;  %746 = vmatprep.subr.bf16.mxu1 %v786_v9 }
  0x24   : > { %730 = vmatpush3.bf16.msra.mxu0 %v786_v9  ;;  %754 = vmatpush3.bf16.msra.mxu1 %v786_v9 }
  0x27   : > { %732 = vmatmul.mubr.bf16.vlgmr.msra.gmra.mrb[0].mxu0 %v789_v10  ;;  %736 = vmatmul.mubr.bf16.vlgmr.msra.gmra.mrb[0].mxu1 %v790_v11 }
  0xfa   : > { %v733_v13 = vpop.f32.mrb[0].mxu0  ;;  %v737_v15 = vpop.f32.mrb[0].mxu1 }
  0xfb   : > { %v437_v16 = vmul.f32 %v733_v13, %v660_v12  ;;  %v441_v17 = vmul.f32 %v737_v15, %v660_v12  ;;  %v397_v18 = vpop.f32.mrb[1].mxu0  ;;  %v413_v19 = vpop.f32.mrb[1].mxu1 }
  0xfc   : > { %v435_v20 = vmul.f32 %v660_v12, %v397_v18  ;;  %v439_v21 = vmul.f32 %v660_v12, %v413_v19  ;;  %v734_v22 = vpop.f32.mrb[2].mxu0  ;;  %v738_v23 = vpop.f32.mrb[2].mxu1 }
  0xfd   : > { %v452_v24 = vadd.f32 %v661_v14, %v437_v16  ;;  %v456_v25 = vadd.f32 %v661_v14, %v441_v17  ;;  %v438_v26 = vmul.f32 %v734_v22, %v660_v12  ;;  %v442_v27 = vmul.f32 %v738_v23, %v660_v12  ;;  %v400_v28 = vpop.f32.mrb[3].mxu0  ;;  %v416_v29 = vpop.f32.mrb[3].mxu1 }
  0xfe   : > { %v450_v30 = vadd.f32 %v661_v14, %v435_v20  ;;  %v454_v31 = vadd.f32 %v661_v14, %v439_v21  ;;  %v436_v32 = vmul.f32 %v660_v12, %v400_v28  ;;  %v440_v33 = vmul.f32 %v660_v12, %v416_v29 }
  0xff   : > { %vm460_vm0 = vcmp.ge.f32.partialorder %v452_v24, 0.0  ;;  %v468_v34 = vmul.f32 0.01, %v452_v24  ;;  %vm464_vm1 = vcmp.ge.f32.partialorder %v456_v25, 0.0  ;;  %v472_v35 = vmul.f32 0.01, %v456_v25 }
 0x100   : > { %vm458_vm2 = vcmp.ge.f32.partialorder %v450_v30, 0.0  ;;  %v466_v36 = vmul.f32 0.01, %v450_v30  ;;  %vm462_vm3 = vcmp.ge.f32.partialorder %v454_v31, 0.0  ;;  %v470_v37 = vmul.f32 0.01, %v454_v31 }
 0x101   : > { %v453_v38 = vadd.f32 %v661_v14, %v438_v26  ;;  %v457_v39 = vadd.f32 %v661_v14, %v442_v27  ;;  %v476_v40 = vsel %vm460_vm0, %v452_v24, %v468_v34  ;;  %v480_v41 = vsel %vm464_vm1, %v456_v25, %v472_v35 }
 0x102   : > { %v451_v42 = vadd.f32 %v661_v14, %v436_v32  ;;  %v455_v43 = vadd.f32 %v661_v14, %v440_v33  ;;  %v474_v48 = vsel %vm458_vm2, %v450_v30, %v466_v36  ;;  %v478_v49 = vsel %vm462_vm3, %v454_v31, %v470_v37 }
 0x103   : > { %vm461_vm4 = vcmp.ge.f32.partialorder %v453_v38, 0.0  ;;  %v469_v44 = vmul.f32 0.01, %v453_v38  ;;  %vm465_vm5 = vcmp.ge.f32.partialorder %v457_v39, 0.0  ;;  %v473_v45 = vmul.f32 0.01, %v457_v39 }
 0x104   : > { %vm459_vm6 = vcmp.ge.f32.partialorder %v451_v42, 0.0  ;;  %v467_v46 = vmul.f32 0.01, %v451_v42  ;;  %vm463_vm7 = vcmp.ge.f32.partialorder %v455_v43, 0.0  ;;  %v471_v47 = vmul.f32 0.01, %v455_v43 }
 0x105   : > { %v477_v50 = vsel %vm461_vm4, %v453_v38, %v469_v44  ;;  %v481_v51 = vsel %vm465_vm5, %v457_v39, %v473_v45 }
 0x106   : > { %v688_v52 = vpack.c.bf16 %v477_v50, %v476_v40  ;;  %v698_v53 = vpack.c.bf16 %v481_v51, %v480_v41  ;;  %v475_v54 = vsel %vm459_vm6, %v451_v42, %v467_v46  ;;  %v479_v55 = vsel %vm463_vm7, %v455_v43, %v471_v47 }
 0x107   : > { %v683_v56 = vpack.c.bf16 %v475_v54, %v474_v48  ;;  %v693_v57 = vpack.c.bf16 %v479_v55, %v478_v49 }
 0x108   : > { %700 = vst [vmem:[%s264_s24 + $0x8] sm:$0xff] %v688_v52   ;;  %702 = vst [vmem:[%s264_s24 + $0x18] sm:$0xff] %v698_v53  }
 0x109   : > { %684 = vst [vmem:[%s264_s24] sm:$0xff] %v683_v56   ;;  %701 = vst [vmem:[%s264_s24 + $0x10] sm:$0xff] %v693_v57  }
 0x10a PF: > { %s14_s17 = sadd.s32 1, %s813_s17   ;;  %s923_s15 = smov %s809_s16 }
 0x10b   : > { %p11_p5 = scmp.ge.s32.totalorder %s14_s17, 4   ;;  %s924_s16 = smov %s926_s18 }
 0x10d   :  { %13 = sbr.rel (!%p11_p5) target bundleno = 2 (0x2), region = 75 }

// kernel: autoencoder_forward.10
= control target key start
LH: loop header
LB: loop body
LE: loop exit
PB: predicated region body
PF: predicated region fallthrough
CT: control target
= control target key end

     0   :  { %s1161_s15 = smov 0   ;;  %s1163_s16 = smov 0   ;;  %s1334_s0 = inlined_call_operand.vmem [shape: bf16[32,640], index: 0, kind: input, shape index: {}]   ;;  %s1335_s1 = inlined_call_operand.vmem [shape: bf16[640,128], index: 1, kind: input, shape index: {}]   ;;  %s1336_s2 = inlined_call_operand.vmem [shape: f32[1,128], index: 2, kind: input, shape index: {}]   ;;  %s1337_s3 = inlined_call_operand.vmem [shape: f32[1,128], index: 3, kind: input, shape index: {}]   ;;  %s1338_s4 = inlined_call_operand.vmem [shape: bf16[32,128], index: 4, kind: output, shape index: {}]  }
   0x1   :  { %s1165_s17 = smov 0  }
   0x2 LB: > { %s26_s18 = sadd.s32 1, %s1128_s16  ;;  %p900_p0 = scmp.ge.s32.totalorder %s1132_s17, 1  ;;  %s1132_s17 = sphi %s1165_s17, %s14_s17   ;;  %s1128_s16 = sphi %s1163_s16, %s1340_s16   ;;  %s1124_s15 = sphi %s1161_s15, %s1339_s15  }
   0x3   : > { %p28_p1 = scmp.ge.s32.totalorder %s26_s18, 2  ;;  %p203_p2 = scmp.lt.s32.totalorder %s1132_s17, 3 }
   0x5   : > { %s1342_s18 = smov (%p28_p1, %s26_s18), 0  ;;  %p204_p3 = pnand %p900_p0, %p203_p2 }
   0x6   : > { %v1063_v0 = vld [vmem:[%s1335_s1 + $0x40] sm:$0xff] (!%p204_p3)   ;;  %v1067_v4 = vld [vmem:[%s1335_s1 + $0x48] sm:$0xff] (!%p204_p3)   ;;  %v1071_v8 = vld [vmem:[%s1335_s1 + $0x50] sm:$0xff] (!%p204_p3)   ;;  %s901_s27 = sshll.u32 (!%p204_p3), %s1124_s15, 1  ;;  %v1134_v34 = vmov (!%p204_p3), 0.0   ;;  %vm1135_vm0 = vmmov (!%p204_p3), 0  }
   0x7   : > { %207 = sbr.rel (%p204_p3) target bundleno = 298 (0x12a), region = 36  ;;  %v1064_v1 = vld [vmem:[%s1335_s1 + $0xc0] sm:$0xff] (!%p204_p3)   ;;  %963 = vmatprep.subr.bf16.mxu0 (!%p204_p3), %v1063_v0  ;;  %v1068_v5 = vld [vmem:[%s1335_s1 + $0xc8] sm:$0xff] (!%p204_p3)   ;;  %v1072_v9 = vld [vmem:[%s1335_s1 + $0xd0] sm:$0xff] (!%p204_p3)   ;;  %p244_p4 = scmp.lt.s32.totalorder (!%p204_p3), %s901_s27, 3 }
   0x8   : > { %v1065_v2 = vld [vmem:[%s1335_s1] sm:$0xff] (!%p204_p3)   ;;  %985 = vmatprep.subr.bf16.mxu1 (!%p204_p3), %v1064_v1  ;;  %v1069_v6 = vld [vmem:[%s1335_s1 + $0x8] sm:$0xff] (!%p204_p3)   ;;  %v1073_v10 = vld [vmem:[%s1335_s1 + $0x10] sm:$0xff] (!%p204_p3)  }
   0x9   : > { %v1066_v3 = vld [vmem:[%s1335_s1 + $0x80] sm:$0xff] (!%p204_p3)   ;;  %964 = vmatpush3.bf16.msra.mxu0 (!%p204_p3), %v1065_v2  ;;  %v1070_v7 = vld [vmem:[%s1335_s1 + $0x88] sm:$0xff] (!%p204_p3)   ;;  %v1074_v11 = vld [vmem:[%s1335_s1 + $0x90] sm:$0xff] (!%p204_p3)  }
   0xa   : > { %986 = vmatpush3.bf16.msra.mxu1 (!%p204_p3), %v1066_v3  ;;  %965 = vmatprep.subr.bf16.mxu0 (!%p204_p3), %v1067_v4  ;;  %v1075_v12 = vld [vmem:[%s1335_s1 + $0x58] sm:$0xff] (!%p204_p3)   ;;  %v1079_v16 = vld [vmem:[%s1335_s1 + $0x60] sm:$0xff] (!%p204_p3)   ;;  %v1083_v20 = vld [vmem:[%s1335_s1 + $0x68] sm:$0xff] (!%p204_p3)  }
   0xb   : > { %987 = vmatprep.subr.bf16.mxu1 (!%p204_p3), %v1068_v5  ;;  %v1076_v13 = vld [vmem:[%s1335_s1 + $0xd8] sm:$0xff] (!%p204_p3)   ;;  %v1080_v17 = vld [vmem:[%s1335_s1 + $0xe0] sm:$0xff] (!%p204_p3)   ;;  %v1084_v21 = vld [vmem:[%s1335_s1 + $0xe8] sm:$0xff] (!%p204_p3)  }
   0xc   : > { %v1077_v14 = vld [vmem:[%s1335_s1 + $0x18] sm:$0xff] (!%p204_p3)   ;;  %v1081_v18 = vld [vmem:[%s1335_s1 + $0x20] sm:$0xff] (!%p204_p3)   ;;  %v1085_v22 = vld [vmem:[%s1335_s1 + $0x28] sm:$0xff] (!%p204_p3)  }
   0xd   : > { %966 = vmatpush3.bf16.msra.mxu0 (!%p204_p3), %v1069_v6  ;;  %v1078_v15 = vld [vmem:[%s1335_s1 + $0x98] sm:$0xff] (!%p204_p3)   ;;  %v1082_v19 = vld [vmem:[%s1335_s1 + $0xa0] sm:$0xff] (!%p204_p3)   ;;  %v1086_v23 = vld [vmem:[%s1335_s1 + $0xa8] sm:$0xff] (!%p204_p3)  }
   0xe   : > { %988 = vmatpush3.bf16.msra.mxu1 %v1070_v7  ;;  %967 = vmatprep.subr.bf16.mxu0 %v1071_v8  ;;  %s1344_s27 = smov (!%p244_p4, %s901_s27), 3  ;;  %v1087_v24 = vld [vmem:[%s1335_s1 + $0x70] sm:$0xff]   ;;  %v1091_v28 = vld [vmem:[%s1335_s1 + $0x78] sm:$0xff]   ;;  %v1101_v37 = vld [vmem:[%s1335_s1 + $0x100] sm:$0xff]  }
   0xf   : > { %989 = vmatprep.subr.bf16.mxu1 %v1072_v9  ;;  %v1088_v25 = vld [vmem:[%s1335_s1 + $0xf0] sm:$0xff]   ;;  %s1036_s28 = smul.u32 20, %s1344_s27  ;;  %v1092_v29 = vld [vmem:[%s1335_s1 + $0xf8] sm:$0xff]   ;;  %v1102_v38 = vld [vmem:[%s1335_s1 + $0x108] sm:$0xff]   ;;  %s904_s19 = sshll.u32 %s1344_s27, 2 }
  0x10   : > { %v1089_v26 = vld [vmem:[%s1335_s1 + $0x30] sm:$0xff]   ;;  %v1093_v30 = vld [vmem:[%s1335_s1 + $0x38] sm:$0xff]   ;;  %v1105_v41 = vld [vmem:[%s1335_s1 + $0x120] sm:$0xff]   ;;  %s267_s22 = scalar_lea.vmem %s1338_s4, %s904_s19 }
  0x11   : > { %968 = vmatpush3.bf16.msra.mxu0 %v1073_v10  ;;  %v1090_v27 = vld [vmem:[%s1335_s1 + $0xb0] sm:$0xff]   ;;  %s1278_s12 = scalar_lea.vmem %s1334_s0, %s1036_s28  ;;  %v1094_v31 = vld [vmem:[%s1335_s1 + $0xb8] sm:$0xff]   ;;  %v1106_v42 = vld [vmem:[%s1335_s1 + $0x128] sm:$0xff]  }
  0x12   : > { %990 = vmatpush3.bf16.msra.mxu1 %v1074_v11  ;;  %969 = vmatprep.subr.bf16.mxu0 %v1075_v12  ;;  %v1095_v32 = vld [vmem:[%s1278_s12] ss:$20 sps:$4 sm:$0xff]   ;;  %v1097_v33 = vld [vmem:[%s1278_s12 + $0x4] ss:$20 sps:$4 sm:$0xff]   ;;  %v1098_v35 = vld [vmem:[%s1278_s12 + $0x8] ss:$20 sps:$4 sm:$0xff]  }
  0x13   : > { %991 = vmatprep.subr.bf16.mxu1 %v1076_v13  ;;  %v1100_v36 = vld [vmem:[%s1278_s12 + $0xc] ss:$20 sps:$4 sm:$0xff]   ;;  %654 = vmatprep.mubr.bf16.mxu0 %v1097_v33  ;;  %v1103_v39 = vld [vmem:[%s1335_s1 + $0x110] sm:$0xff]   ;;  %v1104_v40 = vld [vmem:[%s1335_s1 + $0x118] sm:$0xff]  }
  0x14   : > { %695 = vmatprep.mubr.bf16.mxu1 %v1100_v36  ;;  %v1107_v43 = vld [vmem:[%s1335_s1 + $0x130] sm:$0xff]   ;;  %v1108_v44 = vld [vmem:[%s1335_s1 + $0x138] sm:$0xff]   ;;  %v950_v61 = vld [vmem:[%s1336_s2] ss:$0 sm:$0xff] }
  0x15   : > { %970 = vmatpush3.bf16.msra.mxu0 %v1077_v14  ;;  %v1109_v45 = vld [vmem:[%s1278_s12 + $0x10] ss:$20 sps:$4 sm:$0xff]   ;;  %v951_v0 = vld [vmem:[%s1337_s3] ss:$0 sm:$0xff] }
  0x16   : > { %992 = vmatpush3.bf16.msra.mxu1 %v1078_v15  ;;  %971 = vmatprep.subr.bf16.mxu0 %v1079_v16 }
  0x17   : > { %993 = vmatprep.subr.bf16.mxu1 %v1080_v17 }
  0x19   : > { %972 = vmatpush3.bf16.msra.mxu0 %v1081_v18 }
  0x1a   : > { %994 = vmatpush3.bf16.msra.mxu1 %v1082_v19  ;;  %973 = vmatprep.subr.bf16.mxu0 %v1083_v20 }
  0x1b   : > { %995 = vmatprep.subr.bf16.mxu1 %v1084_v21 }
  0x1d   : > { %974 = vmatpush3.bf16.msra.mxu0 %v1085_v22 }
  0x1e   : > { %996 = vmatpush3.bf16.msra.mxu1 %v1086_v23  ;;  %975 = vmatprep.subr.bf16.mxu0 %v1087_v24 }
  0x1f   : > { %997 = vmatprep.subr.bf16.mxu1 %v1088_v25 }
  0x21   : > { %976 = vmatpush3.bf16.msra.mxu0 %v1089_v26 }
  0x22   : > { %998 = vmatpush3.bf16.msra.mxu1 %v1090_v27  ;;  %977 = vmatprep.subr.bf16.mxu0 %v1091_v28 }
  0x23   : > { %999 = vmatprep.subr.bf16.mxu1 %v1092_v29 }
  0x25   : > { %978 = vmatpush3.bf16.msra.mxu0 %v1093_v30 }
  0x26   : > { %1000 = vmatpush3.bf16.msra.mxu1 %v1094_v31  ;;  %1016 = vmatprep.subr.bf16.mxu0 %v1134_v34 }
  0x28   : > { %655 = vmatmul.mubr.bf16.vlgmr.msra.gmra.mrb[0].mxu0 %v1095_v32 }
  0x29   : > { %696 = vmatmul.mubr.bf16.vlgmr.msra.gmra.mrb[0].mxu1 %v1098_v35  ;;  %1017 = vmatpush3.bf16.msra.mxu0 %v1101_v37 }
  0x2a   : > { %1018 = vmatprep.subr.bf16.mxu0 %v1134_v34  ;;  %1032 = vmatprep.mubr.msk.bf16.mxu0 %vm1135_vm0, %v1134_v34 }
  0x2d   : > { %1019 = vmatpush3.bf16.msra.mxu0 %v1102_v38 }
  0x2e   : > { %1020 = vmatprep.subr.bf16.mxu0 %v1134_v34 }
  0x31   : > { %1021 = vmatpush3.bf16.msra.mxu0 %v1103_v39 }
  0x32   : > { %1022 = vmatprep.subr.bf16.mxu0 %v1134_v34 }
  0x35   : > { %1023 = vmatpush3.bf16.msra.mxu0 %v1104_v40 }
  0x36   : > { %1024 = vmatprep.subr.bf16.mxu0 %v1134_v34 }
  0x39   : > { %1025 = vmatpush3.bf16.msra.mxu0 %v1105_v41 }
  0x3a   : > { %1026 = vmatprep.subr.bf16.mxu0 %v1134_v34 }
  0x3d   : > { %1027 = vmatpush3.bf16.msra.mxu0 %v1106_v42 }
  0x3e   : > { %1028 = vmatprep.subr.bf16.mxu0 %v1134_v34 }
  0x41   : > { %1029 = vmatpush3.bf16.msra.mxu0 %v1107_v43 }
  0x42   : > { %1030 = vmatprep.subr.bf16.mxu0 %v1134_v34 }
  0x45   : > { %1031 = vmatpush3.bf16.msra.mxu0 %v1108_v44 }
  0x48   : > { %1033 = vmatmul.mubr.bf16.vlgmr.msra.gmra.mrb[4].mxu0 %v1109_v45 }
  0xfb   : > { %v979_v46 = vpop.f32.mrb[0].mxu0 }
  0xfc   : > { %v1001_v47 = vpop.f32.mrb[0].mxu1  ;;  %v980_v48 = vpop.f32.mrb[1].mxu0 }
  0xfd   : > { %v981_v49 = vadd.f32 %v980_v48, %v979_v46  ;;  %v1002_v50 = vpop.f32.mrb[1].mxu1  ;;  %v982_v51 = vpop.f32.mrb[2].mxu0 }
  0xfe   : > { %v1003_v52 = vadd.f32 %v1002_v50, %v1001_v47  ;;  %v1004_v53 = vpop.f32.mrb[2].mxu1  ;;  %v983_v54 = vpop.f32.mrb[3].mxu0 }
  0xff   : > { %v984_v55 = vadd.f32 %v983_v54, %v982_v51  ;;  %v1005_v56 = vpop.f32.mrb[3].mxu1 }
 0x100   : > { %v1006_v57 = vadd.f32 %v1005_v56, %v1004_v53  ;;  %v698_v58 = vadd.f32 %v1003_v52, %v981_v49 }
 0x102   : > { %v701_v59 = vadd.f32 %v1006_v57, %v984_v55 }
 0x11b   : > { %v738_v60 = vpop.f32.mrb[4].mxu0 }
 0x11c   : > { %v739_v62 = vadd.f32 %v738_v60, %v698_v58  ;;  %v1034_v63 = vpop.f32.mrb[5].mxu0 }
 0x11d   : > { %v741_v1 = vpop.f32.mrb[6].mxu0 }
 0x11e   : > { %v752_v2 = vmul.f32 %v950_v61, %v739_v62  ;;  %v742_v3 = vadd.f32 %v741_v1, %v701_v59  ;;  %v1035_v4 = vpop.f32.mrb[7].mxu0 }
 0x120   : > { %v761_v5 = vadd.f32 %v951_v0, %v752_v2  ;;  %v753_v6 = vmul.f32 %v950_v61, %v742_v3 }
 0x122   : > { %v765_v7 = vmul.f32 0.01, %v761_v5  ;;  %v762_v8 = vadd.f32 %v951_v0, %v753_v6  ;;  %vm763_vm1 = vcmp.ge.f32.partialorder %v761_v5, 0.0 }
 0x124   : > { %vm764_vm2 = vcmp.ge.f32.partialorder %v762_v8, 0.0  ;;  %v766_v9 = vmul.f32 0.01, %v762_v8  ;;  %v767_v10 = vsel %vm763_vm1, %v761_v5, %v765_v7 }
 0x126   : > { %v768_v11 = vsel %vm764_vm2, %v762_v8, %v766_v9 }
 0x127   : > { %v961_v12 = vpack.c.bf16 %v768_v11, %v767_v10 }
 0x129   : > { %962 = vst [vmem:[%s267_s22] sm:$0xff] %v961_v12  }
 0x12a PF: > { %s14_s17 = sadd.s32 1, %s1132_s17   ;;  %s1339_s15 = smov %s1128_s16 }
 0x12b   : > { %p11_p5 = scmp.ge.s32.totalorder %s14_s17, 4   ;;  %s1340_s16 = smov %s1342_s18 }
 0x12d   :  { %13 = sbr.rel (!%p11_p5) target bundleno = 2 (0x2), region = 75 }

// kernel: autoencoder_forward.11
= control target key start
LH: loop header
LB: loop body
LE: loop exit
PB: predicated region body
PF: predicated region fallthrough
CT: control target
= control target key end

     0   :  { %s2317_s15 = smov 0   ;;  %s2319_s16 = smov 0   ;;  %s2794_s0 = inlined_call_operand.vmem [shape: bf16[16,1152], index: 0, kind: input, shape index: {}]   ;;  %s2795_s1 = inlined_call_operand.vmem [shape: bf16[1152,256], index: 1, kind: input, shape index: {}]   ;;  %s2796_s2 = inlined_call_operand.vmem [shape: f32[1,256], index: 2, kind: input, shape index: {}]   ;;  %s2797_s3 = inlined_call_operand.vmem [shape: f32[1,256], index: 3, kind: input, shape index: {}]   ;;  %s2798_s4 = inlined_call_operand.vmem [shape: bf16[16,256], index: 4, kind: output, shape index: {}]  }
   0x1   :  { %s2321_s17 = smov 0   ;;  %s2323_s18 = smov 0  }
   0x2   :  { %s2325_s19 = smov 0  }
   0x3 LB: > { %s23_s20 = sadd.s32 1, %s2284_s18  ;;  %s1900_s21 = sadd.s32 4294967295, %s2288_s19   ;;  %s2288_s19 = sphi %s2325_s19, %s14_s19   ;;  %s2284_s18 = sphi %s2323_s18, %s2803_s18   ;;  %s2280_s17 = sphi %s2321_s17, %s2802_s17   ;;  %s2276_s16 = sphi %s2319_s16, %s2801_s16   ;;  %s2272_s15 = sphi %s2317_s15, %s2800_s15  }
   0x4   : > { %p24_p0 = scmp.ge.s32.totalorder %s23_s20, 2  ;;  %p66_p1 = scmp.ne.s32.totalorder %s2276_s16, %s2272_s15 }
   0x5   : > { %p67_p2 = scmp.eq.s32.totalorder %s2288_s19, 0  ;;  %p150_p4 = scmp.eq.s32.totalorder %s1900_s21, 1 }
   0x6   : > { %s2805_s20 = smov (%p24_p0, %s23_s20), 0  ;;  %s59_s23 = sadd.s32 1, %s2276_s16 }
   0x7   : > { %p68_p3 = por %p67_p2, %p66_p1  ;;  %s56_s22 = ssub.s32 %s2284_s18, %s2805_s20 }
   0x8   : > { %p57_p5 = scmp.eq.s32.totalorder %s56_s22, 0  ;;  %p2352_p6 = por %p150_p4, %p66_p1 }
   0x9   : > { %p1904_p7 = scmp.ge.s32.totalorder %s2288_s19, 2 }
   0xa   : > { %s2357_s25 = scalar_select %p57_p5, %s2276_s16, %s59_s23  }
   0xb   : > { %182 = sbr.rel (%p1904_p7) target bundleno = 118 (0x76), region = 20 }
  0x12   : > { %185 = sbr.rel (!%p68_p3) target bundleno = 118 (0x76), region = 24  ;;  %s187_s26 = sand.u32 (%p68_p3), 1, %s2276_s16  }
  0x13   : > { %s1905_s27 = sshll.u32 (%p68_p3), %s2284_s18, 2  ;;  %s2121_s28 = smul.u32 (%p68_p3), 576, %s187_s26 }
  0x14   : > { %s2365_s5 = scalar_lea.vmem (%p68_p3), %s2795_s1, %s1905_s27 }
  0x15   : > { %v207_v0 = vld [vmem:[%s2365_s5] sm:$0xf] (%p68_p3)  ;;  %v209_v1 = vld [vmem:[%s2365_s5 + $0x8] sm:$0xf] (%p68_p3)  ;;  %v211_v2 = vld [vmem:[%s2365_s5 + $0x10] sm:$0xf] (%p68_p3) }
  0x16   : > { %v213_v3 = vld [vmem:[%s2365_s5 + $0x18] sm:$0xf] (%p68_p3)  ;;  %v215_v4 = vld [vmem:[%s2365_s5 + $0x20] sm:$0xf] (%p68_p3)  ;;  %s2372_s6 = scalar_lea.vmem (%p68_p3), [#allocation2], %s2121_s28 }
  0x17   : > { %208 = vst [vmem:[%s2372_s6] sm:$0xf] (%p68_p3), %v207_v0  ;;  %210 = vst [vmem:[%s2372_s6 + $0x4] sm:$0xf] (%p68_p3), %v209_v1  ;;  %v217_v5 = vld [vmem:[%s2365_s5 + $0x28] sm:$0xf] (%p68_p3) }
  0x18   : > { %212 = vst [vmem:[%s2372_s6 + $0x8] sm:$0xf] (%p68_p3), %v211_v2  ;;  %214 = vst [vmem:[%s2372_s6 + $0xc] sm:$0xf] (%p68_p3), %v213_v3  ;;  %v219_v6 = vld [vmem:[%s2365_s5 + $0x30] sm:$0xf] (%p68_p3) }
  0x19   : > { %216 = vst [vmem:[%s2372_s6 + $0x10] sm:$0xf] %v215_v4  ;;  %v221_v7 = vld [vmem:[%s2365_s5 + $0x38] sm:$0xf]  ;;  %218 = vst [vmem:[%s2372_s6 + $0x14] sm:$0xf] %v217_v5 }
  0x1a   : > { %220 = vst [vmem:[%s2372_s6 + $0x18] sm:$0xf] %v219_v6  ;;  %222 = vst [vmem:[%s2372_s6 + $0x1c] sm:$0xf] %v221_v7  ;;  %v223_v8 = vld [vmem:[%s2365_s5 + $0x40] sm:$0xf] }
  0x1b   : > { %v225_v9 = vld [vmem:[%s2365_s5 + $0x48] sm:$0xf]  ;;  %v227_v10 = vld [vmem:[%s2365_s5 + $0x50] sm:$0xf]  ;;  %224 = vst [vmem:[%s2372_s6 + $0x20] sm:$0xf] %v223_v8 }
  0x1c   : > { %226 = vst [vmem:[%s2372_s6 + $0x24] sm:$0xf] %v225_v9  ;;  %228 = vst [vmem:[%s2372_s6 + $0x28] sm:$0xf] %v227_v10  ;;  %v229_v11 = vld [vmem:[%s2365_s5 + $0x58] sm:$0xf] }
  0x1d   : > { %v231_v12 = vld [vmem:[%s2365_s5 + $0x60] sm:$0xf]  ;;  %v233_v13 = vld [vmem:[%s2365_s5 + $0x68] sm:$0xf]  ;;  %230 = vst [vmem:[%s2372_s6 + $0x2c] sm:$0xf] %v229_v11 }
  0x1e   : > { %232 = vst [vmem:[%s2372_s6 + $0x30] sm:$0xf] %v231_v12  ;;  %234 = vst [vmem:[%s2372_s6 + $0x34] sm:$0xf] %v233_v13  ;;  %v235_v14 = vld [vmem:[%s2365_s5 + $0x70] sm:$0xf] }
  0x1f   : > { %v237_v15 = vld [vmem:[%s2365_s5 + $0x78] sm:$0xf]  ;;  %v239_v16 = vld [vmem:[%s2365_s5 + $0x80] sm:$0xf]  ;;  %236 = vst [vmem:[%s2372_s6 + $0x38] sm:$0xf] %v235_v14 }
  0x20   : > { %238 = vst [vmem:[%s2372_s6 + $0x3c] sm:$0xf] %v237_v15  ;;  %240 = vst [vmem:[%s2372_s6 + $0x40] sm:$0xf] %v239_v16  ;;  %v241_v17 = vld [vmem:[%s2365_s5 + $0x88] sm:$0xf] }
  0x21   : > { %v243_v18 = vld [vmem:[%s2365_s5 + $0x90] sm:$0xf]  ;;  %v245_v19 = vld [vmem:[%s2365_s5 + $0x98] sm:$0xf]  ;;  %242 = vst [vmem:[%s2372_s6 + $0x44] sm:$0xf] %v241_v17 }
  0x22   : > { %244 = vst [vmem:[%s2372_s6 + $0x48] sm:$0xf] %v243_v18  ;;  %246 = vst [vmem:[%s2372_s6 + $0x4c] sm:$0xf] %v245_v19  ;;  %v247_v20 = vld [vmem:[%s2365_s5 + $0xa0] sm:$0xf] }
  0x23   : > { %v249_v21 = vld [vmem:[%s2365_s5 + $0xa8] sm:$0xf]  ;;  %v251_v22 = vld [vmem:[%s2365_s5 + $0xb0] sm:$0xf]  ;;  %248 = vst [vmem:[%s2372_s6 + $0x50] sm:$0xf] %v247_v20 }
  0x24   : > { %250 = vst [vmem:[%s2372_s6 + $0x54] sm:$0xf] %v249_v21  ;;  %252 = vst [vmem:[%s2372_s6 + $0x58] sm:$0xf] %v251_v22  ;;  %v253_v23 = vld [vmem:[%s2365_s5 + $0xb8] sm:$0xf] }
  0x25   : > { %v255_v24 = vld [vmem:[%s2365_s5 + $0xc0] sm:$0xf]  ;;  %v257_v25 = vld [vmem:[%s2365_s5 + $0xc8] sm:$0xf]  ;;  %254 = vst [vmem:[%s2372_s6 + $0x5c] sm:$0xf] %v253_v23 }
  0x26   : > { %256 = vst [vmem:[%s2372_s6 + $0x60] sm:$0xf] %v255_v24  ;;  %258 = vst [vmem:[%s2372_s6 + $0x64] sm:$0xf] %v257_v25  ;;  %v259_v26 = vld [vmem:[%s2365_s5 + $0xd0] sm:$0xf] }
  0x27   : > { %v261_v27 = vld [vmem:[%s2365_s5 + $0xd8] sm:$0xf]  ;;  %v263_v28 = vld [vmem:[%s2365_s5 + $0xe0] sm:$0xf]  ;;  %260 = vst [vmem:[%s2372_s6 + $0x68] sm:$0xf] %v259_v26 }
  0x28   : > { %262 = vst [vmem:[%s2372_s6 + $0x6c] sm:$0xf] %v261_v27  ;;  %264 = vst [vmem:[%s2372_s6 + $0x70] sm:$0xf] %v263_v28  ;;  %v265_v29 = vld [vmem:[%s2365_s5 + $0xe8] sm:$0xf] }
  0x29   : > { %v267_v30 = vld [vmem:[%s2365_s5 + $0xf0] sm:$0xf]  ;;  %v269_v31 = vld [vmem:[%s2365_s5 + $0xf8] sm:$0xf]  ;;  %266 = vst [vmem:[%s2372_s6 + $0x74] sm:$0xf] %v265_v29 }
  0x2a   : > { %268 = vst [vmem:[%s2372_s6 + $0x78] sm:$0xf] %v267_v30  ;;  %270 = vst [vmem:[%s2372_s6 + $0x7c] sm:$0xf] %v269_v31  ;;  %v271_v32 = vld [vmem:[%s2365_s5 + $0x100] sm:$0xf] }
  0x2b   : > { %v273_v33 = vld [vmem:[%s2365_s5 + $0x108] sm:$0xf]  ;;  %v275_v34 = vld [vmem:[%s2365_s5 + $0x110] sm:$0xf]  ;;  %272 = vst [vmem:[%s2372_s6 + $0x80] sm:$0xf] %v271_v32 }
  0x2c   : > { %274 = vst [vmem:[%s2372_s6 + $0x84] sm:$0xf] %v273_v33  ;;  %276 = vst [vmem:[%s2372_s6 + $0x88] sm:$0xf] %v275_v34  ;;  %v277_v35 = vld [vmem:[%s2365_s5 + $0x118] sm:$0xf] }
  0x2d   : > { %v279_v36 = vld [vmem:[%s2365_s5 + $0x120] sm:$0xf]  ;;  %v281_v37 = vld [vmem:[%s2365_s5 + $0x128] sm:$0xf]  ;;  %278 = vst [vmem:[%s2372_s6 + $0x8c] sm:$0xf] %v277_v35 }
  0x2e   : > { %280 = vst [vmem:[%s2372_s6 + $0x90] sm:$0xf] %v279_v36  ;;  %282 = vst [vmem:[%s2372_s6 + $0x94] sm:$0xf] %v281_v37  ;;  %v283_v38 = vld [vmem:[%s2365_s5 + $0x130] sm:$0xf] }
  0x2f   : > { %v285_v39 = vld [vmem:[%s2365_s5 + $0x138] sm:$0xf]  ;;  %v287_v40 = vld [vmem:[%s2365_s5 + $0x140] sm:$0xf]  ;;  %284 = vst [vmem:[%s2372_s6 + $0x98] sm:$0xf] %v283_v38 }
  0x30   : > { %286 = vst [vmem:[%s2372_s6 + $0x9c] sm:$0xf] %v285_v39  ;;  %288 = vst [vmem:[%s2372_s6 + $0xa0] sm:$0xf] %v287_v40  ;;  %v289_v41 = vld [vmem:[%s2365_s5 + $0x148] sm:$0xf] }
  0x31   : > { %v291_v42 = vld [vmem:[%s2365_s5 + $0x150] sm:$0xf]  ;;  %v293_v43 = vld [vmem:[%s2365_s5 + $0x158] sm:$0xf]  ;;  %290 = vst [vmem:[%s2372_s6 + $0xa4] sm:$0xf] %v289_v41 }
  0x32   : > { %292 = vst [vmem:[%s2372_s6 + $0xa8] sm:$0xf] %v291_v42  ;;  %294 = vst [vmem:[%s2372_s6 + $0xac] sm:$0xf] %v293_v43  ;;  %v295_v44 = vld [vmem:[%s2365_s5 + $0x160] sm:$0xf] }
  0x33   : > { %v297_v45 = vld [vmem:[%s2365_s5 + $0x168] sm:$0xf]  ;;  %v299_v46 = vld [vmem:[%s2365_s5 + $0x170] sm:$0xf]  ;;  %296 = vst [vmem:[%s2372_s6 + $0xb0] sm:$0xf] %v295_v44 }
  0x34   : > { %298 = vst [vmem:[%s2372_s6 + $0xb4] sm:$0xf] %v297_v45  ;;  %300 = vst [vmem:[%s2372_s6 + $0xb8] sm:$0xf] %v299_v46  ;;  %v301_v47 = vld [vmem:[%s2365_s5 + $0x178] sm:$0xf] }
  0x35   : > { %v303_v48 = vld [vmem:[%s2365_s5 + $0x180] sm:$0xf]  ;;  %v305_v49 = vld [vmem:[%s2365_s5 + $0x188] sm:$0xf]  ;;  %302 = vst [vmem:[%s2372_s6 + $0xbc] sm:$0xf] %v301_v47 }
  0x36   : > { %304 = vst [vmem:[%s2372_s6 + $0xc0] sm:$0xf] %v303_v48  ;;  %306 = vst [vmem:[%s2372_s6 + $0xc4] sm:$0xf] %v305_v49  ;;  %v307_v50 = vld [vmem:[%s2365_s5 + $0x190] sm:$0xf] }
  0x37   : > { %v309_v51 = vld [vmem:[%s2365_s5 + $0x198] sm:$0xf]  ;;  %v311_v52 = vld [vmem:[%s2365_s5 + $0x1a0] sm:$0xf]  ;;  %308 = vst [vmem:[%s2372_s6 + $0xc8] sm:$0xf] %v307_v50 }
  0x38   : > { %310 = vst [vmem:[%s2372_s6 + $0xcc] sm:$0xf] %v309_v51  ;;  %312 = vst [vmem:[%s2372_s6 + $0xd0] sm:$0xf] %v311_v52  ;;  %v313_v53 = vld [vmem:[%s2365_s5 + $0x1a8] sm:$0xf] }
  0x39   : > { %v315_v54 = vld [vmem:[%s2365_s5 + $0x1b0] sm:$0xf]  ;;  %v317_v55 = vld [vmem:[%s2365_s5 + $0x1b8] sm:$0xf]  ;;  %314 = vst [vmem:[%s2372_s6 + $0xd4] sm:$0xf] %v313_v53 }
  0x3a   : > { %316 = vst [vmem:[%s2372_s6 + $0xd8] sm:$0xf] %v315_v54  ;;  %318 = vst [vmem:[%s2372_s6 + $0xdc] sm:$0xf] %v317_v55  ;;  %v319_v56 = vld [vmem:[%s2365_s5 + $0x1c0] sm:$0xf] }
  0x3b   : > { %v321_v57 = vld [vmem:[%s2365_s5 + $0x1c8] sm:$0xf]  ;;  %v323_v58 = vld [vmem:[%s2365_s5 + $0x1d0] sm:$0xf]  ;;  %320 = vst [vmem:[%s2372_s6 + $0xe0] sm:$0xf] %v319_v56 }
  0x3c   : > { %322 = vst [vmem:[%s2372_s6 + $0xe4] sm:$0xf] %v321_v57  ;;  %324 = vst [vmem:[%s2372_s6 + $0xe8] sm:$0xf] %v323_v58  ;;  %v325_v59 = vld [vmem:[%s2365_s5 + $0x1d8] sm:$0xf] }
  0x3d   : > { %v327_v60 = vld [vmem:[%s2365_s5 + $0x1e0] sm:$0xf]  ;;  %v329_v61 = vld [vmem:[%s2365_s5 + $0x1e8] sm:$0xf]  ;;  %326 = vst [vmem:[%s2372_s6 + $0xec] sm:$0xf] %v325_v59 }
  0x3e   : > { %328 = vst [vmem:[%s2372_s6 + $0xf0] sm:$0xf] %v327_v60  ;;  %330 = vst [vmem:[%s2372_s6 + $0xf4] sm:$0xf] %v329_v61  ;;  %v331_v62 = vld [vmem:[%s2365_s5 + $0x1f0] sm:$0xf] }
  0x3f   : > { %v333_v63 = vld [vmem:[%s2365_s5 + $0x1f8] sm:$0xf]  ;;  %v335_v0 = vld [vmem:[%s2365_s5 + $0x200] sm:$0xf]  ;;  %332 = vst [vmem:[%s2372_s6 + $0xf8] sm:$0xf] %v331_v62 }
  0x40   : > { %334 = vst [vmem:[%s2372_s6 + $0xfc] sm:$0xf] %v333_v63  ;;  %336 = vst [vmem:[%s2372_s6 + $0x100] sm:$0xf] %v335_v0  ;;  %v337_v1 = vld [vmem:[%s2365_s5 + $0x208] sm:$0xf] }
  0x41   : > { %v339_v2 = vld [vmem:[%s2365_s5 + $0x210] sm:$0xf]  ;;  %v341_v3 = vld [vmem:[%s2365_s5 + $0x218] sm:$0xf]  ;;  %338 = vst [vmem:[%s2372_s6 + $0x104] sm:$0xf] %v337_v1 }
  0x42   : > { %340 = vst [vmem:[%s2372_s6 + $0x108] sm:$0xf] %v339_v2  ;;  %342 = vst [vmem:[%s2372_s6 + $0x10c] sm:$0xf] %v341_v3  ;;  %v343_v4 = vld [vmem:[%s2365_s5 + $0x220] sm:$0xf] }
  0x43   : > { %v345_v5 = vld [vmem:[%s2365_s5 + $0x228] sm:$0xf]  ;;  %v347_v6 = vld [vmem:[%s2365_s5 + $0x230] sm:$0xf]  ;;  %344 = vst [vmem:[%s2372_s6 + $0x110] sm:$0xf] %v343_v4 }
  0x44   : > { %346 = vst [vmem:[%s2372_s6 + $0x114] sm:$0xf] %v345_v5  ;;  %348 = vst [vmem:[%s2372_s6 + $0x118] sm:$0xf] %v347_v6  ;;  %v349_v7 = vld [vmem:[%s2365_s5 + $0x238] sm:$0xf] }
  0x45   : > { %v351_v8 = vld [vmem:[%s2365_s5 + $0x240] sm:$0xf]  ;;  %v353_v9 = vld [vmem:[%s2365_s5 + $0x248] sm:$0xf]  ;;  %350 = vst [vmem:[%s2372_s6 + $0x11c] sm:$0xf] %v349_v7 }
  0x46   : > { %352 = vst [vmem:[%s2372_s6 + $0x120] sm:$0xf] %v351_v8  ;;  %354 = vst [vmem:[%s2372_s6 + $0x124] sm:$0xf] %v353_v9  ;;  %v355_v10 = vld [vmem:[%s2365_s5 + $0x250] sm:$0xf] }
  0x47   : > { %v357_v11 = vld [vmem:[%s2365_s5 + $0x258] sm:$0xf]  ;;  %v359_v12 = vld [vmem:[%s2365_s5 + $0x260] sm:$0xf]  ;;  %356 = vst [vmem:[%s2372_s6 + $0x128] sm:$0xf] %v355_v10 }
  0x48   : > { %358 = vst [vmem:[%s2372_s6 + $0x12c] sm:$0xf] %v357_v11  ;;  %360 = vst [vmem:[%s2372_s6 + $0x130] sm:$0xf] %v359_v12  ;;  %v361_v13 = vld [vmem:[%s2365_s5 + $0x268] sm:$0xf] }
  0x49   : > { %v363_v14 = vld [vmem:[%s2365_s5 + $0x270] sm:$0xf]  ;;  %v365_v15 = vld [vmem:[%s2365_s5 + $0x278] sm:$0xf]  ;;  %362 = vst [vmem:[%s2372_s6 + $0x134] sm:$0xf] %v361_v13 }
  0x4a   : > { %364 = vst [vmem:[%s2372_s6 + $0x138] sm:$0xf] %v363_v14  ;;  %366 = vst [vmem:[%s2372_s6 + $0x13c] sm:$0xf] %v365_v15  ;;  %v367_v16 = vld [vmem:[%s2365_s5 + $0x280] sm:$0xf] }
  0x4b   : > { %v369_v17 = vld [vmem:[%s2365_s5 + $0x288] sm:$0xf]  ;;  %v371_v18 = vld [vmem:[%s2365_s5 + $0x290] sm:$0xf]  ;;  %368 = vst [vmem:[%s2372_s6 + $0x140] sm:$0xf] %v367_v16 }
  0x4c   : > { %370 = vst [vmem:[%s2372_s6 + $0x144] sm:$0xf] %v369_v17  ;;  %372 = vst [vmem:[%s2372_s6 + $0x148] sm:$0xf] %v371_v18  ;;  %v373_v19 = vld [vmem:[%s2365_s5 + $0x298] sm:$0xf] }
  0x4d   : > { %v375_v20 = vld [vmem:[%s2365_s5 + $0x2a0] sm:$0xf]  ;;  %v377_v21 = vld [vmem:[%s2365_s5 + $0x2a8] sm:$0xf]  ;;  %374 = vst [vmem:[%s2372_s6 + $0x14c] sm:$0xf] %v373_v19 }
  0x4e   : > { %376 = vst [vmem:[%s2372_s6 + $0x150] sm:$0xf] %v375_v20  ;;  %378 = vst [vmem:[%s2372_s6 + $0x154] sm:$0xf] %v377_v21  ;;  %v379_v22 = vld [vmem:[%s2365_s5 + $0x2b0] sm:$0xf] }
  0x4f   : > { %v381_v23 = vld [vmem:[%s2365_s5 + $0x2b8] sm:$0xf]  ;;  %v383_v24 = vld [vmem:[%s2365_s5 + $0x2c0] sm:$0xf]  ;;  %380 = vst [vmem:[%s2372_s6 + $0x158] sm:$0xf] %v379_v22 }
  0x50   : > { %382 = vst [vmem:[%s2372_s6 + $0x15c] sm:$0xf] %v381_v23  ;;  %384 = vst [vmem:[%s2372_s6 + $0x160] sm:$0xf] %v383_v24  ;;  %v385_v25 = vld [vmem:[%s2365_s5 + $0x2c8] sm:$0xf] }
  0x51   : > { %v387_v26 = vld [vmem:[%s2365_s5 + $0x2d0] sm:$0xf]  ;;  %v389_v27 = vld [vmem:[%s2365_s5 + $0x2d8] sm:$0xf]  ;;  %386 = vst [vmem:[%s2372_s6 + $0x164] sm:$0xf] %v385_v25 }
  0x52   : > { %388 = vst [vmem:[%s2372_s6 + $0x168] sm:$0xf] %v387_v26  ;;  %390 = vst [vmem:[%s2372_s6 + $0x16c] sm:$0xf] %v389_v27  ;;  %v391_v28 = vld [vmem:[%s2365_s5 + $0x2e0] sm:$0xf] }
  0x53   : > { %v393_v29 = vld [vmem:[%s2365_s5 + $0x2e8] sm:$0xf]  ;;  %v395_v30 = vld [vmem:[%s2365_s5 + $0x2f0] sm:$0xf]  ;;  %392 = vst [vmem:[%s2372_s6 + $0x170] sm:$0xf] %v391_v28 }
  0x54   : > { %394 = vst [vmem:[%s2372_s6 + $0x174] sm:$0xf] %v393_v29  ;;  %396 = vst [vmem:[%s2372_s6 + $0x178] sm:$0xf] %v395_v30  ;;  %v397_v31 = vld [vmem:[%s2365_s5 + $0x2f8] sm:$0xf] }
  0x55   : > { %v399_v32 = vld [vmem:[%s2365_s5 + $0x300] sm:$0xf]  ;;  %v401_v33 = vld [vmem:[%s2365_s5 + $0x308] sm:$0xf]  ;;  %398 = vst [vmem:[%s2372_s6 + $0x17c] sm:$0xf] %v397_v31 }
  0x56   : > { %400 = vst [vmem:[%s2372_s6 + $0x180] sm:$0xf] %v399_v32  ;;  %402 = vst [vmem:[%s2372_s6 + $0x184] sm:$0xf] %v401_v33  ;;  %v403_v34 = vld [vmem:[%s2365_s5 + $0x310] sm:$0xf] }
  0x57   : > { %v405_v35 = vld [vmem:[%s2365_s5 + $0x318] sm:$0xf]  ;;  %v407_v36 = vld [vmem:[%s2365_s5 + $0x320] sm:$0xf]  ;;  %404 = vst [vmem:[%s2372_s6 + $0x188] sm:$0xf] %v403_v34 }
  0x58   : > { %406 = vst [vmem:[%s2372_s6 + $0x18c] sm:$0xf] %v405_v35  ;;  %408 = vst [vmem:[%s2372_s6 + $0x190] sm:$0xf] %v407_v36  ;;  %v409_v37 = vld [vmem:[%s2365_s5 + $0x328] sm:$0xf] }
  0x59   : > { %v411_v38 = vld [vmem:[%s2365_s5 + $0x330] sm:$0xf]  ;;  %v413_v39 = vld [vmem:[%s2365_s5 + $0x338] sm:$0xf]  ;;  %410 = vst [vmem:[%s2372_s6 + $0x194] sm:$0xf] %v409_v37 }
  0x5a   : > { %412 = vst [vmem:[%s2372_s6 + $0x198] sm:$0xf] %v411_v38  ;;  %414 = vst [vmem:[%s2372_s6 + $0x19c] sm:$0xf] %v413_v39  ;;  %v415_v40 = vld [vmem:[%s2365_s5 + $0x340] sm:$0xf] }
  0x5b   : > { %v417_v41 = vld [vmem:[%s2365_s5 + $0x348] sm:$0xf]  ;;  %v419_v42 = vld [vmem:[%s2365_s5 + $0x350] sm:$0xf]  ;;  %416 = vst [vmem:[%s2372_s6 + $0x1a0] sm:$0xf] %v415_v40 }
  0x5c   : > { %418 = vst [vmem:[%s2372_s6 + $0x1a4] sm:$0xf] %v417_v41  ;;  %420 = vst [vmem:[%s2372_s6 + $0x1a8] sm:$0xf] %v419_v42  ;;  %v421_v43 = vld [vmem:[%s2365_s5 + $0x358] sm:$0xf] }
  0x5d   : > { %v423_v44 = vld [vmem:[%s2365_s5 + $0x360] sm:$0xf]  ;;  %v425_v45 = vld [vmem:[%s2365_s5 + $0x368] sm:$0xf]  ;;  %422 = vst [vmem:[%s2372_s6 + $0x1ac] sm:$0xf] %v421_v43 }
  0x5e   : > { %424 = vst [vmem:[%s2372_s6 + $0x1b0] sm:$0xf] %v423_v44  ;;  %426 = vst [vmem:[%s2372_s6 + $0x1b4] sm:$0xf] %v425_v45  ;;  %v427_v46 = vld [vmem:[%s2365_s5 + $0x370] sm:$0xf] }
  0x5f   : > { %v429_v47 = vld [vmem:[%s2365_s5 + $0x378] sm:$0xf]  ;;  %v431_v48 = vld [vmem:[%s2365_s5 + $0x380] sm:$0xf]  ;;  %428 = vst [vmem:[%s2372_s6 + $0x1b8] sm:$0xf] %v427_v46 }
  0x60   : > { %430 = vst [vmem:[%s2372_s6 + $0x1bc] sm:$0xf] %v429_v47  ;;  %432 = vst [vmem:[%s2372_s6 + $0x1c0] sm:$0xf] %v431_v48  ;;  %v433_v49 = vld [vmem:[%s2365_s5 + $0x388] sm:$0xf] }
  0x61   : > { %v435_v50 = vld [vmem:[%s2365_s5 + $0x390] sm:$0xf]  ;;  %v437_v51 = vld [vmem:[%s2365_s5 + $0x398] sm:$0xf]  ;;  %434 = vst [vmem:[%s2372_s6 + $0x1c4] sm:$0xf] %v433_v49 }
  0x62   : > { %436 = vst [vmem:[%s2372_s6 + $0x1c8] sm:$0xf] %v435_v50  ;;  %438 = vst [vmem:[%s2372_s6 + $0x1cc] sm:$0xf] %v437_v51  ;;  %v439_v52 = vld [vmem:[%s2365_s5 + $0x3a0] sm:$0xf] }
  0x63   : > { %v441_v53 = vld [vmem:[%s2365_s5 + $0x3a8] sm:$0xf]  ;;  %v443_v54 = vld [vmem:[%s2365_s5 + $0x3b0] sm:$0xf]  ;;  %440 = vst [vmem:[%s2372_s6 + $0x1d0] sm:$0xf] %v439_v52 }
  0x64   : > { %442 = vst [vmem:[%s2372_s6 + $0x1d4] sm:$0xf] %v441_v53  ;;  %444 = vst [vmem:[%s2372_s6 + $0x1d8] sm:$0xf] %v443_v54  ;;  %v445_v55 = vld [vmem:[%s2365_s5 + $0x3b8] sm:$0xf] }
  0x65   : > { %v447_v56 = vld [vmem:[%s2365_s5 + $0x3c0] sm:$0xf]  ;;  %v449_v57 = vld [vmem:[%s2365_s5 + $0x3c8] sm:$0xf]  ;;  %446 = vst [vmem:[%s2372_s6 + $0x1dc] sm:$0xf] %v445_v55 }
  0x66   : > { %448 = vst [vmem:[%s2372_s6 + $0x1e0] sm:$0xf] %v447_v56  ;;  %450 = vst [vmem:[%s2372_s6 + $0x1e4] sm:$0xf] %v449_v57  ;;  %v451_v58 = vld [vmem:[%s2365_s5 + $0x3d0] sm:$0xf] }
  0x67   : > { %v453_v59 = vld [vmem:[%s2365_s5 + $0x3d8] sm:$0xf]  ;;  %v455_v60 = vld [vmem:[%s2365_s5 + $0x3e0] sm:$0xf]  ;;  %452 = vst [vmem:[%s2372_s6 + $0x1e8] sm:$0xf] %v451_v58 }
  0x68   : > { %454 = vst [vmem:[%s2372_s6 + $0x1ec] sm:$0xf] %v453_v59  ;;  %456 = vst [vmem:[%s2372_s6 + $0x1f0] sm:$0xf] %v455_v60  ;;  %v457_v61 = vld [vmem:[%s2365_s5 + $0x3e8] sm:$0xf] }
  0x69   : > { %v459_v62 = vld [vmem:[%s2365_s5 + $0x3f0] sm:$0xf]  ;;  %v461_v63 = vld [vmem:[%s2365_s5 + $0x3f8] sm:$0xf]  ;;  %458 = vst [vmem:[%s2372_s6 + $0x1f4] sm:$0xf] %v457_v61 }
  0x6a   : > { %460 = vst [vmem:[%s2372_s6 + $0x1f8] sm:$0xf] %v459_v62  ;;  %462 = vst [vmem:[%s2372_s6 + $0x1fc] sm:$0xf] %v461_v63  ;;  %v463_v0 = vld [vmem:[%s2365_s5 + $0x400] sm:$0xf] }
  0x6b   : > { %v465_v1 = vld [vmem:[%s2365_s5 + $0x408] sm:$0xf]  ;;  %v467_v2 = vld [vmem:[%s2365_s5 + $0x410] sm:$0xf]  ;;  %464 = vst [vmem:[%s2372_s6 + $0x200] sm:$0xf] %v463_v0 }
  0x6c   : > { %466 = vst [vmem:[%s2372_s6 + $0x204] sm:$0xf] %v465_v1  ;;  %468 = vst [vmem:[%s2372_s6 + $0x208] sm:$0xf] %v467_v2  ;;  %v469_v3 = vld [vmem:[%s2365_s5 + $0x418] sm:$0xf] }
  0x6d   : > { %v471_v4 = vld [vmem:[%s2365_s5 + $0x420] sm:$0xf]  ;;  %v473_v5 = vld [vmem:[%s2365_s5 + $0x428] sm:$0xf]  ;;  %470 = vst [vmem:[%s2372_s6 + $0x20c] sm:$0xf] %v469_v3 }
  0x6e   : > { %472 = vst [vmem:[%s2372_s6 + $0x210] sm:$0xf] %v471_v4  ;;  %474 = vst [vmem:[%s2372_s6 + $0x214] sm:$0xf] %v473_v5  ;;  %v475_v6 = vld [vmem:[%s2365_s5 + $0x430] sm:$0xf] }
  0x6f   : > { %v477_v7 = vld [vmem:[%s2365_s5 + $0x438] sm:$0xf]  ;;  %v479_v8 = vld [vmem:[%s2365_s5 + $0x440] sm:$0xf]  ;;  %476 = vst [vmem:[%s2372_s6 + $0x218] sm:$0xf] %v475_v6 }
  0x70   : > { %478 = vst [vmem:[%s2372_s6 + $0x21c] sm:$0xf] %v477_v7  ;;  %480 = vst [vmem:[%s2372_s6 + $0x220] sm:$0xf] %v479_v8  ;;  %v481_v9 = vld [vmem:[%s2365_s5 + $0x448] sm:$0xf] }
  0x71   : > { %v483_v10 = vld [vmem:[%s2365_s5 + $0x450] sm:$0xf]  ;;  %v485_v11 = vld [vmem:[%s2365_s5 + $0x458] sm:$0xf]  ;;  %482 = vst [vmem:[%s2372_s6 + $0x224] sm:$0xf] %v481_v9 }
  0x72   : > { %484 = vst [vmem:[%s2372_s6 + $0x228] sm:$0xf] %v483_v10  ;;  %486 = vst [vmem:[%s2372_s6 + $0x22c] sm:$0xf] %v485_v11  ;;  %v487_v12 = vld [vmem:[%s2365_s5 + $0x460] sm:$0xf] }
  0x73   : > { %v489_v13 = vld [vmem:[%s2365_s5 + $0x468] sm:$0xf]  ;;  %v491_v14 = vld [vmem:[%s2365_s5 + $0x470] sm:$0xf]  ;;  %488 = vst [vmem:[%s2372_s6 + $0x230] sm:$0xf] %v487_v12 }
  0x74   : > { %490 = vst [vmem:[%s2372_s6 + $0x234] sm:$0xf] %v489_v13  ;;  %492 = vst [vmem:[%s2372_s6 + $0x238] sm:$0xf] %v491_v14  ;;  %v493_v15 = vld [vmem:[%s2365_s5 + $0x478] sm:$0xf] }
  0x75   : > { %494 = vst [vmem:[%s2372_s6 + $0x23c] sm:$0xf] %v493_v15 }
  0x76 PF: > { %p1906_p8 = scmp.ge.s32.totalorder %s2288_s19, 1  ;;  %p816_p9 = scmp.lt.s32.totalorder %s2288_s19, 3 }
  0x78   : > { %p817_p10 = pnand %p1906_p8, %p816_p9 }
  0x79   : > { %s823_s7 = sand.u32 (!%p817_p10), 1, %s2272_s15   ;;  %v2199_v16 = vld [vmem:[%s2794_s0 + $0x4] ss:$36 sps:$4 sm:$0xff] (!%p817_p10)   ;;  %v2202_v17 = vld [vmem:[%s2794_s0 + $0xc] ss:$36 sps:$4 sm:$0xff] (!%p817_p10)   ;;  %vm2291_vm0 = vmmov (!%p817_p10), 0  }
  0x7a   : > { %820 = sbr.rel (%p817_p10) target bundleno = 458 (0x1ca), region = 73  ;;  %1538 = vmatprep.mubr.bf16.mxu0 (!%p817_p10), %v2199_v16  ;;  %1579 = vmatprep.mubr.bf16.mxu1 (!%p817_p10), %v2202_v17  ;;  %v2197_v48 = vld [vmem:[%s2794_s0] ss:$36 sps:$4 sm:$0xff] (!%p817_p10)   ;;  %v2200_v50 = vld [vmem:[%s2794_s0 + $0x8] ss:$36 sps:$4 sm:$0xff] (!%p817_p10)   ;;  %p866_p11 = scmp.lt.s32.totalorder (!%p817_p10), %s2280_s17, 1 }
  0x7b   : > { %s2122_s8 = smul.u32 (!%p817_p10), 576, %s823_s7  ;;  %v2236_v52 = vld [vmem:[%s2794_s0 + $0x14] ss:$36 sps:$4 sm:$0xff] (!%p817_p10)   ;;  %s1907_s26 = sshll.u32 (!%p817_p10), %s823_s7, 3 }
  0x7c   : > { %s858_s27 = scalar_lea.vmem (!%p817_p10), [#allocation3], %s1907_s26 }
  0x7d   : > { %s2668_s13 = scalar_lea.vmem (!%p817_p10), [#allocation2], %s2122_s8 }
  0x7e   : > { %v2165_v18 = vld [vmem:[%s2668_s13 + $0x40] sm:$0xff] (!%p817_p10)   ;;  %v2169_v22 = vld [vmem:[%s2668_s13 + $0x48] sm:$0xff] (!%p817_p10)   ;;  %v2173_v26 = vld [vmem:[%s2668_s13 + $0x50] sm:$0xff] (!%p817_p10)  }
  0x7f   : > { %v2166_v19 = vld [vmem:[%s2668_s13 + $0xc0] sm:$0xff] (!%p817_p10)   ;;  %2004 = vmatprep.subr.bf16.mxu0 (!%p817_p10), %v2165_v18  ;;  %v2170_v23 = vld [vmem:[%s2668_s13 + $0xc8] sm:$0xff] (!%p817_p10)   ;;  %v2174_v27 = vld [vmem:[%s2668_s13 + $0xd0] sm:$0xff] (!%p817_p10)  }
  0x80   : > { %v2167_v20 = vld [vmem:[%s2668_s13] sm:$0xff] (!%p817_p10)   ;;  %2026 = vmatprep.subr.bf16.mxu1 (!%p817_p10), %v2166_v19  ;;  %v2171_v24 = vld [vmem:[%s2668_s13 + $0x8] sm:$0xff] (!%p817_p10)   ;;  %v2175_v28 = vld [vmem:[%s2668_s13 + $0x10] sm:$0xff] (!%p817_p10)  }
  0x81   : > { %v2168_v21 = vld [vmem:[%s2668_s13 + $0x80] sm:$0xff]   ;;  %2005 = vmatpush3.bf16.msra.mxu0 %v2167_v20  ;;  %v2172_v25 = vld [vmem:[%s2668_s13 + $0x88] sm:$0xff]   ;;  %v2176_v29 = vld [vmem:[%s2668_s13 + $0x90] sm:$0xff]   ;;  %s867_s11 = scalar_select %p866_p11, %s2280_s17, 1 }
  0x82   : > { %2027 = vmatpush3.bf16.msra.mxu1 %v2168_v21  ;;  %2006 = vmatprep.subr.bf16.mxu0 %v2169_v22  ;;  %v2177_v30 = vld [vmem:[%s2668_s13 + $0x58] sm:$0xff]   ;;  %v2181_v34 = vld [vmem:[%s2668_s13 + $0x60] sm:$0xff]   ;;  %v2185_v38 = vld [vmem:[%s2668_s13 + $0x68] sm:$0xff]   ;;  %s1994_s28 = sshll.u32 (%p2352_p6), %s2280_s17, 2 }
  0x83   : > { %2028 = vmatprep.subr.bf16.mxu1 %v2170_v23  ;;  %v2178_v31 = vld [vmem:[%s2668_s13 + $0xd8] sm:$0xff]   ;;  %v2182_v35 = vld [vmem:[%s2668_s13 + $0xe0] sm:$0xff]   ;;  %v2186_v39 = vld [vmem:[%s2668_s13 + $0xe8] sm:$0xff]   ;;  %v2290_v23 = vmov 0.0   ;;  %s868_s14 = scalar_lea.vmem %s2796_s2, %s867_s11  ;;  %s871_s23 = scalar_lea.vmem %s2797_s3, %s867_s11 }
  0x84   : > { %v2179_v32 = vld [vmem:[%s2668_s13 + $0x18] sm:$0xff]   ;;  %v2183_v36 = vld [vmem:[%s2668_s13 + $0x20] sm:$0xff]   ;;  %v2187_v40 = vld [vmem:[%s2668_s13 + $0x28] sm:$0xff]   ;;  %s1756_s5 = scalar_lea.vmem (%p2352_p6), %s2798_s4, %s1994_s28 }
  0x85   : > { %2007 = vmatpush3.bf16.msra.mxu0 %v2171_v24  ;;  %v2180_v33 = vld [vmem:[%s2668_s13 + $0x98] sm:$0xff]   ;;  %v2184_v37 = vld [vmem:[%s2668_s13 + $0xa0] sm:$0xff]   ;;  %v2188_v41 = vld [vmem:[%s2668_s13 + $0xa8] sm:$0xff]  }
  0x86   : > { %2029 = vmatpush3.bf16.msra.mxu1 %v2172_v25  ;;  %2008 = vmatprep.subr.bf16.mxu0 %v2173_v26  ;;  %v2189_v42 = vld [vmem:[%s2668_s13 + $0x70] sm:$0xff]   ;;  %v2193_v46 = vld [vmem:[%s2668_s13 + $0x78] sm:$0xff]   ;;  %v2203_v53 = vld [vmem:[%s2668_s13 + $0x140] sm:$0xff]  }
  0x87   : > { %2030 = vmatprep.subr.bf16.mxu1 %v2174_v27  ;;  %v2190_v43 = vld [vmem:[%s2668_s13 + $0xf0] sm:$0xff]   ;;  %v2194_v47 = vld [vmem:[%s2668_s13 + $0xf8] sm:$0xff]   ;;  %v2204_v54 = vld [vmem:[%s2668_s13 + $0x100] sm:$0xff]  }
  0x88   : > { %v2191_v44 = vld [vmem:[%s2668_s13 + $0x30] sm:$0xff]   ;;  %v2195_v49 = vld [vmem:[%s2668_s13 + $0x38] sm:$0xff]   ;;  %v2205_v55 = vld [vmem:[%s2668_s13 + $0x1c0] sm:$0xff]  }
  0x89   : > { %2009 = vmatpush3.bf16.msra.mxu0 %v2175_v28  ;;  %v2192_v45 = vld [vmem:[%s2668_s13 + $0xb0] sm:$0xff]   ;;  %v2196_v51 = vld [vmem:[%s2668_s13 + $0xb8] sm:$0xff]   ;;  %v2206_v56 = vld [vmem:[%s2668_s13 + $0x180] sm:$0xff]  }
  0x8a   : > { %2031 = vmatpush3.bf16.msra.mxu1 %v2176_v29  ;;  %2010 = vmatprep.subr.bf16.mxu0 %v2177_v30  ;;  %v2207_v57 = vld [vmem:[%s2668_s13 + $0x148] sm:$0xff]   ;;  %v2211_v61 = vld [vmem:[%s2668_s13 + $0x150] sm:$0xff]   ;;  %v2215_v1 = vld [vmem:[%s2668_s13 + $0x158] sm:$0xff]  }
  0x8b   : > { %2032 = vmatprep.subr.bf16.mxu1 %v2178_v31  ;;  %v2208_v58 = vld [vmem:[%s2668_s13 + $0x108] sm:$0xff]   ;;  %v2212_v62 = vld [vmem:[%s2668_s13 + $0x110] sm:$0xff]   ;;  %v2216_v2 = vld [vmem:[%s2668_s13 + $0x118] sm:$0xff]  }
  0x8c   : > { %v2209_v59 = vld [vmem:[%s2668_s13 + $0x1c8] sm:$0xff]   ;;  %v2213_v63 = vld [vmem:[%s2668_s13 + $0x1d0] sm:$0xff]   ;;  %v2217_v3 = vld [vmem:[%s2668_s13 + $0x1d8] sm:$0xff]  }
  0x8d   : > { %2011 = vmatpush3.bf16.msra.mxu0 %v2179_v32  ;;  %v2210_v60 = vld [vmem:[%s2668_s13 + $0x188] sm:$0xff]   ;;  %v2214_v0 = vld [vmem:[%s2668_s13 + $0x190] sm:$0xff]   ;;  %v2218_v4 = vld [vmem:[%s2668_s13 + $0x198] sm:$0xff]  }
  0x8e   : > { %2033 = vmatpush3.bf16.msra.mxu1 %v2180_v33  ;;  %2012 = vmatprep.subr.bf16.mxu0 %v2181_v34  ;;  %v2219_v5 = vld [vmem:[%s2668_s13 + $0x160] sm:$0xff]   ;;  %v2223_v9 = vld [vmem:[%s2668_s13 + $0x168] sm:$0xff]   ;;  %v2227_v13 = vld [vmem:[%s2668_s13 + $0x170] sm:$0xff]  }
  0x8f   : > { %2034 = vmatprep.subr.bf16.mxu1 %v2182_v35  ;;  %v2220_v6 = vld [vmem:[%s2668_s13 + $0x120] sm:$0xff]   ;;  %v2224_v10 = vld [vmem:[%s2668_s13 + $0x128] sm:$0xff]   ;;  %v2228_v14 = vld [vmem:[%s2668_s13 + $0x130] sm:$0xff]  }
  0x90   : > { %v2221_v7 = vld [vmem:[%s2668_s13 + $0x1e0] sm:$0xff]   ;;  %v2225_v11 = vld [vmem:[%s2668_s13 + $0x1e8] sm:$0xff]   ;;  %v2229_v15 = vld [vmem:[%s2668_s13 + $0x1f0] sm:$0xff]  }
  0x91   : > { %2013 = vmatpush3.bf16.msra.mxu0 %v2183_v36  ;;  %v2222_v8 = vld [vmem:[%s2668_s13 + $0x1a0] sm:$0xff]   ;;  %v2226_v12 = vld [vmem:[%s2668_s13 + $0x1a8] sm:$0xff]   ;;  %v2230_v16 = vld [vmem:[%s2668_s13 + $0x1b0] sm:$0xff]  }
  0x92   : > { %2035 = vmatpush3.bf16.msra.mxu1 %v2184_v37  ;;  %2014 = vmatprep.subr.bf16.mxu0 %v2185_v38  ;;  %v2231_v17 = vld [vmem:[%s2668_s13 + $0x178] sm:$0xff]   ;;  %v2234_v19 = vld [vmem:[%s2794_s0 + $0x10] ss:$36 sps:$4 sm:$0xff]   ;;  %v2241_v25 = vld [vmem:[%s2668_s13 + $0x200] sm:$0xff]  }
  0x93   : > { %2036 = vmatprep.subr.bf16.mxu1 %v2186_v39  ;;  %v2232_v18 = vld [vmem:[%s2668_s13 + $0x138] sm:$0xff]   ;;  %v2242_v26 = vld [vmem:[%s2668_s13 + $0x208] sm:$0xff]   ;;  %v2243_v27 = vld [vmem:[%s2668_s13 + $0x210] sm:$0xff]  }
  0x94   : > { %v2233_v20 = vld [vmem:[%s2668_s13 + $0x1f8] sm:$0xff]   ;;  %v2245_v29 = vld [vmem:[%s2668_s13 + $0x220] sm:$0xff]   ;;  %v2246_v30 = vld [vmem:[%s2668_s13 + $0x228] sm:$0xff]  }
  0x95   : > { %2015 = vmatpush3.bf16.msra.mxu0 %v2187_v40  ;;  %v2237_v21 = vld [vmem:[%s2668_s13 + $0x1b8] sm:$0xff]   ;;  %v2247_v31 = vld [vmem:[%s2668_s13 + $0x230] sm:$0xff]   ;;  %v2249_v33 = vld [vmem:[%s2794_s0 + $0x20] ss:$36 sps:$4 sm:$0xff]  }
  0x96   : > { %2037 = vmatpush3.bf16.msra.mxu1 %v2188_v41  ;;  %2016 = vmatprep.subr.bf16.mxu0 %v2189_v42  ;;  %v2238_v22 = vld [vmem:[%s2794_s0 + $0x18] ss:$36 sps:$4 sm:$0xff]  }
  0x97   : > { %2038 = vmatprep.subr.bf16.mxu1 %v2190_v43  ;;  %v2240_v24 = vld [vmem:[%s2794_s0 + $0x1c] ss:$36 sps:$4 sm:$0xff]  }
  0x98   : > { %v2244_v28 = vld [vmem:[%s2668_s13 + $0x218] sm:$0xff]  }
  0x99   : > { %2017 = vmatpush3.bf16.msra.mxu0 %v2191_v44  ;;  %v2248_v32 = vld [vmem:[%s2668_s13 + $0x238] sm:$0xff]  }
  0x9a   : > { %2039 = vmatpush3.bf16.msra.mxu1 %v2192_v45  ;;  %2018 = vmatprep.subr.bf16.mxu0 %v2193_v46 }
  0x9b   : > { %2040 = vmatprep.subr.bf16.mxu1 %v2194_v47 }
  0x9d   : > { %2019 = vmatpush3.bf16.msra.mxu0 %v2195_v49 }
  0x9e   : > { %2041 = vmatpush3.bf16.msra.mxu1 %v2196_v51  ;;  %2048 = vmatprep.subr.bf16.mxu0 %v2203_v53 }
  0x9f   : > { %2070 = vmatprep.subr.bf16.mxu1 %v2205_v55 }
  0xa0   : > { %1539 = vmatmul.mubr.bf16.vlgmr.msra.gmra.mrb[0].mxu0 %v2197_v48 }
  0xa1   : > { %1580 = vmatmul.mubr.bf16.vlgmr.msra.gmra.mrb[0].mxu1 %v2200_v50  ;;  %2049 = vmatpush3.bf16.msra.mxu0 %v2204_v54 }
  0xa2   : > { %1620 = vmatprep.mubr.bf16.mxu0 %v2236_v52  ;;  %2071 = vmatpush3.bf16.msra.mxu1 %v2206_v56 }
  0xa3   : > { %2050 = vmatprep.subr.bf16.mxu0 %v2207_v57  ;;  %2072 = vmatprep.subr.bf16.mxu1 %v2209_v59 }
  0xa4   : > { %1661 = vmatprep.mubr.bf16.mxu1 %v2240_v24 }
  0xa5   : > { %2051 = vmatpush3.bf16.msra.mxu0 %v2208_v58 }
  0xa6   : > { %2073 = vmatpush3.bf16.msra.mxu1 %v2210_v60  ;;  %2052 = vmatprep.subr.bf16.mxu0 %v2211_v61 }
  0xa7   : > { %2074 = vmatprep.subr.bf16.mxu1 %v2213_v63 }
  0xa9   : > { %2053 = vmatpush3.bf16.msra.mxu0 %v2212_v62 }
  0xaa   : > { %2075 = vmatpush3.bf16.msra.mxu1 %v2214_v0  ;;  %2054 = vmatprep.subr.bf16.mxu0 %v2215_v1  ;;  %v1989_v1 = vld [vmem:[%s868_s14] ss:$0 sm:$0xff] }
  0xab   : > { %2076 = vmatprep.subr.bf16.mxu1 %v2217_v3 }
  0xad   : > { %2055 = vmatpush3.bf16.msra.mxu0 %v2216_v2 }
  0xae   : > { %2077 = vmatpush3.bf16.msra.mxu1 %v2218_v4  ;;  %2056 = vmatprep.subr.bf16.mxu0 %v2219_v5  ;;  %v1990_v4 = vld [vmem:[%s871_s23] ss:$0 sm:$0xff] }
  0xaf   : > { %2078 = vmatprep.subr.bf16.mxu1 %v2221_v7 }
  0xb1   : > { %2057 = vmatpush3.bf16.msra.mxu0 %v2220_v6 }
  0xb2   : > { %2079 = vmatpush3.bf16.msra.mxu1 %v2222_v8  ;;  %2058 = vmatprep.subr.bf16.mxu0 %v2223_v9 }
  0xb3   : > { %2080 = vmatprep.subr.bf16.mxu1 %v2225_v11 }
  0xb5   : > { %2059 = vmatpush3.bf16.msra.mxu0 %v2224_v10 }
  0xb6   : > { %2081 = vmatpush3.bf16.msra.mxu1 %v2226_v12  ;;  %2060 = vmatprep.subr.bf16.mxu0 %v2227_v13 }
  0xb7   : > { %2082 = vmatprep.subr.bf16.mxu1 %v2229_v15 }
  0xb9   : > { %2061 = vmatpush3.bf16.msra.mxu0 %v2228_v14 }
  0xba   : > { %2083 = vmatpush3.bf16.msra.mxu1 %v2230_v16  ;;  %2062 = vmatprep.subr.bf16.mxu0 %v2231_v17 }
  0xbb   : > { %2084 = vmatprep.subr.bf16.mxu1 %v2233_v20 }
  0xbd   : > { %2063 = vmatpush3.bf16.msra.mxu0 %v2232_v18 }
  0xbe   : > { %2101 = vmatprep.subr.bf16.mxu0 %v2290_v23  ;;  %2085 = vmatpush3.bf16.msra.mxu1 %v2237_v21 }
  0xc0   : > { %1621 = vmatmul.mubr.bf16.vlgmr.msra.gmra.mrb[4].mxu0 %v2234_v19 }
  0xc1   : > { %2102 = vmatpush3.bf16.msra.mxu0 %v2241_v25  ;;  %2117 = vmatprep.mubr.msk.bf16.mxu0 %vm2291_vm0, %v2290_v23 }
  0xc2   : > { %1662 = vmatmul.mubr.bf16.vlgmr.msra.gmra.mrb[4].mxu1 %v2238_v22  ;;  %2103 = vmatprep.subr.bf16.mxu0 %v2290_v23 }
  0xc5   : > { %2104 = vmatpush3.bf16.msra.mxu0 %v2242_v26 }
  0xc6   : > { %2105 = vmatprep.subr.bf16.mxu0 %v2290_v23 }
  0xc9   : > { %2106 = vmatpush3.bf16.msra.mxu0 %v2243_v27 }
  0xca   : > { %2107 = vmatprep.subr.bf16.mxu0 %v2290_v23 }
  0xcd   : > { %2108 = vmatpush3.bf16.msra.mxu0 %v2244_v28 }
  0xce   : > { %2109 = vmatprep.subr.bf16.mxu0 %v2290_v23 }
  0xd1   : > { %2110 = vmatpush3.bf16.msra.mxu0 %v2245_v29 }
  0xd2   : > { %2111 = vmatprep.subr.bf16.mxu0 %v2290_v23 }
  0xd5   : > { %2112 = vmatpush3.bf16.msra.mxu0 %v2246_v30 }
  0xd6   : > { %2113 = vmatprep.subr.bf16.mxu0 %v2290_v23 }
  0xd9   : > { %2114 = vmatpush3.bf16.msra.mxu0 %v2247_v31 }
  0xda   : > { %2115 = vmatprep.subr.bf16.mxu0 %v2290_v23 }
  0xdd   : > { %2116 = vmatpush3.bf16.msra.mxu0 %v2248_v32 }
  0xe0   : > { %2118 = vmatmul.mubr.bf16.vlgmr.msra.gmra.mrb[8].mxu0 %v2249_v33 }
 0x173   : > { %v2020_v34 = vpop.f32.mrb[0].mxu0 }
 0x174   : > { %v2042_v35 = vpop.f32.mrb[0].mxu1  ;;  %v2021_v36 = vpop.f32.mrb[1].mxu0 }
 0x175   : > { %v2022_v37 = vadd.f32 %v2021_v36, %v2020_v34  ;;  %v2043_v38 = vpop.f32.mrb[1].mxu1  ;;  %v2023_v39 = vpop.f32.mrb[2].mxu0 }
 0x176   : > { %v2044_v40 = vadd.f32 %v2043_v38, %v2042_v35  ;;  %v2045_v41 = vpop.f32.mrb[2].mxu1  ;;  %v2024_v42 = vpop.f32.mrb[3].mxu0 }
 0x177   : > { %v2025_v43 = vadd.f32 %v2024_v42, %v2023_v39  ;;  %v2046_v44 = vpop.f32.mrb[3].mxu1 }
 0x178   : > { %v1582_v45 = vadd.f32 %v2044_v40, %v2022_v37  ;;  %v2047_v46 = vadd.f32 %v2046_v44, %v2045_v41 }
 0x17a   : > { %v1585_v47 = vadd.f32 %v2047_v46, %v2025_v43 }
 0x193   : > { %v2064_v48 = vpop.f32.mrb[4].mxu0 }
 0x194   : > { %v2065_v49 = vpop.f32.mrb[5].mxu0 }
 0x195   : > { %v2066_v50 = vadd.f32 %v2065_v49, %v2064_v48  ;;  %v2067_v51 = vpop.f32.mrb[6].mxu0  ;;  %v2086_v52 = vpop.f32.mrb[4].mxu1 }
 0x196   : > { %v2068_v53 = vpop.f32.mrb[7].mxu0  ;;  %v2087_v54 = vpop.f32.mrb[5].mxu1 }
 0x197   : > { %v1623_v55 = vadd.f32 %v2066_v50, %v1582_v45  ;;  %v2069_v56 = vadd.f32 %v2068_v53, %v2067_v51  ;;  %v2088_v57 = vadd.f32 %v2087_v54, %v2086_v52  ;;  %v2089_v58 = vpop.f32.mrb[6].mxu1 }
 0x198   : > { %v2090_v59 = vpop.f32.mrb[7].mxu1 }
 0x199   : > { %v1626_v60 = vadd.f32 %v2069_v56, %v1585_v47  ;;  %v2091_v61 = vadd.f32 %v2090_v59, %v2089_v58  ;;  %v1664_v62 = vadd.f32 %v2088_v57, %v1623_v55 }
 0x19b   : > { %v1667_v63 = vadd.f32 %v2091_v61, %v1626_v60 }
 0x1b3   : > { %v1704_v0 = vpop.f32.mrb[8].mxu0 }
 0x1b4   : > { %v1705_v2 = vadd.f32 %v1704_v0, %v1664_v62  ;;  %v2119_v3 = vpop.f32.mrb[9].mxu0 }
 0x1b5   : > { %v1707_v5 = vpop.f32.mrb[10].mxu0 }
 0x1b6   : > { %v1718_v6 = vmul.f32 %v1989_v1, %v1705_v2  ;;  %v1708_v7 = vadd.f32 %v1707_v5, %v1667_v63  ;;  %v2120_v8 = vpop.f32.mrb[11].mxu0 }
 0x1b8   : > { %v1727_v9 = vadd.f32 %v1990_v4, %v1718_v6  ;;  %v1719_v10 = vmul.f32 %v1989_v1, %v1708_v7 }
 0x1ba   : > { %v1731_v11 = vmul.f32 0.01, %v1727_v9  ;;  %v1728_v12 = vadd.f32 %v1990_v4, %v1719_v10  ;;  %vm1729_vm1 = vcmp.ge.f32.partialorder %v1727_v9, 0.0 }
 0x1bb   : > { %1751 = sbr.rel (!%p2352_p6) target bundleno = 458 (0x1ca), region = 81 }
 0x1bc   : > { %vm1730_vm2 = vcmp.ge.f32.partialorder %v1728_v12, 0.0  ;;  %v1732_v13 = vmul.f32 0.01, %v1728_v12  ;;  %v1733_v14 = vsel %vm1729_vm1, %v1727_v9, %v1731_v11 }
 0x1be   : > { %v1734_v15 = vsel %vm1730_vm2, %v1728_v12, %v1732_v13 }
 0x1bf   : > { %v2002_v16 = vpack.c.bf16 %v1734_v15, %v1733_v14 }
 0x1c1   : > { %2003 = vst [vmem:[%s858_s27] sm:$0xff] %v2002_v16  }
 0x1c8   : > { %v1772_v17 = vld [vmem:[%s858_s27] sm:$0xf]  ;;  %v1774_v18 = vld [vmem:[%s858_s27 + $0x4] sm:$0xf] }
 0x1c9   : > { %1773 = vst [vmem:[%s1756_s5] sm:$0xf] %v1772_v17  ;;  %1775 = vst [vmem:[%s1756_s5 + $0x8] sm:$0xf] %v1774_v18 }
 0x1ca PF: > { %s14_s19 = sadd.s32 1, %s2288_s19   ;;  %s2800_s15 = smov %s2276_s16 }
 0x1cb   : > { %p11_p12 = scmp.ge.s32.totalorder %s14_s19, 4   ;;  %s2801_s16 = smov %s2357_s25 }
 0x1cc   : > { %s2802_s17 = smov %s2284_s18  ;;  %s2803_s18 = smov %s2805_s20 }
 0x1cd   :  { %13 = sbr.rel (!%p11_p12) target bundleno = 3 (0x3), region = 162 }

// kernel: autoencoder_forward.12
= control target key start
LH: loop header
LB: loop body
LE: loop exit
PB: predicated region body
PF: predicated region fallthrough
CT: control target
= control target key end

     0   :  { %s4812_s15 = smov 0   ;;  %s4814_s16 = smov 0   ;;  %s5819_s0 = inlined_call_operand.vmem [shape: bf16[16,2304], index: 0, kind: input, shape index: {}]   ;;  %s5820_s1 = inlined_call_operand.vmem [shape: bf16[2304,512], index: 1, kind: input, shape index: {}]   ;;  %s5821_s2 = inlined_call_operand.vmem [shape: f32[1,512], index: 2, kind: input, shape index: {}]   ;;  %s5822_s3 = inlined_call_operand.vmem [shape: f32[1,512], index: 3, kind: input, shape index: {}]   ;;  %s5823_s4 = inlined_call_operand.vmem [shape: bf16[16,512], index: 4, kind: output, shape index: {}]  }
   0x1   :  { %s4816_s17 = smov 0   ;;  %s4818_s18 = smov 0  }
   0x2   :  { %s4820_s19 = smov 0  }
   0x3 LB: > { %s23_s20 = sadd.s32 1, %s4781_s18  ;;  %s3886_s21 = sadd.s32 4294967295, %s4785_s19   ;;  %s4785_s19 = sphi %s4820_s19, %s14_s19   ;;  %s4781_s18 = sphi %s4818_s18, %s5828_s18   ;;  %s4777_s17 = sphi %s4816_s17, %s5827_s17   ;;  %s4773_s16 = sphi %s4814_s16, %s5826_s16   ;;  %s4769_s15 = sphi %s4812_s15, %s5825_s15  }
   0x4   : > { %p24_p0 = scmp.ge.s32.totalorder %s23_s20, 2  ;;  %p66_p1 = scmp.ne.s32.totalorder %s4773_s16, %s4769_s15 }
   0x5   : > { %p67_p2 = scmp.eq.s32.totalorder %s4785_s19, 0  ;;  %p150_p4 = scmp.eq.s32.totalorder %s3886_s21, 1 }
   0x6   : > { %s5830_s20 = smov (%p24_p0, %s23_s20), 0  ;;  %s59_s23 = sadd.s32 1, %s4773_s16 }
   0x7   : > { %p68_p3 = por %p67_p2, %p66_p1  ;;  %s56_s22 = ssub.s32 %s4781_s18, %s5830_s20 }
   0x8   : > { %p57_p5 = scmp.eq.s32.totalorder %s56_s22, 0  ;;  %p4847_p6 = por %p150_p4, %p66_p1 }
   0x9   : > { %p3890_p7 = scmp.ge.s32.totalorder %s4785_s19, 2 }
   0xa   : > { %s4852_s25 = scalar_select %p57_p5, %s4773_s16, %s59_s23  }
   0xb   : > { %182 = sbr.rel (%p3890_p7) target bundleno = 166 (0xa6), region = 20 }
  0x12   : > { %185 = sbr.rel (!%p68_p3) target bundleno = 166 (0xa6), region = 24  ;;  %s187_s26 = sand.u32 (%p68_p3), 1, %s4773_s16  }
  0x13   : > { %s4210_s27 = sshll.u32 (%p68_p3), %s4781_s18, 3  ;;  %s4246_s28 = smul.u32 (%p68_p3), 2304, %s187_s26 }
  0x14   : > { %s4860_s5 = scalar_lea.vmem (%p68_p3), %s5820_s1, %s4210_s27 }
  0x15   : > { %v794_v0 = vld [vmem:[%s4860_s5] sm:$0xff] (%p68_p3)  ;;  %v796_v1 = vld [vmem:[%s4860_s5 + $0x10] sm:$0xff] (%p68_p3)  ;;  %s4868_s6 = scalar_lea.vmem (%p68_p3), [#allocation2], %s4246_s28 }
  0x16   : > { %v798_v2 = vld [vmem:[%s4860_s5 + $0x20] sm:$0xff] (%p68_p3)  ;;  %v800_v3 = vld [vmem:[%s4860_s5 + $0x30] sm:$0xff] (%p68_p3)  ;;  %795 = vst [vmem:[%s4868_s6] sm:$0xff] (%p68_p3), %v794_v0  ;;  %797 = vst [vmem:[%s4868_s6 + $0x8] sm:$0xff] (%p68_p3), %v796_v1 }
  0x17   : > { %v802_v4 = vld [vmem:[%s4860_s5 + $0x40] sm:$0xff] (%p68_p3)  ;;  %v804_v5 = vld [vmem:[%s4860_s5 + $0x50] sm:$0xff] (%p68_p3)  ;;  %799 = vst [vmem:[%s4868_s6 + $0x10] sm:$0xff] (%p68_p3), %v798_v2  ;;  %801 = vst [vmem:[%s4868_s6 + $0x18] sm:$0xff] (%p68_p3), %v800_v3 }
  0x18   : > { %803 = vst [vmem:[%s4868_s6 + $0x20] sm:$0xff] (%p68_p3), %v802_v4  ;;  %805 = vst [vmem:[%s4868_s6 + $0x28] sm:$0xff] (%p68_p3), %v804_v5  ;;  %v806_v6 = vld [vmem:[%s4860_s5 + $0x60] sm:$0xff] (%p68_p3)  ;;  %v808_v7 = vld [vmem:[%s4860_s5 + $0x70] sm:$0xff] (%p68_p3) }
  0x19   : > { %v810_v8 = vld [vmem:[%s4860_s5 + $0x80] sm:$0xff]  ;;  %807 = vst [vmem:[%s4868_s6 + $0x30] sm:$0xff] %v806_v6  ;;  %809 = vst [vmem:[%s4868_s6 + $0x38] sm:$0xff] %v808_v7  ;;  %v812_v9 = vld [vmem:[%s4860_s5 + $0x90] sm:$0xff] }
  0x1a   : > { %811 = vst [vmem:[%s4868_s6 + $0x40] sm:$0xff] %v810_v8  ;;  %v814_v10 = vld [vmem:[%s4860_s5 + $0xa0] sm:$0xff]  ;;  %v816_v11 = vld [vmem:[%s4860_s5 + $0xb0] sm:$0xff]  ;;  %813 = vst [vmem:[%s4868_s6 + $0x48] sm:$0xff] %v812_v9 }
  0x1b   : > { %815 = vst [vmem:[%s4868_s6 + $0x50] sm:$0xff] %v814_v10  ;;  %817 = vst [vmem:[%s4868_s6 + $0x58] sm:$0xff] %v816_v11  ;;  %v818_v12 = vld [vmem:[%s4860_s5 + $0xc0] sm:$0xff]  ;;  %v820_v13 = vld [vmem:[%s4860_s5 + $0xd0] sm:$0xff] }
  0x1c   : > { %v822_v14 = vld [vmem:[%s4860_s5 + $0xe0] sm:$0xff]  ;;  %819 = vst [vmem:[%s4868_s6 + $0x60] sm:$0xff] %v818_v12  ;;  %821 = vst [vmem:[%s4868_s6 + $0x68] sm:$0xff] %v820_v13  ;;  %v824_v15 = vld [vmem:[%s4860_s5 + $0xf0] sm:$0xff] }
  0x1d   : > { %823 = vst [vmem:[%s4868_s6 + $0x70] sm:$0xff] %v822_v14  ;;  %v826_v16 = vld [vmem:[%s4860_s5 + $0x100] sm:$0xff]  ;;  %v828_v17 = vld [vmem:[%s4860_s5 + $0x110] sm:$0xff]  ;;  %825 = vst [vmem:[%s4868_s6 + $0x78] sm:$0xff] %v824_v15 }
  0x1e   : > { %827 = vst [vmem:[%s4868_s6 + $0x80] sm:$0xff] %v826_v16  ;;  %829 = vst [vmem:[%s4868_s6 + $0x88] sm:$0xff] %v828_v17  ;;  %v830_v18 = vld [vmem:[%s4860_s5 + $0x120] sm:$0xff]  ;;  %v832_v19 = vld [vmem:[%s4860_s5 + $0x130] sm:$0xff] }
  0x1f   : > { %v834_v20 = vld [vmem:[%s4860_s5 + $0x140] sm:$0xff]  ;;  %831 = vst [vmem:[%s4868_s6 + $0x90] sm:$0xff] %v830_v18  ;;  %833 = vst [vmem:[%s4868_s6 + $0x98] sm:$0xff] %v832_v19  ;;  %v836_v21 = vld [vmem:[%s4860_s5 + $0x150] sm:$0xff] }
  0x20   : > { %835 = vst [vmem:[%s4868_s6 + $0xa0] sm:$0xff] %v834_v20  ;;  %v838_v22 = vld [vmem:[%s4860_s5 + $0x160] sm:$0xff]  ;;  %v840_v23 = vld [vmem:[%s4860_s5 + $0x170] sm:$0xff]  ;;  %837 = vst [vmem:[%s4868_s6 + $0xa8] sm:$0xff] %v836_v21 }
  0x21   : > { %839 = vst [vmem:[%s4868_s6 + $0xb0] sm:$0xff] %v838_v22  ;;  %841 = vst [vmem:[%s4868_s6 + $0xb8] sm:$0xff] %v840_v23  ;;  %v842_v24 = vld [vmem:[%s4860_s5 + $0x180] sm:$0xff]  ;;  %v844_v25 = vld [vmem:[%s4860_s5 + $0x190] sm:$0xff] }
  0x22   : > { %v846_v26 = vld [vmem:[%s4860_s5 + $0x1a0] sm:$0xff]  ;;  %843 = vst [vmem:[%s4868_s6 + $0xc0] sm:$0xff] %v842_v24  ;;  %845 = vst [vmem:[%s4868_s6 + $0xc8] sm:$0xff] %v844_v25  ;;  %v848_v27 = vld [vmem:[%s4860_s5 + $0x1b0] sm:$0xff] }
  0x23   : > { %847 = vst [vmem:[%s4868_s6 + $0xd0] sm:$0xff] %v846_v26  ;;  %v850_v28 = vld [vmem:[%s4860_s5 + $0x1c0] sm:$0xff]  ;;  %v852_v29 = vld [vmem:[%s4860_s5 + $0x1d0] sm:$0xff]  ;;  %849 = vst [vmem:[%s4868_s6 + $0xd8] sm:$0xff] %v848_v27 }
  0x24   : > { %851 = vst [vmem:[%s4868_s6 + $0xe0] sm:$0xff] %v850_v28  ;;  %853 = vst [vmem:[%s4868_s6 + $0xe8] sm:$0xff] %v852_v29  ;;  %v854_v30 = vld [vmem:[%s4860_s5 + $0x1e0] sm:$0xff]  ;;  %v856_v31 = vld [vmem:[%s4860_s5 + $0x1f0] sm:$0xff] }
  0x25   : > { %v858_v32 = vld [vmem:[%s4860_s5 + $0x200] sm:$0xff]  ;;  %855 = vst [vmem:[%s4868_s6 + $0xf0] sm:$0xff] %v854_v30  ;;  %857 = vst [vmem:[%s4868_s6 + $0xf8] sm:$0xff] %v856_v31  ;;  %v860_v33 = vld [vmem:[%s4860_s5 + $0x210] sm:$0xff] }
  0x26   : > { %859 = vst [vmem:[%s4868_s6 + $0x100] sm:$0xff] %v858_v32  ;;  %v862_v34 = vld [vmem:[%s4860_s5 + $0x220] sm:$0xff]  ;;  %v864_v35 = vld [vmem:[%s4860_s5 + $0x230] sm:$0xff]  ;;  %861 = vst [vmem:[%s4868_s6 + $0x108] sm:$0xff] %v860_v33 }
  0x27   : > { %863 = vst [vmem:[%s4868_s6 + $0x110] sm:$0xff] %v862_v34  ;;  %865 = vst [vmem:[%s4868_s6 + $0x118] sm:$0xff] %v864_v35  ;;  %v866_v36 = vld [vmem:[%s4860_s5 + $0x240] sm:$0xff]  ;;  %v868_v37 = vld [vmem:[%s4860_s5 + $0x250] sm:$0xff] }
  0x28   : > { %v870_v38 = vld [vmem:[%s4860_s5 + $0x260] sm:$0xff]  ;;  %867 = vst [vmem:[%s4868_s6 + $0x120] sm:$0xff] %v866_v36  ;;  %869 = vst [vmem:[%s4868_s6 + $0x128] sm:$0xff] %v868_v37  ;;  %v872_v39 = vld [vmem:[%s4860_s5 + $0x270] sm:$0xff] }
  0x29   : > { %871 = vst [vmem:[%s4868_s6 + $0x130] sm:$0xff] %v870_v38  ;;  %v874_v40 = vld [vmem:[%s4860_s5 + $0x280] sm:$0xff]  ;;  %v876_v41 = vld [vmem:[%s4860_s5 + $0x290] sm:$0xff]  ;;  %873 = vst [vmem:[%s4868_s6 + $0x138] sm:$0xff] %v872_v39 }
  0x2a   : > { %875 = vst [vmem:[%s4868_s6 + $0x140] sm:$0xff] %v874_v40  ;;  %877 = vst [vmem:[%s4868_s6 + $0x148] sm:$0xff] %v876_v41  ;;  %v878_v42 = vld [vmem:[%s4860_s5 + $0x2a0] sm:$0xff]  ;;  %v880_v43 = vld [vmem:[%s4860_s5 + $0x2b0] sm:$0xff] }
  0x2b   : > { %v882_v44 = vld [vmem:[%s4860_s5 + $0x2c0] sm:$0xff]  ;;  %879 = vst [vmem:[%s4868_s6 + $0x150] sm:$0xff] %v878_v42  ;;  %881 = vst [vmem:[%s4868_s6 + $0x158] sm:$0xff] %v880_v43  ;;  %v884_v45 = vld [vmem:[%s4860_s5 + $0x2d0] sm:$0xff] }
  0x2c   : > { %883 = vst [vmem:[%s4868_s6 + $0x160] sm:$0xff] %v882_v44  ;;  %v886_v46 = vld [vmem:[%s4860_s5 + $0x2e0] sm:$0xff]  ;;  %v888_v47 = vld [vmem:[%s4860_s5 + $0x2f0] sm:$0xff]  ;;  %885 = vst [vmem:[%s4868_s6 + $0x168] sm:$0xff] %v884_v45 }
  0x2d   : > { %887 = vst [vmem:[%s4868_s6 + $0x170] sm:$0xff] %v886_v46  ;;  %889 = vst [vmem:[%s4868_s6 + $0x178] sm:$0xff] %v888_v47  ;;  %v890_v48 = vld [vmem:[%s4860_s5 + $0x300] sm:$0xff]  ;;  %v892_v49 = vld [vmem:[%s4860_s5 + $0x310] sm:$0xff] }
  0x2e   : > { %v894_v50 = vld [vmem:[%s4860_s5 + $0x320] sm:$0xff]  ;;  %891 = vst [vmem:[%s4868_s6 + $0x180] sm:$0xff] %v890_v48  ;;  %893 = vst [vmem:[%s4868_s6 + $0x188] sm:$0xff] %v892_v49  ;;  %v896_v51 = vld [vmem:[%s4860_s5 + $0x330] sm:$0xff] }
  0x2f   : > { %895 = vst [vmem:[%s4868_s6 + $0x190] sm:$0xff] %v894_v50  ;;  %v898_v52 = vld [vmem:[%s4860_s5 + $0x340] sm:$0xff]  ;;  %v900_v53 = vld [vmem:[%s4860_s5 + $0x350] sm:$0xff]  ;;  %897 = vst [vmem:[%s4868_s6 + $0x198] sm:$0xff] %v896_v51 }
  0x30   : > { %899 = vst [vmem:[%s4868_s6 + $0x1a0] sm:$0xff] %v898_v52  ;;  %901 = vst [vmem:[%s4868_s6 + $0x1a8] sm:$0xff] %v900_v53  ;;  %v902_v54 = vld [vmem:[%s4860_s5 + $0x360] sm:$0xff]  ;;  %v904_v55 = vld [vmem:[%s4860_s5 + $0x370] sm:$0xff] }
  0x31   : > { %v906_v56 = vld [vmem:[%s4860_s5 + $0x380] sm:$0xff]  ;;  %903 = vst [vmem:[%s4868_s6 + $0x1b0] sm:$0xff] %v902_v54  ;;  %905 = vst [vmem:[%s4868_s6 + $0x1b8] sm:$0xff] %v904_v55  ;;  %v908_v57 = vld [vmem:[%s4860_s5 + $0x390] sm:$0xff] }
  0x32   : > { %907 = vst [vmem:[%s4868_s6 + $0x1c0] sm:$0xff] %v906_v56  ;;  %v910_v58 = vld [vmem:[%s4860_s5 + $0x3a0] sm:$0xff]  ;;  %v912_v59 = vld [vmem:[%s4860_s5 + $0x3b0] sm:$0xff]  ;;  %909 = vst [vmem:[%s4868_s6 + $0x1c8] sm:$0xff] %v908_v57 }
  0x33   : > { %911 = vst [vmem:[%s4868_s6 + $0x1d0] sm:$0xff] %v910_v58  ;;  %913 = vst [vmem:[%s4868_s6 + $0x1d8] sm:$0xff] %v912_v59  ;;  %v914_v60 = vld [vmem:[%s4860_s5 + $0x3c0] sm:$0xff]  ;;  %v916_v61 = vld [vmem:[%s4860_s5 + $0x3d0] sm:$0xff] }
  0x34   : > { %v918_v62 = vld [vmem:[%s4860_s5 + $0x3e0] sm:$0xff]  ;;  %915 = vst [vmem:[%s4868_s6 + $0x1e0] sm:$0xff] %v914_v60  ;;  %917 = vst [vmem:[%s4868_s6 + $0x1e8] sm:$0xff] %v916_v61  ;;  %v920_v63 = vld [vmem:[%s4860_s5 + $0x3f0] sm:$0xff] }
  0x35   : > { %919 = vst [vmem:[%s4868_s6 + $0x1f0] sm:$0xff] %v918_v62  ;;  %v922_v0 = vld [vmem:[%s4860_s5 + $0x400] sm:$0xff]  ;;  %v924_v1 = vld [vmem:[%s4860_s5 + $0x410] sm:$0xff]  ;;  %921 = vst [vmem:[%s4868_s6 + $0x1f8] sm:$0xff] %v920_v63 }
  0x36   : > { %923 = vst [vmem:[%s4868_s6 + $0x200] sm:$0xff] %v922_v0  ;;  %925 = vst [vmem:[%s4868_s6 + $0x208] sm:$0xff] %v924_v1  ;;  %v926_v2 = vld [vmem:[%s4860_s5 + $0x420] sm:$0xff]  ;;  %v928_v3 = vld [vmem:[%s4860_s5 + $0x430] sm:$0xff] }
  0x37   : > { %v930_v4 = vld [vmem:[%s4860_s5 + $0x440] sm:$0xff]  ;;  %927 = vst [vmem:[%s4868_s6 + $0x210] sm:$0xff] %v926_v2  ;;  %929 = vst [vmem:[%s4868_s6 + $0x218] sm:$0xff] %v928_v3  ;;  %v932_v5 = vld [vmem:[%s4860_s5 + $0x450] sm:$0xff] }
  0x38   : > { %931 = vst [vmem:[%s4868_s6 + $0x220] sm:$0xff] %v930_v4  ;;  %v934_v6 = vld [vmem:[%s4860_s5 + $0x460] sm:$0xff]  ;;  %v936_v7 = vld [vmem:[%s4860_s5 + $0x470] sm:$0xff]  ;;  %933 = vst [vmem:[%s4868_s6 + $0x228] sm:$0xff] %v932_v5 }
  0x39   : > { %935 = vst [vmem:[%s4868_s6 + $0x230] sm:$0xff] %v934_v6  ;;  %937 = vst [vmem:[%s4868_s6 + $0x238] sm:$0xff] %v936_v7  ;;  %v938_v8 = vld [vmem:[%s4860_s5 + $0x480] sm:$0xff]  ;;  %v940_v9 = vld [vmem:[%s4860_s5 + $0x490] sm:$0xff] }
  0x3a   : > { %v942_v10 = vld [vmem:[%s4860_s5 + $0x4a0] sm:$0xff]  ;;  %939 = vst [vmem:[%s4868_s6 + $0x240] sm:$0xff] %v938_v8  ;;  %941 = vst [vmem:[%s4868_s6 + $0x248] sm:$0xff] %v940_v9  ;;  %v944_v11 = vld [vmem:[%s4860_s5 + $0x4b0] sm:$0xff] }
  0x3b   : > { %943 = vst [vmem:[%s4868_s6 + $0x250] sm:$0xff] %v942_v10  ;;  %v946_v12 = vld [vmem:[%s4860_s5 + $0x4c0] sm:$0xff]  ;;  %v948_v13 = vld [vmem:[%s4860_s5 + $0x4d0] sm:$0xff]  ;;  %945 = vst [vmem:[%s4868_s6 + $0x258] sm:$0xff] %v944_v11 }
  0x3c   : > { %947 = vst [vmem:[%s4868_s6 + $0x260] sm:$0xff] %v946_v12  ;;  %949 = vst [vmem:[%s4868_s6 + $0x268] sm:$0xff] %v948_v13  ;;  %v950_v14 = vld [vmem:[%s4860_s5 + $0x4e0] sm:$0xff]  ;;  %v952_v15 = vld [vmem:[%s4860_s5 + $0x4f0] sm:$0xff] }
  0x3d   : > { %v954_v16 = vld [vmem:[%s4860_s5 + $0x500] sm:$0xff]  ;;  %951 = vst [vmem:[%s4868_s6 + $0x270] sm:$0xff] %v950_v14  ;;  %953 = vst [vmem:[%s4868_s6 + $0x278] sm:$0xff] %v952_v15  ;;  %v956_v17 = vld [vmem:[%s4860_s5 + $0x510] sm:$0xff] }
  0x3e   : > { %955 = vst [vmem:[%s4868_s6 + $0x280] sm:$0xff] %v954_v16  ;;  %v958_v18 = vld [vmem:[%s4860_s5 + $0x520] sm:$0xff]  ;;  %v960_v19 = vld [vmem:[%s4860_s5 + $0x530] sm:$0xff]  ;;  %957 = vst [vmem:[%s4868_s6 + $0x288] sm:$0xff] %v956_v17 }
  0x3f   : > { %959 = vst [vmem:[%s4868_s6 + $0x290] sm:$0xff] %v958_v18  ;;  %961 = vst [vmem:[%s4868_s6 + $0x298] sm:$0xff] %v960_v19  ;;  %v962_v20 = vld [vmem:[%s4860_s5 + $0x540] sm:$0xff]  ;;  %v964_v21 = vld [vmem:[%s4860_s5 + $0x550] sm:$0xff] }
  0x40   : > { %v966_v22 = vld [vmem:[%s4860_s5 + $0x560] sm:$0xff]  ;;  %963 = vst [vmem:[%s4868_s6 + $0x2a0] sm:$0xff] %v962_v20  ;;  %965 = vst [vmem:[%s4868_s6 + $0x2a8] sm:$0xff] %v964_v21  ;;  %v968_v23 = vld [vmem:[%s4860_s5 + $0x570] sm:$0xff] }
  0x41   : > { %967 = vst [vmem:[%s4868_s6 + $0x2b0] sm:$0xff] %v966_v22  ;;  %v970_v24 = vld [vmem:[%s4860_s5 + $0x580] sm:$0xff]  ;;  %v972_v25 = vld [vmem:[%s4860_s5 + $0x590] sm:$0xff]  ;;  %969 = vst [vmem:[%s4868_s6 + $0x2b8] sm:$0xff] %v968_v23 }
  0x42   : > { %971 = vst [vmem:[%s4868_s6 + $0x2c0] sm:$0xff] %v970_v24  ;;  %973 = vst [vmem:[%s4868_s6 + $0x2c8] sm:$0xff] %v972_v25  ;;  %v974_v26 = vld [vmem:[%s4860_s5 + $0x5a0] sm:$0xff]  ;;  %v976_v27 = vld [vmem:[%s4860_s5 + $0x5b0] sm:$0xff] }
  0x43   : > { %v978_v28 = vld [vmem:[%s4860_s5 + $0x5c0] sm:$0xff]  ;;  %975 = vst [vmem:[%s4868_s6 + $0x2d0] sm:$0xff] %v974_v26  ;;  %977 = vst [vmem:[%s4868_s6 + $0x2d8] sm:$0xff] %v976_v27  ;;  %v980_v29 = vld [vmem:[%s4860_s5 + $0x5d0] sm:$0xff] }
  0x44   : > { %979 = vst [vmem:[%s4868_s6 + $0x2e0] sm:$0xff] %v978_v28  ;;  %v982_v30 = vld [vmem:[%s4860_s5 + $0x5e0] sm:$0xff]  ;;  %v984_v31 = vld [vmem:[%s4860_s5 + $0x5f0] sm:$0xff]  ;;  %981 = vst [vmem:[%s4868_s6 + $0x2e8] sm:$0xff] %v980_v29 }
  0x45   : > { %983 = vst [vmem:[%s4868_s6 + $0x2f0] sm:$0xff] %v982_v30  ;;  %985 = vst [vmem:[%s4868_s6 + $0x2f8] sm:$0xff] %v984_v31  ;;  %v986_v32 = vld [vmem:[%s4860_s5 + $0x600] sm:$0xff]  ;;  %v988_v33 = vld [vmem:[%s4860_s5 + $0x610] sm:$0xff] }
  0x46   : > { %v990_v34 = vld [vmem:[%s4860_s5 + $0x620] sm:$0xff]  ;;  %987 = vst [vmem:[%s4868_s6 + $0x300] sm:$0xff] %v986_v32  ;;  %989 = vst [vmem:[%s4868_s6 + $0x308] sm:$0xff] %v988_v33  ;;  %v992_v35 = vld [vmem:[%s4860_s5 + $0x630] sm:$0xff] }
  0x47   : > { %991 = vst [vmem:[%s4868_s6 + $0x310] sm:$0xff] %v990_v34  ;;  %v994_v36 = vld [vmem:[%s4860_s5 + $0x640] sm:$0xff]  ;;  %v996_v37 = vld [vmem:[%s4860_s5 + $0x650] sm:$0xff]  ;;  %993 = vst [vmem:[%s4868_s6 + $0x318] sm:$0xff] %v992_v35 }
  0x48   : > { %995 = vst [vmem:[%s4868_s6 + $0x320] sm:$0xff] %v994_v36  ;;  %997 = vst [vmem:[%s4868_s6 + $0x328] sm:$0xff] %v996_v37  ;;  %v998_v38 = vld [vmem:[%s4860_s5 + $0x660] sm:$0xff]  ;;  %v1000_v39 = vld [vmem:[%s4860_s5 + $0x670] sm:$0xff] }
  0x49   : > { %v1002_v40 = vld [vmem:[%s4860_s5 + $0x680] sm:$0xff]  ;;  %999 = vst [vmem:[%s4868_s6 + $0x330] sm:$0xff] %v998_v38  ;;  %1001 = vst [vmem:[%s4868_s6 + $0x338] sm:$0xff] %v1000_v39  ;;  %v1004_v41 = vld [vmem:[%s4860_s5 + $0x690] sm:$0xff] }
  0x4a   : > { %1003 = vst [vmem:[%s4868_s6 + $0x340] sm:$0xff] %v1002_v40  ;;  %v1006_v42 = vld [vmem:[%s4860_s5 + $0x6a0] sm:$0xff]  ;;  %v1008_v43 = vld [vmem:[%s4860_s5 + $0x6b0] sm:$0xff]  ;;  %1005 = vst [vmem:[%s4868_s6 + $0x348] sm:$0xff] %v1004_v41 }
  0x4b   : > { %1007 = vst [vmem:[%s4868_s6 + $0x350] sm:$0xff] %v1006_v42  ;;  %1009 = vst [vmem:[%s4868_s6 + $0x358] sm:$0xff] %v1008_v43  ;;  %v1010_v44 = vld [vmem:[%s4860_s5 + $0x6c0] sm:$0xff]  ;;  %v1012_v45 = vld [vmem:[%s4860_s5 + $0x6d0] sm:$0xff] }
  0x4c   : > { %v1014_v46 = vld [vmem:[%s4860_s5 + $0x6e0] sm:$0xff]  ;;  %1011 = vst [vmem:[%s4868_s6 + $0x360] sm:$0xff] %v1010_v44  ;;  %1013 = vst [vmem:[%s4868_s6 + $0x368] sm:$0xff] %v1012_v45  ;;  %v1016_v47 = vld [vmem:[%s4860_s5 + $0x6f0] sm:$0xff] }
  0x4d   : > { %1015 = vst [vmem:[%s4868_s6 + $0x370] sm:$0xff] %v1014_v46  ;;  %v1018_v48 = vld [vmem:[%s4860_s5 + $0x700] sm:$0xff]  ;;  %v1020_v49 = vld [vmem:[%s4860_s5 + $0x710] sm:$0xff]  ;;  %1017 = vst [vmem:[%s4868_s6 + $0x378] sm:$0xff] %v1016_v47 }
  0x4e   : > { %1019 = vst [vmem:[%s4868_s6 + $0x380] sm:$0xff] %v1018_v48  ;;  %1021 = vst [vmem:[%s4868_s6 + $0x388] sm:$0xff] %v1020_v49  ;;  %v1022_v50 = vld [vmem:[%s4860_s5 + $0x720] sm:$0xff]  ;;  %v1024_v51 = vld [vmem:[%s4860_s5 + $0x730] sm:$0xff] }
  0x4f   : > { %v1026_v52 = vld [vmem:[%s4860_s5 + $0x740] sm:$0xff]  ;;  %1023 = vst [vmem:[%s4868_s6 + $0x390] sm:$0xff] %v1022_v50  ;;  %1025 = vst [vmem:[%s4868_s6 + $0x398] sm:$0xff] %v1024_v51  ;;  %v1028_v53 = vld [vmem:[%s4860_s5 + $0x750] sm:$0xff] }
  0x50   : > { %1027 = vst [vmem:[%s4868_s6 + $0x3a0] sm:$0xff] %v1026_v52  ;;  %v1030_v54 = vld [vmem:[%s4860_s5 + $0x760] sm:$0xff]  ;;  %v1032_v55 = vld [vmem:[%s4860_s5 + $0x770] sm:$0xff]  ;;  %1029 = vst [vmem:[%s4868_s6 + $0x3a8] sm:$0xff] %v1028_v53 }
  0x51   : > { %1031 = vst [vmem:[%s4868_s6 + $0x3b0] sm:$0xff] %v1030_v54  ;;  %1033 = vst [vmem:[%s4868_s6 + $0x3b8] sm:$0xff] %v1032_v55  ;;  %v1034_v56 = vld [vmem:[%s4860_s5 + $0x780] sm:$0xff]  ;;  %v1036_v57 = vld [vmem:[%s4860_s5 + $0x790] sm:$0xff] }
  0x52   : > { %v1038_v58 = vld [vmem:[%s4860_s5 + $0x7a0] sm:$0xff]  ;;  %1035 = vst [vmem:[%s4868_s6 + $0x3c0] sm:$0xff] %v1034_v56  ;;  %1037 = vst [vmem:[%s4868_s6 + $0x3c8] sm:$0xff] %v1036_v57  ;;  %v1040_v59 = vld [vmem:[%s4860_s5 + $0x7b0] sm:$0xff] }
  0x53   : > { %1039 = vst [vmem:[%s4868_s6 + $0x3d0] sm:$0xff] %v1038_v58  ;;  %v1042_v60 = vld [vmem:[%s4860_s5 + $0x7c0] sm:$0xff]  ;;  %v1044_v61 = vld [vmem:[%s4860_s5 + $0x7d0] sm:$0xff]  ;;  %1041 = vst [vmem:[%s4868_s6 + $0x3d8] sm:$0xff] %v1040_v59 }
  0x54   : > { %1043 = vst [vmem:[%s4868_s6 + $0x3e0] sm:$0xff] %v1042_v60  ;;  %1045 = vst [vmem:[%s4868_s6 + $0x3e8] sm:$0xff] %v1044_v61  ;;  %v1046_v62 = vld [vmem:[%s4860_s5 + $0x7e0] sm:$0xff]  ;;  %v1048_v63 = vld [vmem:[%s4860_s5 + $0x7f0] sm:$0xff] }
  0x55   : > { %v1050_v0 = vld [vmem:[%s4860_s5 + $0x800] sm:$0xff]  ;;  %1047 = vst [vmem:[%s4868_s6 + $0x3f0] sm:$0xff] %v1046_v62  ;;  %1049 = vst [vmem:[%s4868_s6 + $0x3f8] sm:$0xff] %v1048_v63  ;;  %v1052_v1 = vld [vmem:[%s4860_s5 + $0x810] sm:$0xff] }
  0x56   : > { %1051 = vst [vmem:[%s4868_s6 + $0x400] sm:$0xff] %v1050_v0  ;;  %v1054_v2 = vld [vmem:[%s4860_s5 + $0x820] sm:$0xff]  ;;  %v1056_v3 = vld [vmem:[%s4860_s5 + $0x830] sm:$0xff]  ;;  %1053 = vst [vmem:[%s4868_s6 + $0x408] sm:$0xff] %v1052_v1 }
  0x57   : > { %1055 = vst [vmem:[%s4868_s6 + $0x410] sm:$0xff] %v1054_v2  ;;  %1057 = vst [vmem:[%s4868_s6 + $0x418] sm:$0xff] %v1056_v3  ;;  %v1058_v4 = vld [vmem:[%s4860_s5 + $0x840] sm:$0xff]  ;;  %v1060_v5 = vld [vmem:[%s4860_s5 + $0x850] sm:$0xff] }
  0x58   : > { %v1062_v6 = vld [vmem:[%s4860_s5 + $0x860] sm:$0xff]  ;;  %1059 = vst [vmem:[%s4868_s6 + $0x420] sm:$0xff] %v1058_v4  ;;  %1061 = vst [vmem:[%s4868_s6 + $0x428] sm:$0xff] %v1060_v5  ;;  %v1064_v7 = vld [vmem:[%s4860_s5 + $0x870] sm:$0xff] }
  0x59   : > { %1063 = vst [vmem:[%s4868_s6 + $0x430] sm:$0xff] %v1062_v6  ;;  %v1066_v8 = vld [vmem:[%s4860_s5 + $0x880] sm:$0xff]  ;;  %v1068_v9 = vld [vmem:[%s4860_s5 + $0x890] sm:$0xff]  ;;  %1065 = vst [vmem:[%s4868_s6 + $0x438] sm:$0xff] %v1064_v7 }
  0x5a   : > { %1067 = vst [vmem:[%s4868_s6 + $0x440] sm:$0xff] %v1066_v8  ;;  %1069 = vst [vmem:[%s4868_s6 + $0x448] sm:$0xff] %v1068_v9  ;;  %v1070_v10 = vld [vmem:[%s4860_s5 + $0x8a0] sm:$0xff]  ;;  %v1072_v11 = vld [vmem:[%s4860_s5 + $0x8b0] sm:$0xff] }
  0x5b   : > { %v1074_v12 = vld [vmem:[%s4860_s5 + $0x8c0] sm:$0xff]  ;;  %1071 = vst [vmem:[%s4868_s6 + $0x450] sm:$0xff] %v1070_v10  ;;  %1073 = vst [vmem:[%s4868_s6 + $0x458] sm:$0xff] %v1072_v11  ;;  %v1076_v13 = vld [vmem:[%s4860_s5 + $0x8d0] sm:$0xff] }
  0x5c   : > { %1075 = vst [vmem:[%s4868_s6 + $0x460] sm:$0xff] %v1074_v12  ;;  %v1078_v14 = vld [vmem:[%s4860_s5 + $0x8e0] sm:$0xff]  ;;  %v1080_v15 = vld [vmem:[%s4860_s5 + $0x8f0] sm:$0xff]  ;;  %1077 = vst [vmem:[%s4868_s6 + $0x468] sm:$0xff] %v1076_v13 }
  0x5d   : > { %1079 = vst [vmem:[%s4868_s6 + $0x470] sm:$0xff] %v1078_v14  ;;  %1081 = vst [vmem:[%s4868_s6 + $0x478] sm:$0xff] %v1080_v15  ;;  %v1082_v16 = vld [vmem:[%s4860_s5 + $0x900] sm:$0xff]  ;;  %v1084_v17 = vld [vmem:[%s4860_s5 + $0x910] sm:$0xff] }
  0x5e   : > { %v1086_v18 = vld [vmem:[%s4860_s5 + $0x920] sm:$0xff]  ;;  %1083 = vst [vmem:[%s4868_s6 + $0x480] sm:$0xff] %v1082_v16  ;;  %1085 = vst [vmem:[%s4868_s6 + $0x488] sm:$0xff] %v1084_v17  ;;  %v1088_v19 = vld [vmem:[%s4860_s5 + $0x930] sm:$0xff] }
  0x5f   : > { %1087 = vst [vmem:[%s4868_s6 + $0x490] sm:$0xff] %v1086_v18  ;;  %v1090_v20 = vld [vmem:[%s4860_s5 + $0x940] sm:$0xff]  ;;  %v1092_v21 = vld [vmem:[%s4860_s5 + $0x950] sm:$0xff]  ;;  %1089 = vst [vmem:[%s4868_s6 + $0x498] sm:$0xff] %v1088_v19 }
  0x60   : > { %1091 = vst [vmem:[%s4868_s6 + $0x4a0] sm:$0xff] %v1090_v20  ;;  %1093 = vst [vmem:[%s4868_s6 + $0x4a8] sm:$0xff] %v1092_v21  ;;  %v1094_v22 = vld [vmem:[%s4860_s5 + $0x960] sm:$0xff]  ;;  %v1096_v23 = vld [vmem:[%s4860_s5 + $0x970] sm:$0xff] }
  0x61   : > { %v1098_v24 = vld [vmem:[%s4860_s5 + $0x980] sm:$0xff]  ;;  %1095 = vst [vmem:[%s4868_s6 + $0x4b0] sm:$0xff] %v1094_v22  ;;  %1097 = vst [vmem:[%s4868_s6 + $0x4b8] sm:$0xff] %v1096_v23  ;;  %v1100_v25 = vld [vmem:[%s4860_s5 + $0x990] sm:$0xff] }
  0x62   : > { %1099 = vst [vmem:[%s4868_s6 + $0x4c0] sm:$0xff] %v1098_v24  ;;  %v1102_v26 = vld [vmem:[%s4860_s5 + $0x9a0] sm:$0xff]  ;;  %v1104_v27 = vld [vmem:[%s4860_s5 + $0x9b0] sm:$0xff]  ;;  %1101 = vst [vmem:[%s4868_s6 + $0x4c8] sm:$0xff] %v1100_v25 }
  0x63   : > { %1103 = vst [vmem:[%s4868_s6 + $0x4d0] sm:$0xff] %v1102_v26  ;;  %1105 = vst [vmem:[%s4868_s6 + $0x4d8] sm:$0xff] %v1104_v27  ;;  %v1106_v28 = vld [vmem:[%s4860_s5 + $0x9c0] sm:$0xff]  ;;  %v1108_v29 = vld [vmem:[%s4860_s5 + $0x9d0] sm:$0xff] }
  0x64   : > { %v1110_v30 = vld [vmem:[%s4860_s5 + $0x9e0] sm:$0xff]  ;;  %1107 = vst [vmem:[%s4868_s6 + $0x4e0] sm:$0xff] %v1106_v28  ;;  %1109 = vst [vmem:[%s4868_s6 + $0x4e8] sm:$0xff] %v1108_v29  ;;  %v1112_v31 = vld [vmem:[%s4860_s5 + $0x9f0] sm:$0xff] }
  0x65   : > { %1111 = vst [vmem:[%s4868_s6 + $0x4f0] sm:$0xff] %v1110_v30  ;;  %v1114_v32 = vld [vmem:[%s4860_s5 + $0xa00] sm:$0xff]  ;;  %v1116_v33 = vld [vmem:[%s4860_s5 + $0xa10] sm:$0xff]  ;;  %1113 = vst [vmem:[%s4868_s6 + $0x4f8] sm:$0xff] %v1112_v31 }
  0x66   : > { %1115 = vst [vmem:[%s4868_s6 + $0x500] sm:$0xff] %v1114_v32  ;;  %1117 = vst [vmem:[%s4868_s6 + $0x508] sm:$0xff] %v1116_v33  ;;  %v1118_v34 = vld [vmem:[%s4860_s5 + $0xa20] sm:$0xff]  ;;  %v1120_v35 = vld [vmem:[%s4860_s5 + $0xa30] sm:$0xff] }
  0x67   : > { %v1122_v36 = vld [vmem:[%s4860_s5 + $0xa40] sm:$0xff]  ;;  %1119 = vst [vmem:[%s4868_s6 + $0x510] sm:$0xff] %v1118_v34  ;;  %1121 = vst [vmem:[%s4868_s6 + $0x518] sm:$0xff] %v1120_v35  ;;  %v1124_v37 = vld [vmem:[%s4860_s5 + $0xa50] sm:$0xff] }
  0x68   : > { %1123 = vst [vmem:[%s4868_s6 + $0x520] sm:$0xff] %v1122_v36  ;;  %v1126_v38 = vld [vmem:[%s4860_s5 + $0xa60] sm:$0xff]  ;;  %v1128_v39 = vld [vmem:[%s4860_s5 + $0xa70] sm:$0xff]  ;;  %1125 = vst [vmem:[%s4868_s6 + $0x528] sm:$0xff] %v1124_v37 }
  0x69   : > { %1127 = vst [vmem:[%s4868_s6 + $0x530] sm:$0xff] %v1126_v38  ;;  %1129 = vst [vmem:[%s4868_s6 + $0x538] sm:$0xff] %v1128_v39  ;;  %v1130_v40 = vld [vmem:[%s4860_s5 + $0xa80] sm:$0xff]  ;;  %v1132_v41 = vld [vmem:[%s4860_s5 + $0xa90] sm:$0xff] }
  0x6a   : > { %v1134_v42 = vld [vmem:[%s4860_s5 + $0xaa0] sm:$0xff]  ;;  %1131 = vst [vmem:[%s4868_s6 + $0x540] sm:$0xff] %v1130_v40  ;;  %1133 = vst [vmem:[%s4868_s6 + $0x548] sm:$0xff] %v1132_v41  ;;  %v1136_v43 = vld [vmem:[%s4860_s5 + $0xab0] sm:$0xff] }
  0x6b   : > { %1135 = vst [vmem:[%s4868_s6 + $0x550] sm:$0xff] %v1134_v42  ;;  %v1138_v44 = vld [vmem:[%s4860_s5 + $0xac0] sm:$0xff]  ;;  %v1140_v45 = vld [vmem:[%s4860_s5 + $0xad0] sm:$0xff]  ;;  %1137 = vst [vmem:[%s4868_s6 + $0x558] sm:$0xff] %v1136_v43 }
  0x6c   : > { %1139 = vst [vmem:[%s4868_s6 + $0x560] sm:$0xff] %v1138_v44  ;;  %1141 = vst [vmem:[%s4868_s6 + $0x568] sm:$0xff] %v1140_v45  ;;  %v1142_v46 = vld [vmem:[%s4860_s5 + $0xae0] sm:$0xff]  ;;  %v1144_v47 = vld [vmem:[%s4860_s5 + $0xaf0] sm:$0xff] }
  0x6d   : > { %v1146_v48 = vld [vmem:[%s4860_s5 + $0xb00] sm:$0xff]  ;;  %1143 = vst [vmem:[%s4868_s6 + $0x570] sm:$0xff] %v1142_v46  ;;  %1145 = vst [vmem:[%s4868_s6 + $0x578] sm:$0xff] %v1144_v47  ;;  %v1148_v49 = vld [vmem:[%s4860_s5 + $0xb10] sm:$0xff] }
  0x6e   : > { %1147 = vst [vmem:[%s4868_s6 + $0x580] sm:$0xff] %v1146_v48  ;;  %v1150_v50 = vld [vmem:[%s4860_s5 + $0xb20] sm:$0xff]  ;;  %v1152_v51 = vld [vmem:[%s4860_s5 + $0xb30] sm:$0xff]  ;;  %1149 = vst [vmem:[%s4868_s6 + $0x588] sm:$0xff] %v1148_v49 }
  0x6f   : > { %1151 = vst [vmem:[%s4868_s6 + $0x590] sm:$0xff] %v1150_v50  ;;  %1153 = vst [vmem:[%s4868_s6 + $0x598] sm:$0xff] %v1152_v51  ;;  %v1154_v52 = vld [vmem:[%s4860_s5 + $0xb40] sm:$0xff]  ;;  %v1156_v53 = vld [vmem:[%s4860_s5 + $0xb50] sm:$0xff] }
  0x70   : > { %v1158_v54 = vld [vmem:[%s4860_s5 + $0xb60] sm:$0xff]  ;;  %1155 = vst [vmem:[%s4868_s6 + $0x5a0] sm:$0xff] %v1154_v52  ;;  %1157 = vst [vmem:[%s4868_s6 + $0x5a8] sm:$0xff] %v1156_v53  ;;  %v1160_v55 = vld [vmem:[%s4860_s5 + $0xb70] sm:$0xff] }
  0x71   : > { %1159 = vst [vmem:[%s4868_s6 + $0x5b0] sm:$0xff] %v1158_v54  ;;  %v1162_v56 = vld [vmem:[%s4860_s5 + $0xb80] sm:$0xff]  ;;  %v1164_v57 = vld [vmem:[%s4860_s5 + $0xb90] sm:$0xff]  ;;  %1161 = vst [vmem:[%s4868_s6 + $0x5b8] sm:$0xff] %v1160_v55 }
  0x72   : > { %1163 = vst [vmem:[%s4868_s6 + $0x5c0] sm:$0xff] %v1162_v56  ;;  %1165 = vst [vmem:[%s4868_s6 + $0x5c8] sm:$0xff] %v1164_v57  ;;  %v1166_v58 = vld [vmem:[%s4860_s5 + $0xba0] sm:$0xff]  ;;  %v1168_v59 = vld [vmem:[%s4860_s5 + $0xbb0] sm:$0xff] }
  0x73   : > { %v1170_v60 = vld [vmem:[%s4860_s5 + $0xbc0] sm:$0xff]  ;;  %1167 = vst [vmem:[%s4868_s6 + $0x5d0] sm:$0xff] %v1166_v58  ;;  %1169 = vst [vmem:[%s4868_s6 + $0x5d8] sm:$0xff] %v1168_v59  ;;  %v1172_v61 = vld [vmem:[%s4860_s5 + $0xbd0] sm:$0xff] }
  0x74   : > { %1171 = vst [vmem:[%s4868_s6 + $0x5e0] sm:$0xff] %v1170_v60  ;;  %v1174_v62 = vld [vmem:[%s4860_s5 + $0xbe0] sm:$0xff]  ;;  %v1176_v63 = vld [vmem:[%s4860_s5 + $0xbf0] sm:$0xff]  ;;  %1173 = vst [vmem:[%s4868_s6 + $0x5e8] sm:$0xff] %v1172_v61 }
  0x75   : > { %1175 = vst [vmem:[%s4868_s6 + $0x5f0] sm:$0xff] %v1174_v62  ;;  %1177 = vst [vmem:[%s4868_s6 + $0x5f8] sm:$0xff] %v1176_v63  ;;  %v1178_v0 = vld [vmem:[%s4860_s5 + $0xc00] sm:$0xff]  ;;  %v1180_v1 = vld [vmem:[%s4860_s5 + $0xc10] sm:$0xff] }
  0x76   : > { %v1182_v2 = vld [vmem:[%s4860_s5 + $0xc20] sm:$0xff]  ;;  %1179 = vst [vmem:[%s4868_s6 + $0x600] sm:$0xff] %v1178_v0  ;;  %1181 = vst [vmem:[%s4868_s6 + $0x608] sm:$0xff] %v1180_v1  ;;  %v1184_v3 = vld [vmem:[%s4860_s5 + $0xc30] sm:$0xff] }
  0x77   : > { %1183 = vst [vmem:[%s4868_s6 + $0x610] sm:$0xff] %v1182_v2  ;;  %v1186_v4 = vld [vmem:[%s4860_s5 + $0xc40] sm:$0xff]  ;;  %v1188_v5 = vld [vmem:[%s4860_s5 + $0xc50] sm:$0xff]  ;;  %1185 = vst [vmem:[%s4868_s6 + $0x618] sm:$0xff] %v1184_v3 }
  0x78   : > { %1187 = vst [vmem:[%s4868_s6 + $0x620] sm:$0xff] %v1186_v4  ;;  %1189 = vst [vmem:[%s4868_s6 + $0x628] sm:$0xff] %v1188_v5  ;;  %v1190_v6 = vld [vmem:[%s4860_s5 + $0xc60] sm:$0xff]  ;;  %v1192_v7 = vld [vmem:[%s4860_s5 + $0xc70] sm:$0xff] }
  0x79   : > { %v1194_v8 = vld [vmem:[%s4860_s5 + $0xc80] sm:$0xff]  ;;  %1191 = vst [vmem:[%s4868_s6 + $0x630] sm:$0xff] %v1190_v6  ;;  %1193 = vst [vmem:[%s4868_s6 + $0x638] sm:$0xff] %v1192_v7  ;;  %v1196_v9 = vld [vmem:[%s4860_s5 + $0xc90] sm:$0xff] }
  0x7a   : > { %1195 = vst [vmem:[%s4868_s6 + $0x640] sm:$0xff] %v1194_v8  ;;  %v1198_v10 = vld [vmem:[%s4860_s5 + $0xca0] sm:$0xff]  ;;  %v1200_v11 = vld [vmem:[%s4860_s5 + $0xcb0] sm:$0xff]  ;;  %1197 = vst [vmem:[%s4868_s6 + $0x648] sm:$0xff] %v1196_v9 }
  0x7b   : > { %1199 = vst [vmem:[%s4868_s6 + $0x650] sm:$0xff] %v1198_v10  ;;  %1201 = vst [vmem:[%s4868_s6 + $0x658] sm:$0xff] %v1200_v11  ;;  %v1202_v12 = vld [vmem:[%s4860_s5 + $0xcc0] sm:$0xff]  ;;  %v1204_v13 = vld [vmem:[%s4860_s5 + $0xcd0] sm:$0xff] }
  0x7c   : > { %v1206_v14 = vld [vmem:[%s4860_s5 + $0xce0] sm:$0xff]  ;;  %1203 = vst [vmem:[%s4868_s6 + $0x660] sm:$0xff] %v1202_v12  ;;  %1205 = vst [vmem:[%s4868_s6 + $0x668] sm:$0xff] %v1204_v13  ;;  %v1208_v15 = vld [vmem:[%s4860_s5 + $0xcf0] sm:$0xff] }
  0x7d   : > { %1207 = vst [vmem:[%s4868_s6 + $0x670] sm:$0xff] %v1206_v14  ;;  %v1210_v16 = vld [vmem:[%s4860_s5 + $0xd00] sm:$0xff]  ;;  %v1212_v17 = vld [vmem:[%s4860_s5 + $0xd10] sm:$0xff]  ;;  %1209 = vst [vmem:[%s4868_s6 + $0x678] sm:$0xff] %v1208_v15 }
  0x7e   : > { %1211 = vst [vmem:[%s4868_s6 + $0x680] sm:$0xff] %v1210_v16  ;;  %1213 = vst [vmem:[%s4868_s6 + $0x688] sm:$0xff] %v1212_v17  ;;  %v1214_v18 = vld [vmem:[%s4860_s5 + $0xd20] sm:$0xff]  ;;  %v1216_v19 = vld [vmem:[%s4860_s5 + $0xd30] sm:$0xff] }
  0x7f   : > { %v1218_v20 = vld [vmem:[%s4860_s5 + $0xd40] sm:$0xff]  ;;  %1215 = vst [vmem:[%s4868_s6 + $0x690] sm:$0xff] %v1214_v18  ;;  %1217 = vst [vmem:[%s4868_s6 + $0x698] sm:$0xff] %v1216_v19  ;;  %v1220_v21 = vld [vmem:[%s4860_s5 + $0xd50] sm:$0xff] }
  0x80   : > { %1219 = vst [vmem:[%s4868_s6 + $0x6a0] sm:$0xff] %v1218_v20  ;;  %v1222_v22 = vld [vmem:[%s4860_s5 + $0xd60] sm:$0xff]  ;;  %v1224_v23 = vld [vmem:[%s4860_s5 + $0xd70] sm:$0xff]  ;;  %1221 = vst [vmem:[%s4868_s6 + $0x6a8] sm:$0xff] %v1220_v21 }
  0x81   : > { %1223 = vst [vmem:[%s4868_s6 + $0x6b0] sm:$0xff] %v1222_v22  ;;  %1225 = vst [vmem:[%s4868_s6 + $0x6b8] sm:$0xff] %v1224_v23  ;;  %v1226_v24 = vld [vmem:[%s4860_s5 + $0xd80] sm:$0xff]  ;;  %v1228_v25 = vld [vmem:[%s4860_s5 + $0xd90] sm:$0xff] }
  0x82   : > { %v1230_v26 = vld [vmem:[%s4860_s5 + $0xda0] sm:$0xff]  ;;  %1227 = vst [vmem:[%s4868_s6 + $0x6c0] sm:$0xff] %v1226_v24  ;;  %1229 = vst [vmem:[%s4868_s6 + $0x6c8] sm:$0xff] %v1228_v25  ;;  %v1232_v27 = vld [vmem:[%s4860_s5 + $0xdb0] sm:$0xff] }
  0x83   : > { %1231 = vst [vmem:[%s4868_s6 + $0x6d0] sm:$0xff] %v1230_v26  ;;  %v1234_v28 = vld [vmem:[%s4860_s5 + $0xdc0] sm:$0xff]  ;;  %v1236_v29 = vld [vmem:[%s4860_s5 + $0xdd0] sm:$0xff]  ;;  %1233 = vst [vmem:[%s4868_s6 + $0x6d8] sm:$0xff] %v1232_v27 }
  0x84   : > { %1235 = vst [vmem:[%s4868_s6 + $0x6e0] sm:$0xff] %v1234_v28  ;;  %1237 = vst [vmem:[%s4868_s6 + $0x6e8] sm:$0xff] %v1236_v29  ;;  %v1238_v30 = vld [vmem:[%s4860_s5 + $0xde0] sm:$0xff]  ;;  %v1240_v31 = vld [vmem:[%s4860_s5 + $0xdf0] sm:$0xff] }
  0x85   : > { %v1242_v32 = vld [vmem:[%s4860_s5 + $0xe00] sm:$0xff]  ;;  %1239 = vst [vmem:[%s4868_s6 + $0x6f0] sm:$0xff] %v1238_v30  ;;  %1241 = vst [vmem:[%s4868_s6 + $0x6f8] sm:$0xff] %v1240_v31  ;;  %v1244_v33 = vld [vmem:[%s4860_s5 + $0xe10] sm:$0xff] }
  0x86   : > { %1243 = vst [vmem:[%s4868_s6 + $0x700] sm:$0xff] %v1242_v32  ;;  %v1246_v34 = vld [vmem:[%s4860_s5 + $0xe20] sm:$0xff]  ;;  %v1248_v35 = vld [vmem:[%s4860_s5 + $0xe30] sm:$0xff]  ;;  %1245 = vst [vmem:[%s4868_s6 + $0x708] sm:$0xff] %v1244_v33 }
  0x87   : > { %1247 = vst [vmem:[%s4868_s6 + $0x710] sm:$0xff] %v1246_v34  ;;  %1249 = vst [vmem:[%s4868_s6 + $0x718] sm:$0xff] %v1248_v35  ;;  %v1250_v36 = vld [vmem:[%s4860_s5 + $0xe40] sm:$0xff]  ;;  %v1252_v37 = vld [vmem:[%s4860_s5 + $0xe50] sm:$0xff] }
  0x88   : > { %v1254_v38 = vld [vmem:[%s4860_s5 + $0xe60] sm:$0xff]  ;;  %1251 = vst [vmem:[%s4868_s6 + $0x720] sm:$0xff] %v1250_v36  ;;  %1253 = vst [vmem:[%s4868_s6 + $0x728] sm:$0xff] %v1252_v37  ;;  %v1256_v39 = vld [vmem:[%s4860_s5 + $0xe70] sm:$0xff] }
  0x89   : > { %1255 = vst [vmem:[%s4868_s6 + $0x730] sm:$0xff] %v1254_v38  ;;  %v1258_v40 = vld [vmem:[%s4860_s5 + $0xe80] sm:$0xff]  ;;  %v1260_v41 = vld [vmem:[%s4860_s5 + $0xe90] sm:$0xff]  ;;  %1257 = vst [vmem:[%s4868_s6 + $0x738] sm:$0xff] %v1256_v39 }
  0x8a   : > { %1259 = vst [vmem:[%s4868_s6 + $0x740] sm:$0xff] %v1258_v40  ;;  %1261 = vst [vmem:[%s4868_s6 + $0x748] sm:$0xff] %v1260_v41  ;;  %v1262_v42 = vld [vmem:[%s4860_s5 + $0xea0] sm:$0xff]  ;;  %v1264_v43 = vld [vmem:[%s4860_s5 + $0xeb0] sm:$0xff] }
  0x8b   : > { %v1266_v44 = vld [vmem:[%s4860_s5 + $0xec0] sm:$0xff]  ;;  %1263 = vst [vmem:[%s4868_s6 + $0x750] sm:$0xff] %v1262_v42  ;;  %1265 = vst [vmem:[%s4868_s6 + $0x758] sm:$0xff] %v1264_v43  ;;  %v1268_v45 = vld [vmem:[%s4860_s5 + $0xed0] sm:$0xff] }
  0x8c   : > { %1267 = vst [vmem:[%s4868_s6 + $0x760] sm:$0xff] %v1266_v44  ;;  %v1270_v46 = vld [vmem:[%s4860_s5 + $0xee0] sm:$0xff]  ;;  %v1272_v47 = vld [vmem:[%s4860_s5 + $0xef0] sm:$0xff]  ;;  %1269 = vst [vmem:[%s4868_s6 + $0x768] sm:$0xff] %v1268_v45 }
  0x8d   : > { %1271 = vst [vmem:[%s4868_s6 + $0x770] sm:$0xff] %v1270_v46  ;;  %1273 = vst [vmem:[%s4868_s6 + $0x778] sm:$0xff] %v1272_v47  ;;  %v1274_v48 = vld [vmem:[%s4860_s5 + $0xf00] sm:$0xff]  ;;  %v1276_v49 = vld [vmem:[%s4860_s5 + $0xf10] sm:$0xff] }
  0x8e   : > { %v1278_v50 = vld [vmem:[%s4860_s5 + $0xf20] sm:$0xff]  ;;  %1275 = vst [vmem:[%s4868_s6 + $0x780] sm:$0xff] %v1274_v48  ;;  %1277 = vst [vmem:[%s4868_s6 + $0x788] sm:$0xff] %v1276_v49  ;;  %v1280_v51 = vld [vmem:[%s4860_s5 + $0xf30] sm:$0xff] }
  0x8f   : > { %1279 = vst [vmem:[%s4868_s6 + $0x790] sm:$0xff] %v1278_v50  ;;  %v1282_v52 = vld [vmem:[%s4860_s5 + $0xf40] sm:$0xff]  ;;  %v1284_v53 = vld [vmem:[%s4860_s5 + $0xf50] sm:$0xff]  ;;  %1281 = vst [vmem:[%s4868_s6 + $0x798] sm:$0xff] %v1280_v51 }
  0x90   : > { %1283 = vst [vmem:[%s4868_s6 + $0x7a0] sm:$0xff] %v1282_v52  ;;  %1285 = vst [vmem:[%s4868_s6 + $0x7a8] sm:$0xff] %v1284_v53  ;;  %v1286_v54 = vld [vmem:[%s4860_s5 + $0xf60] sm:$0xff]  ;;  %v1288_v55 = vld [vmem:[%s4860_s5 + $0xf70] sm:$0xff] }
  0x91   : > { %v1290_v56 = vld [vmem:[%s4860_s5 + $0xf80] sm:$0xff]  ;;  %1287 = vst [vmem:[%s4868_s6 + $0x7b0] sm:$0xff] %v1286_v54  ;;  %1289 = vst [vmem:[%s4868_s6 + $0x7b8] sm:$0xff] %v1288_v55  ;;  %v1292_v57 = vld [vmem:[%s4860_s5 + $0xf90] sm:$0xff] }
  0x92   : > { %1291 = vst [vmem:[%s4868_s6 + $0x7c0] sm:$0xff] %v1290_v56  ;;  %v1294_v58 = vld [vmem:[%s4860_s5 + $0xfa0] sm:$0xff]  ;;  %v1296_v59 = vld [vmem:[%s4860_s5 + $0xfb0] sm:$0xff]  ;;  %1293 = vst [vmem:[%s4868_s6 + $0x7c8] sm:$0xff] %v1292_v57 }
  0x93   : > { %1295 = vst [vmem:[%s4868_s6 + $0x7d0] sm:$0xff] %v1294_v58  ;;  %1297 = vst [vmem:[%s4868_s6 + $0x7d8] sm:$0xff] %v1296_v59  ;;  %v1298_v60 = vld [vmem:[%s4860_s5 + $0xfc0] sm:$0xff]  ;;  %v1300_v61 = vld [vmem:[%s4860_s5 + $0xfd0] sm:$0xff] }
  0x94   : > { %v1302_v62 = vld [vmem:[%s4860_s5 + $0xfe0] sm:$0xff]  ;;  %1299 = vst [vmem:[%s4868_s6 + $0x7e0] sm:$0xff] %v1298_v60  ;;  %1301 = vst [vmem:[%s4868_s6 + $0x7e8] sm:$0xff] %v1300_v61  ;;  %v1304_v63 = vld [vmem:[%s4860_s5 + $0xff0] sm:$0xff] }
  0x95   : > { %1303 = vst [vmem:[%s4868_s6 + $0x7f0] sm:$0xff] %v1302_v62  ;;  %v1306_v0 = vld [vmem:[%s4860_s5 + $0x1000] sm:$0xff]  ;;  %v1308_v1 = vld [vmem:[%s4860_s5 + $0x1010] sm:$0xff]  ;;  %1305 = vst [vmem:[%s4868_s6 + $0x7f8] sm:$0xff] %v1304_v63 }
  0x96   : > { %1307 = vst [vmem:[%s4868_s6 + $0x800] sm:$0xff] %v1306_v0  ;;  %1309 = vst [vmem:[%s4868_s6 + $0x808] sm:$0xff] %v1308_v1  ;;  %v1310_v2 = vld [vmem:[%s4860_s5 + $0x1020] sm:$0xff]  ;;  %v1312_v3 = vld [vmem:[%s4860_s5 + $0x1030] sm:$0xff] }
  0x97   : > { %v1314_v4 = vld [vmem:[%s4860_s5 + $0x1040] sm:$0xff]  ;;  %1311 = vst [vmem:[%s4868_s6 + $0x810] sm:$0xff] %v1310_v2  ;;  %1313 = vst [vmem:[%s4868_s6 + $0x818] sm:$0xff] %v1312_v3  ;;  %v1316_v5 = vld [vmem:[%s4860_s5 + $0x1050] sm:$0xff] }
  0x98   : > { %1315 = vst [vmem:[%s4868_s6 + $0x820] sm:$0xff] %v1314_v4  ;;  %v1318_v6 = vld [vmem:[%s4860_s5 + $0x1060] sm:$0xff]  ;;  %v1320_v7 = vld [vmem:[%s4860_s5 + $0x1070] sm:$0xff]  ;;  %1317 = vst [vmem:[%s4868_s6 + $0x828] sm:$0xff] %v1316_v5 }
  0x99   : > { %1319 = vst [vmem:[%s4868_s6 + $0x830] sm:$0xff] %v1318_v6  ;;  %1321 = vst [vmem:[%s4868_s6 + $0x838] sm:$0xff] %v1320_v7  ;;  %v1322_v8 = vld [vmem:[%s4860_s5 + $0x1080] sm:$0xff]  ;;  %v1324_v9 = vld [vmem:[%s4860_s5 + $0x1090] sm:$0xff] }
  0x9a   : > { %v1326_v10 = vld [vmem:[%s4860_s5 + $0x10a0] sm:$0xff]  ;;  %1323 = vst [vmem:[%s4868_s6 + $0x840] sm:$0xff] %v1322_v8  ;;  %1325 = vst [vmem:[%s4868_s6 + $0x848] sm:$0xff] %v1324_v9  ;;  %v1328_v11 = vld [vmem:[%s4860_s5 + $0x10b0] sm:$0xff] }
  0x9b   : > { %1327 = vst [vmem:[%s4868_s6 + $0x850] sm:$0xff] %v1326_v10  ;;  %v1330_v12 = vld [vmem:[%s4860_s5 + $0x10c0] sm:$0xff]  ;;  %v1332_v13 = vld [vmem:[%s4860_s5 + $0x10d0] sm:$0xff]  ;;  %1329 = vst [vmem:[%s4868_s6 + $0x858] sm:$0xff] %v1328_v11 }
  0x9c   : > { %1331 = vst [vmem:[%s4868_s6 + $0x860] sm:$0xff] %v1330_v12  ;;  %1333 = vst [vmem:[%s4868_s6 + $0x868] sm:$0xff] %v1332_v13  ;;  %v1334_v14 = vld [vmem:[%s4860_s5 + $0x10e0] sm:$0xff]  ;;  %v1336_v15 = vld [vmem:[%s4860_s5 + $0x10f0] sm:$0xff] }
  0x9d   : > { %v1338_v16 = vld [vmem:[%s4860_s5 + $0x1100] sm:$0xff]  ;;  %1335 = vst [vmem:[%s4868_s6 + $0x870] sm:$0xff] %v1334_v14  ;;  %1337 = vst [vmem:[%s4868_s6 + $0x878] sm:$0xff] %v1336_v15  ;;  %v1340_v17 = vld [vmem:[%s4860_s5 + $0x1110] sm:$0xff] }
  0x9e   : > { %1339 = vst [vmem:[%s4868_s6 + $0x880] sm:$0xff] %v1338_v16  ;;  %v1342_v18 = vld [vmem:[%s4860_s5 + $0x1120] sm:$0xff]  ;;  %v1344_v19 = vld [vmem:[%s4860_s5 + $0x1130] sm:$0xff]  ;;  %1341 = vst [vmem:[%s4868_s6 + $0x888] sm:$0xff] %v1340_v17 }
  0x9f   : > { %1343 = vst [vmem:[%s4868_s6 + $0x890] sm:$0xff] %v1342_v18  ;;  %1345 = vst [vmem:[%s4868_s6 + $0x898] sm:$0xff] %v1344_v19  ;;  %v1346_v20 = vld [vmem:[%s4860_s5 + $0x1140] sm:$0xff]  ;;  %v1348_v21 = vld [vmem:[%s4860_s5 + $0x1150] sm:$0xff] }
  0xa0   : > { %v1350_v22 = vld [vmem:[%s4860_s5 + $0x1160] sm:$0xff]  ;;  %1347 = vst [vmem:[%s4868_s6 + $0x8a0] sm:$0xff] %v1346_v20  ;;  %1349 = vst [vmem:[%s4868_s6 + $0x8a8] sm:$0xff] %v1348_v21  ;;  %v1352_v23 = vld [vmem:[%s4860_s5 + $0x1170] sm:$0xff] }
  0xa1   : > { %1351 = vst [vmem:[%s4868_s6 + $0x8b0] sm:$0xff] %v1350_v22  ;;  %v1354_v24 = vld [vmem:[%s4860_s5 + $0x1180] sm:$0xff]  ;;  %v1356_v25 = vld [vmem:[%s4860_s5 + $0x1190] sm:$0xff]  ;;  %1353 = vst [vmem:[%s4868_s6 + $0x8b8] sm:$0xff] %v1352_v23 }
  0xa2   : > { %1355 = vst [vmem:[%s4868_s6 + $0x8c0] sm:$0xff] %v1354_v24  ;;  %1357 = vst [vmem:[%s4868_s6 + $0x8c8] sm:$0xff] %v1356_v25  ;;  %v1358_v26 = vld [vmem:[%s4860_s5 + $0x11a0] sm:$0xff]  ;;  %v1360_v27 = vld [vmem:[%s4860_s5 + $0x11b0] sm:$0xff] }
  0xa3   : > { %v1362_v28 = vld [vmem:[%s4860_s5 + $0x11c0] sm:$0xff]  ;;  %1359 = vst [vmem:[%s4868_s6 + $0x8d0] sm:$0xff] %v1358_v26  ;;  %1361 = vst [vmem:[%s4868_s6 + $0x8d8] sm:$0xff] %v1360_v27  ;;  %v1364_v29 = vld [vmem:[%s4860_s5 + $0x11d0] sm:$0xff] }
  0xa4   : > { %1363 = vst [vmem:[%s4868_s6 + $0x8e0] sm:$0xff] %v1362_v28  ;;  %v1366_v30 = vld [vmem:[%s4860_s5 + $0x11e0] sm:$0xff]  ;;  %v1368_v31 = vld [vmem:[%s4860_s5 + $0x11f0] sm:$0xff]  ;;  %1365 = vst [vmem:[%s4868_s6 + $0x8e8] sm:$0xff] %v1364_v29 }
  0xa5   : > { %1367 = vst [vmem:[%s4868_s6 + $0x8f0] sm:$0xff] %v1366_v30  ;;  %1369 = vst [vmem:[%s4868_s6 + $0x8f8] sm:$0xff] %v1368_v31 }
  0xa6 PF: > { %p3893_p8 = scmp.ge.s32.totalorder %s4785_s19, 1  ;;  %p1390_p9 = scmp.lt.s32.totalorder %s4785_s19, 3 }
  0xa8   : > { %p1391_p10 = pnand %p3893_p8, %p1390_p9 }
  0xa9   : > { %s1397_s7 = sand.u32 (!%p1391_p10), 1, %s4769_s15   ;;  %v4386_v32 = vld [vmem:[%s5819_s0 + $0x4] ss:$72 sps:$4 sm:$0xff] (!%p1391_p10)   ;;  %s3895_s14 = sshll.u32 (!%p1391_p10), %s4777_s17, 1 }
  0xaa   : > { %1394 = sbr.rel (%p1391_p10) target bundleno = 731 (0x2db), region = 70  ;;  %v4392_v33 = vld [vmem:[%s5819_s0 + $0x24] ss:$72 sps:$4 sm:$0xff] (!%p1391_p10)   ;;  %3323 = vmatprep.mubr.bf16.mxu1 (!%p1391_p10), %v4386_v32  ;;  %p1444_p11 = scmp.lt.s32.totalorder (!%p1391_p10), %s3895_s14, 3 }
  0xab   : > { %s4247_s8 = smul.u32 (!%p1391_p10), 2304, %s1397_s7  ;;  %3495 = vmatprep.mubr.bf16.mxu0 (!%p1391_p10), %v4392_v33  ;;  %s3894_s28 = sshll.u32 (!%p1391_p10), %s1397_s7, 4 }
  0xac   : > { %s1434_s29 = scalar_lea.vmem (!%p1391_p10), [#allocation3], %s3894_s28 }
  0xad   : > { %s5451_s13 = scalar_lea.vmem (!%p1391_p10), [#allocation2], %s4247_s8 }
  0xae   : > { %v4288_v34 = vld [vmem:[%s5451_s13 + $0x4] ss:$8 sps:$4 sm:$0xff] (!%p1391_p10)   ;;  %v4292_v36 = vld [vmem:[%s5451_s13] ss:$8 sps:$4 sm:$0xff] (!%p1391_p10)   ;;  %v4294_v38 = vld [vmem:[%s5451_s13 + $0x14] ss:$8 sps:$4 sm:$0xff] (!%p1391_p10)  }
  0xaf   : > { %v4290_v35 = vld [vmem:[%s5451_s13 + $0x404] ss:$8 sps:$4 sm:$0xff] (!%p1391_p10)   ;;  %3291 = vmatprep.subr.bf16.mxu1 (!%p1391_p10), %v4288_v34  ;;  %v4293_v37 = vld [vmem:[%s5451_s13 + $0x400] ss:$8 sps:$4 sm:$0xff] (!%p1391_p10)   ;;  %v4296_v39 = vld [vmem:[%s5451_s13 + $0x414] ss:$8 sps:$4 sm:$0xff] (!%p1391_p10)  }
  0xb0   : > { %3463 = vmatprep.subr.bf16.mxu0 (!%p1391_p10), %v4290_v35  ;;  %3292 = vmatpush1.bf16.msra.mxu1 (!%p1391_p10), %v4292_v36  ;;  %v4298_v40 = vld [vmem:[%s5451_s13 + $0x10] ss:$8 sps:$4 sm:$0xff] (!%p1391_p10)   ;;  %v4300_v42 = vld [vmem:[%s5451_s13 + $0x24] ss:$8 sps:$4 sm:$0xff] (!%p1391_p10)   ;;  %v4304_v44 = vld [vmem:[%s5451_s13 + $0x20] ss:$8 sps:$4 sm:$0xff] (!%p1391_p10)  }
  0xb1   : > { %3464 = vmatpush1.bf16.msra.mxu0 %v4293_v37  ;;  %3293 = vmatprep.subr.bf16.mxu1 %v4294_v38  ;;  %v4299_v41 = vld [vmem:[%s5451_s13 + $0x410] ss:$8 sps:$4 sm:$0xff]   ;;  %v4302_v43 = vld [vmem:[%s5451_s13 + $0x424] ss:$8 sps:$4 sm:$0xff]   ;;  %v4305_v45 = vld [vmem:[%s5451_s13 + $0x420] ss:$8 sps:$4 sm:$0xff]  }
  0xb2   : > { %3465 = vmatprep.subr.bf16.mxu0 %v4296_v39  ;;  %v4306_v46 = vld [vmem:[%s5451_s13 + $0x34] ss:$8 sps:$4 sm:$0xff]   ;;  %v4310_v48 = vld [vmem:[%s5451_s13 + $0x30] ss:$8 sps:$4 sm:$0xff]   ;;  %v4312_v50 = vld [vmem:[%s5451_s13 + $0x44] ss:$8 sps:$4 sm:$0xff]  }
  0xb3   : > { %v4308_v47 = vld [vmem:[%s5451_s13 + $0x434] ss:$8 sps:$4 sm:$0xff]   ;;  %v4311_v49 = vld [vmem:[%s5451_s13 + $0x430] ss:$8 sps:$4 sm:$0xff]   ;;  %v4314_v51 = vld [vmem:[%s5451_s13 + $0x444] ss:$8 sps:$4 sm:$0xff]  }
  0xb4   : > { %3294 = vmatpush1.bf16.msra.mxu1 %v4298_v40  ;;  %v4316_v52 = vld [vmem:[%s5451_s13 + $0x40] ss:$8 sps:$4 sm:$0xff]   ;;  %v4318_v54 = vld [vmem:[%s5451_s13 + $0x54] ss:$8 sps:$4 sm:$0xff]   ;;  %v4322_v56 = vld [vmem:[%s5451_s13 + $0x50] ss:$8 sps:$4 sm:$0xff]  }
  0xb5   : > { %3466 = vmatpush1.bf16.msra.mxu0 %v4299_v41  ;;  %3295 = vmatprep.subr.bf16.mxu1 %v4300_v42  ;;  %v4317_v53 = vld [vmem:[%s5451_s13 + $0x440] ss:$8 sps:$4 sm:$0xff]   ;;  %v4320_v55 = vld [vmem:[%s5451_s13 + $0x454] ss:$8 sps:$4 sm:$0xff]   ;;  %v4323_v57 = vld [vmem:[%s5451_s13 + $0x450] ss:$8 sps:$4 sm:$0xff]  }
  0xb6   : > { %3467 = vmatprep.subr.bf16.mxu0 %v4302_v43  ;;  %v4324_v58 = vld [vmem:[%s5451_s13 + $0x64] ss:$8 sps:$4 sm:$0xff]   ;;  %v4328_v60 = vld [vmem:[%s5451_s13 + $0x60] ss:$8 sps:$4 sm:$0xff]   ;;  %v4330_v62 = vld [vmem:[%s5451_s13 + $0x74] ss:$8 sps:$4 sm:$0xff]  }
  0xb7   : > { %v4326_v59 = vld [vmem:[%s5451_s13 + $0x464] ss:$8 sps:$4 sm:$0xff]   ;;  %v4329_v61 = vld [vmem:[%s5451_s13 + $0x460] ss:$8 sps:$4 sm:$0xff]   ;;  %v4332_v63 = vld [vmem:[%s5451_s13 + $0x474] ss:$8 sps:$4 sm:$0xff]  }
  0xb8   : > { %3296 = vmatpush1.bf16.msra.mxu1 %v4304_v44  ;;  %v4334_v0 = vld [vmem:[%s5451_s13 + $0x70] ss:$8 sps:$4 sm:$0xff]   ;;  %v4336_v2 = vld [vmem:[%s5451_s13 + $0x84] ss:$8 sps:$4 sm:$0xff]   ;;  %v4340_v4 = vld [vmem:[%s5451_s13 + $0x80] ss:$8 sps:$4 sm:$0xff]  }
  0xb9   : > { %3468 = vmatpush1.bf16.msra.mxu0 %v4305_v45  ;;  %3297 = vmatprep.subr.bf16.mxu1 %v4306_v46  ;;  %v4335_v1 = vld [vmem:[%s5451_s13 + $0x470] ss:$8 sps:$4 sm:$0xff]   ;;  %v4338_v3 = vld [vmem:[%s5451_s13 + $0x484] ss:$8 sps:$4 sm:$0xff]   ;;  %v4341_v5 = vld [vmem:[%s5451_s13 + $0x480] ss:$8 sps:$4 sm:$0xff]  }
  0xba   : > { %3469 = vmatprep.subr.bf16.mxu0 %v4308_v47  ;;  %v4342_v6 = vld [vmem:[%s5451_s13 + $0x94] ss:$8 sps:$4 sm:$0xff]   ;;  %v4346_v8 = vld [vmem:[%s5451_s13 + $0x90] ss:$8 sps:$4 sm:$0xff]   ;;  %v4348_v10 = vld [vmem:[%s5451_s13 + $0xa4] ss:$8 sps:$4 sm:$0xff]  }
  0xbb   : > { %v4344_v7 = vld [vmem:[%s5451_s13 + $0x494] ss:$8 sps:$4 sm:$0xff]   ;;  %v4347_v9 = vld [vmem:[%s5451_s13 + $0x490] ss:$8 sps:$4 sm:$0xff]   ;;  %v4350_v11 = vld [vmem:[%s5451_s13 + $0x4a4] ss:$8 sps:$4 sm:$0xff]  }
  0xbc   : > { %3298 = vmatpush1.bf16.msra.mxu1 %v4310_v48  ;;  %v4352_v12 = vld [vmem:[%s5451_s13 + $0xa0] ss:$8 sps:$4 sm:$0xff]   ;;  %v4354_v14 = vld [vmem:[%s5451_s13 + $0xb4] ss:$8 sps:$4 sm:$0xff]   ;;  %v4358_v16 = vld [vmem:[%s5451_s13 + $0xb0] ss:$8 sps:$4 sm:$0xff]  }
  0xbd   : > { %3470 = vmatpush1.bf16.msra.mxu0 %v4311_v49  ;;  %3299 = vmatprep.subr.bf16.mxu1 %v4312_v50  ;;  %v4353_v13 = vld [vmem:[%s5451_s13 + $0x4a0] ss:$8 sps:$4 sm:$0xff]   ;;  %v4356_v15 = vld [vmem:[%s5451_s13 + $0x4b4] ss:$8 sps:$4 sm:$0xff]   ;;  %v4359_v17 = vld [vmem:[%s5451_s13 + $0x4b0] ss:$8 sps:$4 sm:$0xff]  }
  0xbe   : > { %3471 = vmatprep.subr.bf16.mxu0 %v4314_v51  ;;  %v4360_v18 = vld [vmem:[%s5451_s13 + $0xc4] ss:$8 sps:$4 sm:$0xff]   ;;  %v4364_v20 = vld [vmem:[%s5451_s13 + $0xc0] ss:$8 sps:$4 sm:$0xff]   ;;  %v4366_v22 = vld [vmem:[%s5451_s13 + $0xd4] ss:$8 sps:$4 sm:$0xff]  }
  0xbf   : > { %v4362_v19 = vld [vmem:[%s5451_s13 + $0x4c4] ss:$8 sps:$4 sm:$0xff]   ;;  %v4365_v21 = vld [vmem:[%s5451_s13 + $0x4c0] ss:$8 sps:$4 sm:$0xff]   ;;  %v4368_v23 = vld [vmem:[%s5451_s13 + $0x4d4] ss:$8 sps:$4 sm:$0xff]  }
  0xc0   : > { %3300 = vmatpush1.bf16.msra.mxu1 %v4316_v52  ;;  %v4370_v24 = vld [vmem:[%s5451_s13 + $0xd0] ss:$8 sps:$4 sm:$0xff]   ;;  %v4372_v26 = vld [vmem:[%s5451_s13 + $0xe4] ss:$8 sps:$4 sm:$0xff]   ;;  %v4376_v28 = vld [vmem:[%s5451_s13 + $0xe0] ss:$8 sps:$4 sm:$0xff]  }
  0xc1   : > { %3472 = vmatpush1.bf16.msra.mxu0 %v4317_v53  ;;  %3301 = vmatprep.subr.bf16.mxu1 %v4318_v54  ;;  %v4371_v25 = vld [vmem:[%s5451_s13 + $0x4d0] ss:$8 sps:$4 sm:$0xff]   ;;  %v4374_v27 = vld [vmem:[%s5451_s13 + $0x4e4] ss:$8 sps:$4 sm:$0xff]   ;;  %v4377_v29 = vld [vmem:[%s5451_s13 + $0x4e0] ss:$8 sps:$4 sm:$0xff]  }
  0xc2   : > { %3473 = vmatprep.subr.bf16.mxu0 %v4320_v55  ;;  %v4378_v30 = vld [vmem:[%s5451_s13 + $0xf4] ss:$8 sps:$4 sm:$0xff]   ;;  %v4382_v32 = vld [vmem:[%s5451_s13 + $0xf0] ss:$8 sps:$4 sm:$0xff]   ;;  %v4389_v34 = vld [vmem:[%s5451_s13 + $0x104] ss:$8 sps:$4 sm:$0xff]  }
  0xc3   : > { %v4380_v31 = vld [vmem:[%s5451_s13 + $0x4f4] ss:$8 sps:$4 sm:$0xff]   ;;  %v4383_v33 = vld [vmem:[%s5451_s13 + $0x4f0] ss:$8 sps:$4 sm:$0xff]   ;;  %v4395_v35 = vld [vmem:[%s5451_s13 + $0x504] ss:$8 sps:$4 sm:$0xff]  }
  0xc4   : > { %3302 = vmatpush1.bf16.msra.mxu1 %v4322_v56  ;;  %v4384_v36 = vld [vmem:[%s5819_s0] ss:$72 sps:$4 sm:$0xff]   ;;  %v4398_v40 = vld [vmem:[%s5451_s13 + $0x114] ss:$8 sps:$4 sm:$0xff]   ;;  %v4396_v42 = vld [vmem:[%s5451_s13 + $0x110] ss:$8 sps:$4 sm:$0xff]  }
  0xc5   : > { %3474 = vmatpush1.bf16.msra.mxu0 %v4323_v57  ;;  %3303 = vmatprep.subr.bf16.mxu1 %v4324_v58  ;;  %v4390_v37 = vld [vmem:[%s5819_s0 + $0x20] ss:$72 sps:$4 sm:$0xff]   ;;  %v4401_v41 = vld [vmem:[%s5451_s13 + $0x514] ss:$8 sps:$4 sm:$0xff]   ;;  %v4399_v43 = vld [vmem:[%s5451_s13 + $0x510] ss:$8 sps:$4 sm:$0xff]  }
  0xc6   : > { %3475 = vmatprep.subr.bf16.mxu0 %v4326_v59  ;;  %v4387_v38 = vld [vmem:[%s5451_s13 + $0x100] ss:$8 sps:$4 sm:$0xff]   ;;  %v4404_v44 = vld [vmem:[%s5451_s13 + $0x124] ss:$8 sps:$4 sm:$0xff]   ;;  %v4410_v48 = vld [vmem:[%s5451_s13 + $0x134] ss:$8 sps:$4 sm:$0xff]  }
  0xc7   : > { %v4393_v39 = vld [vmem:[%s5451_s13 + $0x500] ss:$8 sps:$4 sm:$0xff]   ;;  %v4407_v45 = vld [vmem:[%s5451_s13 + $0x524] ss:$8 sps:$4 sm:$0xff]   ;;  %v4413_v49 = vld [vmem:[%s5451_s13 + $0x534] ss:$8 sps:$4 sm:$0xff]  }
  0xc8   : > { %3304 = vmatpush1.bf16.msra.mxu1 %v4328_v60  ;;  %v4402_v46 = vld [vmem:[%s5451_s13 + $0x120] ss:$8 sps:$4 sm:$0xff]   ;;  %v4408_v50 = vld [vmem:[%s5451_s13 + $0x130] ss:$8 sps:$4 sm:$0xff]   ;;  %v4416_v52 = vld [vmem:[%s5451_s13 + $0x144] ss:$8 sps:$4 sm:$0xff]  }
  0xc9   : > { %3476 = vmatpush1.bf16.msra.mxu0 %v4329_v61  ;;  %3305 = vmatprep.subr.bf16.mxu1 %v4330_v62  ;;  %v4405_v47 = vld [vmem:[%s5451_s13 + $0x520] ss:$8 sps:$4 sm:$0xff]   ;;  %v4411_v51 = vld [vmem:[%s5451_s13 + $0x530] ss:$8 sps:$4 sm:$0xff]   ;;  %v4419_v53 = vld [vmem:[%s5451_s13 + $0x544] ss:$8 sps:$4 sm:$0xff]  }
  0xca   : > { %3477 = vmatprep.subr.bf16.mxu0 %v4332_v63  ;;  %v4414_v54 = vld [vmem:[%s5451_s13 + $0x140] ss:$8 sps:$4 sm:$0xff]   ;;  %v4422_v56 = vld [vmem:[%s5451_s13 + $0x154] ss:$8 sps:$4 sm:$0xff]   ;;  %v4420_v58 = vld [vmem:[%s5451_s13 + $0x150] ss:$8 sps:$4 sm:$0xff]  }
  0xcb   : > { %v4417_v55 = vld [vmem:[%s5451_s13 + $0x540] ss:$8 sps:$4 sm:$0xff]   ;;  %v4425_v57 = vld [vmem:[%s5451_s13 + $0x554] ss:$8 sps:$4 sm:$0xff]   ;;  %v4423_v59 = vld [vmem:[%s5451_s13 + $0x550] ss:$8 sps:$4 sm:$0xff]  }
  0xcc   : > { %3306 = vmatpush1.bf16.msra.mxu1 %v4334_v0  ;;  %v4428_v60 = vld [vmem:[%s5451_s13 + $0x164] ss:$8 sps:$4 sm:$0xff]   ;;  %v4426_v63 = vld [vmem:[%s5451_s13 + $0x160] ss:$8 sps:$4 sm:$0xff]   ;;  %s5832_s14 = smov (!%p1444_p11, %s3895_s14), 3  ;;  %s4213_s15 = sshll.u32 (%p4847_p6), %s4777_s17, 3 }
  0xcd   : > { %3478 = vmatpush1.bf16.msra.mxu0 %v4335_v1  ;;  %3307 = vmatprep.subr.bf16.mxu1 %v4336_v2  ;;  %v4431_v61 = vld [vmem:[%s5451_s13 + $0x564] ss:$8 sps:$4 sm:$0xff]   ;;  %v4429_v0 = vld [vmem:[%s5451_s13 + $0x560] ss:$8 sps:$4 sm:$0xff]   ;;  %v4434_v2 = vld [vmem:[%s5451_s13 + $0x174] ss:$8 sps:$4 sm:$0xff]   ;;  %s1451_s27 = scalar_lea.vmem %s5822_s3, %s5832_s14  ;;  %s3748_s5 = scalar_lea.vmem (%p4847_p6), %s5823_s4, %s4213_s15 }
  0xce   : > { %3479 = vmatprep.subr.bf16.mxu0 %v4338_v3  ;;  %v4488_v62 = vld [vmem:[%s5819_s0 + $0xc] ss:$72 sps:$4 sm:$0xff]  }
  0xcf   : > { %v4494_v1 = vld [vmem:[%s5819_s0 + $0x2c] ss:$72 sps:$4 sm:$0xff]  }
  0xd0   : > { %3308 = vmatpush1.bf16.msra.mxu1 %v4340_v4  ;;  %v4437_v3 = vld [vmem:[%s5451_s13 + $0x574] ss:$8 sps:$4 sm:$0xff]   ;;  %v4432_v4 = vld [vmem:[%s5451_s13 + $0x170] ss:$8 sps:$4 sm:$0xff]  }
  0xd1   : > { %3480 = vmatpush1.bf16.msra.mxu0 %v4341_v5  ;;  %3309 = vmatprep.subr.bf16.mxu1 %v4342_v6  ;;  %v4435_v5 = vld [vmem:[%s5451_s13 + $0x570] ss:$8 sps:$4 sm:$0xff]   ;;  %v4440_v6 = vld [vmem:[%s5451_s13 + $0x184] ss:$8 sps:$4 sm:$0xff]  }
  0xd2   : > { %3481 = vmatprep.subr.bf16.mxu0 %v4344_v7  ;;  %v4443_v7 = vld [vmem:[%s5451_s13 + $0x584] ss:$8 sps:$4 sm:$0xff]  }
  0xd4   : > { %3310 = vmatpush1.bf16.msra.mxu1 %v4346_v8  ;;  %v4438_v8 = vld [vmem:[%s5451_s13 + $0x180] ss:$8 sps:$4 sm:$0xff]  }
  0xd5   : > { %3482 = vmatpush1.bf16.msra.mxu0 %v4347_v9  ;;  %3311 = vmatprep.subr.bf16.mxu1 %v4348_v10  ;;  %v4441_v9 = vld [vmem:[%s5451_s13 + $0x580] ss:$8 sps:$4 sm:$0xff]   ;;  %v4446_v10 = vld [vmem:[%s5451_s13 + $0x194] ss:$8 sps:$4 sm:$0xff]  }
  0xd6   : > { %3483 = vmatprep.subr.bf16.mxu0 %v4350_v11  ;;  %v4449_v11 = vld [vmem:[%s5451_s13 + $0x594] ss:$8 sps:$4 sm:$0xff]  }
  0xd8   : > { %3312 = vmatpush1.bf16.msra.mxu1 %v4352_v12  ;;  %v4444_v12 = vld [vmem:[%s5451_s13 + $0x190] ss:$8 sps:$4 sm:$0xff]  }
  0xd9   : > { %3484 = vmatpush1.bf16.msra.mxu0 %v4353_v13  ;;  %3313 = vmatprep.subr.bf16.mxu1 %v4354_v14  ;;  %v4447_v13 = vld [vmem:[%s5451_s13 + $0x590] ss:$8 sps:$4 sm:$0xff]   ;;  %v4452_v14 = vld [vmem:[%s5451_s13 + $0x1a4] ss:$8 sps:$4 sm:$0xff]  }
  0xda   : > { %3485 = vmatprep.subr.bf16.mxu0 %v4356_v15  ;;  %v4455_v15 = vld [vmem:[%s5451_s13 + $0x5a4] ss:$8 sps:$4 sm:$0xff]  }
  0xdc   : > { %3314 = vmatpush1.bf16.msra.mxu1 %v4358_v16  ;;  %v4450_v16 = vld [vmem:[%s5451_s13 + $0x1a0] ss:$8 sps:$4 sm:$0xff]  }
  0xdd   : > { %3486 = vmatpush1.bf16.msra.mxu0 %v4359_v17  ;;  %3315 = vmatprep.subr.bf16.mxu1 %v4360_v18  ;;  %v4453_v17 = vld [vmem:[%s5451_s13 + $0x5a0] ss:$8 sps:$4 sm:$0xff]   ;;  %v4458_v18 = vld [vmem:[%s5451_s13 + $0x1b4] ss:$8 sps:$4 sm:$0xff]  }
  0xde   : > { %3487 = vmatprep.subr.bf16.mxu0 %v4362_v19  ;;  %v4461_v19 = vld [vmem:[%s5451_s13 + $0x5b4] ss:$8 sps:$4 sm:$0xff]  }
  0xe0   : > { %3316 = vmatpush1.bf16.msra.mxu1 %v4364_v20  ;;  %v4456_v20 = vld [vmem:[%s5451_s13 + $0x1b0] ss:$8 sps:$4 sm:$0xff]  }
  0xe1   : > { %3488 = vmatpush1.bf16.msra.mxu0 %v4365_v21  ;;  %3317 = vmatprep.subr.bf16.mxu1 %v4366_v22  ;;  %v4459_v21 = vld [vmem:[%s5451_s13 + $0x5b0] ss:$8 sps:$4 sm:$0xff]   ;;  %v4464_v22 = vld [vmem:[%s5451_s13 + $0x1c4] ss:$8 sps:$4 sm:$0xff]  }
  0xe2   : > { %3489 = vmatprep.subr.bf16.mxu0 %v4368_v23  ;;  %v4467_v23 = vld [vmem:[%s5451_s13 + $0x5c4] ss:$8 sps:$4 sm:$0xff]  }
  0xe4   : > { %3318 = vmatpush1.bf16.msra.mxu1 %v4370_v24  ;;  %v4462_v24 = vld [vmem:[%s5451_s13 + $0x1c0] ss:$8 sps:$4 sm:$0xff]  }
  0xe5   : > { %3490 = vmatpush1.bf16.msra.mxu0 %v4371_v25  ;;  %3319 = vmatprep.subr.bf16.mxu1 %v4372_v26  ;;  %v4465_v25 = vld [vmem:[%s5451_s13 + $0x5c0] ss:$8 sps:$4 sm:$0xff]   ;;  %v4470_v26 = vld [vmem:[%s5451_s13 + $0x1d4] ss:$8 sps:$4 sm:$0xff]  }
  0xe6   : > { %3491 = vmatprep.subr.bf16.mxu0 %v4374_v27  ;;  %v4473_v27 = vld [vmem:[%s5451_s13 + $0x5d4] ss:$8 sps:$4 sm:$0xff]  }
  0xe8   : > { %3320 = vmatpush1.bf16.msra.mxu1 %v4376_v28  ;;  %v4468_v28 = vld [vmem:[%s5451_s13 + $0x1d0] ss:$8 sps:$4 sm:$0xff]  }
  0xe9   : > { %3492 = vmatpush1.bf16.msra.mxu0 %v4377_v29  ;;  %3321 = vmatprep.subr.bf16.mxu1 %v4378_v30  ;;  %v4471_v29 = vld [vmem:[%s5451_s13 + $0x5d0] ss:$8 sps:$4 sm:$0xff]   ;;  %v4476_v30 = vld [vmem:[%s5451_s13 + $0x1e4] ss:$8 sps:$4 sm:$0xff]  }
  0xea   : > { %3493 = vmatprep.subr.bf16.mxu0 %v4380_v31  ;;  %v4479_v31 = vld [vmem:[%s5451_s13 + $0x5e4] ss:$8 sps:$4 sm:$0xff]  }
  0xec   : > { %3322 = vmatpush1.bf16.msra.mxu1 %v4382_v32  ;;  %v4474_v32 = vld [vmem:[%s5451_s13 + $0x1e0] ss:$8 sps:$4 sm:$0xff]  }
  0xed   : > { %3494 = vmatpush1.bf16.msra.mxu0 %v4383_v33  ;;  %3334 = vmatprep.subr.bf16.mxu1 %v4389_v34  ;;  %v4477_v33 = vld [vmem:[%s5451_s13 + $0x5e0] ss:$8 sps:$4 sm:$0xff]   ;;  %v4482_v34 = vld [vmem:[%s5451_s13 + $0x1f4] ss:$8 sps:$4 sm:$0xff]  }
  0xee   : > { %3506 = vmatprep.subr.bf16.mxu0 %v4395_v35  ;;  %v4485_v35 = vld [vmem:[%s5451_s13 + $0x5f4] ss:$8 sps:$4 sm:$0xff]  }
  0xef   : > { %3324 = vmatmul.mubr.bf16.vlgmr.msra.gmra.mrb[0].mxu1 %v4384_v36  ;;  %v4480_v36 = vld [vmem:[%s5451_s13 + $0x1f0] ss:$8 sps:$4 sm:$0xff]  }
  0xf0   : > { %3496 = vmatmul.mubr.bf16.vlgmr.msra.gmra.mrb[0].mxu0 %v4390_v37  ;;  %3335 = vmatpush1.bf16.msra.mxu1 %v4387_v38  ;;  %v4483_v37 = vld [vmem:[%s5451_s13 + $0x5f0] ss:$8 sps:$4 sm:$0xff]   ;;  %v4491_v38 = vld [vmem:[%s5451_s13 + $0x204] ss:$8 sps:$4 sm:$0xff]  }
  0xf1   : > { %3507 = vmatpush1.bf16.msra.mxu0 %v4393_v39  ;;  %3336 = vmatprep.subr.bf16.mxu1 %v4398_v40  ;;  %v4497_v39 = vld [vmem:[%s5451_s13 + $0x604] ss:$8 sps:$4 sm:$0xff]   ;;  %v4486_v40 = vld [vmem:[%s5819_s0 + $0x8] ss:$72 sps:$4 sm:$0xff]  }
  0xf2   : > { %3508 = vmatprep.subr.bf16.mxu0 %v4401_v41  ;;  %3366 = vmatprep.mubr.bf16.mxu1 %v4488_v62  ;;  %v4489_v41 = vld [vmem:[%s5451_s13 + $0x200] ss:$8 sps:$4 sm:$0xff]   ;;  %v4524_v62 = vld [vmem:[%s5451_s13 + $0x254] ss:$8 sps:$4 sm:$0xff]  }
  0xf3   : > { %3538 = vmatprep.mubr.bf16.mxu0 %v4494_v1  ;;  %v4525_v1 = vld [vmem:[%s5451_s13 + $0x650] ss:$8 sps:$4 sm:$0xff]  }
  0xf4   : > { %3337 = vmatpush1.bf16.msra.mxu1 %v4396_v42  ;;  %v4492_v42 = vld [vmem:[%s5819_s0 + $0x28] ss:$72 sps:$4 sm:$0xff]  }
  0xf5   : > { %3509 = vmatpush1.bf16.msra.mxu0 %v4399_v43  ;;  %3338 = vmatprep.subr.bf16.mxu1 %v4404_v44  ;;  %v4495_v43 = vld [vmem:[%s5451_s13 + $0x600] ss:$8 sps:$4 sm:$0xff]   ;;  %v4500_v44 = vld [vmem:[%s5451_s13 + $0x214] ss:$8 sps:$4 sm:$0xff]  }
  0xf6   : > { %3510 = vmatprep.subr.bf16.mxu0 %v4407_v45  ;;  %v4503_v45 = vld [vmem:[%s5451_s13 + $0x614] ss:$8 sps:$4 sm:$0xff]  }
  0xf8   : > { %3339 = vmatpush1.bf16.msra.mxu1 %v4402_v46  ;;  %v4498_v46 = vld [vmem:[%s5451_s13 + $0x210] ss:$8 sps:$4 sm:$0xff]  }
  0xf9   : > { %3511 = vmatpush1.bf16.msra.mxu0 %v4405_v47  ;;  %3340 = vmatprep.subr.bf16.mxu1 %v4410_v48  ;;  %v4590_v47 = vld [vmem:[%s5819_s0 + $0x14] ss:$72 sps:$4 sm:$0xff]   ;;  %v4501_v48 = vld [vmem:[%s5451_s13 + $0x610] ss:$8 sps:$4 sm:$0xff]  }
  0xfa   : > { %3512 = vmatprep.subr.bf16.mxu0 %v4413_v49  ;;  %v4506_v49 = vld [vmem:[%s5451_s13 + $0x224] ss:$8 sps:$4 sm:$0xff]  }
  0xfc   : > { %3341 = vmatpush1.bf16.msra.mxu1 %v4408_v50  ;;  %v4509_v50 = vld [vmem:[%s5451_s13 + $0x624] ss:$8 sps:$4 sm:$0xff]  }
  0xfd   : > { %3513 = vmatpush1.bf16.msra.mxu0 %v4411_v51  ;;  %3342 = vmatprep.subr.bf16.mxu1 %v4416_v52  ;;  %v4596_v51 = vld [vmem:[%s5819_s0 + $0x34] ss:$72 sps:$4 sm:$0xff]   ;;  %v4504_v52 = vld [vmem:[%s5451_s13 + $0x220] ss:$8 sps:$4 sm:$0xff]  }
  0xfe   : > { %3514 = vmatprep.subr.bf16.mxu0 %v4419_v53  ;;  %v4507_v53 = vld [vmem:[%s5451_s13 + $0x620] ss:$8 sps:$4 sm:$0xff]  }
 0x100   : > { %3343 = vmatpush1.bf16.msra.mxu1 %v4414_v54  ;;  %v4512_v54 = vld [vmem:[%s5451_s13 + $0x234] ss:$8 sps:$4 sm:$0xff]  }
 0x101   : > { %3515 = vmatpush1.bf16.msra.mxu0 %v4417_v55  ;;  %3344 = vmatprep.subr.bf16.mxu1 %v4422_v56  ;;  %v4515_v55 = vld [vmem:[%s5451_s13 + $0x634] ss:$8 sps:$4 sm:$0xff]   ;;  %v4510_v56 = vld [vmem:[%s5451_s13 + $0x230] ss:$8 sps:$4 sm:$0xff]  }
 0x102   : > { %3516 = vmatprep.subr.bf16.mxu0 %v4425_v57  ;;  %v4513_v57 = vld [vmem:[%s5451_s13 + $0x630] ss:$8 sps:$4 sm:$0xff]  }
 0x104   : > { %3345 = vmatpush1.bf16.msra.mxu1 %v4420_v58  ;;  %v4518_v58 = vld [vmem:[%s5451_s13 + $0x244] ss:$8 sps:$4 sm:$0xff]  }
 0x105   : > { %3517 = vmatpush1.bf16.msra.mxu0 %v4423_v59  ;;  %3346 = vmatprep.subr.bf16.mxu1 %v4428_v60  ;;  %v4521_v59 = vld [vmem:[%s5451_s13 + $0x644] ss:$8 sps:$4 sm:$0xff]   ;;  %v4516_v60 = vld [vmem:[%s5451_s13 + $0x240] ss:$8 sps:$4 sm:$0xff]  }
 0x106   : > { %3518 = vmatprep.subr.bf16.mxu0 %v4431_v61  ;;  %v4519_v61 = vld [vmem:[%s5451_s13 + $0x640] ss:$8 sps:$4 sm:$0xff]  }
 0x108   : > { %3347 = vmatpush1.bf16.msra.mxu1 %v4426_v63  ;;  %v4527_v63 = vld [vmem:[%s5451_s13 + $0x654] ss:$8 sps:$4 sm:$0xff]  }
 0x109   : > { %3519 = vmatpush1.bf16.msra.mxu0 %v4429_v0  ;;  %3348 = vmatprep.subr.bf16.mxu1 %v4434_v2  ;;  %v4522_v0 = vld [vmem:[%s5451_s13 + $0x250] ss:$8 sps:$4 sm:$0xff]   ;;  %v4530_v2 = vld [vmem:[%s5451_s13 + $0x264] ss:$8 sps:$4 sm:$0xff]  }
 0x10a   : > { %3520 = vmatprep.subr.bf16.mxu0 %v4437_v3  ;;  %v4533_v3 = vld [vmem:[%s5451_s13 + $0x664] ss:$8 sps:$4 sm:$0xff]  }
 0x10c   : > { %3349 = vmatpush1.bf16.msra.mxu1 %v4432_v4  ;;  %v4528_v4 = vld [vmem:[%s5451_s13 + $0x260] ss:$8 sps:$4 sm:$0xff]  }
 0x10d   : > { %3521 = vmatpush1.bf16.msra.mxu0 %v4435_v5  ;;  %3350 = vmatprep.subr.bf16.mxu1 %v4440_v6  ;;  %v4531_v5 = vld [vmem:[%s5451_s13 + $0x660] ss:$8 sps:$4 sm:$0xff]   ;;  %v4536_v6 = vld [vmem:[%s5451_s13 + $0x274] ss:$8 sps:$4 sm:$0xff]  }
 0x10e   : > { %3522 = vmatprep.subr.bf16.mxu0 %v4443_v7  ;;  %v4539_v7 = vld [vmem:[%s5451_s13 + $0x674] ss:$8 sps:$4 sm:$0xff]  }
 0x110   : > { %3351 = vmatpush1.bf16.msra.mxu1 %v4438_v8  ;;  %v4534_v8 = vld [vmem:[%s5451_s13 + $0x270] ss:$8 sps:$4 sm:$0xff]  }
 0x111   : > { %3523 = vmatpush1.bf16.msra.mxu0 %v4441_v9  ;;  %3352 = vmatprep.subr.bf16.mxu1 %v4446_v10  ;;  %v4537_v9 = vld [vmem:[%s5451_s13 + $0x670] ss:$8 sps:$4 sm:$0xff]   ;;  %v4542_v10 = vld [vmem:[%s5451_s13 + $0x284] ss:$8 sps:$4 sm:$0xff]  }
 0x112   : > { %3524 = vmatprep.subr.bf16.mxu0 %v4449_v11  ;;  %v4545_v11 = vld [vmem:[%s5451_s13 + $0x684] ss:$8 sps:$4 sm:$0xff]  }
 0x114   : > { %3353 = vmatpush1.bf16.msra.mxu1 %v4444_v12  ;;  %v4540_v12 = vld [vmem:[%s5451_s13 + $0x280] ss:$8 sps:$4 sm:$0xff]  }
 0x115   : > { %3525 = vmatpush1.bf16.msra.mxu0 %v4447_v13  ;;  %3354 = vmatprep.subr.bf16.mxu1 %v4452_v14  ;;  %v4543_v13 = vld [vmem:[%s5451_s13 + $0x680] ss:$8 sps:$4 sm:$0xff]   ;;  %v4548_v14 = vld [vmem:[%s5451_s13 + $0x294] ss:$8 sps:$4 sm:$0xff]  }
 0x116   : > { %3526 = vmatprep.subr.bf16.mxu0 %v4455_v15  ;;  %v4551_v15 = vld [vmem:[%s5451_s13 + $0x694] ss:$8 sps:$4 sm:$0xff]  }
 0x118   : > { %3355 = vmatpush1.bf16.msra.mxu1 %v4450_v16  ;;  %v4546_v16 = vld [vmem:[%s5451_s13 + $0x290] ss:$8 sps:$4 sm:$0xff]  }
 0x119   : > { %3527 = vmatpush1.bf16.msra.mxu0 %v4453_v17  ;;  %3356 = vmatprep.subr.bf16.mxu1 %v4458_v18  ;;  %v4549_v17 = vld [vmem:[%s5451_s13 + $0x690] ss:$8 sps:$4 sm:$0xff]   ;;  %v4554_v18 = vld [vmem:[%s5451_s13 + $0x2a4] ss:$8 sps:$4 sm:$0xff]  }
 0x11a   : > { %3528 = vmatprep.subr.bf16.mxu0 %v4461_v19  ;;  %v4557_v19 = vld [vmem:[%s5451_s13 + $0x6a4] ss:$8 sps:$4 sm:$0xff]  }
 0x11c   : > { %3357 = vmatpush1.bf16.msra.mxu1 %v4456_v20  ;;  %v4552_v20 = vld [vmem:[%s5451_s13 + $0x2a0] ss:$8 sps:$4 sm:$0xff]  }
 0x11d   : > { %3529 = vmatpush1.bf16.msra.mxu0 %v4459_v21  ;;  %3358 = vmatprep.subr.bf16.mxu1 %v4464_v22  ;;  %v4555_v21 = vld [vmem:[%s5451_s13 + $0x6a0] ss:$8 sps:$4 sm:$0xff]   ;;  %v4560_v22 = vld [vmem:[%s5451_s13 + $0x2b4] ss:$8 sps:$4 sm:$0xff]  }
 0x11e   : > { %3530 = vmatprep.subr.bf16.mxu0 %v4467_v23  ;;  %v4563_v23 = vld [vmem:[%s5451_s13 + $0x6b4] ss:$8 sps:$4 sm:$0xff]  }
 0x120   : > { %3359 = vmatpush1.bf16.msra.mxu1 %v4462_v24  ;;  %v4558_v24 = vld [vmem:[%s5451_s13 + $0x2b0] ss:$8 sps:$4 sm:$0xff]  }
 0x121   : > { %3531 = vmatpush1.bf16.msra.mxu0 %v4465_v25  ;;  %3360 = vmatprep.subr.bf16.mxu1 %v4470_v26  ;;  %v4561_v25 = vld [vmem:[%s5451_s13 + $0x6b0] ss:$8 sps:$4 sm:$0xff]   ;;  %v4566_v26 = vld [vmem:[%s5451_s13 + $0x2c4] ss:$8 sps:$4 sm:$0xff]  }
 0x122   : > { %3532 = vmatprep.subr.bf16.mxu0 %v4473_v27  ;;  %v4569_v27 = vld [vmem:[%s5451_s13 + $0x6c4] ss:$8 sps:$4 sm:$0xff]  }
 0x124   : > { %3361 = vmatpush1.bf16.msra.mxu1 %v4468_v28  ;;  %v4564_v28 = vld [vmem:[%s5451_s13 + $0x2c0] ss:$8 sps:$4 sm:$0xff]  }
 0x125   : > { %3533 = vmatpush1.bf16.msra.mxu0 %v4471_v29  ;;  %3362 = vmatprep.subr.bf16.mxu1 %v4476_v30  ;;  %v4567_v29 = vld [vmem:[%s5451_s13 + $0x6c0] ss:$8 sps:$4 sm:$0xff]   ;;  %v4572_v30 = vld [vmem:[%s5451_s13 + $0x2d4] ss:$8 sps:$4 sm:$0xff]  }
 0x126   : > { %3534 = vmatprep.subr.bf16.mxu0 %v4479_v31  ;;  %v4575_v31 = vld [vmem:[%s5451_s13 + $0x6d4] ss:$8 sps:$4 sm:$0xff]  }
 0x128   : > { %3363 = vmatpush1.bf16.msra.mxu1 %v4474_v32  ;;  %v4570_v32 = vld [vmem:[%s5451_s13 + $0x2d0] ss:$8 sps:$4 sm:$0xff]  }
 0x129   : > { %3535 = vmatpush1.bf16.msra.mxu0 %v4477_v33  ;;  %3364 = vmatprep.subr.bf16.mxu1 %v4482_v34  ;;  %v4573_v33 = vld [vmem:[%s5451_s13 + $0x6d0] ss:$8 sps:$4 sm:$0xff]   ;;  %v4578_v34 = vld [vmem:[%s5451_s13 + $0x2e4] ss:$8 sps:$4 sm:$0xff]  }
 0x12a   : > { %3536 = vmatprep.subr.bf16.mxu0 %v4485_v35  ;;  %v4581_v35 = vld [vmem:[%s5451_s13 + $0x6e4] ss:$8 sps:$4 sm:$0xff]  }
 0x12c   : > { %3365 = vmatpush1.bf16.msra.mxu1 %v4480_v36  ;;  %v4576_v36 = vld [vmem:[%s5451_s13 + $0x2e0] ss:$8 sps:$4 sm:$0xff]  }
 0x12d   : > { %3537 = vmatpush1.bf16.msra.mxu0 %v4483_v37  ;;  %3377 = vmatprep.subr.bf16.mxu1 %v4491_v38  ;;  %v4579_v37 = vld [vmem:[%s5451_s13 + $0x6e0] ss:$8 sps:$4 sm:$0xff]   ;;  %v4584_v38 = vld [vmem:[%s5451_s13 + $0x2f4] ss:$8 sps:$4 sm:$0xff]  }
 0x12e   : > { %3549 = vmatprep.subr.bf16.mxu0 %v4497_v39  ;;  %v4587_v39 = vld [vmem:[%s5451_s13 + $0x6f4] ss:$8 sps:$4 sm:$0xff]  }
 0x12f   : > { %3367 = vmatmul.mubr.bf16.vlgmr.msra.gmra.mrb[0].mxu1 %v4486_v40  ;;  %v4582_v40 = vld [vmem:[%s5451_s13 + $0x2f0] ss:$8 sps:$4 sm:$0xff]  }
 0x130   : > { %3539 = vmatmul.mubr.bf16.vlgmr.msra.gmra.mrb[0].mxu0 %v4492_v42  ;;  %3378 = vmatpush1.bf16.msra.mxu1 %v4489_v41  ;;  %v4585_v41 = vld [vmem:[%s5451_s13 + $0x6f0] ss:$8 sps:$4 sm:$0xff]   ;;  %v4593_v42 = vld [vmem:[%s5451_s13 + $0x304] ss:$8 sps:$4 sm:$0xff]  }
 0x131   : > { %3550 = vmatpush1.bf16.msra.mxu0 %v4495_v43  ;;  %3379 = vmatprep.subr.bf16.mxu1 %v4500_v44  ;;  %v4599_v43 = vld [vmem:[%s5451_s13 + $0x704] ss:$8 sps:$4 sm:$0xff]   ;;  %v4588_v44 = vld [vmem:[%s5819_s0 + $0x10] ss:$72 sps:$4 sm:$0xff]  }
 0x132   : > { %3551 = vmatprep.subr.bf16.mxu0 %v4503_v45  ;;  %3409 = vmatprep.mubr.bf16.mxu1 %v4590_v47  ;;  %v4591_v45 = vld [vmem:[%s5451_s13 + $0x300] ss:$8 sps:$4 sm:$0xff]  }
 0x133   : > { %3581 = vmatprep.mubr.bf16.mxu0 %v4596_v51  ;;  %v4597_v47 = vld [vmem:[%s5451_s13 + $0x700] ss:$8 sps:$4 sm:$0xff]   ;;  %v4695_v51 = vld [vmem:[%s5819_s0 + $0x3c] ss:$72 sps:$4 sm:$0xff]  }
 0x134   : > { %3380 = vmatpush1.bf16.msra.mxu1 %v4498_v46  ;;  %v4594_v46 = vld [vmem:[%s5819_s0 + $0x30] ss:$72 sps:$4 sm:$0xff]  }
 0x135   : > { %3552 = vmatpush1.bf16.msra.mxu0 %v4501_v48  ;;  %3381 = vmatprep.subr.bf16.mxu1 %v4506_v49  ;;  %v4602_v48 = vld [vmem:[%s5451_s13 + $0x314] ss:$8 sps:$4 sm:$0xff]  }
 0x136   : > { %3553 = vmatprep.subr.bf16.mxu0 %v4509_v50  ;;  %v4605_v49 = vld [vmem:[%s5451_s13 + $0x714] ss:$8 sps:$4 sm:$0xff]  }
 0x137   : > { %v4692_v50 = vld [vmem:[%s5819_s0 + $0x1c] ss:$72 sps:$4 sm:$0xff]  }
 0x138   : > { %3382 = vmatpush1.bf16.msra.mxu1 %v4504_v52  ;;  %v4600_v52 = vld [vmem:[%s5451_s13 + $0x310] ss:$8 sps:$4 sm:$0xff]  }
 0x139   : > { %3554 = vmatpush1.bf16.msra.mxu0 %v4507_v53  ;;  %3383 = vmatprep.subr.bf16.mxu1 %v4512_v54  ;;  %v4603_v53 = vld [vmem:[%s5451_s13 + $0x710] ss:$8 sps:$4 sm:$0xff]   ;;  %v4608_v54 = vld [vmem:[%s5451_s13 + $0x324] ss:$8 sps:$4 sm:$0xff]  }
 0x13a   : > { %3555 = vmatprep.subr.bf16.mxu0 %v4515_v55  ;;  %v4611_v55 = vld [vmem:[%s5451_s13 + $0x724] ss:$8 sps:$4 sm:$0xff]  }
 0x13c   : > { %3384 = vmatpush1.bf16.msra.mxu1 %v4510_v56  ;;  %v4606_v56 = vld [vmem:[%s5451_s13 + $0x320] ss:$8 sps:$4 sm:$0xff]  }
 0x13d   : > { %3556 = vmatpush1.bf16.msra.mxu0 %v4513_v57  ;;  %3385 = vmatprep.subr.bf16.mxu1 %v4518_v58  ;;  %v4609_v57 = vld [vmem:[%s5451_s13 + $0x720] ss:$8 sps:$4 sm:$0xff]   ;;  %v4614_v58 = vld [vmem:[%s5451_s13 + $0x334] ss:$8 sps:$4 sm:$0xff]  }
 0x13e   : > { %3557 = vmatprep.subr.bf16.mxu0 %v4521_v59  ;;  %v4617_v59 = vld [vmem:[%s5451_s13 + $0x734] ss:$8 sps:$4 sm:$0xff]  }
 0x140   : > { %3386 = vmatpush1.bf16.msra.mxu1 %v4516_v60  ;;  %v4612_v60 = vld [vmem:[%s5451_s13 + $0x330] ss:$8 sps:$4 sm:$0xff]  }
 0x141   : > { %3558 = vmatpush1.bf16.msra.mxu0 %v4519_v61  ;;  %3387 = vmatprep.subr.bf16.mxu1 %v4524_v62  ;;  %v4615_v61 = vld [vmem:[%s5451_s13 + $0x730] ss:$8 sps:$4 sm:$0xff]   ;;  %v4620_v62 = vld [vmem:[%s5451_s13 + $0x344] ss:$8 sps:$4 sm:$0xff]  }
 0x142   : > { %3559 = vmatprep.subr.bf16.mxu0 %v4527_v63  ;;  %v4623_v63 = vld [vmem:[%s5451_s13 + $0x744] ss:$8 sps:$4 sm:$0xff]  }
 0x144   : > { %3388 = vmatpush1.bf16.msra.mxu1 %v4522_v0  ;;  %v4618_v0 = vld [vmem:[%s5451_s13 + $0x340] ss:$8 sps:$4 sm:$0xff]  }
 0x145   : > { %3560 = vmatpush1.bf16.msra.mxu0 %v4525_v1  ;;  %3389 = vmatprep.subr.bf16.mxu1 %v4530_v2  ;;  %v4621_v1 = vld [vmem:[%s5451_s13 + $0x740] ss:$8 sps:$4 sm:$0xff]   ;;  %v4626_v2 = vld [vmem:[%s5451_s13 + $0x354] ss:$8 sps:$4 sm:$0xff]  }
 0x146   : > { %3561 = vmatprep.subr.bf16.mxu0 %v4533_v3  ;;  %v4629_v3 = vld [vmem:[%s5451_s13 + $0x754] ss:$8 sps:$4 sm:$0xff]  }
 0x148   : > { %3390 = vmatpush1.bf16.msra.mxu1 %v4528_v4  ;;  %v4624_v4 = vld [vmem:[%s5451_s13 + $0x350] ss:$8 sps:$4 sm:$0xff]  }
 0x149   : > { %3562 = vmatpush1.bf16.msra.mxu0 %v4531_v5  ;;  %3391 = vmatprep.subr.bf16.mxu1 %v4536_v6  ;;  %v4627_v5 = vld [vmem:[%s5451_s13 + $0x750] ss:$8 sps:$4 sm:$0xff]   ;;  %v4632_v6 = vld [vmem:[%s5451_s13 + $0x364] ss:$8 sps:$4 sm:$0xff]  }
 0x14a   : > { %3563 = vmatprep.subr.bf16.mxu0 %v4539_v7  ;;  %v4635_v7 = vld [vmem:[%s5451_s13 + $0x764] ss:$8 sps:$4 sm:$0xff]  }
 0x14c   : > { %3392 = vmatpush1.bf16.msra.mxu1 %v4534_v8  ;;  %v4630_v8 = vld [vmem:[%s5451_s13 + $0x360] ss:$8 sps:$4 sm:$0xff]  }
 0x14d   : > { %3564 = vmatpush1.bf16.msra.mxu0 %v4537_v9  ;;  %3393 = vmatprep.subr.bf16.mxu1 %v4542_v10  ;;  %v4633_v9 = vld [vmem:[%s5451_s13 + $0x760] ss:$8 sps:$4 sm:$0xff]   ;;  %v4638_v10 = vld [vmem:[%s5451_s13 + $0x374] ss:$8 sps:$4 sm:$0xff]  }
 0x14e   : > { %3565 = vmatprep.subr.bf16.mxu0 %v4545_v11  ;;  %v4641_v11 = vld [vmem:[%s5451_s13 + $0x774] ss:$8 sps:$4 sm:$0xff]  }
 0x150   : > { %3394 = vmatpush1.bf16.msra.mxu1 %v4540_v12  ;;  %v4636_v12 = vld [vmem:[%s5451_s13 + $0x370] ss:$8 sps:$4 sm:$0xff]  }
 0x151   : > { %3566 = vmatpush1.bf16.msra.mxu0 %v4543_v13  ;;  %3395 = vmatprep.subr.bf16.mxu1 %v4548_v14  ;;  %v4639_v13 = vld [vmem:[%s5451_s13 + $0x770] ss:$8 sps:$4 sm:$0xff]   ;;  %v4644_v14 = vld [vmem:[%s5451_s13 + $0x384] ss:$8 sps:$4 sm:$0xff]  }
 0x152   : > { %3567 = vmatprep.subr.bf16.mxu0 %v4551_v15  ;;  %v4647_v15 = vld [vmem:[%s5451_s13 + $0x784] ss:$8 sps:$4 sm:$0xff]  }
 0x154   : > { %3396 = vmatpush1.bf16.msra.mxu1 %v4546_v16  ;;  %v4642_v16 = vld [vmem:[%s5451_s13 + $0x380] ss:$8 sps:$4 sm:$0xff]  }
 0x155   : > { %3568 = vmatpush1.bf16.msra.mxu0 %v4549_v17  ;;  %3397 = vmatprep.subr.bf16.mxu1 %v4554_v18  ;;  %v4645_v17 = vld [vmem:[%s5451_s13 + $0x780] ss:$8 sps:$4 sm:$0xff]   ;;  %v4650_v18 = vld [vmem:[%s5451_s13 + $0x394] ss:$8 sps:$4 sm:$0xff]  }
 0x156   : > { %3569 = vmatprep.subr.bf16.mxu0 %v4557_v19  ;;  %v4653_v19 = vld [vmem:[%s5451_s13 + $0x794] ss:$8 sps:$4 sm:$0xff]  }
 0x158   : > { %3398 = vmatpush1.bf16.msra.mxu1 %v4552_v20  ;;  %v4648_v20 = vld [vmem:[%s5451_s13 + $0x390] ss:$8 sps:$4 sm:$0xff]  }
 0x159   : > { %3570 = vmatpush1.bf16.msra.mxu0 %v4555_v21  ;;  %3399 = vmatprep.subr.bf16.mxu1 %v4560_v22  ;;  %v4651_v21 = vld [vmem:[%s5451_s13 + $0x790] ss:$8 sps:$4 sm:$0xff]   ;;  %v4656_v22 = vld [vmem:[%s5451_s13 + $0x3a4] ss:$8 sps:$4 sm:$0xff]  }
 0x15a   : > { %3571 = vmatprep.subr.bf16.mxu0 %v4563_v23  ;;  %v4659_v23 = vld [vmem:[%s5451_s13 + $0x7a4] ss:$8 sps:$4 sm:$0xff]  }
 0x15c   : > { %3400 = vmatpush1.bf16.msra.mxu1 %v4558_v24  ;;  %v4654_v24 = vld [vmem:[%s5451_s13 + $0x3a0] ss:$8 sps:$4 sm:$0xff]  }
 0x15d   : > { %3572 = vmatpush1.bf16.msra.mxu0 %v4561_v25  ;;  %3401 = vmatprep.subr.bf16.mxu1 %v4566_v26  ;;  %v4657_v25 = vld [vmem:[%s5451_s13 + $0x7a0] ss:$8 sps:$4 sm:$0xff]   ;;  %v4662_v26 = vld [vmem:[%s5451_s13 + $0x3b4] ss:$8 sps:$4 sm:$0xff]  }
 0x15e   : > { %3573 = vmatprep.subr.bf16.mxu0 %v4569_v27  ;;  %v4665_v27 = vld [vmem:[%s5451_s13 + $0x7b4] ss:$8 sps:$4 sm:$0xff]  }
 0x160   : > { %3402 = vmatpush1.bf16.msra.mxu1 %v4564_v28  ;;  %v4660_v28 = vld [vmem:[%s5451_s13 + $0x3b0] ss:$8 sps:$4 sm:$0xff]  }
 0x161   : > { %3574 = vmatpush1.bf16.msra.mxu0 %v4567_v29  ;;  %3403 = vmatprep.subr.bf16.mxu1 %v4572_v30  ;;  %v4663_v29 = vld [vmem:[%s5451_s13 + $0x7b0] ss:$8 sps:$4 sm:$0xff]   ;;  %v4668_v30 = vld [vmem:[%s5451_s13 + $0x3c4] ss:$8 sps:$4 sm:$0xff]  }
 0x162   : > { %3575 = vmatprep.subr.bf16.mxu0 %v4575_v31  ;;  %v4671_v31 = vld [vmem:[%s5451_s13 + $0x7c4] ss:$8 sps:$4 sm:$0xff]  }
 0x164   : > { %3404 = vmatpush1.bf16.msra.mxu1 %v4570_v32  ;;  %v4666_v32 = vld [vmem:[%s5451_s13 + $0x3c0] ss:$8 sps:$4 sm:$0xff]  }
 0x165   : > { %3576 = vmatpush1.bf16.msra.mxu0 %v4573_v33  ;;  %3405 = vmatprep.subr.bf16.mxu1 %v4578_v34  ;;  %v4669_v33 = vld [vmem:[%s5451_s13 + $0x7c0] ss:$8 sps:$4 sm:$0xff]   ;;  %v4674_v34 = vld [vmem:[%s5451_s13 + $0x3d4] ss:$8 sps:$4 sm:$0xff]  }
 0x166   : > { %3577 = vmatprep.subr.bf16.mxu0 %v4581_v35  ;;  %v4677_v35 = vld [vmem:[%s5451_s13 + $0x7d4] ss:$8 sps:$4 sm:$0xff]  }
 0x168   : > { %3406 = vmatpush1.bf16.msra.mxu1 %v4576_v36  ;;  %v4672_v36 = vld [vmem:[%s5451_s13 + $0x3d0] ss:$8 sps:$4 sm:$0xff]  }
 0x169   : > { %3578 = vmatpush1.bf16.msra.mxu0 %v4579_v37  ;;  %3407 = vmatprep.subr.bf16.mxu1 %v4584_v38  ;;  %v4675_v37 = vld [vmem:[%s5451_s13 + $0x7d0] ss:$8 sps:$4 sm:$0xff]   ;;  %v4680_v38 = vld [vmem:[%s5451_s13 + $0x3e4] ss:$8 sps:$4 sm:$0xff]  }
 0x16a   : > { %3579 = vmatprep.subr.bf16.mxu0 %v4587_v39  ;;  %v4683_v39 = vld [vmem:[%s5451_s13 + $0x7e4] ss:$8 sps:$4 sm:$0xff]  }
 0x16c   : > { %3408 = vmatpush1.bf16.msra.mxu1 %v4582_v40  ;;  %v4678_v40 = vld [vmem:[%s5451_s13 + $0x3e0] ss:$8 sps:$4 sm:$0xff]  }
 0x16d   : > { %3580 = vmatpush1.bf16.msra.mxu0 %v4585_v41  ;;  %3420 = vmatprep.subr.bf16.mxu1 %v4593_v42  ;;  %v4681_v41 = vld [vmem:[%s5451_s13 + $0x7e0] ss:$8 sps:$4 sm:$0xff]   ;;  %v4686_v42 = vld [vmem:[%s5451_s13 + $0x3f4] ss:$8 sps:$4 sm:$0xff]  }
 0x16e   : > { %3592 = vmatprep.subr.bf16.mxu0 %v4599_v43  ;;  %v4689_v43 = vld [vmem:[%s5451_s13 + $0x7f4] ss:$8 sps:$4 sm:$0xff]  }
 0x16f   : > { %3410 = vmatmul.mubr.bf16.vlgmr.msra.gmra.mrb[0].mxu1 %v4588_v44  ;;  %v4684_v44 = vld [vmem:[%s5451_s13 + $0x3f0] ss:$8 sps:$4 sm:$0xff]  }
 0x170   : > { %3582 = vmatmul.mubr.bf16.vlgmr.msra.gmra.mrb[0].mxu0 %v4594_v46  ;;  %3421 = vmatpush1.bf16.msra.mxu1 %v4591_v45  ;;  %v4687_v45 = vld [vmem:[%s5451_s13 + $0x7f0] ss:$8 sps:$4 sm:$0xff]   ;;  %v4698_v46 = vld [vmem:[%s5451_s13 + $0x804] ss:$8 sps:$4 sm:$0xff]  }
 0x171   : > { %3593 = vmatpush1.bf16.msra.mxu0 %v4597_v47  ;;  %3422 = vmatprep.subr.bf16.mxu1 %v4602_v48  ;;  %v4690_v47 = vld [vmem:[%s5819_s0 + $0x18] ss:$72 sps:$4 sm:$0xff]  }
 0x172   : > { %3594 = vmatprep.subr.bf16.mxu0 %v4605_v49  ;;  %3452 = vmatprep.mubr.bf16.mxu1 %v4692_v50  ;;  %v4693_v48 = vld [vmem:[%s5819_s0 + $0x38] ss:$72 sps:$4 sm:$0xff]   ;;  %v4746_v50 = vld [vmem:[%s5819_s0 + $0x44] ss:$72 sps:$4 sm:$0xff]  }
 0x173   : > { %3624 = vmatprep.mubr.bf16.mxu0 %v4695_v51  ;;  %v4696_v49 = vld [vmem:[%s5451_s13 + $0x800] ss:$8 sps:$4 sm:$0xff]   ;;  %v4701_v51 = vld [vmem:[%s5451_s13 + $0x814] ss:$8 sps:$4 sm:$0xff]  }
 0x174   : > { %3423 = vmatpush1.bf16.msra.mxu1 %v4600_v52  ;;  %v4699_v52 = vld [vmem:[%s5451_s13 + $0x810] ss:$8 sps:$4 sm:$0xff]  }
 0x175   : > { %3595 = vmatpush1.bf16.msra.mxu0 %v4603_v53  ;;  %3424 = vmatprep.subr.bf16.mxu1 %v4608_v54  ;;  %v4704_v53 = vld [vmem:[%s5451_s13 + $0x824] ss:$8 sps:$4 sm:$0xff]   ;;  %v4702_v54 = vld [vmem:[%s5451_s13 + $0x820] ss:$8 sps:$4 sm:$0xff]  }
 0x176   : > { %3596 = vmatprep.subr.bf16.mxu0 %v4611_v55  ;;  %v4707_v55 = vld [vmem:[%s5451_s13 + $0x834] ss:$8 sps:$4 sm:$0xff]  }
 0x178   : > { %3425 = vmatpush1.bf16.msra.mxu1 %v4606_v56  ;;  %v4705_v56 = vld [vmem:[%s5451_s13 + $0x830] ss:$8 sps:$4 sm:$0xff]  }
 0x179   : > { %3597 = vmatpush1.bf16.msra.mxu0 %v4609_v57  ;;  %3426 = vmatprep.subr.bf16.mxu1 %v4614_v58  ;;  %v4710_v57 = vld [vmem:[%s5451_s13 + $0x844] ss:$8 sps:$4 sm:$0xff]   ;;  %v4708_v58 = vld [vmem:[%s5451_s13 + $0x840] ss:$8 sps:$4 sm:$0xff]  }
 0x17a   : > { %3598 = vmatprep.subr.bf16.mxu0 %v4617_v59  ;;  %v4713_v59 = vld [vmem:[%s5451_s13 + $0x854] ss:$8 sps:$4 sm:$0xff]  }
 0x17c   : > { %3427 = vmatpush1.bf16.msra.mxu1 %v4612_v60  ;;  %v4711_v60 = vld [vmem:[%s5451_s13 + $0x850] ss:$8 sps:$4 sm:$0xff]  }
 0x17d   : > { %3599 = vmatpush1.bf16.msra.mxu0 %v4615_v61  ;;  %3428 = vmatprep.subr.bf16.mxu1 %v4620_v62  ;;  %v4716_v61 = vld [vmem:[%s5451_s13 + $0x864] ss:$8 sps:$4 sm:$0xff]   ;;  %v4714_v62 = vld [vmem:[%s5451_s13 + $0x860] ss:$8 sps:$4 sm:$0xff]  }
 0x17e   : > { %3600 = vmatprep.subr.bf16.mxu0 %v4623_v63  ;;  %v4719_v63 = vld [vmem:[%s5451_s13 + $0x874] ss:$8 sps:$4 sm:$0xff]  }
 0x180   : > { %3429 = vmatpush1.bf16.msra.mxu1 %v4618_v0  ;;  %v4717_v0 = vld [vmem:[%s5451_s13 + $0x870] ss:$8 sps:$4 sm:$0xff]  }
 0x181   : > { %3601 = vmatpush1.bf16.msra.mxu0 %v4621_v1  ;;  %3430 = vmatprep.subr.bf16.mxu1 %v4626_v2  ;;  %v4722_v1 = vld [vmem:[%s5451_s13 + $0x884] ss:$8 sps:$4 sm:$0xff]   ;;  %v4720_v2 = vld [vmem:[%s5451_s13 + $0x880] ss:$8 sps:$4 sm:$0xff]  }
 0x182   : > { %3602 = vmatprep.subr.bf16.mxu0 %v4629_v3  ;;  %v4725_v3 = vld [vmem:[%s5451_s13 + $0x894] ss:$8 sps:$4 sm:$0xff]  }
 0x184   : > { %3431 = vmatpush1.bf16.msra.mxu1 %v4624_v4  ;;  %v4723_v4 = vld [vmem:[%s5451_s13 + $0x890] ss:$8 sps:$4 sm:$0xff]  }
 0x185   : > { %3603 = vmatpush1.bf16.msra.mxu0 %v4627_v5  ;;  %3432 = vmatprep.subr.bf16.mxu1 %v4632_v6  ;;  %v4728_v5 = vld [vmem:[%s5451_s13 + $0x8a4] ss:$8 sps:$4 sm:$0xff]   ;;  %v4726_v6 = vld [vmem:[%s5451_s13 + $0x8a0] ss:$8 sps:$4 sm:$0xff]  }
 0x186   : > { %3604 = vmatprep.subr.bf16.mxu0 %v4635_v7  ;;  %v4731_v7 = vld [vmem:[%s5451_s13 + $0x8b4] ss:$8 sps:$4 sm:$0xff]  }
 0x188   : > { %3433 = vmatpush1.bf16.msra.mxu1 %v4630_v8  ;;  %v4729_v8 = vld [vmem:[%s5451_s13 + $0x8b0] ss:$8 sps:$4 sm:$0xff]  }
 0x189   : > { %3605 = vmatpush1.bf16.msra.mxu0 %v4633_v9  ;;  %3434 = vmatprep.subr.bf16.mxu1 %v4638_v10  ;;  %v4734_v9 = vld [vmem:[%s5451_s13 + $0x8c4] ss:$8 sps:$4 sm:$0xff]   ;;  %v4732_v10 = vld [vmem:[%s5451_s13 + $0x8c0] ss:$8 sps:$4 sm:$0xff]  }
 0x18a   : > { %3606 = vmatprep.subr.bf16.mxu0 %v4641_v11  ;;  %v4737_v11 = vld [vmem:[%s5451_s13 + $0x8d4] ss:$8 sps:$4 sm:$0xff]  }
 0x18c   : > { %3435 = vmatpush1.bf16.msra.mxu1 %v4636_v12  ;;  %v4735_v12 = vld [vmem:[%s5451_s13 + $0x8d0] ss:$8 sps:$4 sm:$0xff]  }
 0x18d   : > { %3607 = vmatpush1.bf16.msra.mxu0 %v4639_v13  ;;  %3436 = vmatprep.subr.bf16.mxu1 %v4644_v14  ;;  %v4740_v13 = vld [vmem:[%s5451_s13 + $0x8e4] ss:$8 sps:$4 sm:$0xff]   ;;  %v4738_v14 = vld [vmem:[%s5451_s13 + $0x8e0] ss:$8 sps:$4 sm:$0xff]  }
 0x18e   : > { %3608 = vmatprep.subr.bf16.mxu0 %v4647_v15  ;;  %v4743_v15 = vld [vmem:[%s5451_s13 + $0x8f4] ss:$8 sps:$4 sm:$0xff]  }
 0x190   : > { %3437 = vmatpush1.bf16.msra.mxu1 %v4642_v16  ;;  %v4741_v16 = vld [vmem:[%s5451_s13 + $0x8f0] ss:$8 sps:$4 sm:$0xff]   ;;  %s1446_s13 = scalar_lea.vmem %s5821_s2, %s5832_s14 }
 0x191   : > { %3609 = vmatpush1.bf16.msra.mxu0 %v4645_v17  ;;  %3438 = vmatprep.subr.bf16.mxu1 %v4650_v18  ;;  %v4744_v17 = vld [vmem:[%s5819_s0 + $0x40] ss:$72 sps:$4 sm:$0xff]  }
 0x192   : > { %3610 = vmatprep.subr.bf16.mxu0 %v4653_v19 }
 0x194   : > { %3439 = vmatpush1.bf16.msra.mxu1 %v4648_v20 }
 0x195   : > { %3611 = vmatpush1.bf16.msra.mxu0 %v4651_v21  ;;  %3440 = vmatprep.subr.bf16.mxu1 %v4656_v22  ;;  %v3680_v22 = vlaneseq }
 0x196   : > { %3612 = vmatprep.subr.bf16.mxu0 %v4659_v23 }
 0x197   : > { %v3681_v23 = vshrl.u32 %v3680_v22, 7 }
 0x198   : > { %3441 = vmatpush1.bf16.msra.mxu1 %v4654_v24 }
 0x199   : > { %3613 = vmatpush1.bf16.msra.mxu0 %v4657_v25  ;;  %3442 = vmatprep.subr.bf16.mxu1 %v4662_v26  ;;  %v3682_v24 = vsub.s32 0, %v3681_v23  ;;  %v3678_v25 = vld [vmem:[%s1446_s13] sm:$0x3]  ;;  %v3686_v26 = vsub.s32 1, %v3681_v23 }
 0x19a   : > { %3614 = vmatprep.subr.bf16.mxu0 %v4665_v27  ;;  %v3694_v27 = vld [vmem:[%s1451_s27] sm:$0x3] }
 0x19c   : > { %3443 = vmatpush1.bf16.msra.mxu1 %v4660_v28  ;;  %v3683_v28 = vrot.slane %v3678_v25, %v3682_v24 }
 0x19d   : > { %3615 = vmatpush1.bf16.msra.mxu0 %v4663_v29  ;;  %3444 = vmatprep.subr.bf16.mxu1 %v4668_v30  ;;  %v3687_v30 = vrot.slane %v3678_v25, %v3686_v26 }
 0x19e   : > { %3616 = vmatprep.subr.bf16.mxu0 %v4671_v31 }
 0x1a0   : > { %3445 = vmatpush1.bf16.msra.mxu1 %v4666_v32  ;;  %v3699_v32 = vrot.slane %v3694_v27, %v3682_v24 }
 0x1a1   : > { %3617 = vmatpush1.bf16.msra.mxu0 %v4669_v33  ;;  %3446 = vmatprep.subr.bf16.mxu1 %v4674_v34 }
 0x1a2   : > { %3618 = vmatprep.subr.bf16.mxu0 %v4677_v35  ;;  %v3703_v35 = vrot.slane %v3694_v27, %v3686_v26 }
 0x1a4   : > { %3447 = vmatpush1.bf16.msra.mxu1 %v4672_v36 }
 0x1a5   : > { %3619 = vmatpush1.bf16.msra.mxu0 %v4675_v37  ;;  %3448 = vmatprep.subr.bf16.mxu1 %v4680_v38 }
 0x1a6   : > { %3620 = vmatprep.subr.bf16.mxu0 %v4683_v39 }
 0x1a8   : > { %3449 = vmatpush1.bf16.msra.mxu1 %v4678_v40 }
 0x1a9   : > { %3621 = vmatpush1.bf16.msra.mxu0 %v4681_v41  ;;  %3450 = vmatprep.subr.bf16.mxu1 %v4686_v42 }
 0x1aa   : > { %3622 = vmatprep.subr.bf16.mxu0 %v4689_v43 }
 0x1ac   : > { %3451 = vmatpush1.bf16.msra.mxu1 %v4684_v44 }
 0x1ad   : > { %3623 = vmatpush1.bf16.msra.mxu0 %v4687_v45 }
 0x1ae   : > { %3635 = vmatprep.subr.bf16.mxu0 %v4698_v46 }
 0x1af   : > { %3453 = vmatmul.mubr.bf16.vlgmr.msra.gmra.mrb[0].mxu1 %v4690_v47 }
 0x1b0   : > { %3625 = vmatmul.mubr.bf16.vlgmr.msra.gmra.mrb[0].mxu0 %v4693_v48 }
 0x1b1   : > { %3636 = vmatpush1.bf16.msra.mxu0 %v4696_v49  ;;  %3667 = vmatprep.mubr.bf16.mxu0 %v4746_v50 }
 0x1b2   : > { %3637 = vmatprep.subr.bf16.mxu0 %v4701_v51 }
 0x1b5   : > { %3638 = vmatpush1.bf16.msra.mxu0 %v4699_v52 }
 0x1b6   : > { %3639 = vmatprep.subr.bf16.mxu0 %v4704_v53 }
 0x1b9   : > { %3640 = vmatpush1.bf16.msra.mxu0 %v4702_v54 }
 0x1ba   : > { %3641 = vmatprep.subr.bf16.mxu0 %v4707_v55 }
 0x1bd   : > { %3642 = vmatpush1.bf16.msra.mxu0 %v4705_v56 }
 0x1be   : > { %3643 = vmatprep.subr.bf16.mxu0 %v4710_v57 }
 0x1c1   : > { %3644 = vmatpush1.bf16.msra.mxu0 %v4708_v58 }
 0x1c2   : > { %3645 = vmatprep.subr.bf16.mxu0 %v4713_v59 }
 0x1c5   : > { %3646 = vmatpush1.bf16.msra.mxu0 %v4711_v60 }
 0x1c6   : > { %3647 = vmatprep.subr.bf16.mxu0 %v4716_v61 }
 0x1c9   : > { %3648 = vmatpush1.bf16.msra.mxu0 %v4714_v62 }
 0x1ca   : > { %3649 = vmatprep.subr.bf16.mxu0 %v4719_v63 }
 0x1cd   : > { %3650 = vmatpush1.bf16.msra.mxu0 %v4717_v0 }
 0x1ce   : > { %3651 = vmatprep.subr.bf16.mxu0 %v4722_v1 }
 0x1d1   : > { %3652 = vmatpush1.bf16.msra.mxu0 %v4720_v2 }
 0x1d2   : > { %3653 = vmatprep.subr.bf16.mxu0 %v4725_v3 }
 0x1d5   : > { %3654 = vmatpush1.bf16.msra.mxu0 %v4723_v4 }
 0x1d6   : > { %3655 = vmatprep.subr.bf16.mxu0 %v4728_v5 }
 0x1d9   : > { %3656 = vmatpush1.bf16.msra.mxu0 %v4726_v6 }
 0x1da   : > { %3657 = vmatprep.subr.bf16.mxu0 %v4731_v7 }
 0x1dd   : > { %3658 = vmatpush1.bf16.msra.mxu0 %v4729_v8 }
 0x1de   : > { %3659 = vmatprep.subr.bf16.mxu0 %v4734_v9 }
 0x1e1   : > { %3660 = vmatpush1.bf16.msra.mxu0 %v4732_v10 }
 0x1e2   : > { %3661 = vmatprep.subr.bf16.mxu0 %v4737_v11 }
 0x1e5   : > { %3662 = vmatpush1.bf16.msra.mxu0 %v4735_v12 }
 0x1e6   : > { %3663 = vmatprep.subr.bf16.mxu0 %v4740_v13 }
 0x1e9   : > { %3664 = vmatpush1.bf16.msra.mxu0 %v4738_v14 }
 0x1ea   : > { %3665 = vmatprep.subr.bf16.mxu0 %v4743_v15 }
 0x1ed   : > { %3666 = vmatpush1.bf16.msra.mxu0 %v4741_v16 }
 0x1f0   : > { %3668 = vmatmul.mubr.bf16.vlgmr.msra.gmra.mrb[0].mxu0 %v4744_v17 }
 0x282   : > { %v3454_v18 = vpop.f32.mrb[0].mxu1 }
 0x283   : > { %v3456_v19 = vpop.f32.mrb[1].mxu1 }
 0x284   : > { %v3458_v20 = vpop.f32.mrb[2].mxu1 }
 0x285   : > { %v3460_v21 = vpop.f32.mrb[3].mxu1 }
 0x2c3   : > { %v3669_v29 = vpop.f32.mrb[0].mxu0 }
 0x2c4   : > { %v4214_v31 = vadd.f32 %v3669_v29, %v3454_v18  ;;  %v3671_v33 = vpop.f32.mrb[1].mxu0 }
 0x2c5   : > { %v4215_v34 = vadd.f32 %v3671_v33, %v3456_v19  ;;  %v3673_v36 = vpop.f32.mrb[2].mxu0 }
 0x2c6   : > { %v3690_v37 = vmul.f32 %v4214_v31, %v3683_v28  ;;  %v4216_v38 = vadd.f32 %v3673_v36, %v3458_v20  ;;  %v3675_v39 = vpop.f32.mrb[3].mxu0 }
 0x2c7   : > { %v3691_v40 = vmul.f32 %v4215_v34, %v3687_v30  ;;  %v4217_v41 = vadd.f32 %v3675_v39, %v3460_v21 }
 0x2c8   : > { %v3706_v42 = vadd.f32 %v3699_v32, %v3690_v37  ;;  %v3692_v43 = vmul.f32 %v4216_v38, %v3683_v28 }
 0x2c9   : > { %v3707_v44 = vadd.f32 %v3703_v35, %v3691_v40  ;;  %v3693_v45 = vmul.f32 %v4217_v41, %v3687_v30 }
 0x2ca   : > { %vm3710_vm0 = vcmp.ge.f32.partialorder %v3706_v42, 0.0  ;;  %v3714_v46 = vmul.f32 0.01, %v3706_v42  ;;  %v3708_v47 = vadd.f32 %v3699_v32, %v3692_v43 }
 0x2cb   : > { %vm3711_vm1 = vcmp.ge.f32.partialorder %v3707_v44, 0.0  ;;  %v3715_v48 = vmul.f32 0.01, %v3707_v44  ;;  %v3709_v49 = vadd.f32 %v3703_v35, %v3693_v45 }
 0x2cc   : > { %v3718_v50 = vsel %vm3710_vm0, %v3706_v42, %v3714_v46  ;;  %vm3712_vm2 = vcmp.ge.f32.partialorder %v3708_v47, 0.0  ;;  %v3716_v51 = vmul.f32 0.01, %v3708_v47  ;;  %3742 = sbr.rel (!%p4847_p6) target bundleno = 731 (0x2db), region = 78 }
 0x2cd   : > { %v3719_v52 = vsel %vm3711_vm1, %v3707_v44, %v3715_v48  ;;  %vm3713_vm3 = vcmp.ge.f32.partialorder %v3709_v49, 0.0  ;;  %v3717_v53 = vmul.f32 0.01, %v3709_v49 }
 0x2ce   : > { %v4211_v54 = vpack.c.bf16 %v3719_v52, %v3718_v50  ;;  %v3720_v55 = vsel %vm3712_vm2, %v3708_v47, %v3716_v51 }
 0x2cf   : > { %v3721_v56 = vsel %vm3713_vm3, %v3709_v49, %v3717_v53 }
 0x2d0   : > { %3734 = vst [vmem:[%s1434_s29] sm:$0xff] %v4211_v54  ;;  %v4212_v57 = vpack.c.bf16 %v3721_v56, %v3720_v55 }
 0x2d2   : > { %3735 = vst [vmem:[%s1434_s29 + $0x8] sm:$0xff] %v4212_v57 }
 0x2d7   : > { %v3778_v58 = vld [vmem:[%s1434_s29] sm:$0xff] }
 0x2d8   : > { %3779 = vst [vmem:[%s3748_s5] sm:$0xff] %v3778_v58 }
 0x2d9   : > { %v3780_v59 = vld [vmem:[%s1434_s29 + $0x8] sm:$0xff] }
 0x2da   : > { %3781 = vst [vmem:[%s3748_s5 + $0x10] sm:$0xff] %v3780_v59 }
 0x2db PF: > { %s14_s19 = sadd.s32 1, %s4785_s19   ;;  %s5825_s15 = smov %s4773_s16 }
 0x2dc   : > { %p11_p12 = scmp.ge.s32.totalorder %s14_s19, 4   ;;  %s5826_s16 = smov %s4852_s25 }
 0x2dd   : > { %s5827_s17 = smov %s4781_s18  ;;  %s5828_s18 = smov %s5830_s20 }
 0x2de   :  { %13 = sbr.rel (!%p11_p12) target bundleno = 3 (0x3), region = 156 }

// kernel: tile.28
= control target key start
LH: loop header
LB: loop body
LE: loop exit
PB: predicated region body
PF: predicated region fallthrough
CT: control target
= control target key end

     0   :  { %s22_s0 = inlined_call_operand.vmem [shape: f32[128], index: 0, kind: input, shape index: {}]   ;;  %s23_s1 = inlined_call_operand.vmem [shape: f32[4,128], index: 1, kind: output, shape index: {}]  }
   0x1   :  { %v4_v0 = vld [vmem:[%s22_s0] ss:$0 sm:$0xff] }
   0x2   :  { %5 = vst [vmem:[%s23_s1] sm:$0xf] %v4_v0 }

// kernel: autoencoder_forward.13
= control target key start
LH: loop header
LB: loop body
LE: loop exit
PB: predicated region body
PF: predicated region fallthrough
CT: control target
= control target key end

     0   :  { %s4312_s15 = smov 0   ;;  %s4314_s16 = smov 0   ;;  %s5287_s0 = inlined_call_operand.vmem [shape: bf16[16,2048], index: 0, kind: input, shape index: {}]   ;;  %s5288_s1 = inlined_call_operand.vmem [shape: bf16[2048,1024], index: 1, kind: input, shape index: {}]   ;;  %s5289_s2 = inlined_call_operand.vmem [shape: f32[1,1024], index: 2, kind: input, shape index: {}]   ;;  %s5290_s3 = inlined_call_operand.vmem [shape: f32[1,1024], index: 3, kind: input, shape index: {}]   ;;  %s5291_s4 = inlined_call_operand.vmem [shape: bf16[16,1024], index: 4, kind: output, shape index: {}]  }
   0x1   :  { %s4316_s17 = smov 0   ;;  %s4318_s18 = smov 0  }
   0x2   :  { %s4320_s19 = smov 0  }
   0x3 LB: > { %s23_s20 = sadd.s32 1, %s4281_s18  ;;  %s3499_s21 = sadd.s32 4294967295, %s4285_s19   ;;  %s4285_s19 = sphi %s4320_s19, %s14_s19   ;;  %s4281_s18 = sphi %s4318_s18, %s5296_s18   ;;  %s4277_s17 = sphi %s4316_s17, %s5295_s17   ;;  %s4273_s16 = sphi %s4314_s16, %s5294_s16   ;;  %s4269_s15 = sphi %s4312_s15, %s5293_s15  }
   0x4   : > { %p24_p0 = scmp.ge.s32.totalorder %s23_s20, 4  ;;  %p66_p1 = scmp.ne.s32.totalorder %s4273_s16, %s4269_s15 }
   0x5   : > { %p67_p2 = scmp.eq.s32.totalorder %s4285_s19, 0  ;;  %p150_p4 = scmp.eq.s32.totalorder %s3499_s21, 3 }
   0x6   : > { %s5298_s20 = smov (%p24_p0, %s23_s20), 0  ;;  %s59_s23 = sadd.s32 1, %s4273_s16 }
   0x7   : > { %p68_p3 = por %p67_p2, %p66_p1  ;;  %s56_s22 = ssub.s32 %s4281_s18, %s5298_s20 }
   0x8   : > { %p57_p5 = scmp.eq.s32.totalorder %s56_s22, 0  ;;  %p4347_p6 = por %p150_p4, %p66_p1 }
   0x9   : > { %p3503_p7 = scmp.ge.s32.totalorder %s4285_s19, 4 }
   0xa   : > { %s4352_s25 = scalar_select %p57_p5, %s4273_s16, %s59_s23  }
   0xb   : > { %182 = sbr.rel (%p3503_p7) target bundleno = 278 (0x116), region = 20 }
  0x12   : > { %185 = sbr.rel (!%p68_p3) target bundleno = 278 (0x116), region = 24  ;;  %s187_s26 = sand.u32 (%p68_p3), 1, %s4273_s16  }
  0x13   : > { %s3791_s27 = sshll.u32 (%p68_p3), %s4281_s18, 3  ;;  %s3504_s28 = sshll.u32 (%p68_p3), %s187_s26, 11 }
  0x14   : > { %s4360_s5 = scalar_lea.vmem (%p68_p3), %s5288_s1, %s3791_s27  ;;  %s4365_s6 = scalar_lea.vmem (%p68_p3), [#allocation2], %s3504_s28 }
  0x15   : > { %v730_v0 = vld [vmem:[%s4360_s5] sm:$0xff] (%p68_p3) }
  0x16   : > { %v732_v1 = vld [vmem:[%s4360_s5 + $0x20] sm:$0xff] (%p68_p3)  ;;  %731 = vst [vmem:[%s4365_s6] sm:$0xff] (%p68_p3), %v730_v0 }
  0x17   : > { %v734_v2 = vld [vmem:[%s4360_s5 + $0x40] sm:$0xff] (%p68_p3)  ;;  %733 = vst [vmem:[%s4365_s6 + $0x8] sm:$0xff] (%p68_p3), %v732_v1 }
  0x18   : > { %735 = vst [vmem:[%s4365_s6 + $0x10] sm:$0xff] (%p68_p3), %v734_v2  ;;  %v736_v3 = vld [vmem:[%s4360_s5 + $0x60] sm:$0xff] (%p68_p3) }
  0x19   : > { %v738_v4 = vld [vmem:[%s4360_s5 + $0x80] sm:$0xff]  ;;  %737 = vst [vmem:[%s4365_s6 + $0x18] sm:$0xff] %v736_v3 }
  0x1a   : > { %v740_v5 = vld [vmem:[%s4360_s5 + $0xa0] sm:$0xff]  ;;  %739 = vst [vmem:[%s4365_s6 + $0x20] sm:$0xff] %v738_v4 }
  0x1b   : > { %741 = vst [vmem:[%s4365_s6 + $0x28] sm:$0xff] %v740_v5  ;;  %v742_v6 = vld [vmem:[%s4360_s5 + $0xc0] sm:$0xff] }
  0x1c   : > { %v744_v7 = vld [vmem:[%s4360_s5 + $0xe0] sm:$0xff]  ;;  %743 = vst [vmem:[%s4365_s6 + $0x30] sm:$0xff] %v742_v6 }
  0x1d   : > { %v746_v8 = vld [vmem:[%s4360_s5 + $0x100] sm:$0xff]  ;;  %745 = vst [vmem:[%s4365_s6 + $0x38] sm:$0xff] %v744_v7 }
  0x1e   : > { %747 = vst [vmem:[%s4365_s6 + $0x40] sm:$0xff] %v746_v8  ;;  %v748_v9 = vld [vmem:[%s4360_s5 + $0x120] sm:$0xff] }
  0x1f   : > { %v750_v10 = vld [vmem:[%s4360_s5 + $0x140] sm:$0xff]  ;;  %749 = vst [vmem:[%s4365_s6 + $0x48] sm:$0xff] %v748_v9 }
  0x20   : > { %v752_v11 = vld [vmem:[%s4360_s5 + $0x160] sm:$0xff]  ;;  %751 = vst [vmem:[%s4365_s6 + $0x50] sm:$0xff] %v750_v10 }
  0x21   : > { %753 = vst [vmem:[%s4365_s6 + $0x58] sm:$0xff] %v752_v11  ;;  %v754_v12 = vld [vmem:[%s4360_s5 + $0x180] sm:$0xff] }
  0x22   : > { %v756_v13 = vld [vmem:[%s4360_s5 + $0x1a0] sm:$0xff]  ;;  %755 = vst [vmem:[%s4365_s6 + $0x60] sm:$0xff] %v754_v12 }
  0x23   : > { %v758_v14 = vld [vmem:[%s4360_s5 + $0x1c0] sm:$0xff]  ;;  %757 = vst [vmem:[%s4365_s6 + $0x68] sm:$0xff] %v756_v13 }
  0x24   : > { %759 = vst [vmem:[%s4365_s6 + $0x70] sm:$0xff] %v758_v14  ;;  %v760_v15 = vld [vmem:[%s4360_s5 + $0x1e0] sm:$0xff] }
  0x25   : > { %v762_v16 = vld [vmem:[%s4360_s5 + $0x200] sm:$0xff]  ;;  %761 = vst [vmem:[%s4365_s6 + $0x78] sm:$0xff] %v760_v15 }
  0x26   : > { %v764_v17 = vld [vmem:[%s4360_s5 + $0x220] sm:$0xff]  ;;  %763 = vst [vmem:[%s4365_s6 + $0x80] sm:$0xff] %v762_v16 }
  0x27   : > { %765 = vst [vmem:[%s4365_s6 + $0x88] sm:$0xff] %v764_v17  ;;  %v766_v18 = vld [vmem:[%s4360_s5 + $0x240] sm:$0xff] }
  0x28   : > { %v768_v19 = vld [vmem:[%s4360_s5 + $0x260] sm:$0xff]  ;;  %767 = vst [vmem:[%s4365_s6 + $0x90] sm:$0xff] %v766_v18 }
  0x29   : > { %v770_v20 = vld [vmem:[%s4360_s5 + $0x280] sm:$0xff]  ;;  %769 = vst [vmem:[%s4365_s6 + $0x98] sm:$0xff] %v768_v19 }
  0x2a   : > { %771 = vst [vmem:[%s4365_s6 + $0xa0] sm:$0xff] %v770_v20  ;;  %v772_v21 = vld [vmem:[%s4360_s5 + $0x2a0] sm:$0xff] }
  0x2b   : > { %v774_v22 = vld [vmem:[%s4360_s5 + $0x2c0] sm:$0xff]  ;;  %773 = vst [vmem:[%s4365_s6 + $0xa8] sm:$0xff] %v772_v21 }
  0x2c   : > { %v776_v23 = vld [vmem:[%s4360_s5 + $0x2e0] sm:$0xff]  ;;  %775 = vst [vmem:[%s4365_s6 + $0xb0] sm:$0xff] %v774_v22 }
  0x2d   : > { %777 = vst [vmem:[%s4365_s6 + $0xb8] sm:$0xff] %v776_v23  ;;  %v778_v24 = vld [vmem:[%s4360_s5 + $0x300] sm:$0xff] }
  0x2e   : > { %v780_v25 = vld [vmem:[%s4360_s5 + $0x320] sm:$0xff]  ;;  %779 = vst [vmem:[%s4365_s6 + $0xc0] sm:$0xff] %v778_v24 }
  0x2f   : > { %v782_v26 = vld [vmem:[%s4360_s5 + $0x340] sm:$0xff]  ;;  %781 = vst [vmem:[%s4365_s6 + $0xc8] sm:$0xff] %v780_v25 }
  0x30   : > { %783 = vst [vmem:[%s4365_s6 + $0xd0] sm:$0xff] %v782_v26  ;;  %v784_v27 = vld [vmem:[%s4360_s5 + $0x360] sm:$0xff] }
  0x31   : > { %v786_v28 = vld [vmem:[%s4360_s5 + $0x380] sm:$0xff]  ;;  %785 = vst [vmem:[%s4365_s6 + $0xd8] sm:$0xff] %v784_v27 }
  0x32   : > { %v788_v29 = vld [vmem:[%s4360_s5 + $0x3a0] sm:$0xff]  ;;  %787 = vst [vmem:[%s4365_s6 + $0xe0] sm:$0xff] %v786_v28 }
  0x33   : > { %789 = vst [vmem:[%s4365_s6 + $0xe8] sm:$0xff] %v788_v29  ;;  %v790_v30 = vld [vmem:[%s4360_s5 + $0x3c0] sm:$0xff] }
  0x34   : > { %v792_v31 = vld [vmem:[%s4360_s5 + $0x3e0] sm:$0xff]  ;;  %791 = vst [vmem:[%s4365_s6 + $0xf0] sm:$0xff] %v790_v30 }
  0x35   : > { %v794_v32 = vld [vmem:[%s4360_s5 + $0x400] sm:$0xff]  ;;  %793 = vst [vmem:[%s4365_s6 + $0xf8] sm:$0xff] %v792_v31 }
  0x36   : > { %795 = vst [vmem:[%s4365_s6 + $0x100] sm:$0xff] %v794_v32  ;;  %v796_v33 = vld [vmem:[%s4360_s5 + $0x420] sm:$0xff] }
  0x37   : > { %v798_v34 = vld [vmem:[%s4360_s5 + $0x440] sm:$0xff]  ;;  %797 = vst [vmem:[%s4365_s6 + $0x108] sm:$0xff] %v796_v33 }
  0x38   : > { %v800_v35 = vld [vmem:[%s4360_s5 + $0x460] sm:$0xff]  ;;  %799 = vst [vmem:[%s4365_s6 + $0x110] sm:$0xff] %v798_v34 }
  0x39   : > { %801 = vst [vmem:[%s4365_s6 + $0x118] sm:$0xff] %v800_v35  ;;  %v802_v36 = vld [vmem:[%s4360_s5 + $0x480] sm:$0xff] }
  0x3a   : > { %v804_v37 = vld [vmem:[%s4360_s5 + $0x4a0] sm:$0xff]  ;;  %803 = vst [vmem:[%s4365_s6 + $0x120] sm:$0xff] %v802_v36 }
  0x3b   : > { %v806_v38 = vld [vmem:[%s4360_s5 + $0x4c0] sm:$0xff]  ;;  %805 = vst [vmem:[%s4365_s6 + $0x128] sm:$0xff] %v804_v37 }
  0x3c   : > { %807 = vst [vmem:[%s4365_s6 + $0x130] sm:$0xff] %v806_v38  ;;  %v808_v39 = vld [vmem:[%s4360_s5 + $0x4e0] sm:$0xff] }
  0x3d   : > { %v810_v40 = vld [vmem:[%s4360_s5 + $0x500] sm:$0xff]  ;;  %809 = vst [vmem:[%s4365_s6 + $0x138] sm:$0xff] %v808_v39 }
  0x3e   : > { %v812_v41 = vld [vmem:[%s4360_s5 + $0x520] sm:$0xff]  ;;  %811 = vst [vmem:[%s4365_s6 + $0x140] sm:$0xff] %v810_v40 }
  0x3f   : > { %813 = vst [vmem:[%s4365_s6 + $0x148] sm:$0xff] %v812_v41  ;;  %v814_v42 = vld [vmem:[%s4360_s5 + $0x540] sm:$0xff] }
  0x40   : > { %v816_v43 = vld [vmem:[%s4360_s5 + $0x560] sm:$0xff]  ;;  %815 = vst [vmem:[%s4365_s6 + $0x150] sm:$0xff] %v814_v42 }
  0x41   : > { %v818_v44 = vld [vmem:[%s4360_s5 + $0x580] sm:$0xff]  ;;  %817 = vst [vmem:[%s4365_s6 + $0x158] sm:$0xff] %v816_v43 }
  0x42   : > { %819 = vst [vmem:[%s4365_s6 + $0x160] sm:$0xff] %v818_v44  ;;  %v820_v45 = vld [vmem:[%s4360_s5 + $0x5a0] sm:$0xff] }
  0x43   : > { %v822_v46 = vld [vmem:[%s4360_s5 + $0x5c0] sm:$0xff]  ;;  %821 = vst [vmem:[%s4365_s6 + $0x168] sm:$0xff] %v820_v45 }
  0x44   : > { %v824_v47 = vld [vmem:[%s4360_s5 + $0x5e0] sm:$0xff]  ;;  %823 = vst [vmem:[%s4365_s6 + $0x170] sm:$0xff] %v822_v46 }
  0x45   : > { %825 = vst [vmem:[%s4365_s6 + $0x178] sm:$0xff] %v824_v47  ;;  %v826_v48 = vld [vmem:[%s4360_s5 + $0x600] sm:$0xff] }
  0x46   : > { %v828_v49 = vld [vmem:[%s4360_s5 + $0x620] sm:$0xff]  ;;  %827 = vst [vmem:[%s4365_s6 + $0x180] sm:$0xff] %v826_v48 }
  0x47   : > { %v830_v50 = vld [vmem:[%s4360_s5 + $0x640] sm:$0xff]  ;;  %829 = vst [vmem:[%s4365_s6 + $0x188] sm:$0xff] %v828_v49 }
  0x48   : > { %831 = vst [vmem:[%s4365_s6 + $0x190] sm:$0xff] %v830_v50  ;;  %v832_v51 = vld [vmem:[%s4360_s5 + $0x660] sm:$0xff] }
  0x49   : > { %v834_v52 = vld [vmem:[%s4360_s5 + $0x680] sm:$0xff]  ;;  %833 = vst [vmem:[%s4365_s6 + $0x198] sm:$0xff] %v832_v51 }
  0x4a   : > { %v836_v53 = vld [vmem:[%s4360_s5 + $0x6a0] sm:$0xff]  ;;  %835 = vst [vmem:[%s4365_s6 + $0x1a0] sm:$0xff] %v834_v52 }
  0x4b   : > { %837 = vst [vmem:[%s4365_s6 + $0x1a8] sm:$0xff] %v836_v53  ;;  %v838_v54 = vld [vmem:[%s4360_s5 + $0x6c0] sm:$0xff] }
  0x4c   : > { %v840_v55 = vld [vmem:[%s4360_s5 + $0x6e0] sm:$0xff]  ;;  %839 = vst [vmem:[%s4365_s6 + $0x1b0] sm:$0xff] %v838_v54 }
  0x4d   : > { %v842_v56 = vld [vmem:[%s4360_s5 + $0x700] sm:$0xff]  ;;  %841 = vst [vmem:[%s4365_s6 + $0x1b8] sm:$0xff] %v840_v55 }
  0x4e   : > { %843 = vst [vmem:[%s4365_s6 + $0x1c0] sm:$0xff] %v842_v56  ;;  %v844_v57 = vld [vmem:[%s4360_s5 + $0x720] sm:$0xff] }
  0x4f   : > { %v846_v58 = vld [vmem:[%s4360_s5 + $0x740] sm:$0xff]  ;;  %845 = vst [vmem:[%s4365_s6 + $0x1c8] sm:$0xff] %v844_v57 }
  0x50   : > { %v848_v59 = vld [vmem:[%s4360_s5 + $0x760] sm:$0xff]  ;;  %847 = vst [vmem:[%s4365_s6 + $0x1d0] sm:$0xff] %v846_v58 }
  0x51   : > { %849 = vst [vmem:[%s4365_s6 + $0x1d8] sm:$0xff] %v848_v59  ;;  %v850_v60 = vld [vmem:[%s4360_s5 + $0x780] sm:$0xff] }
  0x52   : > { %v852_v61 = vld [vmem:[%s4360_s5 + $0x7a0] sm:$0xff]  ;;  %851 = vst [vmem:[%s4365_s6 + $0x1e0] sm:$0xff] %v850_v60 }
  0x53   : > { %v854_v62 = vld [vmem:[%s4360_s5 + $0x7c0] sm:$0xff]  ;;  %853 = vst [vmem:[%s4365_s6 + $0x1e8] sm:$0xff] %v852_v61 }
  0x54   : > { %855 = vst [vmem:[%s4365_s6 + $0x1f0] sm:$0xff] %v854_v62  ;;  %v856_v63 = vld [vmem:[%s4360_s5 + $0x7e0] sm:$0xff] }
  0x55   : > { %v858_v0 = vld [vmem:[%s4360_s5 + $0x800] sm:$0xff]  ;;  %857 = vst [vmem:[%s4365_s6 + $0x1f8] sm:$0xff] %v856_v63 }
  0x56   : > { %v860_v1 = vld [vmem:[%s4360_s5 + $0x820] sm:$0xff]  ;;  %859 = vst [vmem:[%s4365_s6 + $0x200] sm:$0xff] %v858_v0 }
  0x57   : > { %861 = vst [vmem:[%s4365_s6 + $0x208] sm:$0xff] %v860_v1  ;;  %v862_v2 = vld [vmem:[%s4360_s5 + $0x840] sm:$0xff] }
  0x58   : > { %v864_v3 = vld [vmem:[%s4360_s5 + $0x860] sm:$0xff]  ;;  %863 = vst [vmem:[%s4365_s6 + $0x210] sm:$0xff] %v862_v2 }
  0x59   : > { %v866_v4 = vld [vmem:[%s4360_s5 + $0x880] sm:$0xff]  ;;  %865 = vst [vmem:[%s4365_s6 + $0x218] sm:$0xff] %v864_v3 }
  0x5a   : > { %867 = vst [vmem:[%s4365_s6 + $0x220] sm:$0xff] %v866_v4  ;;  %v868_v5 = vld [vmem:[%s4360_s5 + $0x8a0] sm:$0xff] }
  0x5b   : > { %v870_v6 = vld [vmem:[%s4360_s5 + $0x8c0] sm:$0xff]  ;;  %869 = vst [vmem:[%s4365_s6 + $0x228] sm:$0xff] %v868_v5 }
  0x5c   : > { %v872_v7 = vld [vmem:[%s4360_s5 + $0x8e0] sm:$0xff]  ;;  %871 = vst [vmem:[%s4365_s6 + $0x230] sm:$0xff] %v870_v6 }
  0x5d   : > { %873 = vst [vmem:[%s4365_s6 + $0x238] sm:$0xff] %v872_v7  ;;  %v874_v8 = vld [vmem:[%s4360_s5 + $0x900] sm:$0xff] }
  0x5e   : > { %v876_v9 = vld [vmem:[%s4360_s5 + $0x920] sm:$0xff]  ;;  %875 = vst [vmem:[%s4365_s6 + $0x240] sm:$0xff] %v874_v8 }
  0x5f   : > { %v878_v10 = vld [vmem:[%s4360_s5 + $0x940] sm:$0xff]  ;;  %877 = vst [vmem:[%s4365_s6 + $0x248] sm:$0xff] %v876_v9 }
  0x60   : > { %879 = vst [vmem:[%s4365_s6 + $0x250] sm:$0xff] %v878_v10  ;;  %v880_v11 = vld [vmem:[%s4360_s5 + $0x960] sm:$0xff] }
  0x61   : > { %v882_v12 = vld [vmem:[%s4360_s5 + $0x980] sm:$0xff]  ;;  %881 = vst [vmem:[%s4365_s6 + $0x258] sm:$0xff] %v880_v11 }
  0x62   : > { %v884_v13 = vld [vmem:[%s4360_s5 + $0x9a0] sm:$0xff]  ;;  %883 = vst [vmem:[%s4365_s6 + $0x260] sm:$0xff] %v882_v12 }
  0x63   : > { %885 = vst [vmem:[%s4365_s6 + $0x268] sm:$0xff] %v884_v13  ;;  %v886_v14 = vld [vmem:[%s4360_s5 + $0x9c0] sm:$0xff] }
  0x64   : > { %v888_v15 = vld [vmem:[%s4360_s5 + $0x9e0] sm:$0xff]  ;;  %887 = vst [vmem:[%s4365_s6 + $0x270] sm:$0xff] %v886_v14 }
  0x65   : > { %v890_v16 = vld [vmem:[%s4360_s5 + $0xa00] sm:$0xff]  ;;  %889 = vst [vmem:[%s4365_s6 + $0x278] sm:$0xff] %v888_v15 }
  0x66   : > { %891 = vst [vmem:[%s4365_s6 + $0x280] sm:$0xff] %v890_v16  ;;  %v892_v17 = vld [vmem:[%s4360_s5 + $0xa20] sm:$0xff] }
  0x67   : > { %v894_v18 = vld [vmem:[%s4360_s5 + $0xa40] sm:$0xff]  ;;  %893 = vst [vmem:[%s4365_s6 + $0x288] sm:$0xff] %v892_v17 }
  0x68   : > { %v896_v19 = vld [vmem:[%s4360_s5 + $0xa60] sm:$0xff]  ;;  %895 = vst [vmem:[%s4365_s6 + $0x290] sm:$0xff] %v894_v18 }
  0x69   : > { %897 = vst [vmem:[%s4365_s6 + $0x298] sm:$0xff] %v896_v19  ;;  %v898_v20 = vld [vmem:[%s4360_s5 + $0xa80] sm:$0xff] }
  0x6a   : > { %v900_v21 = vld [vmem:[%s4360_s5 + $0xaa0] sm:$0xff]  ;;  %899 = vst [vmem:[%s4365_s6 + $0x2a0] sm:$0xff] %v898_v20 }
  0x6b   : > { %v902_v22 = vld [vmem:[%s4360_s5 + $0xac0] sm:$0xff]  ;;  %901 = vst [vmem:[%s4365_s6 + $0x2a8] sm:$0xff] %v900_v21 }
  0x6c   : > { %903 = vst [vmem:[%s4365_s6 + $0x2b0] sm:$0xff] %v902_v22  ;;  %v904_v23 = vld [vmem:[%s4360_s5 + $0xae0] sm:$0xff] }
  0x6d   : > { %v906_v24 = vld [vmem:[%s4360_s5 + $0xb00] sm:$0xff]  ;;  %905 = vst [vmem:[%s4365_s6 + $0x2b8] sm:$0xff] %v904_v23 }
  0x6e   : > { %v908_v25 = vld [vmem:[%s4360_s5 + $0xb20] sm:$0xff]  ;;  %907 = vst [vmem:[%s4365_s6 + $0x2c0] sm:$0xff] %v906_v24 }
  0x6f   : > { %909 = vst [vmem:[%s4365_s6 + $0x2c8] sm:$0xff] %v908_v25  ;;  %v910_v26 = vld [vmem:[%s4360_s5 + $0xb40] sm:$0xff] }
  0x70   : > { %v912_v27 = vld [vmem:[%s4360_s5 + $0xb60] sm:$0xff]  ;;  %911 = vst [vmem:[%s4365_s6 + $0x2d0] sm:$0xff] %v910_v26 }
  0x71   : > { %v914_v28 = vld [vmem:[%s4360_s5 + $0xb80] sm:$0xff]  ;;  %913 = vst [vmem:[%s4365_s6 + $0x2d8] sm:$0xff] %v912_v27 }
  0x72   : > { %915 = vst [vmem:[%s4365_s6 + $0x2e0] sm:$0xff] %v914_v28  ;;  %v916_v29 = vld [vmem:[%s4360_s5 + $0xba0] sm:$0xff] }
  0x73   : > { %v918_v30 = vld [vmem:[%s4360_s5 + $0xbc0] sm:$0xff]  ;;  %917 = vst [vmem:[%s4365_s6 + $0x2e8] sm:$0xff] %v916_v29 }
  0x74   : > { %v920_v31 = vld [vmem:[%s4360_s5 + $0xbe0] sm:$0xff]  ;;  %919 = vst [vmem:[%s4365_s6 + $0x2f0] sm:$0xff] %v918_v30 }
  0x75   : > { %921 = vst [vmem:[%s4365_s6 + $0x2f8] sm:$0xff] %v920_v31  ;;  %v922_v32 = vld [vmem:[%s4360_s5 + $0xc00] sm:$0xff] }
  0x76   : > { %v924_v33 = vld [vmem:[%s4360_s5 + $0xc20] sm:$0xff]  ;;  %923 = vst [vmem:[%s4365_s6 + $0x300] sm:$0xff] %v922_v32 }
  0x77   : > { %v926_v34 = vld [vmem:[%s4360_s5 + $0xc40] sm:$0xff]  ;;  %925 = vst [vmem:[%s4365_s6 + $0x308] sm:$0xff] %v924_v33 }
  0x78   : > { %927 = vst [vmem:[%s4365_s6 + $0x310] sm:$0xff] %v926_v34  ;;  %v928_v35 = vld [vmem:[%s4360_s5 + $0xc60] sm:$0xff] }
  0x79   : > { %v930_v36 = vld [vmem:[%s4360_s5 + $0xc80] sm:$0xff]  ;;  %929 = vst [vmem:[%s4365_s6 + $0x318] sm:$0xff] %v928_v35 }
  0x7a   : > { %v932_v37 = vld [vmem:[%s4360_s5 + $0xca0] sm:$0xff]  ;;  %931 = vst [vmem:[%s4365_s6 + $0x320] sm:$0xff] %v930_v36 }
  0x7b   : > { %933 = vst [vmem:[%s4365_s6 + $0x328] sm:$0xff] %v932_v37  ;;  %v934_v38 = vld [vmem:[%s4360_s5 + $0xcc0] sm:$0xff] }
  0x7c   : > { %v936_v39 = vld [vmem:[%s4360_s5 + $0xce0] sm:$0xff]  ;;  %935 = vst [vmem:[%s4365_s6 + $0x330] sm:$0xff] %v934_v38 }
  0x7d   : > { %v938_v40 = vld [vmem:[%s4360_s5 + $0xd00] sm:$0xff]  ;;  %937 = vst [vmem:[%s4365_s6 + $0x338] sm:$0xff] %v936_v39 }
  0x7e   : > { %939 = vst [vmem:[%s4365_s6 + $0x340] sm:$0xff] %v938_v40  ;;  %v940_v41 = vld [vmem:[%s4360_s5 + $0xd20] sm:$0xff] }
  0x7f   : > { %v942_v42 = vld [vmem:[%s4360_s5 + $0xd40] sm:$0xff]  ;;  %941 = vst [vmem:[%s4365_s6 + $0x348] sm:$0xff] %v940_v41 }
  0x80   : > { %v944_v43 = vld [vmem:[%s4360_s5 + $0xd60] sm:$0xff]  ;;  %943 = vst [vmem:[%s4365_s6 + $0x350] sm:$0xff] %v942_v42 }
  0x81   : > { %945 = vst [vmem:[%s4365_s6 + $0x358] sm:$0xff] %v944_v43  ;;  %v946_v44 = vld [vmem:[%s4360_s5 + $0xd80] sm:$0xff] }
  0x82   : > { %v948_v45 = vld [vmem:[%s4360_s5 + $0xda0] sm:$0xff]  ;;  %947 = vst [vmem:[%s4365_s6 + $0x360] sm:$0xff] %v946_v44 }
  0x83   : > { %v950_v46 = vld [vmem:[%s4360_s5 + $0xdc0] sm:$0xff]  ;;  %949 = vst [vmem:[%s4365_s6 + $0x368] sm:$0xff] %v948_v45 }
  0x84   : > { %951 = vst [vmem:[%s4365_s6 + $0x370] sm:$0xff] %v950_v46  ;;  %v952_v47 = vld [vmem:[%s4360_s5 + $0xde0] sm:$0xff] }
  0x85   : > { %v954_v48 = vld [vmem:[%s4360_s5 + $0xe00] sm:$0xff]  ;;  %953 = vst [vmem:[%s4365_s6 + $0x378] sm:$0xff] %v952_v47 }
  0x86   : > { %v956_v49 = vld [vmem:[%s4360_s5 + $0xe20] sm:$0xff]  ;;  %955 = vst [vmem:[%s4365_s6 + $0x380] sm:$0xff] %v954_v48 }
  0x87   : > { %957 = vst [vmem:[%s4365_s6 + $0x388] sm:$0xff] %v956_v49  ;;  %v958_v50 = vld [vmem:[%s4360_s5 + $0xe40] sm:$0xff] }
  0x88   : > { %v960_v51 = vld [vmem:[%s4360_s5 + $0xe60] sm:$0xff]  ;;  %959 = vst [vmem:[%s4365_s6 + $0x390] sm:$0xff] %v958_v50 }
  0x89   : > { %v962_v52 = vld [vmem:[%s4360_s5 + $0xe80] sm:$0xff]  ;;  %961 = vst [vmem:[%s4365_s6 + $0x398] sm:$0xff] %v960_v51 }
  0x8a   : > { %963 = vst [vmem:[%s4365_s6 + $0x3a0] sm:$0xff] %v962_v52  ;;  %v964_v53 = vld [vmem:[%s4360_s5 + $0xea0] sm:$0xff] }
  0x8b   : > { %v966_v54 = vld [vmem:[%s4360_s5 + $0xec0] sm:$0xff]  ;;  %965 = vst [vmem:[%s4365_s6 + $0x3a8] sm:$0xff] %v964_v53 }
  0x8c   : > { %v968_v55 = vld [vmem:[%s4360_s5 + $0xee0] sm:$0xff]  ;;  %967 = vst [vmem:[%s4365_s6 + $0x3b0] sm:$0xff] %v966_v54 }
  0x8d   : > { %969 = vst [vmem:[%s4365_s6 + $0x3b8] sm:$0xff] %v968_v55  ;;  %v970_v56 = vld [vmem:[%s4360_s5 + $0xf00] sm:$0xff] }
  0x8e   : > { %v972_v57 = vld [vmem:[%s4360_s5 + $0xf20] sm:$0xff]  ;;  %971 = vst [vmem:[%s4365_s6 + $0x3c0] sm:$0xff] %v970_v56 }
  0x8f   : > { %v974_v58 = vld [vmem:[%s4360_s5 + $0xf40] sm:$0xff]  ;;  %973 = vst [vmem:[%s4365_s6 + $0x3c8] sm:$0xff] %v972_v57 }
  0x90   : > { %975 = vst [vmem:[%s4365_s6 + $0x3d0] sm:$0xff] %v974_v58  ;;  %v976_v59 = vld [vmem:[%s4360_s5 + $0xf60] sm:$0xff] }
  0x91   : > { %v978_v60 = vld [vmem:[%s4360_s5 + $0xf80] sm:$0xff]  ;;  %977 = vst [vmem:[%s4365_s6 + $0x3d8] sm:$0xff] %v976_v59 }
  0x92   : > { %v980_v61 = vld [vmem:[%s4360_s5 + $0xfa0] sm:$0xff]  ;;  %979 = vst [vmem:[%s4365_s6 + $0x3e0] sm:$0xff] %v978_v60 }
  0x93   : > { %981 = vst [vmem:[%s4365_s6 + $0x3e8] sm:$0xff] %v980_v61  ;;  %v982_v62 = vld [vmem:[%s4360_s5 + $0xfc0] sm:$0xff] }
  0x94   : > { %v984_v63 = vld [vmem:[%s4360_s5 + $0xfe0] sm:$0xff]  ;;  %983 = vst [vmem:[%s4365_s6 + $0x3f0] sm:$0xff] %v982_v62 }
  0x95   : > { %v986_v0 = vld [vmem:[%s4360_s5 + $0x1000] sm:$0xff]  ;;  %985 = vst [vmem:[%s4365_s6 + $0x3f8] sm:$0xff] %v984_v63 }
  0x96   : > { %987 = vst [vmem:[%s4365_s6 + $0x400] sm:$0xff] %v986_v0  ;;  %v988_v1 = vld [vmem:[%s4360_s5 + $0x1020] sm:$0xff] }
  0x97   : > { %v990_v2 = vld [vmem:[%s4360_s5 + $0x1040] sm:$0xff]  ;;  %989 = vst [vmem:[%s4365_s6 + $0x408] sm:$0xff] %v988_v1 }
  0x98   : > { %v992_v3 = vld [vmem:[%s4360_s5 + $0x1060] sm:$0xff]  ;;  %991 = vst [vmem:[%s4365_s6 + $0x410] sm:$0xff] %v990_v2 }
  0x99   : > { %993 = vst [vmem:[%s4365_s6 + $0x418] sm:$0xff] %v992_v3  ;;  %v994_v4 = vld [vmem:[%s4360_s5 + $0x1080] sm:$0xff] }
  0x9a   : > { %v996_v5 = vld [vmem:[%s4360_s5 + $0x10a0] sm:$0xff]  ;;  %995 = vst [vmem:[%s4365_s6 + $0x420] sm:$0xff] %v994_v4 }
  0x9b   : > { %v998_v6 = vld [vmem:[%s4360_s5 + $0x10c0] sm:$0xff]  ;;  %997 = vst [vmem:[%s4365_s6 + $0x428] sm:$0xff] %v996_v5 }
  0x9c   : > { %999 = vst [vmem:[%s4365_s6 + $0x430] sm:$0xff] %v998_v6  ;;  %v1000_v7 = vld [vmem:[%s4360_s5 + $0x10e0] sm:$0xff] }
  0x9d   : > { %v1002_v8 = vld [vmem:[%s4360_s5 + $0x1100] sm:$0xff]  ;;  %1001 = vst [vmem:[%s4365_s6 + $0x438] sm:$0xff] %v1000_v7 }
  0x9e   : > { %v1004_v9 = vld [vmem:[%s4360_s5 + $0x1120] sm:$0xff]  ;;  %1003 = vst [vmem:[%s4365_s6 + $0x440] sm:$0xff] %v1002_v8 }
  0x9f   : > { %1005 = vst [vmem:[%s4365_s6 + $0x448] sm:$0xff] %v1004_v9  ;;  %v1006_v10 = vld [vmem:[%s4360_s5 + $0x1140] sm:$0xff] }
  0xa0   : > { %v1008_v11 = vld [vmem:[%s4360_s5 + $0x1160] sm:$0xff]  ;;  %1007 = vst [vmem:[%s4365_s6 + $0x450] sm:$0xff] %v1006_v10 }
  0xa1   : > { %v1010_v12 = vld [vmem:[%s4360_s5 + $0x1180] sm:$0xff]  ;;  %1009 = vst [vmem:[%s4365_s6 + $0x458] sm:$0xff] %v1008_v11 }
  0xa2   : > { %1011 = vst [vmem:[%s4365_s6 + $0x460] sm:$0xff] %v1010_v12  ;;  %v1012_v13 = vld [vmem:[%s4360_s5 + $0x11a0] sm:$0xff] }
  0xa3   : > { %v1014_v14 = vld [vmem:[%s4360_s5 + $0x11c0] sm:$0xff]  ;;  %1013 = vst [vmem:[%s4365_s6 + $0x468] sm:$0xff] %v1012_v13 }
  0xa4   : > { %v1016_v15 = vld [vmem:[%s4360_s5 + $0x11e0] sm:$0xff]  ;;  %1015 = vst [vmem:[%s4365_s6 + $0x470] sm:$0xff] %v1014_v14 }
  0xa5   : > { %1017 = vst [vmem:[%s4365_s6 + $0x478] sm:$0xff] %v1016_v15  ;;  %v1018_v16 = vld [vmem:[%s4360_s5 + $0x1200] sm:$0xff] }
  0xa6   : > { %v1020_v17 = vld [vmem:[%s4360_s5 + $0x1220] sm:$0xff]  ;;  %1019 = vst [vmem:[%s4365_s6 + $0x480] sm:$0xff] %v1018_v16 }
  0xa7   : > { %v1022_v18 = vld [vmem:[%s4360_s5 + $0x1240] sm:$0xff]  ;;  %1021 = vst [vmem:[%s4365_s6 + $0x488] sm:$0xff] %v1020_v17 }
  0xa8   : > { %1023 = vst [vmem:[%s4365_s6 + $0x490] sm:$0xff] %v1022_v18  ;;  %v1024_v19 = vld [vmem:[%s4360_s5 + $0x1260] sm:$0xff] }
  0xa9   : > { %v1026_v20 = vld [vmem:[%s4360_s5 + $0x1280] sm:$0xff]  ;;  %1025 = vst [vmem:[%s4365_s6 + $0x498] sm:$0xff] %v1024_v19 }
  0xaa   : > { %v1028_v21 = vld [vmem:[%s4360_s5 + $0x12a0] sm:$0xff]  ;;  %1027 = vst [vmem:[%s4365_s6 + $0x4a0] sm:$0xff] %v1026_v20 }
  0xab   : > { %1029 = vst [vmem:[%s4365_s6 + $0x4a8] sm:$0xff] %v1028_v21  ;;  %v1030_v22 = vld [vmem:[%s4360_s5 + $0x12c0] sm:$0xff] }
  0xac   : > { %v1032_v23 = vld [vmem:[%s4360_s5 + $0x12e0] sm:$0xff]  ;;  %1031 = vst [vmem:[%s4365_s6 + $0x4b0] sm:$0xff] %v1030_v22 }
  0xad   : > { %v1034_v24 = vld [vmem:[%s4360_s5 + $0x1300] sm:$0xff]  ;;  %1033 = vst [vmem:[%s4365_s6 + $0x4b8] sm:$0xff] %v1032_v23 }
  0xae   : > { %1035 = vst [vmem:[%s4365_s6 + $0x4c0] sm:$0xff] %v1034_v24  ;;  %v1036_v25 = vld [vmem:[%s4360_s5 + $0x1320] sm:$0xff] }
  0xaf   : > { %v1038_v26 = vld [vmem:[%s4360_s5 + $0x1340] sm:$0xff]  ;;  %1037 = vst [vmem:[%s4365_s6 + $0x4c8] sm:$0xff] %v1036_v25 }
  0xb0   : > { %v1040_v27 = vld [vmem:[%s4360_s5 + $0x1360] sm:$0xff]  ;;  %1039 = vst [vmem:[%s4365_s6 + $0x4d0] sm:$0xff] %v1038_v26 }
  0xb1   : > { %1041 = vst [vmem:[%s4365_s6 + $0x4d8] sm:$0xff] %v1040_v27  ;;  %v1042_v28 = vld [vmem:[%s4360_s5 + $0x1380] sm:$0xff] }
  0xb2   : > { %v1044_v29 = vld [vmem:[%s4360_s5 + $0x13a0] sm:$0xff]  ;;  %1043 = vst [vmem:[%s4365_s6 + $0x4e0] sm:$0xff] %v1042_v28 }
  0xb3   : > { %v1046_v30 = vld [vmem:[%s4360_s5 + $0x13c0] sm:$0xff]  ;;  %1045 = vst [vmem:[%s4365_s6 + $0x4e8] sm:$0xff] %v1044_v29 }
  0xb4   : > { %1047 = vst [vmem:[%s4365_s6 + $0x4f0] sm:$0xff] %v1046_v30  ;;  %v1048_v31 = vld [vmem:[%s4360_s5 + $0x13e0] sm:$0xff] }
  0xb5   : > { %v1050_v32 = vld [vmem:[%s4360_s5 + $0x1400] sm:$0xff]  ;;  %1049 = vst [vmem:[%s4365_s6 + $0x4f8] sm:$0xff] %v1048_v31 }
  0xb6   : > { %v1052_v33 = vld [vmem:[%s4360_s5 + $0x1420] sm:$0xff]  ;;  %1051 = vst [vmem:[%s4365_s6 + $0x500] sm:$0xff] %v1050_v32 }
  0xb7   : > { %1053 = vst [vmem:[%s4365_s6 + $0x508] sm:$0xff] %v1052_v33  ;;  %v1054_v34 = vld [vmem:[%s4360_s5 + $0x1440] sm:$0xff] }
  0xb8   : > { %v1056_v35 = vld [vmem:[%s4360_s5 + $0x1460] sm:$0xff]  ;;  %1055 = vst [vmem:[%s4365_s6 + $0x510] sm:$0xff] %v1054_v34 }
  0xb9   : > { %v1058_v36 = vld [vmem:[%s4360_s5 + $0x1480] sm:$0xff]  ;;  %1057 = vst [vmem:[%s4365_s6 + $0x518] sm:$0xff] %v1056_v35 }
  0xba   : > { %1059 = vst [vmem:[%s4365_s6 + $0x520] sm:$0xff] %v1058_v36  ;;  %v1060_v37 = vld [vmem:[%s4360_s5 + $0x14a0] sm:$0xff] }
  0xbb   : > { %v1062_v38 = vld [vmem:[%s4360_s5 + $0x14c0] sm:$0xff]  ;;  %1061 = vst [vmem:[%s4365_s6 + $0x528] sm:$0xff] %v1060_v37 }
  0xbc   : > { %v1064_v39 = vld [vmem:[%s4360_s5 + $0x14e0] sm:$0xff]  ;;  %1063 = vst [vmem:[%s4365_s6 + $0x530] sm:$0xff] %v1062_v38 }
  0xbd   : > { %1065 = vst [vmem:[%s4365_s6 + $0x538] sm:$0xff] %v1064_v39  ;;  %v1066_v40 = vld [vmem:[%s4360_s5 + $0x1500] sm:$0xff] }
  0xbe   : > { %v1068_v41 = vld [vmem:[%s4360_s5 + $0x1520] sm:$0xff]  ;;  %1067 = vst [vmem:[%s4365_s6 + $0x540] sm:$0xff] %v1066_v40 }
  0xbf   : > { %v1070_v42 = vld [vmem:[%s4360_s5 + $0x1540] sm:$0xff]  ;;  %1069 = vst [vmem:[%s4365_s6 + $0x548] sm:$0xff] %v1068_v41 }
  0xc0   : > { %1071 = vst [vmem:[%s4365_s6 + $0x550] sm:$0xff] %v1070_v42  ;;  %v1072_v43 = vld [vmem:[%s4360_s5 + $0x1560] sm:$0xff] }
  0xc1   : > { %v1074_v44 = vld [vmem:[%s4360_s5 + $0x1580] sm:$0xff]  ;;  %1073 = vst [vmem:[%s4365_s6 + $0x558] sm:$0xff] %v1072_v43 }
  0xc2   : > { %v1076_v45 = vld [vmem:[%s4360_s5 + $0x15a0] sm:$0xff]  ;;  %1075 = vst [vmem:[%s4365_s6 + $0x560] sm:$0xff] %v1074_v44 }
  0xc3   : > { %1077 = vst [vmem:[%s4365_s6 + $0x568] sm:$0xff] %v1076_v45  ;;  %v1078_v46 = vld [vmem:[%s4360_s5 + $0x15c0] sm:$0xff] }
  0xc4   : > { %v1080_v47 = vld [vmem:[%s4360_s5 + $0x15e0] sm:$0xff]  ;;  %1079 = vst [vmem:[%s4365_s6 + $0x570] sm:$0xff] %v1078_v46 }
  0xc5   : > { %v1082_v48 = vld [vmem:[%s4360_s5 + $0x1600] sm:$0xff]  ;;  %1081 = vst [vmem:[%s4365_s6 + $0x578] sm:$0xff] %v1080_v47 }
  0xc6   : > { %1083 = vst [vmem:[%s4365_s6 + $0x580] sm:$0xff] %v1082_v48  ;;  %v1084_v49 = vld [vmem:[%s4360_s5 + $0x1620] sm:$0xff] }
  0xc7   : > { %v1086_v50 = vld [vmem:[%s4360_s5 + $0x1640] sm:$0xff]  ;;  %1085 = vst [vmem:[%s4365_s6 + $0x588] sm:$0xff] %v1084_v49 }
  0xc8   : > { %v1088_v51 = vld [vmem:[%s4360_s5 + $0x1660] sm:$0xff]  ;;  %1087 = vst [vmem:[%s4365_s6 + $0x590] sm:$0xff] %v1086_v50 }
  0xc9   : > { %1089 = vst [vmem:[%s4365_s6 + $0x598] sm:$0xff] %v1088_v51  ;;  %v1090_v52 = vld [vmem:[%s4360_s5 + $0x1680] sm:$0xff] }
  0xca   : > { %v1092_v53 = vld [vmem:[%s4360_s5 + $0x16a0] sm:$0xff]  ;;  %1091 = vst [vmem:[%s4365_s6 + $0x5a0] sm:$0xff] %v1090_v52 }
  0xcb   : > { %v1094_v54 = vld [vmem:[%s4360_s5 + $0x16c0] sm:$0xff]  ;;  %1093 = vst [vmem:[%s4365_s6 + $0x5a8] sm:$0xff] %v1092_v53 }
  0xcc   : > { %1095 = vst [vmem:[%s4365_s6 + $0x5b0] sm:$0xff] %v1094_v54  ;;  %v1096_v55 = vld [vmem:[%s4360_s5 + $0x16e0] sm:$0xff] }
  0xcd   : > { %v1098_v56 = vld [vmem:[%s4360_s5 + $0x1700] sm:$0xff]  ;;  %1097 = vst [vmem:[%s4365_s6 + $0x5b8] sm:$0xff] %v1096_v55 }
  0xce   : > { %v1100_v57 = vld [vmem:[%s4360_s5 + $0x1720] sm:$0xff]  ;;  %1099 = vst [vmem:[%s4365_s6 + $0x5c0] sm:$0xff] %v1098_v56 }
  0xcf   : > { %1101 = vst [vmem:[%s4365_s6 + $0x5c8] sm:$0xff] %v1100_v57  ;;  %v1102_v58 = vld [vmem:[%s4360_s5 + $0x1740] sm:$0xff] }
  0xd0   : > { %v1104_v59 = vld [vmem:[%s4360_s5 + $0x1760] sm:$0xff]  ;;  %1103 = vst [vmem:[%s4365_s6 + $0x5d0] sm:$0xff] %v1102_v58 }
  0xd1   : > { %v1106_v60 = vld [vmem:[%s4360_s5 + $0x1780] sm:$0xff]  ;;  %1105 = vst [vmem:[%s4365_s6 + $0x5d8] sm:$0xff] %v1104_v59 }
  0xd2   : > { %1107 = vst [vmem:[%s4365_s6 + $0x5e0] sm:$0xff] %v1106_v60  ;;  %v1108_v61 = vld [vmem:[%s4360_s5 + $0x17a0] sm:$0xff] }
  0xd3   : > { %v1110_v62 = vld [vmem:[%s4360_s5 + $0x17c0] sm:$0xff]  ;;  %1109 = vst [vmem:[%s4365_s6 + $0x5e8] sm:$0xff] %v1108_v61 }
  0xd4   : > { %v1112_v63 = vld [vmem:[%s4360_s5 + $0x17e0] sm:$0xff]  ;;  %1111 = vst [vmem:[%s4365_s6 + $0x5f0] sm:$0xff] %v1110_v62 }
  0xd5   : > { %1113 = vst [vmem:[%s4365_s6 + $0x5f8] sm:$0xff] %v1112_v63  ;;  %v1114_v0 = vld [vmem:[%s4360_s5 + $0x1800] sm:$0xff] }
  0xd6   : > { %v1116_v1 = vld [vmem:[%s4360_s5 + $0x1820] sm:$0xff]  ;;  %1115 = vst [vmem:[%s4365_s6 + $0x600] sm:$0xff] %v1114_v0 }
  0xd7   : > { %v1118_v2 = vld [vmem:[%s4360_s5 + $0x1840] sm:$0xff]  ;;  %1117 = vst [vmem:[%s4365_s6 + $0x608] sm:$0xff] %v1116_v1 }
  0xd8   : > { %1119 = vst [vmem:[%s4365_s6 + $0x610] sm:$0xff] %v1118_v2  ;;  %v1120_v3 = vld [vmem:[%s4360_s5 + $0x1860] sm:$0xff] }
  0xd9   : > { %v1122_v4 = vld [vmem:[%s4360_s5 + $0x1880] sm:$0xff]  ;;  %1121 = vst [vmem:[%s4365_s6 + $0x618] sm:$0xff] %v1120_v3 }
  0xda   : > { %v1124_v5 = vld [vmem:[%s4360_s5 + $0x18a0] sm:$0xff]  ;;  %1123 = vst [vmem:[%s4365_s6 + $0x620] sm:$0xff] %v1122_v4 }
  0xdb   : > { %1125 = vst [vmem:[%s4365_s6 + $0x628] sm:$0xff] %v1124_v5  ;;  %v1126_v6 = vld [vmem:[%s4360_s5 + $0x18c0] sm:$0xff] }
  0xdc   : > { %v1128_v7 = vld [vmem:[%s4360_s5 + $0x18e0] sm:$0xff]  ;;  %1127 = vst [vmem:[%s4365_s6 + $0x630] sm:$0xff] %v1126_v6 }
  0xdd   : > { %v1130_v8 = vld [vmem:[%s4360_s5 + $0x1900] sm:$0xff]  ;;  %1129 = vst [vmem:[%s4365_s6 + $0x638] sm:$0xff] %v1128_v7 }
  0xde   : > { %1131 = vst [vmem:[%s4365_s6 + $0x640] sm:$0xff] %v1130_v8  ;;  %v1132_v9 = vld [vmem:[%s4360_s5 + $0x1920] sm:$0xff] }
  0xdf   : > { %v1134_v10 = vld [vmem:[%s4360_s5 + $0x1940] sm:$0xff]  ;;  %1133 = vst [vmem:[%s4365_s6 + $0x648] sm:$0xff] %v1132_v9 }
  0xe0   : > { %v1136_v11 = vld [vmem:[%s4360_s5 + $0x1960] sm:$0xff]  ;;  %1135 = vst [vmem:[%s4365_s6 + $0x650] sm:$0xff] %v1134_v10 }
  0xe1   : > { %1137 = vst [vmem:[%s4365_s6 + $0x658] sm:$0xff] %v1136_v11  ;;  %v1138_v12 = vld [vmem:[%s4360_s5 + $0x1980] sm:$0xff] }
  0xe2   : > { %v1140_v13 = vld [vmem:[%s4360_s5 + $0x19a0] sm:$0xff]  ;;  %1139 = vst [vmem:[%s4365_s6 + $0x660] sm:$0xff] %v1138_v12 }
  0xe3   : > { %v1142_v14 = vld [vmem:[%s4360_s5 + $0x19c0] sm:$0xff]  ;;  %1141 = vst [vmem:[%s4365_s6 + $0x668] sm:$0xff] %v1140_v13 }
  0xe4   : > { %1143 = vst [vmem:[%s4365_s6 + $0x670] sm:$0xff] %v1142_v14  ;;  %v1144_v15 = vld [vmem:[%s4360_s5 + $0x19e0] sm:$0xff] }
  0xe5   : > { %v1146_v16 = vld [vmem:[%s4360_s5 + $0x1a00] sm:$0xff]  ;;  %1145 = vst [vmem:[%s4365_s6 + $0x678] sm:$0xff] %v1144_v15 }
  0xe6   : > { %v1148_v17 = vld [vmem:[%s4360_s5 + $0x1a20] sm:$0xff]  ;;  %1147 = vst [vmem:[%s4365_s6 + $0x680] sm:$0xff] %v1146_v16 }
  0xe7   : > { %1149 = vst [vmem:[%s4365_s6 + $0x688] sm:$0xff] %v1148_v17  ;;  %v1150_v18 = vld [vmem:[%s4360_s5 + $0x1a40] sm:$0xff] }
  0xe8   : > { %v1152_v19 = vld [vmem:[%s4360_s5 + $0x1a60] sm:$0xff]  ;;  %1151 = vst [vmem:[%s4365_s6 + $0x690] sm:$0xff] %v1150_v18 }
  0xe9   : > { %v1154_v20 = vld [vmem:[%s4360_s5 + $0x1a80] sm:$0xff]  ;;  %1153 = vst [vmem:[%s4365_s6 + $0x698] sm:$0xff] %v1152_v19 }
  0xea   : > { %1155 = vst [vmem:[%s4365_s6 + $0x6a0] sm:$0xff] %v1154_v20  ;;  %v1156_v21 = vld [vmem:[%s4360_s5 + $0x1aa0] sm:$0xff] }
  0xeb   : > { %v1158_v22 = vld [vmem:[%s4360_s5 + $0x1ac0] sm:$0xff]  ;;  %1157 = vst [vmem:[%s4365_s6 + $0x6a8] sm:$0xff] %v1156_v21 }
  0xec   : > { %v1160_v23 = vld [vmem:[%s4360_s5 + $0x1ae0] sm:$0xff]  ;;  %1159 = vst [vmem:[%s4365_s6 + $0x6b0] sm:$0xff] %v1158_v22 }
  0xed   : > { %1161 = vst [vmem:[%s4365_s6 + $0x6b8] sm:$0xff] %v1160_v23  ;;  %v1162_v24 = vld [vmem:[%s4360_s5 + $0x1b00] sm:$0xff] }
  0xee   : > { %v1164_v25 = vld [vmem:[%s4360_s5 + $0x1b20] sm:$0xff]  ;;  %1163 = vst [vmem:[%s4365_s6 + $0x6c0] sm:$0xff] %v1162_v24 }
  0xef   : > { %v1166_v26 = vld [vmem:[%s4360_s5 + $0x1b40] sm:$0xff]  ;;  %1165 = vst [vmem:[%s4365_s6 + $0x6c8] sm:$0xff] %v1164_v25 }
  0xf0   : > { %1167 = vst [vmem:[%s4365_s6 + $0x6d0] sm:$0xff] %v1166_v26  ;;  %v1168_v27 = vld [vmem:[%s4360_s5 + $0x1b60] sm:$0xff] }
  0xf1   : > { %v1170_v28 = vld [vmem:[%s4360_s5 + $0x1b80] sm:$0xff]  ;;  %1169 = vst [vmem:[%s4365_s6 + $0x6d8] sm:$0xff] %v1168_v27 }
  0xf2   : > { %v1172_v29 = vld [vmem:[%s4360_s5 + $0x1ba0] sm:$0xff]  ;;  %1171 = vst [vmem:[%s4365_s6 + $0x6e0] sm:$0xff] %v1170_v28 }
  0xf3   : > { %1173 = vst [vmem:[%s4365_s6 + $0x6e8] sm:$0xff] %v1172_v29  ;;  %v1174_v30 = vld [vmem:[%s4360_s5 + $0x1bc0] sm:$0xff] }
  0xf4   : > { %v1176_v31 = vld [vmem:[%s4360_s5 + $0x1be0] sm:$0xff]  ;;  %1175 = vst [vmem:[%s4365_s6 + $0x6f0] sm:$0xff] %v1174_v30 }
  0xf5   : > { %v1178_v32 = vld [vmem:[%s4360_s5 + $0x1c00] sm:$0xff]  ;;  %1177 = vst [vmem:[%s4365_s6 + $0x6f8] sm:$0xff] %v1176_v31 }
  0xf6   : > { %1179 = vst [vmem:[%s4365_s6 + $0x700] sm:$0xff] %v1178_v32  ;;  %v1180_v33 = vld [vmem:[%s4360_s5 + $0x1c20] sm:$0xff] }
  0xf7   : > { %v1182_v34 = vld [vmem:[%s4360_s5 + $0x1c40] sm:$0xff]  ;;  %1181 = vst [vmem:[%s4365_s6 + $0x708] sm:$0xff] %v1180_v33 }
  0xf8   : > { %v1184_v35 = vld [vmem:[%s4360_s5 + $0x1c60] sm:$0xff]  ;;  %1183 = vst [vmem:[%s4365_s6 + $0x710] sm:$0xff] %v1182_v34 }
  0xf9   : > { %1185 = vst [vmem:[%s4365_s6 + $0x718] sm:$0xff] %v1184_v35  ;;  %v1186_v36 = vld [vmem:[%s4360_s5 + $0x1c80] sm:$0xff] }
  0xfa   : > { %v1188_v37 = vld [vmem:[%s4360_s5 + $0x1ca0] sm:$0xff]  ;;  %1187 = vst [vmem:[%s4365_s6 + $0x720] sm:$0xff] %v1186_v36 }
  0xfb   : > { %v1190_v38 = vld [vmem:[%s4360_s5 + $0x1cc0] sm:$0xff]  ;;  %1189 = vst [vmem:[%s4365_s6 + $0x728] sm:$0xff] %v1188_v37 }
  0xfc   : > { %1191 = vst [vmem:[%s4365_s6 + $0x730] sm:$0xff] %v1190_v38  ;;  %v1192_v39 = vld [vmem:[%s4360_s5 + $0x1ce0] sm:$0xff] }
  0xfd   : > { %v1194_v40 = vld [vmem:[%s4360_s5 + $0x1d00] sm:$0xff]  ;;  %1193 = vst [vmem:[%s4365_s6 + $0x738] sm:$0xff] %v1192_v39 }
  0xfe   : > { %v1196_v41 = vld [vmem:[%s4360_s5 + $0x1d20] sm:$0xff]  ;;  %1195 = vst [vmem:[%s4365_s6 + $0x740] sm:$0xff] %v1194_v40 }
  0xff   : > { %1197 = vst [vmem:[%s4365_s6 + $0x748] sm:$0xff] %v1196_v41  ;;  %v1198_v42 = vld [vmem:[%s4360_s5 + $0x1d40] sm:$0xff] }
 0x100   : > { %v1200_v43 = vld [vmem:[%s4360_s5 + $0x1d60] sm:$0xff]  ;;  %1199 = vst [vmem:[%s4365_s6 + $0x750] sm:$0xff] %v1198_v42 }
 0x101   : > { %v1202_v44 = vld [vmem:[%s4360_s5 + $0x1d80] sm:$0xff]  ;;  %1201 = vst [vmem:[%s4365_s6 + $0x758] sm:$0xff] %v1200_v43 }
 0x102   : > { %1203 = vst [vmem:[%s4365_s6 + $0x760] sm:$0xff] %v1202_v44  ;;  %v1204_v45 = vld [vmem:[%s4360_s5 + $0x1da0] sm:$0xff] }
 0x103   : > { %v1206_v46 = vld [vmem:[%s4360_s5 + $0x1dc0] sm:$0xff]  ;;  %1205 = vst [vmem:[%s4365_s6 + $0x768] sm:$0xff] %v1204_v45 }
 0x104   : > { %v1208_v47 = vld [vmem:[%s4360_s5 + $0x1de0] sm:$0xff]  ;;  %1207 = vst [vmem:[%s4365_s6 + $0x770] sm:$0xff] %v1206_v46 }
 0x105   : > { %1209 = vst [vmem:[%s4365_s6 + $0x778] sm:$0xff] %v1208_v47  ;;  %v1210_v48 = vld [vmem:[%s4360_s5 + $0x1e00] sm:$0xff] }
 0x106   : > { %v1212_v49 = vld [vmem:[%s4360_s5 + $0x1e20] sm:$0xff]  ;;  %1211 = vst [vmem:[%s4365_s6 + $0x780] sm:$0xff] %v1210_v48 }
 0x107   : > { %v1214_v50 = vld [vmem:[%s4360_s5 + $0x1e40] sm:$0xff]  ;;  %1213 = vst [vmem:[%s4365_s6 + $0x788] sm:$0xff] %v1212_v49 }
 0x108   : > { %1215 = vst [vmem:[%s4365_s6 + $0x790] sm:$0xff] %v1214_v50  ;;  %v1216_v51 = vld [vmem:[%s4360_s5 + $0x1e60] sm:$0xff] }
 0x109   : > { %v1218_v52 = vld [vmem:[%s4360_s5 + $0x1e80] sm:$0xff]  ;;  %1217 = vst [vmem:[%s4365_s6 + $0x798] sm:$0xff] %v1216_v51 }
 0x10a   : > { %v1220_v53 = vld [vmem:[%s4360_s5 + $0x1ea0] sm:$0xff]  ;;  %1219 = vst [vmem:[%s4365_s6 + $0x7a0] sm:$0xff] %v1218_v52 }
 0x10b   : > { %1221 = vst [vmem:[%s4365_s6 + $0x7a8] sm:$0xff] %v1220_v53  ;;  %v1222_v54 = vld [vmem:[%s4360_s5 + $0x1ec0] sm:$0xff] }
 0x10c   : > { %v1224_v55 = vld [vmem:[%s4360_s5 + $0x1ee0] sm:$0xff]  ;;  %1223 = vst [vmem:[%s4365_s6 + $0x7b0] sm:$0xff] %v1222_v54 }
 0x10d   : > { %v1226_v56 = vld [vmem:[%s4360_s5 + $0x1f00] sm:$0xff]  ;;  %1225 = vst [vmem:[%s4365_s6 + $0x7b8] sm:$0xff] %v1224_v55 }
 0x10e   : > { %1227 = vst [vmem:[%s4365_s6 + $0x7c0] sm:$0xff] %v1226_v56  ;;  %v1228_v57 = vld [vmem:[%s4360_s5 + $0x1f20] sm:$0xff] }
 0x10f   : > { %v1230_v58 = vld [vmem:[%s4360_s5 + $0x1f40] sm:$0xff]  ;;  %1229 = vst [vmem:[%s4365_s6 + $0x7c8] sm:$0xff] %v1228_v57 }
 0x110   : > { %v1232_v59 = vld [vmem:[%s4360_s5 + $0x1f60] sm:$0xff]  ;;  %1231 = vst [vmem:[%s4365_s6 + $0x7d0] sm:$0xff] %v1230_v58 }
 0x111   : > { %1233 = vst [vmem:[%s4365_s6 + $0x7d8] sm:$0xff] %v1232_v59  ;;  %v1234_v60 = vld [vmem:[%s4360_s5 + $0x1f80] sm:$0xff] }
 0x112   : > { %v1236_v61 = vld [vmem:[%s4360_s5 + $0x1fa0] sm:$0xff]  ;;  %1235 = vst [vmem:[%s4365_s6 + $0x7e0] sm:$0xff] %v1234_v60 }
 0x113   : > { %v1238_v62 = vld [vmem:[%s4360_s5 + $0x1fc0] sm:$0xff]  ;;  %1237 = vst [vmem:[%s4365_s6 + $0x7e8] sm:$0xff] %v1236_v61 }
 0x114   : > { %1239 = vst [vmem:[%s4365_s6 + $0x7f0] sm:$0xff] %v1238_v62  ;;  %v1240_v63 = vld [vmem:[%s4360_s5 + $0x1fe0] sm:$0xff] }
 0x115   : > { %1241 = vst [vmem:[%s4365_s6 + $0x7f8] sm:$0xff] %v1240_v63 }
 0x116 PF: > { %p3507_p8 = scmp.ge.s32.totalorder %s4285_s19, 1  ;;  %p1262_p9 = scmp.lt.s32.totalorder %s4285_s19, 5 }
 0x118   : > { %p1263_p10 = pnand %p3507_p8, %p1262_p9 }
 0x119   : > { %s1269_s7 = sand.u32 (!%p1263_p10), 1, %s4269_s15   ;;  %v4882_v0 = vld [vmem:[%s5287_s0] sm:$0xff] (!%p1263_p10)  ;;  %s3510_s9 = sshll.u32 (!%p1263_p10), %s4277_s17, 1 }
 0x11a   : > { %1266 = sbr.rel (%p1263_p10) target bundleno = 775 (0x307), region = 70  ;;  %v4887_v1 = vld [vmem:[%s5287_s0 + $0x40] sm:$0xff] (!%p1263_p10)  ;;  %s3508_s14 = sshll.u32 (!%p1263_p10), %s1269_s7, 11 }
 0x11b   : > { %v4892_v2 = vld [vmem:[%s5287_s0 + $0x20] sm:$0xff] (!%p1263_p10)  ;;  %v3512_v3 = vcombine.low (!%p1263_p10), %v4882_v0, %v4887_v1  ;;  %v3513_v4 = vcombine.high (!%p1263_p10), %v4882_v0, %v4887_v1  ;;  %s4909_s23 = scalar_lea.vmem (!%p1263_p10), [#allocation2], %s3508_s14  ;;  %p1316_p11 = scmp.lt.s32.totalorder (!%p1263_p10), %s3510_s9, 7 }
 0x11c   : > { %v4903_v5 = vld [vmem:[%s5287_s0 + $0x60] sm:$0xff] (!%p1263_p10)  ;;  %v3869_v12 = vld [vmem:[%s4909_s23 + $0x14] ss:$8 sps:$4 sm:$0xff] (!%p1263_p10)   ;;  %v3873_v14 = vld [vmem:[%s4909_s23 + $0x10] ss:$8 sps:$4 sm:$0xff] (!%p1263_p10)   ;;  %s3509_s21 = sshll.u32 (!%p1263_p10), %s1269_s7, 4 }
 0x11d   : > { %v3520_v6 = vcombine.low (!%p1263_p10), %v4892_v2, %v4903_v5  ;;  %v3521_v7 = vcombine.high (!%p1263_p10), %v4892_v2, %v4903_v5  ;;  %v3863_v8 = vld [vmem:[%s4909_s23 + $0x4] ss:$8 sps:$4 sm:$0xff] (!%p1263_p10)   ;;  %2991 = vmatprep.mubr.bf16.mxu1 (!%p1263_p10), %v3513_v4  ;;  %v3867_v10 = vld [vmem:[%s4909_s23] ss:$8 sps:$4 sm:$0xff] (!%p1263_p10)   ;;  %v3871_v13 = vld [vmem:[%s4909_s23 + $0x414] ss:$8 sps:$4 sm:$0xff] (!%p1263_p10)  }
 0x11e   : > { %v3865_v9 = vld [vmem:[%s4909_s23 + $0x404] ss:$8 sps:$4 sm:$0xff] (!%p1263_p10)   ;;  %2959 = vmatprep.subr.bf16.mxu1 (!%p1263_p10), %v3863_v8  ;;  %v3868_v11 = vld [vmem:[%s4909_s23 + $0x400] ss:$8 sps:$4 sm:$0xff] (!%p1263_p10)   ;;  %v3874_v15 = vld [vmem:[%s4909_s23 + $0x410] ss:$8 sps:$4 sm:$0xff] (!%p1263_p10)  }
 0x11f   : > { %3163 = vmatprep.mubr.bf16.mxu0 (!%p1263_p10), %v3521_v7  ;;  %3131 = vmatprep.subr.bf16.mxu0 (!%p1263_p10), %v3865_v9  ;;  %v3875_v16 = vld [vmem:[%s4909_s23 + $0x24] ss:$8 sps:$4 sm:$0xff] (!%p1263_p10)   ;;  %v3879_v18 = vld [vmem:[%s4909_s23 + $0x20] ss:$8 sps:$4 sm:$0xff] (!%p1263_p10)   ;;  %v3881_v20 = vld [vmem:[%s4909_s23 + $0x34] ss:$8 sps:$4 sm:$0xff] (!%p1263_p10)  }
 0x120   : > { %2960 = vmatpush1.bf16.msra.mxu1 (!%p1263_p10), %v3867_v10  ;;  %3132 = vmatpush1.bf16.msra.mxu0 (!%p1263_p10), %v3868_v11  ;;  %v3877_v17 = vld [vmem:[%s4909_s23 + $0x424] ss:$8 sps:$4 sm:$0xff] (!%p1263_p10)   ;;  %v3880_v19 = vld [vmem:[%s4909_s23 + $0x420] ss:$8 sps:$4 sm:$0xff] (!%p1263_p10)   ;;  %v3883_v21 = vld [vmem:[%s4909_s23 + $0x434] ss:$8 sps:$4 sm:$0xff] (!%p1263_p10)  }
 0x121   : > { %2961 = vmatprep.subr.bf16.mxu1 %v3869_v12  ;;  %3133 = vmatprep.subr.bf16.mxu0 %v3871_v13  ;;  %v3885_v22 = vld [vmem:[%s4909_s23 + $0x30] ss:$8 sps:$4 sm:$0xff]   ;;  %v3887_v24 = vld [vmem:[%s4909_s23 + $0x44] ss:$8 sps:$4 sm:$0xff]   ;;  %v3891_v26 = vld [vmem:[%s4909_s23 + $0x40] ss:$8 sps:$4 sm:$0xff]  }
 0x122   : > { %v3886_v23 = vld [vmem:[%s4909_s23 + $0x430] ss:$8 sps:$4 sm:$0xff]   ;;  %v3889_v25 = vld [vmem:[%s4909_s23 + $0x444] ss:$8 sps:$4 sm:$0xff]   ;;  %v3892_v27 = vld [vmem:[%s4909_s23 + $0x440] ss:$8 sps:$4 sm:$0xff]  }
 0x123   : > { %v3893_v28 = vld [vmem:[%s4909_s23 + $0x54] ss:$8 sps:$4 sm:$0xff]   ;;  %v3897_v30 = vld [vmem:[%s4909_s23 + $0x50] ss:$8 sps:$4 sm:$0xff]   ;;  %v3899_v32 = vld [vmem:[%s4909_s23 + $0x64] ss:$8 sps:$4 sm:$0xff]  }
 0x124   : > { %2962 = vmatpush1.bf16.msra.mxu1 %v3873_v14  ;;  %3134 = vmatpush1.bf16.msra.mxu0 %v3874_v15  ;;  %v3895_v29 = vld [vmem:[%s4909_s23 + $0x454] ss:$8 sps:$4 sm:$0xff]   ;;  %v3898_v31 = vld [vmem:[%s4909_s23 + $0x450] ss:$8 sps:$4 sm:$0xff]   ;;  %v3901_v33 = vld [vmem:[%s4909_s23 + $0x464] ss:$8 sps:$4 sm:$0xff]  }
 0x125   : > { %2963 = vmatprep.subr.bf16.mxu1 %v3875_v16  ;;  %3135 = vmatprep.subr.bf16.mxu0 %v3877_v17  ;;  %v3903_v34 = vld [vmem:[%s4909_s23 + $0x60] ss:$8 sps:$4 sm:$0xff]   ;;  %v3905_v36 = vld [vmem:[%s4909_s23 + $0x74] ss:$8 sps:$4 sm:$0xff]   ;;  %v3909_v38 = vld [vmem:[%s4909_s23 + $0x70] ss:$8 sps:$4 sm:$0xff]  }
 0x126   : > { %v3904_v35 = vld [vmem:[%s4909_s23 + $0x460] ss:$8 sps:$4 sm:$0xff]   ;;  %v3907_v37 = vld [vmem:[%s4909_s23 + $0x474] ss:$8 sps:$4 sm:$0xff]   ;;  %v3910_v39 = vld [vmem:[%s4909_s23 + $0x470] ss:$8 sps:$4 sm:$0xff]  }
 0x127   : > { %v3911_v40 = vld [vmem:[%s4909_s23 + $0x84] ss:$8 sps:$4 sm:$0xff]   ;;  %v3915_v42 = vld [vmem:[%s4909_s23 + $0x80] ss:$8 sps:$4 sm:$0xff]   ;;  %v3917_v44 = vld [vmem:[%s4909_s23 + $0x94] ss:$8 sps:$4 sm:$0xff]  }
 0x128   : > { %2964 = vmatpush1.bf16.msra.mxu1 %v3879_v18  ;;  %3136 = vmatpush1.bf16.msra.mxu0 %v3880_v19  ;;  %v3913_v41 = vld [vmem:[%s4909_s23 + $0x484] ss:$8 sps:$4 sm:$0xff]   ;;  %v3916_v43 = vld [vmem:[%s4909_s23 + $0x480] ss:$8 sps:$4 sm:$0xff]   ;;  %v3919_v45 = vld [vmem:[%s4909_s23 + $0x494] ss:$8 sps:$4 sm:$0xff]  }
 0x129   : > { %2965 = vmatprep.subr.bf16.mxu1 %v3881_v20  ;;  %3137 = vmatprep.subr.bf16.mxu0 %v3883_v21  ;;  %v3921_v46 = vld [vmem:[%s4909_s23 + $0x90] ss:$8 sps:$4 sm:$0xff]   ;;  %v3923_v48 = vld [vmem:[%s4909_s23 + $0xa4] ss:$8 sps:$4 sm:$0xff]   ;;  %v3927_v50 = vld [vmem:[%s4909_s23 + $0xa0] ss:$8 sps:$4 sm:$0xff]  }
 0x12a   : > { %v3922_v47 = vld [vmem:[%s4909_s23 + $0x490] ss:$8 sps:$4 sm:$0xff]   ;;  %v3925_v49 = vld [vmem:[%s4909_s23 + $0x4a4] ss:$8 sps:$4 sm:$0xff]   ;;  %v3928_v51 = vld [vmem:[%s4909_s23 + $0x4a0] ss:$8 sps:$4 sm:$0xff]  }
 0x12b   : > { %v3929_v52 = vld [vmem:[%s4909_s23 + $0xb4] ss:$8 sps:$4 sm:$0xff]   ;;  %v3933_v54 = vld [vmem:[%s4909_s23 + $0xb0] ss:$8 sps:$4 sm:$0xff]   ;;  %v3935_v56 = vld [vmem:[%s4909_s23 + $0xc4] ss:$8 sps:$4 sm:$0xff]  }
 0x12c   : > { %2966 = vmatpush1.bf16.msra.mxu1 %v3885_v22  ;;  %3138 = vmatpush1.bf16.msra.mxu0 %v3886_v23  ;;  %v3931_v53 = vld [vmem:[%s4909_s23 + $0x4b4] ss:$8 sps:$4 sm:$0xff]   ;;  %v3934_v55 = vld [vmem:[%s4909_s23 + $0x4b0] ss:$8 sps:$4 sm:$0xff]   ;;  %v3937_v57 = vld [vmem:[%s4909_s23 + $0x4c4] ss:$8 sps:$4 sm:$0xff]  }
 0x12d   : > { %2967 = vmatprep.subr.bf16.mxu1 %v3887_v24  ;;  %3139 = vmatprep.subr.bf16.mxu0 %v3889_v25  ;;  %v3939_v58 = vld [vmem:[%s4909_s23 + $0xc0] ss:$8 sps:$4 sm:$0xff]   ;;  %v3941_v60 = vld [vmem:[%s4909_s23 + $0xd4] ss:$8 sps:$4 sm:$0xff]   ;;  %v3945_v62 = vld [vmem:[%s4909_s23 + $0xd0] ss:$8 sps:$4 sm:$0xff]  }
 0x12e   : > { %v3940_v59 = vld [vmem:[%s4909_s23 + $0x4c0] ss:$8 sps:$4 sm:$0xff]   ;;  %v3943_v61 = vld [vmem:[%s4909_s23 + $0x4d4] ss:$8 sps:$4 sm:$0xff]   ;;  %v3946_v63 = vld [vmem:[%s4909_s23 + $0x4d0] ss:$8 sps:$4 sm:$0xff]  }
 0x12f   : > { %v3947_v4 = vld [vmem:[%s4909_s23 + $0xe4] ss:$8 sps:$4 sm:$0xff]   ;;  %v3951_v8 = vld [vmem:[%s4909_s23 + $0xe0] ss:$8 sps:$4 sm:$0xff]   ;;  %v3953_v10 = vld [vmem:[%s4909_s23 + $0xf4] ss:$8 sps:$4 sm:$0xff]  }
 0x130   : > { %2968 = vmatpush1.bf16.msra.mxu1 %v3891_v26  ;;  %3140 = vmatpush1.bf16.msra.mxu0 %v3892_v27  ;;  %v3949_v7 = vld [vmem:[%s4909_s23 + $0x4e4] ss:$8 sps:$4 sm:$0xff]   ;;  %v3952_v9 = vld [vmem:[%s4909_s23 + $0x4e0] ss:$8 sps:$4 sm:$0xff]   ;;  %v3955_v11 = vld [vmem:[%s4909_s23 + $0x4f4] ss:$8 sps:$4 sm:$0xff]  }
 0x131   : > { %2969 = vmatprep.subr.bf16.mxu1 %v3893_v28  ;;  %3141 = vmatprep.subr.bf16.mxu0 %v3895_v29  ;;  %v3957_v12 = vld [vmem:[%s4909_s23 + $0xf0] ss:$8 sps:$4 sm:$0xff]   ;;  %v3961_v14 = vld [vmem:[%s4909_s23 + $0x104] ss:$8 sps:$4 sm:$0xff]   ;;  %v3959_v16 = vld [vmem:[%s4909_s23 + $0x100] ss:$8 sps:$4 sm:$0xff]  }
 0x132   : > { %v3958_v13 = vld [vmem:[%s4909_s23 + $0x4f0] ss:$8 sps:$4 sm:$0xff]   ;;  %v3964_v15 = vld [vmem:[%s4909_s23 + $0x504] ss:$8 sps:$4 sm:$0xff]   ;;  %v3962_v17 = vld [vmem:[%s4909_s23 + $0x500] ss:$8 sps:$4 sm:$0xff]  }
 0x133   : > { %v3967_v18 = vld [vmem:[%s4909_s23 + $0x114] ss:$8 sps:$4 sm:$0xff]   ;;  %v3965_v20 = vld [vmem:[%s4909_s23 + $0x110] ss:$8 sps:$4 sm:$0xff]   ;;  %v3973_v22 = vld [vmem:[%s4909_s23 + $0x124] ss:$8 sps:$4 sm:$0xff]  }
 0x134   : > { %2970 = vmatpush1.bf16.msra.mxu1 %v3897_v30  ;;  %3142 = vmatpush1.bf16.msra.mxu0 %v3898_v31  ;;  %v3970_v19 = vld [vmem:[%s4909_s23 + $0x514] ss:$8 sps:$4 sm:$0xff]   ;;  %v3968_v21 = vld [vmem:[%s4909_s23 + $0x510] ss:$8 sps:$4 sm:$0xff]   ;;  %v3976_v23 = vld [vmem:[%s4909_s23 + $0x524] ss:$8 sps:$4 sm:$0xff]  }
 0x135   : > { %2971 = vmatprep.subr.bf16.mxu1 %v3899_v32  ;;  %3143 = vmatprep.subr.bf16.mxu0 %v3901_v33  ;;  %v3971_v24 = vld [vmem:[%s4909_s23 + $0x120] ss:$8 sps:$4 sm:$0xff]   ;;  %v3979_v1 = vld [vmem:[%s4909_s23 + $0x134] ss:$8 sps:$4 sm:$0xff]   ;;  %v3980_v5 = vld [vmem:[%s4909_s23 + $0x530] ss:$8 sps:$4 sm:$0xff]  }
 0x136   : > { %v3974_v0 = vld [vmem:[%s4909_s23 + $0x520] ss:$8 sps:$4 sm:$0xff]   ;;  %v3982_v2 = vld [vmem:[%s4909_s23 + $0x534] ss:$8 sps:$4 sm:$0xff]   ;;  %v3988_v25 = vld [vmem:[%s4909_s23 + $0x544] ss:$8 sps:$4 sm:$0xff]  }
 0x137   : > { %v3983_v26 = vld [vmem:[%s4909_s23 + $0x140] ss:$8 sps:$4 sm:$0xff]   ;;  %v3991_v28 = vld [vmem:[%s4909_s23 + $0x154] ss:$8 sps:$4 sm:$0xff]   ;;  %v3989_v30 = vld [vmem:[%s4909_s23 + $0x150] ss:$8 sps:$4 sm:$0xff]  }
 0x138   : > { %2972 = vmatpush1.bf16.msra.mxu1 %v3903_v34  ;;  %3144 = vmatpush1.bf16.msra.mxu0 %v3904_v35  ;;  %v3986_v27 = vld [vmem:[%s4909_s23 + $0x540] ss:$8 sps:$4 sm:$0xff]   ;;  %v3994_v29 = vld [vmem:[%s4909_s23 + $0x554] ss:$8 sps:$4 sm:$0xff]   ;;  %v3992_v31 = vld [vmem:[%s4909_s23 + $0x550] ss:$8 sps:$4 sm:$0xff]  }
 0x139   : > { %2973 = vmatprep.subr.bf16.mxu1 %v3905_v36  ;;  %3145 = vmatprep.subr.bf16.mxu0 %v3907_v37  ;;  %v3997_v32 = vld [vmem:[%s4909_s23 + $0x164] ss:$8 sps:$4 sm:$0xff]   ;;  %v3995_v36 = vld [vmem:[%s4909_s23 + $0x160] ss:$8 sps:$4 sm:$0xff]   ;;  %s5300_s9 = smov (!%p1316_p11, %s3510_s9), 7  ;;  %s1306_s22 = scalar_lea.vmem [#allocation3], %s3509_s21 }
 0x13a   : > { %v4000_v33 = vld [vmem:[%s4909_s23 + $0x564] ss:$8 sps:$4 sm:$0xff]   ;;  %s1323_s14 = scalar_lea.vmem %s5290_s3, %s5300_s9  ;;  %s3794_s26 = sshll.u32 (%p4347_p6), %s4277_s17, 3 }
 0x13b   : > { %v5010_v34 = vld [vmem:[%s5287_s0 + $0x8] sm:$0xff]  ;;  %s3361_s27 = scalar_lea.vmem (%p4347_p6), %s5291_s4, %s3794_s26 }
 0x13c   : > { %2974 = vmatpush1.bf16.msra.mxu1 %v3909_v38  ;;  %3146 = vmatpush1.bf16.msra.mxu0 %v3910_v39  ;;  %v5015_v35 = vld [vmem:[%s5287_s0 + $0x48] sm:$0xff] }
 0x13d   : > { %2975 = vmatprep.subr.bf16.mxu1 %v3911_v40  ;;  %3147 = vmatprep.subr.bf16.mxu0 %v3913_v41  ;;  %v3515_v37 = vcombine.high %v5010_v34, %v5015_v35  ;;  %v3998_v38 = vld [vmem:[%s4909_s23 + $0x560] ss:$8 sps:$4 sm:$0xff]   ;;  %v4003_v41 = vld [vmem:[%s4909_s23 + $0x174] ss:$8 sps:$4 sm:$0xff]  }
 0x13e   : > { %v5024_v39 = vld [vmem:[%s5287_s0 + $0x28] sm:$0xff] }
 0x13f   : > { %v5029_v40 = vld [vmem:[%s5287_s0 + $0x68] sm:$0xff] }
 0x140   : > { %2976 = vmatpush1.bf16.msra.mxu1 %v3915_v42  ;;  %3148 = vmatpush1.bf16.msra.mxu0 %v3916_v43  ;;  %v3523_v42 = vcombine.high %v5024_v39, %v5029_v40  ;;  %v4006_v43 = vld [vmem:[%s4909_s23 + $0x574] ss:$8 sps:$4 sm:$0xff]  }
 0x141   : > { %2977 = vmatprep.subr.bf16.mxu1 %v3917_v44  ;;  %3149 = vmatprep.subr.bf16.mxu0 %v3919_v45  ;;  %v4001_v44 = vld [vmem:[%s4909_s23 + $0x170] ss:$8 sps:$4 sm:$0xff]  }
 0x142   : > { %v4004_v45 = vld [vmem:[%s4909_s23 + $0x570] ss:$8 sps:$4 sm:$0xff]  }
 0x144   : > { %2978 = vmatpush1.bf16.msra.mxu1 %v3921_v46  ;;  %3150 = vmatpush1.bf16.msra.mxu0 %v3922_v47  ;;  %v4009_v46 = vld [vmem:[%s4909_s23 + $0x184] ss:$8 sps:$4 sm:$0xff]  }
 0x145   : > { %2979 = vmatprep.subr.bf16.mxu1 %v3923_v48  ;;  %3151 = vmatprep.subr.bf16.mxu0 %v3925_v49  ;;  %v4012_v47 = vld [vmem:[%s4909_s23 + $0x584] ss:$8 sps:$4 sm:$0xff]   ;;  %v4007_v48 = vld [vmem:[%s4909_s23 + $0x180] ss:$8 sps:$4 sm:$0xff]  }
 0x146   : > { %v4010_v49 = vld [vmem:[%s4909_s23 + $0x580] ss:$8 sps:$4 sm:$0xff]  }
 0x148   : > { %2980 = vmatpush1.bf16.msra.mxu1 %v3927_v50  ;;  %3152 = vmatpush1.bf16.msra.mxu0 %v3928_v51  ;;  %v4015_v50 = vld [vmem:[%s4909_s23 + $0x194] ss:$8 sps:$4 sm:$0xff]  }
 0x149   : > { %2981 = vmatprep.subr.bf16.mxu1 %v3929_v52  ;;  %3153 = vmatprep.subr.bf16.mxu0 %v3931_v53  ;;  %v4018_v51 = vld [vmem:[%s4909_s23 + $0x594] ss:$8 sps:$4 sm:$0xff]   ;;  %v4013_v52 = vld [vmem:[%s4909_s23 + $0x190] ss:$8 sps:$4 sm:$0xff]  }
 0x14a   : > { %v4016_v53 = vld [vmem:[%s4909_s23 + $0x590] ss:$8 sps:$4 sm:$0xff]  }
 0x14c   : > { %2982 = vmatpush1.bf16.msra.mxu1 %v3933_v54  ;;  %3154 = vmatpush1.bf16.msra.mxu0 %v3934_v55  ;;  %v4021_v54 = vld [vmem:[%s4909_s23 + $0x1a4] ss:$8 sps:$4 sm:$0xff]  }
 0x14d   : > { %2983 = vmatprep.subr.bf16.mxu1 %v3935_v56  ;;  %3155 = vmatprep.subr.bf16.mxu0 %v3937_v57  ;;  %v4024_v55 = vld [vmem:[%s4909_s23 + $0x5a4] ss:$8 sps:$4 sm:$0xff]   ;;  %v4019_v56 = vld [vmem:[%s4909_s23 + $0x1a0] ss:$8 sps:$4 sm:$0xff]  }
 0x14e   : > { %v4022_v57 = vld [vmem:[%s4909_s23 + $0x5a0] ss:$8 sps:$4 sm:$0xff]  }
 0x150   : > { %2984 = vmatpush1.bf16.msra.mxu1 %v3939_v58  ;;  %3156 = vmatpush1.bf16.msra.mxu0 %v3940_v59  ;;  %v4027_v58 = vld [vmem:[%s4909_s23 + $0x1b4] ss:$8 sps:$4 sm:$0xff]  }
 0x151   : > { %2985 = vmatprep.subr.bf16.mxu1 %v3941_v60  ;;  %3157 = vmatprep.subr.bf16.mxu0 %v3943_v61  ;;  %v4030_v59 = vld [vmem:[%s4909_s23 + $0x5b4] ss:$8 sps:$4 sm:$0xff]   ;;  %v4025_v60 = vld [vmem:[%s4909_s23 + $0x1b0] ss:$8 sps:$4 sm:$0xff]  }
 0x152   : > { %v4028_v61 = vld [vmem:[%s4909_s23 + $0x5b0] ss:$8 sps:$4 sm:$0xff]  }
 0x154   : > { %2986 = vmatpush1.bf16.msra.mxu1 %v3945_v62  ;;  %3158 = vmatpush1.bf16.msra.mxu0 %v3946_v63  ;;  %v4033_v62 = vld [vmem:[%s4909_s23 + $0x1c4] ss:$8 sps:$4 sm:$0xff]  }
 0x155   : > { %2987 = vmatprep.subr.bf16.mxu1 %v3947_v4  ;;  %3159 = vmatprep.subr.bf16.mxu0 %v3949_v7  ;;  %v4036_v63 = vld [vmem:[%s4909_s23 + $0x5c4] ss:$8 sps:$4 sm:$0xff]   ;;  %v4031_v4 = vld [vmem:[%s4909_s23 + $0x1c0] ss:$8 sps:$4 sm:$0xff]  }
 0x156   : > { %v4034_v7 = vld [vmem:[%s4909_s23 + $0x5c0] ss:$8 sps:$4 sm:$0xff]  }
 0x158   : > { %2988 = vmatpush1.bf16.msra.mxu1 %v3951_v8  ;;  %3160 = vmatpush1.bf16.msra.mxu0 %v3952_v9  ;;  %v4039_v8 = vld [vmem:[%s4909_s23 + $0x1d4] ss:$8 sps:$4 sm:$0xff]  }
 0x159   : > { %2989 = vmatprep.subr.bf16.mxu1 %v3953_v10  ;;  %3161 = vmatprep.subr.bf16.mxu0 %v3955_v11  ;;  %v4042_v9 = vld [vmem:[%s4909_s23 + $0x5d4] ss:$8 sps:$4 sm:$0xff]   ;;  %v4037_v10 = vld [vmem:[%s4909_s23 + $0x1d0] ss:$8 sps:$4 sm:$0xff]  }
 0x15a   : > { %v4040_v11 = vld [vmem:[%s4909_s23 + $0x5d0] ss:$8 sps:$4 sm:$0xff]  }
 0x15c   : > { %2990 = vmatpush1.bf16.msra.mxu1 %v3957_v12  ;;  %3162 = vmatpush1.bf16.msra.mxu0 %v3958_v13  ;;  %v4045_v12 = vld [vmem:[%s4909_s23 + $0x1e4] ss:$8 sps:$4 sm:$0xff]  }
 0x15d   : > { %3002 = vmatprep.subr.bf16.mxu1 %v3961_v14  ;;  %3174 = vmatprep.subr.bf16.mxu0 %v3964_v15  ;;  %v4048_v13 = vld [vmem:[%s4909_s23 + $0x5e4] ss:$8 sps:$4 sm:$0xff]   ;;  %v4043_v14 = vld [vmem:[%s4909_s23 + $0x1e0] ss:$8 sps:$4 sm:$0xff]  }
 0x15e   : > { %v4046_v15 = vld [vmem:[%s4909_s23 + $0x5e0] ss:$8 sps:$4 sm:$0xff]  }
 0x15f   : > { %2992 = vmatmul.mubr.bf16.vlgmr.msra.gmra.mrb[0].mxu1 %v3512_v3  ;;  %3164 = vmatmul.mubr.bf16.vlgmr.msra.gmra.mrb[0].mxu0 %v3520_v6  ;;  %v3977_v3 = vld [vmem:[%s4909_s23 + $0x130] ss:$8 sps:$4 sm:$0xff]   ;;  %v3985_v6 = vld [vmem:[%s4909_s23 + $0x144] ss:$8 sps:$4 sm:$0xff]  }
 0x160   : > { %3003 = vmatpush1.bf16.msra.mxu1 %v3959_v16  ;;  %3175 = vmatpush1.bf16.msra.mxu0 %v3962_v17  ;;  %v4051_v16 = vld [vmem:[%s4909_s23 + $0x1f4] ss:$8 sps:$4 sm:$0xff]  }
 0x161   : > { %3004 = vmatprep.subr.bf16.mxu1 %v3967_v18  ;;  %3176 = vmatprep.subr.bf16.mxu0 %v3970_v19  ;;  %v4054_v17 = vld [vmem:[%s4909_s23 + $0x5f4] ss:$8 sps:$4 sm:$0xff]   ;;  %v4049_v18 = vld [vmem:[%s4909_s23 + $0x1f0] ss:$8 sps:$4 sm:$0xff]  }
 0x162   : > { %3034 = vmatprep.mubr.bf16.mxu1 %v3515_v37  ;;  %3206 = vmatprep.mubr.bf16.mxu0 %v3523_v42  ;;  %v4052_v19 = vld [vmem:[%s4909_s23 + $0x5f0] ss:$8 sps:$4 sm:$0xff]   ;;  %v4087_v42 = vld [vmem:[%s4909_s23 + $0x254] ss:$8 sps:$4 sm:$0xff]  }
 0x163   : > { %v4076_v37 = vld [vmem:[%s4909_s23 + $0x630] ss:$8 sps:$4 sm:$0xff]  }
 0x164   : > { %3005 = vmatpush1.bf16.msra.mxu1 %v3965_v20  ;;  %3177 = vmatpush1.bf16.msra.mxu0 %v3968_v21  ;;  %v4057_v20 = vld [vmem:[%s4909_s23 + $0x204] ss:$8 sps:$4 sm:$0xff]  }
 0x165   : > { %3006 = vmatprep.subr.bf16.mxu1 %v3973_v22  ;;  %3178 = vmatprep.subr.bf16.mxu0 %v3976_v23  ;;  %v4060_v21 = vld [vmem:[%s4909_s23 + $0x604] ss:$8 sps:$4 sm:$0xff]   ;;  %v3514_v22 = vcombine.low %v5010_v34, %v5015_v35  ;;  %v4055_v23 = vld [vmem:[%s4909_s23 + $0x200] ss:$8 sps:$4 sm:$0xff]   ;;  %v4075_v34 = vld [vmem:[%s4909_s23 + $0x234] ss:$8 sps:$4 sm:$0xff]  }
 0x166   : > { %v4078_v35 = vld [vmem:[%s4909_s23 + $0x634] ss:$8 sps:$4 sm:$0xff]  }
 0x168   : > { %3007 = vmatpush1.bf16.msra.mxu1 %v3971_v24  ;;  %3179 = vmatpush1.bf16.msra.mxu0 %v3974_v0  ;;  %v3522_v24 = vcombine.low %v5024_v39, %v5029_v40  ;;  %v4058_v0 = vld [vmem:[%s4909_s23 + $0x600] ss:$8 sps:$4 sm:$0xff]   ;;  %v4084_v39 = vld [vmem:[%s4909_s23 + $0x644] ss:$8 sps:$4 sm:$0xff]  }
 0x169   : > { %3008 = vmatprep.subr.bf16.mxu1 %v3979_v1  ;;  %3180 = vmatprep.subr.bf16.mxu0 %v3982_v2  ;;  %v4063_v1 = vld [vmem:[%s4909_s23 + $0x214] ss:$8 sps:$4 sm:$0xff]   ;;  %v4079_v40 = vld [vmem:[%s4909_s23 + $0x240] ss:$8 sps:$4 sm:$0xff]  }
 0x16a   : > { %v4066_v2 = vld [vmem:[%s4909_s23 + $0x614] ss:$8 sps:$4 sm:$0xff]  }
 0x16c   : > { %3009 = vmatpush1.bf16.msra.mxu1 %v3977_v3  ;;  %3181 = vmatpush1.bf16.msra.mxu0 %v3980_v5  ;;  %v5082_v3 = vld [vmem:[%s5287_s0 + $0x10] sm:$0xff] }
 0x16d   : > { %3010 = vmatprep.subr.bf16.mxu1 %v3985_v6  ;;  %3182 = vmatprep.subr.bf16.mxu0 %v3988_v25  ;;  %v5087_v5 = vld [vmem:[%s5287_s0 + $0x50] sm:$0xff] }
 0x16e   : > { %v4061_v6 = vld [vmem:[%s4909_s23 + $0x210] ss:$8 sps:$4 sm:$0xff]   ;;  %v3517_v25 = vcombine.high %v5082_v3, %v5087_v5 }
 0x170   : > { %3011 = vmatpush1.bf16.msra.mxu1 %v3983_v26  ;;  %3183 = vmatpush1.bf16.msra.mxu0 %v3986_v27  ;;  %v4064_v26 = vld [vmem:[%s4909_s23 + $0x610] ss:$8 sps:$4 sm:$0xff]  }
 0x171   : > { %3012 = vmatprep.subr.bf16.mxu1 %v3991_v28  ;;  %3184 = vmatprep.subr.bf16.mxu0 %v3994_v29  ;;  %v5096_v27 = vld [vmem:[%s5287_s0 + $0x30] sm:$0xff]  ;;  %v4069_v29 = vld [vmem:[%s4909_s23 + $0x224] ss:$8 sps:$4 sm:$0xff]  }
 0x172   : > { %v5101_v28 = vld [vmem:[%s5287_s0 + $0x70] sm:$0xff] }
 0x174   : > { %3013 = vmatpush1.bf16.msra.mxu1 %v3989_v30  ;;  %3185 = vmatpush1.bf16.msra.mxu0 %v3992_v31  ;;  %v3525_v30 = vcombine.high %v5096_v27, %v5101_v28  ;;  %v4072_v31 = vld [vmem:[%s4909_s23 + $0x624] ss:$8 sps:$4 sm:$0xff]  }
 0x175   : > { %3014 = vmatprep.subr.bf16.mxu1 %v3997_v32  ;;  %3186 = vmatprep.subr.bf16.mxu0 %v4000_v33  ;;  %v4067_v32 = vld [vmem:[%s4909_s23 + $0x220] ss:$8 sps:$4 sm:$0xff]  }
 0x176   : > { %v4070_v33 = vld [vmem:[%s4909_s23 + $0x620] ss:$8 sps:$4 sm:$0xff]  }
 0x178   : > { %3015 = vmatpush1.bf16.msra.mxu1 %v3995_v36  ;;  %3187 = vmatpush1.bf16.msra.mxu0 %v3998_v38  ;;  %v4073_v36 = vld [vmem:[%s4909_s23 + $0x230] ss:$8 sps:$4 sm:$0xff]   ;;  %v4081_v38 = vld [vmem:[%s4909_s23 + $0x244] ss:$8 sps:$4 sm:$0xff]  }
 0x179   : > { %3016 = vmatprep.subr.bf16.mxu1 %v4003_v41  ;;  %3188 = vmatprep.subr.bf16.mxu0 %v4006_v43  ;;  %v4082_v41 = vld [vmem:[%s4909_s23 + $0x640] ss:$8 sps:$4 sm:$0xff]   ;;  %v4090_v43 = vld [vmem:[%s4909_s23 + $0x654] ss:$8 sps:$4 sm:$0xff]  }
 0x17c   : > { %3017 = vmatpush1.bf16.msra.mxu1 %v4001_v44  ;;  %3189 = vmatpush1.bf16.msra.mxu0 %v4004_v45  ;;  %v4085_v44 = vld [vmem:[%s4909_s23 + $0x250] ss:$8 sps:$4 sm:$0xff]  }
 0x17d   : > { %3018 = vmatprep.subr.bf16.mxu1 %v4009_v46  ;;  %3190 = vmatprep.subr.bf16.mxu0 %v4012_v47  ;;  %v4088_v45 = vld [vmem:[%s4909_s23 + $0x650] ss:$8 sps:$4 sm:$0xff]   ;;  %v4093_v46 = vld [vmem:[%s4909_s23 + $0x264] ss:$8 sps:$4 sm:$0xff]  }
 0x17e   : > { %v4096_v47 = vld [vmem:[%s4909_s23 + $0x664] ss:$8 sps:$4 sm:$0xff]  }
 0x180   : > { %3019 = vmatpush1.bf16.msra.mxu1 %v4007_v48  ;;  %3191 = vmatpush1.bf16.msra.mxu0 %v4010_v49  ;;  %v4091_v48 = vld [vmem:[%s4909_s23 + $0x260] ss:$8 sps:$4 sm:$0xff]  }
 0x181   : > { %3020 = vmatprep.subr.bf16.mxu1 %v4015_v50  ;;  %3192 = vmatprep.subr.bf16.mxu0 %v4018_v51  ;;  %v4094_v49 = vld [vmem:[%s4909_s23 + $0x660] ss:$8 sps:$4 sm:$0xff]   ;;  %v4099_v50 = vld [vmem:[%s4909_s23 + $0x274] ss:$8 sps:$4 sm:$0xff]  }
 0x182   : > { %v4102_v51 = vld [vmem:[%s4909_s23 + $0x674] ss:$8 sps:$4 sm:$0xff]  }
 0x184   : > { %3021 = vmatpush1.bf16.msra.mxu1 %v4013_v52  ;;  %3193 = vmatpush1.bf16.msra.mxu0 %v4016_v53  ;;  %v4097_v52 = vld [vmem:[%s4909_s23 + $0x270] ss:$8 sps:$4 sm:$0xff]  }
 0x185   : > { %3022 = vmatprep.subr.bf16.mxu1 %v4021_v54  ;;  %3194 = vmatprep.subr.bf16.mxu0 %v4024_v55  ;;  %v4100_v53 = vld [vmem:[%s4909_s23 + $0x670] ss:$8 sps:$4 sm:$0xff]   ;;  %v4105_v54 = vld [vmem:[%s4909_s23 + $0x284] ss:$8 sps:$4 sm:$0xff]  }
 0x186   : > { %v4108_v55 = vld [vmem:[%s4909_s23 + $0x684] ss:$8 sps:$4 sm:$0xff]  }
 0x188   : > { %3023 = vmatpush1.bf16.msra.mxu1 %v4019_v56  ;;  %3195 = vmatpush1.bf16.msra.mxu0 %v4022_v57  ;;  %v4103_v56 = vld [vmem:[%s4909_s23 + $0x280] ss:$8 sps:$4 sm:$0xff]  }
 0x189   : > { %3024 = vmatprep.subr.bf16.mxu1 %v4027_v58  ;;  %3196 = vmatprep.subr.bf16.mxu0 %v4030_v59  ;;  %v4106_v57 = vld [vmem:[%s4909_s23 + $0x680] ss:$8 sps:$4 sm:$0xff]   ;;  %v4111_v58 = vld [vmem:[%s4909_s23 + $0x294] ss:$8 sps:$4 sm:$0xff]  }
 0x18a   : > { %v4114_v59 = vld [vmem:[%s4909_s23 + $0x694] ss:$8 sps:$4 sm:$0xff]  }
 0x18c   : > { %3025 = vmatpush1.bf16.msra.mxu1 %v4025_v60  ;;  %3197 = vmatpush1.bf16.msra.mxu0 %v4028_v61  ;;  %v4109_v60 = vld [vmem:[%s4909_s23 + $0x290] ss:$8 sps:$4 sm:$0xff]  }
 0x18d   : > { %3026 = vmatprep.subr.bf16.mxu1 %v4033_v62  ;;  %3198 = vmatprep.subr.bf16.mxu0 %v4036_v63  ;;  %v4112_v61 = vld [vmem:[%s4909_s23 + $0x690] ss:$8 sps:$4 sm:$0xff]   ;;  %v4117_v62 = vld [vmem:[%s4909_s23 + $0x2a4] ss:$8 sps:$4 sm:$0xff]  }
 0x18e   : > { %v4120_v63 = vld [vmem:[%s4909_s23 + $0x6a4] ss:$8 sps:$4 sm:$0xff]  }
 0x190   : > { %3027 = vmatpush1.bf16.msra.mxu1 %v4031_v4  ;;  %3199 = vmatpush1.bf16.msra.mxu0 %v4034_v7  ;;  %v4115_v4 = vld [vmem:[%s4909_s23 + $0x2a0] ss:$8 sps:$4 sm:$0xff]  }
 0x191   : > { %3028 = vmatprep.subr.bf16.mxu1 %v4039_v8  ;;  %3200 = vmatprep.subr.bf16.mxu0 %v4042_v9  ;;  %v4118_v7 = vld [vmem:[%s4909_s23 + $0x6a0] ss:$8 sps:$4 sm:$0xff]   ;;  %v4123_v8 = vld [vmem:[%s4909_s23 + $0x2b4] ss:$8 sps:$4 sm:$0xff]  }
 0x192   : > { %v4126_v9 = vld [vmem:[%s4909_s23 + $0x6b4] ss:$8 sps:$4 sm:$0xff]  }
 0x194   : > { %3029 = vmatpush1.bf16.msra.mxu1 %v4037_v10  ;;  %3201 = vmatpush1.bf16.msra.mxu0 %v4040_v11  ;;  %v4121_v10 = vld [vmem:[%s4909_s23 + $0x2b0] ss:$8 sps:$4 sm:$0xff]  }
 0x195   : > { %3030 = vmatprep.subr.bf16.mxu1 %v4045_v12  ;;  %3202 = vmatprep.subr.bf16.mxu0 %v4048_v13  ;;  %v4124_v11 = vld [vmem:[%s4909_s23 + $0x6b0] ss:$8 sps:$4 sm:$0xff]   ;;  %v4129_v12 = vld [vmem:[%s4909_s23 + $0x2c4] ss:$8 sps:$4 sm:$0xff]  }
 0x196   : > { %v4132_v13 = vld [vmem:[%s4909_s23 + $0x6c4] ss:$8 sps:$4 sm:$0xff]  }
 0x198   : > { %3031 = vmatpush1.bf16.msra.mxu1 %v4043_v14  ;;  %3203 = vmatpush1.bf16.msra.mxu0 %v4046_v15  ;;  %v4127_v14 = vld [vmem:[%s4909_s23 + $0x2c0] ss:$8 sps:$4 sm:$0xff]  }
 0x199   : > { %3032 = vmatprep.subr.bf16.mxu1 %v4051_v16  ;;  %3204 = vmatprep.subr.bf16.mxu0 %v4054_v17  ;;  %v4130_v15 = vld [vmem:[%s4909_s23 + $0x6c0] ss:$8 sps:$4 sm:$0xff]   ;;  %v4135_v16 = vld [vmem:[%s4909_s23 + $0x2d4] ss:$8 sps:$4 sm:$0xff]  }
 0x19a   : > { %v4138_v17 = vld [vmem:[%s4909_s23 + $0x6d4] ss:$8 sps:$4 sm:$0xff]  }
 0x19c   : > { %3033 = vmatpush1.bf16.msra.mxu1 %v4049_v18  ;;  %3205 = vmatpush1.bf16.msra.mxu0 %v4052_v19  ;;  %v4133_v18 = vld [vmem:[%s4909_s23 + $0x2d0] ss:$8 sps:$4 sm:$0xff]  }
 0x19d   : > { %3045 = vmatprep.subr.bf16.mxu1 %v4057_v20  ;;  %3217 = vmatprep.subr.bf16.mxu0 %v4060_v21  ;;  %v4136_v19 = vld [vmem:[%s4909_s23 + $0x6d0] ss:$8 sps:$4 sm:$0xff]   ;;  %v4141_v20 = vld [vmem:[%s4909_s23 + $0x2e4] ss:$8 sps:$4 sm:$0xff]  }
 0x19e   : > { %v4144_v21 = vld [vmem:[%s4909_s23 + $0x6e4] ss:$8 sps:$4 sm:$0xff]  }
 0x19f   : > { %3035 = vmatmul.mubr.bf16.vlgmr.msra.gmra.mrb[0].mxu1 %v3514_v22  ;;  %3207 = vmatmul.mubr.bf16.vlgmr.msra.gmra.mrb[0].mxu0 %v3522_v24  ;;  %v4139_v22 = vld [vmem:[%s4909_s23 + $0x2e0] ss:$8 sps:$4 sm:$0xff]   ;;  %v4147_v24 = vld [vmem:[%s4909_s23 + $0x2f4] ss:$8 sps:$4 sm:$0xff]  }
 0x1a0   : > { %3046 = vmatpush1.bf16.msra.mxu1 %v4055_v23  ;;  %3218 = vmatpush1.bf16.msra.mxu0 %v4058_v0  ;;  %v4142_v23 = vld [vmem:[%s4909_s23 + $0x6e0] ss:$8 sps:$4 sm:$0xff]   ;;  %v4150_v0 = vld [vmem:[%s4909_s23 + $0x6f4] ss:$8 sps:$4 sm:$0xff]  }
 0x1a1   : > { %3047 = vmatprep.subr.bf16.mxu1 %v4063_v1  ;;  %3219 = vmatprep.subr.bf16.mxu0 %v4066_v2  ;;  %v4145_v1 = vld [vmem:[%s4909_s23 + $0x2f0] ss:$8 sps:$4 sm:$0xff]  }
 0x1a2   : > { %3077 = vmatprep.mubr.bf16.mxu1 %v3517_v25  ;;  %3249 = vmatprep.mubr.bf16.mxu0 %v3525_v30  ;;  %v4148_v2 = vld [vmem:[%s4909_s23 + $0x6f0] ss:$8 sps:$4 sm:$0xff]   ;;  %v4156_v25 = vld [vmem:[%s4909_s23 + $0x704] ss:$8 sps:$4 sm:$0xff]   ;;  %v3524_v30 = vcombine.low %v5096_v27, %v5101_v28  ;;  %v4159_v27 = vld [vmem:[%s4909_s23 + $0x314] ss:$8 sps:$4 sm:$0xff]  }
 0x1a3   : > { %v4162_v28 = vld [vmem:[%s4909_s23 + $0x714] ss:$8 sps:$4 sm:$0xff]  }
 0x1a4   : > { %3048 = vmatpush1.bf16.msra.mxu1 %v4061_v6  ;;  %3220 = vmatpush1.bf16.msra.mxu0 %v4064_v26  ;;  %v4153_v6 = vld [vmem:[%s4909_s23 + $0x304] ss:$8 sps:$4 sm:$0xff]   ;;  %v5166_v26 = vld [vmem:[%s5287_s0 + $0x18] sm:$0xff] }
 0x1a5   : > { %3049 = vmatprep.subr.bf16.mxu1 %v4069_v29  ;;  %3221 = vmatprep.subr.bf16.mxu0 %v4072_v31  ;;  %v3516_v29 = vcombine.low %v5082_v3, %v5087_v5  ;;  %v5175_v31 = vld [vmem:[%s5287_s0 + $0x58] sm:$0xff]  ;;  %v4151_v3 = vld [vmem:[%s4909_s23 + $0x300] ss:$8 sps:$4 sm:$0xff]  }
 0x1a6   : > { %v4154_v5 = vld [vmem:[%s4909_s23 + $0x700] ss:$8 sps:$4 sm:$0xff]  }
 0x1a8   : > { %3050 = vmatpush1.bf16.msra.mxu1 %v4067_v32  ;;  %3222 = vmatpush1.bf16.msra.mxu0 %v4070_v33  ;;  %v5180_v32 = vld [vmem:[%s5287_s0 + $0x38] sm:$0xff] }
 0x1a9   : > { %3051 = vmatprep.subr.bf16.mxu1 %v4075_v34  ;;  %3223 = vmatprep.subr.bf16.mxu0 %v4078_v35  ;;  %v5185_v33 = vld [vmem:[%s5287_s0 + $0x78] sm:$0xff]  ;;  %v3519_v34 = vcombine.high %v5166_v26, %v5175_v31 }
 0x1aa   : > { %v3527_v35 = vcombine.high %v5180_v32, %v5185_v33 }
 0x1ac   : > { %3052 = vmatpush1.bf16.msra.mxu1 %v4073_v36  ;;  %3224 = vmatpush1.bf16.msra.mxu0 %v4076_v37  ;;  %v4157_v36 = vld [vmem:[%s4909_s23 + $0x310] ss:$8 sps:$4 sm:$0xff]  }
 0x1ad   : > { %3053 = vmatprep.subr.bf16.mxu1 %v4081_v38  ;;  %3225 = vmatprep.subr.bf16.mxu0 %v4084_v39  ;;  %v4160_v37 = vld [vmem:[%s4909_s23 + $0x710] ss:$8 sps:$4 sm:$0xff]   ;;  %v4165_v38 = vld [vmem:[%s4909_s23 + $0x324] ss:$8 sps:$4 sm:$0xff]  }
 0x1ae   : > { %v4168_v39 = vld [vmem:[%s4909_s23 + $0x724] ss:$8 sps:$4 sm:$0xff]  }
 0x1b0   : > { %3054 = vmatpush1.bf16.msra.mxu1 %v4079_v40  ;;  %3226 = vmatpush1.bf16.msra.mxu0 %v4082_v41  ;;  %v4163_v40 = vld [vmem:[%s4909_s23 + $0x320] ss:$8 sps:$4 sm:$0xff]  }
 0x1b1   : > { %3055 = vmatprep.subr.bf16.mxu1 %v4087_v42  ;;  %3227 = vmatprep.subr.bf16.mxu0 %v4090_v43  ;;  %v4166_v41 = vld [vmem:[%s4909_s23 + $0x720] ss:$8 sps:$4 sm:$0xff]   ;;  %v4171_v42 = vld [vmem:[%s4909_s23 + $0x334] ss:$8 sps:$4 sm:$0xff]  }
 0x1b2   : > { %v4174_v43 = vld [vmem:[%s4909_s23 + $0x734] ss:$8 sps:$4 sm:$0xff]  }
 0x1b4   : > { %3056 = vmatpush1.bf16.msra.mxu1 %v4085_v44  ;;  %3228 = vmatpush1.bf16.msra.mxu0 %v4088_v45  ;;  %v4169_v44 = vld [vmem:[%s4909_s23 + $0x330] ss:$8 sps:$4 sm:$0xff]  }
 0x1b5   : > { %3057 = vmatprep.subr.bf16.mxu1 %v4093_v46  ;;  %3229 = vmatprep.subr.bf16.mxu0 %v4096_v47  ;;  %v4172_v45 = vld [vmem:[%s4909_s23 + $0x730] ss:$8 sps:$4 sm:$0xff]   ;;  %v4177_v46 = vld [vmem:[%s4909_s23 + $0x344] ss:$8 sps:$4 sm:$0xff]  }
 0x1b6   : > { %v4180_v47 = vld [vmem:[%s4909_s23 + $0x744] ss:$8 sps:$4 sm:$0xff]  }
 0x1b8   : > { %3058 = vmatpush1.bf16.msra.mxu1 %v4091_v48  ;;  %3230 = vmatpush1.bf16.msra.mxu0 %v4094_v49  ;;  %v4175_v48 = vld [vmem:[%s4909_s23 + $0x340] ss:$8 sps:$4 sm:$0xff]  }
 0x1b9   : > { %3059 = vmatprep.subr.bf16.mxu1 %v4099_v50  ;;  %3231 = vmatprep.subr.bf16.mxu0 %v4102_v51  ;;  %v4178_v49 = vld [vmem:[%s4909_s23 + $0x740] ss:$8 sps:$4 sm:$0xff]   ;;  %v4183_v50 = vld [vmem:[%s4909_s23 + $0x354] ss:$8 sps:$4 sm:$0xff]  }
 0x1ba   : > { %v4186_v51 = vld [vmem:[%s4909_s23 + $0x754] ss:$8 sps:$4 sm:$0xff]  }
 0x1bc   : > { %3060 = vmatpush1.bf16.msra.mxu1 %v4097_v52  ;;  %3232 = vmatpush1.bf16.msra.mxu0 %v4100_v53  ;;  %v4181_v52 = vld [vmem:[%s4909_s23 + $0x350] ss:$8 sps:$4 sm:$0xff]  }
 0x1bd   : > { %3061 = vmatprep.subr.bf16.mxu1 %v4105_v54  ;;  %3233 = vmatprep.subr.bf16.mxu0 %v4108_v55  ;;  %v4184_v53 = vld [vmem:[%s4909_s23 + $0x750] ss:$8 sps:$4 sm:$0xff]   ;;  %v4189_v54 = vld [vmem:[%s4909_s23 + $0x364] ss:$8 sps:$4 sm:$0xff]  }
 0x1be   : > { %v4192_v55 = vld [vmem:[%s4909_s23 + $0x764] ss:$8 sps:$4 sm:$0xff]  }
 0x1c0   : > { %3062 = vmatpush1.bf16.msra.mxu1 %v4103_v56  ;;  %3234 = vmatpush1.bf16.msra.mxu0 %v4106_v57  ;;  %v4187_v56 = vld [vmem:[%s4909_s23 + $0x360] ss:$8 sps:$4 sm:$0xff]  }
 0x1c1   : > { %3063 = vmatprep.subr.bf16.mxu1 %v4111_v58  ;;  %3235 = vmatprep.subr.bf16.mxu0 %v4114_v59  ;;  %v4190_v57 = vld [vmem:[%s4909_s23 + $0x760] ss:$8 sps:$4 sm:$0xff]   ;;  %v4195_v58 = vld [vmem:[%s4909_s23 + $0x374] ss:$8 sps:$4 sm:$0xff]  }
 0x1c2   : > { %v4198_v59 = vld [vmem:[%s4909_s23 + $0x774] ss:$8 sps:$4 sm:$0xff]  }
 0x1c4   : > { %3064 = vmatpush1.bf16.msra.mxu1 %v4109_v60  ;;  %3236 = vmatpush1.bf16.msra.mxu0 %v4112_v61  ;;  %v4193_v60 = vld [vmem:[%s4909_s23 + $0x370] ss:$8 sps:$4 sm:$0xff]  }
 0x1c5   : > { %3065 = vmatprep.subr.bf16.mxu1 %v4117_v62  ;;  %3237 = vmatprep.subr.bf16.mxu0 %v4120_v63  ;;  %v4196_v61 = vld [vmem:[%s4909_s23 + $0x770] ss:$8 sps:$4 sm:$0xff]   ;;  %v4201_v62 = vld [vmem:[%s4909_s23 + $0x384] ss:$8 sps:$4 sm:$0xff]  }
 0x1c6   : > { %v4204_v63 = vld [vmem:[%s4909_s23 + $0x784] ss:$8 sps:$4 sm:$0xff]  }
 0x1c8   : > { %3066 = vmatpush1.bf16.msra.mxu1 %v4115_v4  ;;  %3238 = vmatpush1.bf16.msra.mxu0 %v4118_v7  ;;  %v4199_v4 = vld [vmem:[%s4909_s23 + $0x380] ss:$8 sps:$4 sm:$0xff]  }
 0x1c9   : > { %3067 = vmatprep.subr.bf16.mxu1 %v4123_v8  ;;  %3239 = vmatprep.subr.bf16.mxu0 %v4126_v9  ;;  %v4202_v7 = vld [vmem:[%s4909_s23 + $0x780] ss:$8 sps:$4 sm:$0xff]   ;;  %v4207_v8 = vld [vmem:[%s4909_s23 + $0x394] ss:$8 sps:$4 sm:$0xff]  }
 0x1ca   : > { %v4210_v9 = vld [vmem:[%s4909_s23 + $0x794] ss:$8 sps:$4 sm:$0xff]  }
 0x1cc   : > { %3068 = vmatpush1.bf16.msra.mxu1 %v4121_v10  ;;  %3240 = vmatpush1.bf16.msra.mxu0 %v4124_v11  ;;  %v4205_v10 = vld [vmem:[%s4909_s23 + $0x390] ss:$8 sps:$4 sm:$0xff]  }
 0x1cd   : > { %3069 = vmatprep.subr.bf16.mxu1 %v4129_v12  ;;  %3241 = vmatprep.subr.bf16.mxu0 %v4132_v13  ;;  %v4208_v11 = vld [vmem:[%s4909_s23 + $0x790] ss:$8 sps:$4 sm:$0xff]   ;;  %v4213_v12 = vld [vmem:[%s4909_s23 + $0x3a4] ss:$8 sps:$4 sm:$0xff]  }
 0x1ce   : > { %v4216_v13 = vld [vmem:[%s4909_s23 + $0x7a4] ss:$8 sps:$4 sm:$0xff]  }
 0x1d0   : > { %3070 = vmatpush1.bf16.msra.mxu1 %v4127_v14  ;;  %3242 = vmatpush1.bf16.msra.mxu0 %v4130_v15  ;;  %v4211_v14 = vld [vmem:[%s4909_s23 + $0x3a0] ss:$8 sps:$4 sm:$0xff]  }
 0x1d1   : > { %3071 = vmatprep.subr.bf16.mxu1 %v4135_v16  ;;  %3243 = vmatprep.subr.bf16.mxu0 %v4138_v17  ;;  %v4214_v15 = vld [vmem:[%s4909_s23 + $0x7a0] ss:$8 sps:$4 sm:$0xff]   ;;  %v4219_v16 = vld [vmem:[%s4909_s23 + $0x3b4] ss:$8 sps:$4 sm:$0xff]  }
 0x1d2   : > { %v4222_v17 = vld [vmem:[%s4909_s23 + $0x7b4] ss:$8 sps:$4 sm:$0xff]  }
 0x1d4   : > { %3072 = vmatpush1.bf16.msra.mxu1 %v4133_v18  ;;  %3244 = vmatpush1.bf16.msra.mxu0 %v4136_v19  ;;  %v4217_v18 = vld [vmem:[%s4909_s23 + $0x3b0] ss:$8 sps:$4 sm:$0xff]  }
 0x1d5   : > { %3073 = vmatprep.subr.bf16.mxu1 %v4141_v20  ;;  %3245 = vmatprep.subr.bf16.mxu0 %v4144_v21  ;;  %v4220_v19 = vld [vmem:[%s4909_s23 + $0x7b0] ss:$8 sps:$4 sm:$0xff]   ;;  %v4225_v20 = vld [vmem:[%s4909_s23 + $0x3c4] ss:$8 sps:$4 sm:$0xff]  }
 0x1d6   : > { %v4228_v21 = vld [vmem:[%s4909_s23 + $0x7c4] ss:$8 sps:$4 sm:$0xff]  }
 0x1d8   : > { %3074 = vmatpush1.bf16.msra.mxu1 %v4139_v22  ;;  %3246 = vmatpush1.bf16.msra.mxu0 %v4142_v23  ;;  %v4223_v22 = vld [vmem:[%s4909_s23 + $0x3c0] ss:$8 sps:$4 sm:$0xff]  }
 0x1d9   : > { %3075 = vmatprep.subr.bf16.mxu1 %v4147_v24  ;;  %3247 = vmatprep.subr.bf16.mxu0 %v4150_v0  ;;  %v4226_v23 = vld [vmem:[%s4909_s23 + $0x7c0] ss:$8 sps:$4 sm:$0xff]   ;;  %v4231_v24 = vld [vmem:[%s4909_s23 + $0x3d4] ss:$8 sps:$4 sm:$0xff]  }
 0x1da   : > { %v4234_v0 = vld [vmem:[%s4909_s23 + $0x7d4] ss:$8 sps:$4 sm:$0xff]  }
 0x1dc   : > { %3076 = vmatpush1.bf16.msra.mxu1 %v4145_v1  ;;  %3248 = vmatpush1.bf16.msra.mxu0 %v4148_v2  ;;  %v4229_v1 = vld [vmem:[%s4909_s23 + $0x3d0] ss:$8 sps:$4 sm:$0xff]  }
 0x1dd   : > { %3088 = vmatprep.subr.bf16.mxu1 %v4153_v6  ;;  %3260 = vmatprep.subr.bf16.mxu0 %v4156_v25  ;;  %v4232_v2 = vld [vmem:[%s4909_s23 + $0x7d0] ss:$8 sps:$4 sm:$0xff]   ;;  %v4237_v6 = vld [vmem:[%s4909_s23 + $0x3e4] ss:$8 sps:$4 sm:$0xff]  }
 0x1de   : > { %v4240_v25 = vld [vmem:[%s4909_s23 + $0x7e4] ss:$8 sps:$4 sm:$0xff]  }
 0x1df   : > { %3078 = vmatmul.mubr.bf16.vlgmr.msra.gmra.mrb[0].mxu1 %v3516_v29  ;;  %3250 = vmatmul.mubr.bf16.vlgmr.msra.gmra.mrb[0].mxu0 %v3524_v30  ;;  %v4235_v29 = vld [vmem:[%s4909_s23 + $0x3e0] ss:$8 sps:$4 sm:$0xff]  }
 0x1e0   : > { %3089 = vmatpush1.bf16.msra.mxu1 %v4151_v3  ;;  %3261 = vmatpush1.bf16.msra.mxu0 %v4154_v5  ;;  %v4238_v30 = vld [vmem:[%s4909_s23 + $0x7e0] ss:$8 sps:$4 sm:$0xff]   ;;  %v4243_v3 = vld [vmem:[%s4909_s23 + $0x3f4] ss:$8 sps:$4 sm:$0xff]  }
 0x1e1   : > { %3090 = vmatprep.subr.bf16.mxu1 %v4159_v27  ;;  %3262 = vmatprep.subr.bf16.mxu0 %v4162_v28  ;;  %v4246_v5 = vld [vmem:[%s4909_s23 + $0x7f4] ss:$8 sps:$4 sm:$0xff]   ;;  %v4241_v27 = vld [vmem:[%s4909_s23 + $0x3f0] ss:$8 sps:$4 sm:$0xff]  }
 0x1e2   : > { %3120 = vmatprep.mubr.bf16.mxu1 %v3519_v34  ;;  %3292 = vmatprep.mubr.bf16.mxu0 %v3527_v35  ;;  %v4244_v28 = vld [vmem:[%s4909_s23 + $0x7f0] ss:$8 sps:$4 sm:$0xff]   ;;  %v3518_v34 = vcombine.low %v5166_v26, %v5175_v31  ;;  %v3526_v35 = vcombine.low %v5180_v32, %v5185_v33  ;;  %s1318_s23 = scalar_lea.vmem %s5289_s2, %s5300_s9  ;;  %v3319_v33 = vld [vmem:[%s1323_s14] sm:$0x3] }
 0x1e3   : > { %v3303_v31 = vld [vmem:[%s1318_s23] sm:$0x3] }
 0x1e4   : > { %3091 = vmatpush1.bf16.msra.mxu1 %v4157_v36  ;;  %3263 = vmatpush1.bf16.msra.mxu0 %v4160_v37  ;;  %v3305_v36 = vlaneseq }
 0x1e5   : > { %3092 = vmatprep.subr.bf16.mxu1 %v4165_v38  ;;  %3264 = vmatprep.subr.bf16.mxu0 %v4168_v39 }
 0x1e6   : > { %v3306_v37 = vshrl.u32 %v3305_v36, 7 }
 0x1e8   : > { %3093 = vmatpush1.bf16.msra.mxu1 %v4163_v40  ;;  %3265 = vmatpush1.bf16.msra.mxu0 %v4166_v41  ;;  %v3307_v26 = vsub.s32 0, %v3306_v37  ;;  %v3311_v32 = vsub.s32 1, %v3306_v37 }
 0x1e9   : > { %3094 = vmatprep.subr.bf16.mxu1 %v4171_v42  ;;  %3266 = vmatprep.subr.bf16.mxu0 %v4174_v43 }
 0x1ea   : > { %v3308_v38 = vrot.slane %v3303_v31, %v3307_v26  ;;  %v3312_v41 = vrot.slane %v3303_v31, %v3311_v32  ;;  %v3324_v43 = vrot.slane %v3319_v33, %v3307_v26 }
 0x1ec   : > { %3095 = vmatpush1.bf16.msra.mxu1 %v4169_v44  ;;  %3267 = vmatpush1.bf16.msra.mxu0 %v4172_v45 }
 0x1ed   : > { %3096 = vmatprep.subr.bf16.mxu1 %v4177_v46  ;;  %3268 = vmatprep.subr.bf16.mxu0 %v4180_v47  ;;  %v3328_v47 = vrot.slane %v3319_v33, %v3311_v32 }
 0x1f0   : > { %3097 = vmatpush1.bf16.msra.mxu1 %v4175_v48  ;;  %3269 = vmatpush1.bf16.msra.mxu0 %v4178_v49 }
 0x1f1   : > { %3098 = vmatprep.subr.bf16.mxu1 %v4183_v50  ;;  %3270 = vmatprep.subr.bf16.mxu0 %v4186_v51 }
 0x1f4   : > { %3099 = vmatpush1.bf16.msra.mxu1 %v4181_v52  ;;  %3271 = vmatpush1.bf16.msra.mxu0 %v4184_v53 }
 0x1f5   : > { %3100 = vmatprep.subr.bf16.mxu1 %v4189_v54  ;;  %3272 = vmatprep.subr.bf16.mxu0 %v4192_v55 }
 0x1f8   : > { %3101 = vmatpush1.bf16.msra.mxu1 %v4187_v56  ;;  %3273 = vmatpush1.bf16.msra.mxu0 %v4190_v57 }
 0x1f9   : > { %3102 = vmatprep.subr.bf16.mxu1 %v4195_v58  ;;  %3274 = vmatprep.subr.bf16.mxu0 %v4198_v59 }
 0x1fc   : > { %3103 = vmatpush1.bf16.msra.mxu1 %v4193_v60  ;;  %3275 = vmatpush1.bf16.msra.mxu0 %v4196_v61 }
 0x1fd   : > { %3104 = vmatprep.subr.bf16.mxu1 %v4201_v62  ;;  %3276 = vmatprep.subr.bf16.mxu0 %v4204_v63 }
 0x200   : > { %3105 = vmatpush1.bf16.msra.mxu1 %v4199_v4  ;;  %3277 = vmatpush1.bf16.msra.mxu0 %v4202_v7 }
 0x201   : > { %3106 = vmatprep.subr.bf16.mxu1 %v4207_v8  ;;  %3278 = vmatprep.subr.bf16.mxu0 %v4210_v9 }
 0x204   : > { %3107 = vmatpush1.bf16.msra.mxu1 %v4205_v10  ;;  %3279 = vmatpush1.bf16.msra.mxu0 %v4208_v11 }
 0x205   : > { %3108 = vmatprep.subr.bf16.mxu1 %v4213_v12  ;;  %3280 = vmatprep.subr.bf16.mxu0 %v4216_v13 }
 0x208   : > { %3109 = vmatpush1.bf16.msra.mxu1 %v4211_v14  ;;  %3281 = vmatpush1.bf16.msra.mxu0 %v4214_v15 }
 0x209   : > { %3110 = vmatprep.subr.bf16.mxu1 %v4219_v16  ;;  %3282 = vmatprep.subr.bf16.mxu0 %v4222_v17 }
 0x20c   : > { %3111 = vmatpush1.bf16.msra.mxu1 %v4217_v18  ;;  %3283 = vmatpush1.bf16.msra.mxu0 %v4220_v19 }
 0x20d   : > { %3112 = vmatprep.subr.bf16.mxu1 %v4225_v20  ;;  %3284 = vmatprep.subr.bf16.mxu0 %v4228_v21 }
 0x210   : > { %3113 = vmatpush1.bf16.msra.mxu1 %v4223_v22  ;;  %3285 = vmatpush1.bf16.msra.mxu0 %v4226_v23 }
 0x211   : > { %3114 = vmatprep.subr.bf16.mxu1 %v4231_v24  ;;  %3286 = vmatprep.subr.bf16.mxu0 %v4234_v0 }
 0x214   : > { %3115 = vmatpush1.bf16.msra.mxu1 %v4229_v1  ;;  %3287 = vmatpush1.bf16.msra.mxu0 %v4232_v2 }
 0x215   : > { %3116 = vmatprep.subr.bf16.mxu1 %v4237_v6  ;;  %3288 = vmatprep.subr.bf16.mxu0 %v4240_v25 }
 0x218   : > { %3117 = vmatpush1.bf16.msra.mxu1 %v4235_v29  ;;  %3289 = vmatpush1.bf16.msra.mxu0 %v4238_v30 }
 0x219   : > { %3118 = vmatprep.subr.bf16.mxu1 %v4243_v3  ;;  %3290 = vmatprep.subr.bf16.mxu0 %v4246_v5 }
 0x21c   : > { %3119 = vmatpush1.bf16.msra.mxu1 %v4241_v27  ;;  %3291 = vmatpush1.bf16.msra.mxu0 %v4244_v28 }
 0x21f   : > { %3121 = vmatmul.mubr.bf16.vlgmr.msra.gmra.mrb[0].mxu1 %v3518_v34  ;;  %3293 = vmatmul.mubr.bf16.vlgmr.msra.gmra.mrb[0].mxu0 %v3526_v35 }
 0x2f2   : > { %v3122_v39 = vpop.f32.mrb[0].mxu1  ;;  %v3294_v40 = vpop.f32.mrb[0].mxu0 }
 0x2f3   : > { %v3795_v42 = vadd.f32 %v3294_v40, %v3122_v39  ;;  %v3124_v44 = vpop.f32.mrb[1].mxu1  ;;  %v3296_v45 = vpop.f32.mrb[1].mxu0 }
 0x2f4   : > { %v3796_v46 = vadd.f32 %v3296_v45, %v3124_v44  ;;  %v3126_v48 = vpop.f32.mrb[2].mxu1  ;;  %v3298_v49 = vpop.f32.mrb[2].mxu0 }
 0x2f5   : > { %v3315_v50 = vmul.f32 %v3795_v42, %v3308_v38  ;;  %v3797_v51 = vadd.f32 %v3298_v49, %v3126_v48  ;;  %v3128_v52 = vpop.f32.mrb[3].mxu1  ;;  %v3300_v53 = vpop.f32.mrb[3].mxu0 }
 0x2f6   : > { %v3316_v54 = vmul.f32 %v3796_v46, %v3312_v41  ;;  %v3798_v55 = vadd.f32 %v3300_v53, %v3128_v52 }
 0x2f7   : > { %v3331_v56 = vadd.f32 %v3324_v43, %v3315_v50  ;;  %v3317_v57 = vmul.f32 %v3797_v51, %v3308_v38 }
 0x2f8   : > { %v3332_v58 = vadd.f32 %v3328_v47, %v3316_v54  ;;  %v3318_v59 = vmul.f32 %v3798_v55, %v3312_v41  ;;  %3355 = sbr.rel (!%p4347_p6) target bundleno = 775 (0x307), region = 78 }
 0x2f9   : > { %v3333_v60 = vadd.f32 %v3324_v43, %v3317_v57 }
 0x2fa   : > { %v3792_v61 = vpack.c.bf16 %v3332_v58, %v3331_v56  ;;  %v3334_v62 = vadd.f32 %v3328_v47, %v3318_v59 }
 0x2fc   : > { %3347 = vst [vmem:[%s1306_s22] sm:$0xff] %v3792_v61  ;;  %v3793_v63 = vpack.c.bf16 %v3334_v62, %v3333_v60 }
 0x2fe   : > { %3348 = vst [vmem:[%s1306_s22 + $0x8] sm:$0xff] %v3793_v63 }
 0x303   : > { %v3391_v4 = vld [vmem:[%s1306_s22] sm:$0xff] }
 0x304   : > { %3392 = vst [vmem:[%s3361_s27] sm:$0xff] %v3391_v4 }
 0x305   : > { %v3393_v7 = vld [vmem:[%s1306_s22 + $0x8] sm:$0xff] }
 0x306   : > { %3394 = vst [vmem:[%s3361_s27 + $0x20] sm:$0xff] %v3393_v7 }
 0x307 PF: > { %s14_s19 = sadd.s32 1, %s4285_s19   ;;  %s5293_s15 = smov %s4273_s16 }
 0x308   : > { %p11_p12 = scmp.ge.s32.totalorder %s14_s19, 6   ;;  %s5294_s16 = smov %s4352_s25 }
 0x309   : > { %s5295_s17 = smov %s4281_s18  ;;  %s5296_s18 = smov %s5298_s20 }
 0x30a   :  { %13 = sbr.rel (!%p11_p12) target bundleno = 3 (0x3), region = 156 }

// kernel: autoencoder_forward.14
= control target key start
LH: loop header
LB: loop body
LE: loop exit
PB: predicated region body
PF: predicated region fallthrough
CT: control target
= control target key end

     0   :  { %s2468_s15 = smov 0   ;;  %s2470_s16 = smov 0   ;;  %s3003_s0 = inlined_call_operand.vmem [shape: bf16[16,1024], index: 0, kind: input, shape index: {}]   ;;  %s3004_s1 = inlined_call_operand.vmem [shape: bf16[1024,512], index: 1, kind: input, shape index: {}]   ;;  %s3005_s2 = inlined_call_operand.vmem [shape: f32[1,512], index: 2, kind: input, shape index: {}]   ;;  %s3006_s3 = inlined_call_operand.vmem [shape: f32[1,512], index: 3, kind: input, shape index: {}]   ;;  %s3007_s4 = inlined_call_operand.vmem [shape: bf16[16,512], index: 4, kind: output, shape index: {}]  }
   0x1   :  { %s2472_s17 = smov 0   ;;  %s2474_s18 = smov 0  }
   0x2   :  { %s2476_s19 = smov 0  }
   0x3 LB: > { %s23_s20 = sadd.s32 1, %s2437_s18  ;;  %s1999_s21 = sadd.s32 4294967295, %s2441_s19   ;;  %s2441_s19 = sphi %s2476_s19, %s14_s19   ;;  %s2437_s18 = sphi %s2474_s18, %s3012_s18   ;;  %s2433_s17 = sphi %s2472_s17, %s3011_s17   ;;  %s2429_s16 = sphi %s2470_s16, %s3010_s16   ;;  %s2425_s15 = sphi %s2468_s15, %s3009_s15  }
   0x4   : > { %p24_p0 = scmp.ge.s32.totalorder %s23_s20, 2  ;;  %p66_p1 = scmp.ne.s32.totalorder %s2429_s16, %s2425_s15 }
   0x5   : > { %p67_p2 = scmp.eq.s32.totalorder %s2441_s19, 0  ;;  %p150_p4 = scmp.eq.s32.totalorder %s1999_s21, 1 }
   0x6   : > { %s3014_s20 = smov (%p24_p0, %s23_s20), 0  ;;  %s59_s23 = sadd.s32 1, %s2429_s16 }
   0x7   : > { %p68_p3 = por %p67_p2, %p66_p1  ;;  %s56_s22 = ssub.s32 %s2437_s18, %s3014_s20 }
   0x8   : > { %p57_p5 = scmp.eq.s32.totalorder %s56_s22, 0  ;;  %p2503_p6 = por %p150_p4, %p66_p1 }
   0x9   : > { %p2003_p7 = scmp.ge.s32.totalorder %s2441_s19, 2 }
   0xa   : > { %s2508_s25 = scalar_select %p57_p5, %s2429_s16, %s59_s23  }
   0xb   : > { %182 = sbr.rel (%p2003_p7) target bundleno = 86 (0x56), region = 20 }
  0x12   : > { %185 = sbr.rel (!%p68_p3) target bundleno = 86 (0x56), region = 24  ;;  %s187_s26 = sand.u32 (%p68_p3), 1, %s2429_s16  }
  0x13   : > { %s2155_s27 = sshll.u32 (%p68_p3), %s2437_s18, 3  ;;  %s2004_s28 = sshll.u32 (%p68_p3), %s187_s26, 10 }
  0x14   : > { %s2516_s5 = scalar_lea.vmem (%p68_p3), %s3004_s1, %s2155_s27  ;;  %s2521_s6 = scalar_lea.vmem (%p68_p3), [#allocation2], %s2004_s28 }
  0x15   : > { %v474_v0 = vld [vmem:[%s2516_s5] sm:$0xff] (%p68_p3)  ;;  %v476_v1 = vld [vmem:[%s2516_s5 + $0x10] sm:$0xff] (%p68_p3) }
  0x16   : > { %v478_v2 = vld [vmem:[%s2516_s5 + $0x20] sm:$0xff] (%p68_p3)  ;;  %475 = vst [vmem:[%s2521_s6] sm:$0xff] (%p68_p3), %v474_v0  ;;  %477 = vst [vmem:[%s2521_s6 + $0x8] sm:$0xff] (%p68_p3), %v476_v1  ;;  %v480_v3 = vld [vmem:[%s2516_s5 + $0x30] sm:$0xff] (%p68_p3) }
  0x17   : > { %479 = vst [vmem:[%s2521_s6 + $0x10] sm:$0xff] (%p68_p3), %v478_v2  ;;  %v482_v4 = vld [vmem:[%s2516_s5 + $0x40] sm:$0xff] (%p68_p3)  ;;  %v484_v5 = vld [vmem:[%s2516_s5 + $0x50] sm:$0xff] (%p68_p3)  ;;  %481 = vst [vmem:[%s2521_s6 + $0x18] sm:$0xff] (%p68_p3), %v480_v3 }
  0x18   : > { %483 = vst [vmem:[%s2521_s6 + $0x20] sm:$0xff] (%p68_p3), %v482_v4  ;;  %485 = vst [vmem:[%s2521_s6 + $0x28] sm:$0xff] (%p68_p3), %v484_v5  ;;  %v486_v6 = vld [vmem:[%s2516_s5 + $0x60] sm:$0xff] (%p68_p3)  ;;  %v488_v7 = vld [vmem:[%s2516_s5 + $0x70] sm:$0xff] (%p68_p3) }
  0x19   : > { %v490_v8 = vld [vmem:[%s2516_s5 + $0x80] sm:$0xff]  ;;  %487 = vst [vmem:[%s2521_s6 + $0x30] sm:$0xff] %v486_v6  ;;  %489 = vst [vmem:[%s2521_s6 + $0x38] sm:$0xff] %v488_v7  ;;  %v492_v9 = vld [vmem:[%s2516_s5 + $0x90] sm:$0xff] }
  0x1a   : > { %491 = vst [vmem:[%s2521_s6 + $0x40] sm:$0xff] %v490_v8  ;;  %v494_v10 = vld [vmem:[%s2516_s5 + $0xa0] sm:$0xff]  ;;  %v496_v11 = vld [vmem:[%s2516_s5 + $0xb0] sm:$0xff]  ;;  %493 = vst [vmem:[%s2521_s6 + $0x48] sm:$0xff] %v492_v9 }
  0x1b   : > { %495 = vst [vmem:[%s2521_s6 + $0x50] sm:$0xff] %v494_v10  ;;  %497 = vst [vmem:[%s2521_s6 + $0x58] sm:$0xff] %v496_v11  ;;  %v498_v12 = vld [vmem:[%s2516_s5 + $0xc0] sm:$0xff]  ;;  %v500_v13 = vld [vmem:[%s2516_s5 + $0xd0] sm:$0xff] }
  0x1c   : > { %v502_v14 = vld [vmem:[%s2516_s5 + $0xe0] sm:$0xff]  ;;  %499 = vst [vmem:[%s2521_s6 + $0x60] sm:$0xff] %v498_v12  ;;  %501 = vst [vmem:[%s2521_s6 + $0x68] sm:$0xff] %v500_v13  ;;  %v504_v15 = vld [vmem:[%s2516_s5 + $0xf0] sm:$0xff] }
  0x1d   : > { %503 = vst [vmem:[%s2521_s6 + $0x70] sm:$0xff] %v502_v14  ;;  %v506_v16 = vld [vmem:[%s2516_s5 + $0x100] sm:$0xff]  ;;  %v508_v17 = vld [vmem:[%s2516_s5 + $0x110] sm:$0xff]  ;;  %505 = vst [vmem:[%s2521_s6 + $0x78] sm:$0xff] %v504_v15 }
  0x1e   : > { %507 = vst [vmem:[%s2521_s6 + $0x80] sm:$0xff] %v506_v16  ;;  %509 = vst [vmem:[%s2521_s6 + $0x88] sm:$0xff] %v508_v17  ;;  %v510_v18 = vld [vmem:[%s2516_s5 + $0x120] sm:$0xff]  ;;  %v512_v19 = vld [vmem:[%s2516_s5 + $0x130] sm:$0xff] }
  0x1f   : > { %v514_v20 = vld [vmem:[%s2516_s5 + $0x140] sm:$0xff]  ;;  %511 = vst [vmem:[%s2521_s6 + $0x90] sm:$0xff] %v510_v18  ;;  %513 = vst [vmem:[%s2521_s6 + $0x98] sm:$0xff] %v512_v19  ;;  %v516_v21 = vld [vmem:[%s2516_s5 + $0x150] sm:$0xff] }
  0x20   : > { %515 = vst [vmem:[%s2521_s6 + $0xa0] sm:$0xff] %v514_v20  ;;  %v518_v22 = vld [vmem:[%s2516_s5 + $0x160] sm:$0xff]  ;;  %v520_v23 = vld [vmem:[%s2516_s5 + $0x170] sm:$0xff]  ;;  %517 = vst [vmem:[%s2521_s6 + $0xa8] sm:$0xff] %v516_v21 }
  0x21   : > { %519 = vst [vmem:[%s2521_s6 + $0xb0] sm:$0xff] %v518_v22  ;;  %521 = vst [vmem:[%s2521_s6 + $0xb8] sm:$0xff] %v520_v23  ;;  %v522_v24 = vld [vmem:[%s2516_s5 + $0x180] sm:$0xff]  ;;  %v524_v25 = vld [vmem:[%s2516_s5 + $0x190] sm:$0xff] }
  0x22   : > { %v526_v26 = vld [vmem:[%s2516_s5 + $0x1a0] sm:$0xff]  ;;  %523 = vst [vmem:[%s2521_s6 + $0xc0] sm:$0xff] %v522_v24  ;;  %525 = vst [vmem:[%s2521_s6 + $0xc8] sm:$0xff] %v524_v25  ;;  %v528_v27 = vld [vmem:[%s2516_s5 + $0x1b0] sm:$0xff] }
  0x23   : > { %527 = vst [vmem:[%s2521_s6 + $0xd0] sm:$0xff] %v526_v26  ;;  %v530_v28 = vld [vmem:[%s2516_s5 + $0x1c0] sm:$0xff]  ;;  %v532_v29 = vld [vmem:[%s2516_s5 + $0x1d0] sm:$0xff]  ;;  %529 = vst [vmem:[%s2521_s6 + $0xd8] sm:$0xff] %v528_v27 }
  0x24   : > { %531 = vst [vmem:[%s2521_s6 + $0xe0] sm:$0xff] %v530_v28  ;;  %533 = vst [vmem:[%s2521_s6 + $0xe8] sm:$0xff] %v532_v29  ;;  %v534_v30 = vld [vmem:[%s2516_s5 + $0x1e0] sm:$0xff]  ;;  %v536_v31 = vld [vmem:[%s2516_s5 + $0x1f0] sm:$0xff] }
  0x25   : > { %v538_v32 = vld [vmem:[%s2516_s5 + $0x200] sm:$0xff]  ;;  %535 = vst [vmem:[%s2521_s6 + $0xf0] sm:$0xff] %v534_v30  ;;  %537 = vst [vmem:[%s2521_s6 + $0xf8] sm:$0xff] %v536_v31  ;;  %v540_v33 = vld [vmem:[%s2516_s5 + $0x210] sm:$0xff] }
  0x26   : > { %539 = vst [vmem:[%s2521_s6 + $0x100] sm:$0xff] %v538_v32  ;;  %v542_v34 = vld [vmem:[%s2516_s5 + $0x220] sm:$0xff]  ;;  %v544_v35 = vld [vmem:[%s2516_s5 + $0x230] sm:$0xff]  ;;  %541 = vst [vmem:[%s2521_s6 + $0x108] sm:$0xff] %v540_v33 }
  0x27   : > { %543 = vst [vmem:[%s2521_s6 + $0x110] sm:$0xff] %v542_v34  ;;  %545 = vst [vmem:[%s2521_s6 + $0x118] sm:$0xff] %v544_v35  ;;  %v546_v36 = vld [vmem:[%s2516_s5 + $0x240] sm:$0xff]  ;;  %v548_v37 = vld [vmem:[%s2516_s5 + $0x250] sm:$0xff] }
  0x28   : > { %v550_v38 = vld [vmem:[%s2516_s5 + $0x260] sm:$0xff]  ;;  %547 = vst [vmem:[%s2521_s6 + $0x120] sm:$0xff] %v546_v36  ;;  %549 = vst [vmem:[%s2521_s6 + $0x128] sm:$0xff] %v548_v37  ;;  %v552_v39 = vld [vmem:[%s2516_s5 + $0x270] sm:$0xff] }
  0x29   : > { %551 = vst [vmem:[%s2521_s6 + $0x130] sm:$0xff] %v550_v38  ;;  %v554_v40 = vld [vmem:[%s2516_s5 + $0x280] sm:$0xff]  ;;  %v556_v41 = vld [vmem:[%s2516_s5 + $0x290] sm:$0xff]  ;;  %553 = vst [vmem:[%s2521_s6 + $0x138] sm:$0xff] %v552_v39 }
  0x2a   : > { %555 = vst [vmem:[%s2521_s6 + $0x140] sm:$0xff] %v554_v40  ;;  %557 = vst [vmem:[%s2521_s6 + $0x148] sm:$0xff] %v556_v41  ;;  %v558_v42 = vld [vmem:[%s2516_s5 + $0x2a0] sm:$0xff]  ;;  %v560_v43 = vld [vmem:[%s2516_s5 + $0x2b0] sm:$0xff] }
  0x2b   : > { %v562_v44 = vld [vmem:[%s2516_s5 + $0x2c0] sm:$0xff]  ;;  %559 = vst [vmem:[%s2521_s6 + $0x150] sm:$0xff] %v558_v42  ;;  %561 = vst [vmem:[%s2521_s6 + $0x158] sm:$0xff] %v560_v43  ;;  %v564_v45 = vld [vmem:[%s2516_s5 + $0x2d0] sm:$0xff] }
  0x2c   : > { %563 = vst [vmem:[%s2521_s6 + $0x160] sm:$0xff] %v562_v44  ;;  %v566_v46 = vld [vmem:[%s2516_s5 + $0x2e0] sm:$0xff]  ;;  %v568_v47 = vld [vmem:[%s2516_s5 + $0x2f0] sm:$0xff]  ;;  %565 = vst [vmem:[%s2521_s6 + $0x168] sm:$0xff] %v564_v45 }
  0x2d   : > { %567 = vst [vmem:[%s2521_s6 + $0x170] sm:$0xff] %v566_v46  ;;  %569 = vst [vmem:[%s2521_s6 + $0x178] sm:$0xff] %v568_v47  ;;  %v570_v48 = vld [vmem:[%s2516_s5 + $0x300] sm:$0xff]  ;;  %v572_v49 = vld [vmem:[%s2516_s5 + $0x310] sm:$0xff] }
  0x2e   : > { %v574_v50 = vld [vmem:[%s2516_s5 + $0x320] sm:$0xff]  ;;  %571 = vst [vmem:[%s2521_s6 + $0x180] sm:$0xff] %v570_v48  ;;  %573 = vst [vmem:[%s2521_s6 + $0x188] sm:$0xff] %v572_v49  ;;  %v576_v51 = vld [vmem:[%s2516_s5 + $0x330] sm:$0xff] }
  0x2f   : > { %575 = vst [vmem:[%s2521_s6 + $0x190] sm:$0xff] %v574_v50  ;;  %v578_v52 = vld [vmem:[%s2516_s5 + $0x340] sm:$0xff]  ;;  %v580_v53 = vld [vmem:[%s2516_s5 + $0x350] sm:$0xff]  ;;  %577 = vst [vmem:[%s2521_s6 + $0x198] sm:$0xff] %v576_v51 }
  0x30   : > { %579 = vst [vmem:[%s2521_s6 + $0x1a0] sm:$0xff] %v578_v52  ;;  %581 = vst [vmem:[%s2521_s6 + $0x1a8] sm:$0xff] %v580_v53  ;;  %v582_v54 = vld [vmem:[%s2516_s5 + $0x360] sm:$0xff]  ;;  %v584_v55 = vld [vmem:[%s2516_s5 + $0x370] sm:$0xff] }
  0x31   : > { %v586_v56 = vld [vmem:[%s2516_s5 + $0x380] sm:$0xff]  ;;  %583 = vst [vmem:[%s2521_s6 + $0x1b0] sm:$0xff] %v582_v54  ;;  %585 = vst [vmem:[%s2521_s6 + $0x1b8] sm:$0xff] %v584_v55  ;;  %v588_v57 = vld [vmem:[%s2516_s5 + $0x390] sm:$0xff] }
  0x32   : > { %587 = vst [vmem:[%s2521_s6 + $0x1c0] sm:$0xff] %v586_v56  ;;  %v590_v58 = vld [vmem:[%s2516_s5 + $0x3a0] sm:$0xff]  ;;  %v592_v59 = vld [vmem:[%s2516_s5 + $0x3b0] sm:$0xff]  ;;  %589 = vst [vmem:[%s2521_s6 + $0x1c8] sm:$0xff] %v588_v57 }
  0x33   : > { %591 = vst [vmem:[%s2521_s6 + $0x1d0] sm:$0xff] %v590_v58  ;;  %593 = vst [vmem:[%s2521_s6 + $0x1d8] sm:$0xff] %v592_v59  ;;  %v594_v60 = vld [vmem:[%s2516_s5 + $0x3c0] sm:$0xff]  ;;  %v596_v61 = vld [vmem:[%s2516_s5 + $0x3d0] sm:$0xff] }
  0x34   : > { %v598_v62 = vld [vmem:[%s2516_s5 + $0x3e0] sm:$0xff]  ;;  %595 = vst [vmem:[%s2521_s6 + $0x1e0] sm:$0xff] %v594_v60  ;;  %597 = vst [vmem:[%s2521_s6 + $0x1e8] sm:$0xff] %v596_v61  ;;  %v600_v63 = vld [vmem:[%s2516_s5 + $0x3f0] sm:$0xff] }
  0x35   : > { %599 = vst [vmem:[%s2521_s6 + $0x1f0] sm:$0xff] %v598_v62  ;;  %v602_v0 = vld [vmem:[%s2516_s5 + $0x400] sm:$0xff]  ;;  %v604_v1 = vld [vmem:[%s2516_s5 + $0x410] sm:$0xff]  ;;  %601 = vst [vmem:[%s2521_s6 + $0x1f8] sm:$0xff] %v600_v63 }
  0x36   : > { %603 = vst [vmem:[%s2521_s6 + $0x200] sm:$0xff] %v602_v0  ;;  %605 = vst [vmem:[%s2521_s6 + $0x208] sm:$0xff] %v604_v1  ;;  %v606_v2 = vld [vmem:[%s2516_s5 + $0x420] sm:$0xff]  ;;  %v608_v3 = vld [vmem:[%s2516_s5 + $0x430] sm:$0xff] }
  0x37   : > { %v610_v4 = vld [vmem:[%s2516_s5 + $0x440] sm:$0xff]  ;;  %607 = vst [vmem:[%s2521_s6 + $0x210] sm:$0xff] %v606_v2  ;;  %609 = vst [vmem:[%s2521_s6 + $0x218] sm:$0xff] %v608_v3  ;;  %v612_v5 = vld [vmem:[%s2516_s5 + $0x450] sm:$0xff] }
  0x38   : > { %611 = vst [vmem:[%s2521_s6 + $0x220] sm:$0xff] %v610_v4  ;;  %v614_v6 = vld [vmem:[%s2516_s5 + $0x460] sm:$0xff]  ;;  %v616_v7 = vld [vmem:[%s2516_s5 + $0x470] sm:$0xff]  ;;  %613 = vst [vmem:[%s2521_s6 + $0x228] sm:$0xff] %v612_v5 }
  0x39   : > { %615 = vst [vmem:[%s2521_s6 + $0x230] sm:$0xff] %v614_v6  ;;  %617 = vst [vmem:[%s2521_s6 + $0x238] sm:$0xff] %v616_v7  ;;  %v618_v8 = vld [vmem:[%s2516_s5 + $0x480] sm:$0xff]  ;;  %v620_v9 = vld [vmem:[%s2516_s5 + $0x490] sm:$0xff] }
  0x3a   : > { %v622_v10 = vld [vmem:[%s2516_s5 + $0x4a0] sm:$0xff]  ;;  %619 = vst [vmem:[%s2521_s6 + $0x240] sm:$0xff] %v618_v8  ;;  %621 = vst [vmem:[%s2521_s6 + $0x248] sm:$0xff] %v620_v9  ;;  %v624_v11 = vld [vmem:[%s2516_s5 + $0x4b0] sm:$0xff] }
  0x3b   : > { %623 = vst [vmem:[%s2521_s6 + $0x250] sm:$0xff] %v622_v10  ;;  %v626_v12 = vld [vmem:[%s2516_s5 + $0x4c0] sm:$0xff]  ;;  %v628_v13 = vld [vmem:[%s2516_s5 + $0x4d0] sm:$0xff]  ;;  %625 = vst [vmem:[%s2521_s6 + $0x258] sm:$0xff] %v624_v11 }
  0x3c   : > { %627 = vst [vmem:[%s2521_s6 + $0x260] sm:$0xff] %v626_v12  ;;  %629 = vst [vmem:[%s2521_s6 + $0x268] sm:$0xff] %v628_v13  ;;  %v630_v14 = vld [vmem:[%s2516_s5 + $0x4e0] sm:$0xff]  ;;  %v632_v15 = vld [vmem:[%s2516_s5 + $0x4f0] sm:$0xff] }
  0x3d   : > { %v634_v16 = vld [vmem:[%s2516_s5 + $0x500] sm:$0xff]  ;;  %631 = vst [vmem:[%s2521_s6 + $0x270] sm:$0xff] %v630_v14  ;;  %633 = vst [vmem:[%s2521_s6 + $0x278] sm:$0xff] %v632_v15  ;;  %v636_v17 = vld [vmem:[%s2516_s5 + $0x510] sm:$0xff] }
  0x3e   : > { %635 = vst [vmem:[%s2521_s6 + $0x280] sm:$0xff] %v634_v16  ;;  %v638_v18 = vld [vmem:[%s2516_s5 + $0x520] sm:$0xff]  ;;  %v640_v19 = vld [vmem:[%s2516_s5 + $0x530] sm:$0xff]  ;;  %637 = vst [vmem:[%s2521_s6 + $0x288] sm:$0xff] %v636_v17 }
  0x3f   : > { %639 = vst [vmem:[%s2521_s6 + $0x290] sm:$0xff] %v638_v18  ;;  %641 = vst [vmem:[%s2521_s6 + $0x298] sm:$0xff] %v640_v19  ;;  %v642_v20 = vld [vmem:[%s2516_s5 + $0x540] sm:$0xff]  ;;  %v644_v21 = vld [vmem:[%s2516_s5 + $0x550] sm:$0xff] }
  0x40   : > { %v646_v22 = vld [vmem:[%s2516_s5 + $0x560] sm:$0xff]  ;;  %643 = vst [vmem:[%s2521_s6 + $0x2a0] sm:$0xff] %v642_v20  ;;  %645 = vst [vmem:[%s2521_s6 + $0x2a8] sm:$0xff] %v644_v21  ;;  %v648_v23 = vld [vmem:[%s2516_s5 + $0x570] sm:$0xff] }
  0x41   : > { %647 = vst [vmem:[%s2521_s6 + $0x2b0] sm:$0xff] %v646_v22  ;;  %v650_v24 = vld [vmem:[%s2516_s5 + $0x580] sm:$0xff]  ;;  %v652_v25 = vld [vmem:[%s2516_s5 + $0x590] sm:$0xff]  ;;  %649 = vst [vmem:[%s2521_s6 + $0x2b8] sm:$0xff] %v648_v23 }
  0x42   : > { %651 = vst [vmem:[%s2521_s6 + $0x2c0] sm:$0xff] %v650_v24  ;;  %653 = vst [vmem:[%s2521_s6 + $0x2c8] sm:$0xff] %v652_v25  ;;  %v654_v26 = vld [vmem:[%s2516_s5 + $0x5a0] sm:$0xff]  ;;  %v656_v27 = vld [vmem:[%s2516_s5 + $0x5b0] sm:$0xff] }
  0x43   : > { %v658_v28 = vld [vmem:[%s2516_s5 + $0x5c0] sm:$0xff]  ;;  %655 = vst [vmem:[%s2521_s6 + $0x2d0] sm:$0xff] %v654_v26  ;;  %657 = vst [vmem:[%s2521_s6 + $0x2d8] sm:$0xff] %v656_v27  ;;  %v660_v29 = vld [vmem:[%s2516_s5 + $0x5d0] sm:$0xff] }
  0x44   : > { %659 = vst [vmem:[%s2521_s6 + $0x2e0] sm:$0xff] %v658_v28  ;;  %v662_v30 = vld [vmem:[%s2516_s5 + $0x5e0] sm:$0xff]  ;;  %v664_v31 = vld [vmem:[%s2516_s5 + $0x5f0] sm:$0xff]  ;;  %661 = vst [vmem:[%s2521_s6 + $0x2e8] sm:$0xff] %v660_v29 }
  0x45   : > { %663 = vst [vmem:[%s2521_s6 + $0x2f0] sm:$0xff] %v662_v30  ;;  %665 = vst [vmem:[%s2521_s6 + $0x2f8] sm:$0xff] %v664_v31  ;;  %v666_v32 = vld [vmem:[%s2516_s5 + $0x600] sm:$0xff]  ;;  %v668_v33 = vld [vmem:[%s2516_s5 + $0x610] sm:$0xff] }
  0x46   : > { %v670_v34 = vld [vmem:[%s2516_s5 + $0x620] sm:$0xff]  ;;  %667 = vst [vmem:[%s2521_s6 + $0x300] sm:$0xff] %v666_v32  ;;  %669 = vst [vmem:[%s2521_s6 + $0x308] sm:$0xff] %v668_v33  ;;  %v672_v35 = vld [vmem:[%s2516_s5 + $0x630] sm:$0xff] }
  0x47   : > { %671 = vst [vmem:[%s2521_s6 + $0x310] sm:$0xff] %v670_v34  ;;  %v674_v36 = vld [vmem:[%s2516_s5 + $0x640] sm:$0xff]  ;;  %v676_v37 = vld [vmem:[%s2516_s5 + $0x650] sm:$0xff]  ;;  %673 = vst [vmem:[%s2521_s6 + $0x318] sm:$0xff] %v672_v35 }
  0x48   : > { %675 = vst [vmem:[%s2521_s6 + $0x320] sm:$0xff] %v674_v36  ;;  %677 = vst [vmem:[%s2521_s6 + $0x328] sm:$0xff] %v676_v37  ;;  %v678_v38 = vld [vmem:[%s2516_s5 + $0x660] sm:$0xff]  ;;  %v680_v39 = vld [vmem:[%s2516_s5 + $0x670] sm:$0xff] }
  0x49   : > { %v682_v40 = vld [vmem:[%s2516_s5 + $0x680] sm:$0xff]  ;;  %679 = vst [vmem:[%s2521_s6 + $0x330] sm:$0xff] %v678_v38  ;;  %681 = vst [vmem:[%s2521_s6 + $0x338] sm:$0xff] %v680_v39  ;;  %v684_v41 = vld [vmem:[%s2516_s5 + $0x690] sm:$0xff] }
  0x4a   : > { %683 = vst [vmem:[%s2521_s6 + $0x340] sm:$0xff] %v682_v40  ;;  %v686_v42 = vld [vmem:[%s2516_s5 + $0x6a0] sm:$0xff]  ;;  %v688_v43 = vld [vmem:[%s2516_s5 + $0x6b0] sm:$0xff]  ;;  %685 = vst [vmem:[%s2521_s6 + $0x348] sm:$0xff] %v684_v41 }
  0x4b   : > { %687 = vst [vmem:[%s2521_s6 + $0x350] sm:$0xff] %v686_v42  ;;  %689 = vst [vmem:[%s2521_s6 + $0x358] sm:$0xff] %v688_v43  ;;  %v690_v44 = vld [vmem:[%s2516_s5 + $0x6c0] sm:$0xff]  ;;  %v692_v45 = vld [vmem:[%s2516_s5 + $0x6d0] sm:$0xff] }
  0x4c   : > { %v694_v46 = vld [vmem:[%s2516_s5 + $0x6e0] sm:$0xff]  ;;  %691 = vst [vmem:[%s2521_s6 + $0x360] sm:$0xff] %v690_v44  ;;  %693 = vst [vmem:[%s2521_s6 + $0x368] sm:$0xff] %v692_v45  ;;  %v696_v47 = vld [vmem:[%s2516_s5 + $0x6f0] sm:$0xff] }
  0x4d   : > { %695 = vst [vmem:[%s2521_s6 + $0x370] sm:$0xff] %v694_v46  ;;  %v698_v48 = vld [vmem:[%s2516_s5 + $0x700] sm:$0xff]  ;;  %v700_v49 = vld [vmem:[%s2516_s5 + $0x710] sm:$0xff]  ;;  %697 = vst [vmem:[%s2521_s6 + $0x378] sm:$0xff] %v696_v47 }
  0x4e   : > { %699 = vst [vmem:[%s2521_s6 + $0x380] sm:$0xff] %v698_v48  ;;  %701 = vst [vmem:[%s2521_s6 + $0x388] sm:$0xff] %v700_v49  ;;  %v702_v50 = vld [vmem:[%s2516_s5 + $0x720] sm:$0xff]  ;;  %v704_v51 = vld [vmem:[%s2516_s5 + $0x730] sm:$0xff] }
  0x4f   : > { %v706_v52 = vld [vmem:[%s2516_s5 + $0x740] sm:$0xff]  ;;  %703 = vst [vmem:[%s2521_s6 + $0x390] sm:$0xff] %v702_v50  ;;  %705 = vst [vmem:[%s2521_s6 + $0x398] sm:$0xff] %v704_v51  ;;  %v708_v53 = vld [vmem:[%s2516_s5 + $0x750] sm:$0xff] }
  0x50   : > { %707 = vst [vmem:[%s2521_s6 + $0x3a0] sm:$0xff] %v706_v52  ;;  %v710_v54 = vld [vmem:[%s2516_s5 + $0x760] sm:$0xff]  ;;  %v712_v55 = vld [vmem:[%s2516_s5 + $0x770] sm:$0xff]  ;;  %709 = vst [vmem:[%s2521_s6 + $0x3a8] sm:$0xff] %v708_v53 }
  0x51   : > { %711 = vst [vmem:[%s2521_s6 + $0x3b0] sm:$0xff] %v710_v54  ;;  %713 = vst [vmem:[%s2521_s6 + $0x3b8] sm:$0xff] %v712_v55  ;;  %v714_v56 = vld [vmem:[%s2516_s5 + $0x780] sm:$0xff]  ;;  %v716_v57 = vld [vmem:[%s2516_s5 + $0x790] sm:$0xff] }
  0x52   : > { %v718_v58 = vld [vmem:[%s2516_s5 + $0x7a0] sm:$0xff]  ;;  %715 = vst [vmem:[%s2521_s6 + $0x3c0] sm:$0xff] %v714_v56  ;;  %717 = vst [vmem:[%s2521_s6 + $0x3c8] sm:$0xff] %v716_v57  ;;  %v720_v59 = vld [vmem:[%s2516_s5 + $0x7b0] sm:$0xff] }
  0x53   : > { %719 = vst [vmem:[%s2521_s6 + $0x3d0] sm:$0xff] %v718_v58  ;;  %v722_v60 = vld [vmem:[%s2516_s5 + $0x7c0] sm:$0xff]  ;;  %v724_v61 = vld [vmem:[%s2516_s5 + $0x7d0] sm:$0xff]  ;;  %721 = vst [vmem:[%s2521_s6 + $0x3d8] sm:$0xff] %v720_v59 }
  0x54   : > { %723 = vst [vmem:[%s2521_s6 + $0x3e0] sm:$0xff] %v722_v60  ;;  %725 = vst [vmem:[%s2521_s6 + $0x3e8] sm:$0xff] %v724_v61  ;;  %v726_v62 = vld [vmem:[%s2516_s5 + $0x7e0] sm:$0xff]  ;;  %v728_v63 = vld [vmem:[%s2516_s5 + $0x7f0] sm:$0xff] }
  0x55   : > { %727 = vst [vmem:[%s2521_s6 + $0x3f0] sm:$0xff] %v726_v62  ;;  %729 = vst [vmem:[%s2521_s6 + $0x3f8] sm:$0xff] %v728_v63 }
  0x56 PF: > { %p2007_p8 = scmp.ge.s32.totalorder %s2441_s19, 1  ;;  %p750_p9 = scmp.lt.s32.totalorder %s2441_s19, 3 }
  0x58   : > { %p751_p10 = pnand %p2007_p8, %p750_p9 }
  0x59   : > { %s757_s7 = sand.u32 (!%p751_p10), 1, %s2425_s15   ;;  %v2782_v0 = vld [vmem:[%s3003_s0] sm:$0xff] (!%p751_p10)  ;;  %v2792_v2 = vld [vmem:[%s3003_s0 + $0x10] sm:$0xff] (!%p751_p10)  ;;  %s2010_s9 = sshll.u32 (!%p751_p10), %s2433_s17, 1 }
  0x5a   : > { %754 = sbr.rel (%p751_p10) target bundleno = 454 (0x1c6), region = 70  ;;  %v2787_v1 = vld [vmem:[%s3003_s0 + $0x20] sm:$0xff] (!%p751_p10)  ;;  %s2008_s14 = sshll.u32 (!%p751_p10), %s757_s7, 10  ;;  %v2803_v5 = vld [vmem:[%s3003_s0 + $0x30] sm:$0xff] (!%p751_p10) }
  0x5b   : > { %v2012_v3 = vcombine.low (!%p751_p10), %v2782_v0, %v2787_v1  ;;  %v2013_v4 = vcombine.high (!%p751_p10), %v2782_v0, %v2787_v1  ;;  %v2016_v6 = vcombine.low (!%p751_p10), %v2792_v2, %v2803_v5  ;;  %v2017_v7 = vcombine.high (!%p751_p10), %v2792_v2, %v2803_v5  ;;  %s2809_s23 = scalar_lea.vmem (!%p751_p10), [#allocation2], %s2008_s14  ;;  %p804_p11 = scmp.lt.s32.totalorder (!%p751_p10), %s2010_s9, 3 }
  0x5c   : > { %v2211_v8 = vld [vmem:[%s2809_s23 + $0x4] ss:$8 sps:$4 sm:$0xff] (!%p751_p10)   ;;  %v2215_v10 = vld [vmem:[%s2809_s23] ss:$8 sps:$4 sm:$0xff] (!%p751_p10)   ;;  %v2217_v12 = vld [vmem:[%s2809_s23 + $0x14] ss:$8 sps:$4 sm:$0xff] (!%p751_p10)  }
  0x5d   : > { %1663 = vmatprep.mubr.bf16.mxu1 (!%p751_p10), %v2013_v4  ;;  %v2213_v9 = vld [vmem:[%s2809_s23 + $0x204] ss:$8 sps:$4 sm:$0xff] (!%p751_p10)   ;;  %1749 = vmatprep.mubr.bf16.mxu0 (!%p751_p10), %v2017_v7  ;;  %v2216_v11 = vld [vmem:[%s2809_s23 + $0x200] ss:$8 sps:$4 sm:$0xff] (!%p751_p10)   ;;  %v2219_v13 = vld [vmem:[%s2809_s23 + $0x214] ss:$8 sps:$4 sm:$0xff] (!%p751_p10)  }
  0x5e   : > { %1631 = vmatprep.subr.bf16.mxu1 (!%p751_p10), %v2211_v8  ;;  %1717 = vmatprep.subr.bf16.mxu0 (!%p751_p10), %v2213_v9  ;;  %v2221_v14 = vld [vmem:[%s2809_s23 + $0x10] ss:$8 sps:$4 sm:$0xff] (!%p751_p10)   ;;  %v2223_v16 = vld [vmem:[%s2809_s23 + $0x24] ss:$8 sps:$4 sm:$0xff] (!%p751_p10)   ;;  %v2227_v18 = vld [vmem:[%s2809_s23 + $0x20] ss:$8 sps:$4 sm:$0xff] (!%p751_p10)  }
  0x5f   : > { %1632 = vmatpush1.bf16.msra.mxu1 (!%p751_p10), %v2215_v10  ;;  %1718 = vmatpush1.bf16.msra.mxu0 (!%p751_p10), %v2216_v11  ;;  %v2222_v15 = vld [vmem:[%s2809_s23 + $0x210] ss:$8 sps:$4 sm:$0xff] (!%p751_p10)   ;;  %v2225_v17 = vld [vmem:[%s2809_s23 + $0x224] ss:$8 sps:$4 sm:$0xff] (!%p751_p10)   ;;  %v2228_v19 = vld [vmem:[%s2809_s23 + $0x220] ss:$8 sps:$4 sm:$0xff] (!%p751_p10)  }
  0x60   : > { %1633 = vmatprep.subr.bf16.mxu1 (!%p751_p10), %v2217_v12  ;;  %1719 = vmatprep.subr.bf16.mxu0 (!%p751_p10), %v2219_v13  ;;  %v2229_v20 = vld [vmem:[%s2809_s23 + $0x34] ss:$8 sps:$4 sm:$0xff] (!%p751_p10)   ;;  %v2233_v22 = vld [vmem:[%s2809_s23 + $0x30] ss:$8 sps:$4 sm:$0xff] (!%p751_p10)   ;;  %v2235_v24 = vld [vmem:[%s2809_s23 + $0x44] ss:$8 sps:$4 sm:$0xff] (!%p751_p10)  }
  0x61   : > { %v2231_v21 = vld [vmem:[%s2809_s23 + $0x234] ss:$8 sps:$4 sm:$0xff]   ;;  %v2234_v23 = vld [vmem:[%s2809_s23 + $0x230] ss:$8 sps:$4 sm:$0xff]   ;;  %v2237_v25 = vld [vmem:[%s2809_s23 + $0x244] ss:$8 sps:$4 sm:$0xff]  }
  0x62   : > { %v2239_v26 = vld [vmem:[%s2809_s23 + $0x40] ss:$8 sps:$4 sm:$0xff]   ;;  %v2241_v28 = vld [vmem:[%s2809_s23 + $0x54] ss:$8 sps:$4 sm:$0xff]   ;;  %v2245_v30 = vld [vmem:[%s2809_s23 + $0x50] ss:$8 sps:$4 sm:$0xff]  }
  0x63   : > { %1634 = vmatpush1.bf16.msra.mxu1 %v2221_v14  ;;  %1720 = vmatpush1.bf16.msra.mxu0 %v2222_v15  ;;  %v2240_v27 = vld [vmem:[%s2809_s23 + $0x240] ss:$8 sps:$4 sm:$0xff]   ;;  %v2243_v29 = vld [vmem:[%s2809_s23 + $0x254] ss:$8 sps:$4 sm:$0xff]   ;;  %v2246_v31 = vld [vmem:[%s2809_s23 + $0x250] ss:$8 sps:$4 sm:$0xff]  }
  0x64   : > { %1635 = vmatprep.subr.bf16.mxu1 %v2223_v16  ;;  %1721 = vmatprep.subr.bf16.mxu0 %v2225_v17  ;;  %v2247_v32 = vld [vmem:[%s2809_s23 + $0x64] ss:$8 sps:$4 sm:$0xff]   ;;  %v2251_v34 = vld [vmem:[%s2809_s23 + $0x60] ss:$8 sps:$4 sm:$0xff]   ;;  %v2253_v36 = vld [vmem:[%s2809_s23 + $0x74] ss:$8 sps:$4 sm:$0xff]  }
  0x65   : > { %v2249_v33 = vld [vmem:[%s2809_s23 + $0x264] ss:$8 sps:$4 sm:$0xff]   ;;  %v2252_v35 = vld [vmem:[%s2809_s23 + $0x260] ss:$8 sps:$4 sm:$0xff]   ;;  %v2255_v37 = vld [vmem:[%s2809_s23 + $0x274] ss:$8 sps:$4 sm:$0xff]  }
  0x66   : > { %v2257_v38 = vld [vmem:[%s2809_s23 + $0x70] ss:$8 sps:$4 sm:$0xff]   ;;  %v2259_v40 = vld [vmem:[%s2809_s23 + $0x84] ss:$8 sps:$4 sm:$0xff]   ;;  %v2263_v42 = vld [vmem:[%s2809_s23 + $0x80] ss:$8 sps:$4 sm:$0xff]  }
  0x67   : > { %1636 = vmatpush1.bf16.msra.mxu1 %v2227_v18  ;;  %1722 = vmatpush1.bf16.msra.mxu0 %v2228_v19  ;;  %v2258_v39 = vld [vmem:[%s2809_s23 + $0x270] ss:$8 sps:$4 sm:$0xff]   ;;  %v2261_v41 = vld [vmem:[%s2809_s23 + $0x284] ss:$8 sps:$4 sm:$0xff]   ;;  %v2264_v43 = vld [vmem:[%s2809_s23 + $0x280] ss:$8 sps:$4 sm:$0xff]  }
  0x68   : > { %1637 = vmatprep.subr.bf16.mxu1 %v2229_v20  ;;  %1723 = vmatprep.subr.bf16.mxu0 %v2231_v21  ;;  %v2265_v44 = vld [vmem:[%s2809_s23 + $0x94] ss:$8 sps:$4 sm:$0xff]   ;;  %v2269_v46 = vld [vmem:[%s2809_s23 + $0x90] ss:$8 sps:$4 sm:$0xff]   ;;  %v2271_v48 = vld [vmem:[%s2809_s23 + $0xa4] ss:$8 sps:$4 sm:$0xff]  }
  0x69   : > { %v2267_v45 = vld [vmem:[%s2809_s23 + $0x294] ss:$8 sps:$4 sm:$0xff]   ;;  %v2270_v47 = vld [vmem:[%s2809_s23 + $0x290] ss:$8 sps:$4 sm:$0xff]   ;;  %v2273_v49 = vld [vmem:[%s2809_s23 + $0x2a4] ss:$8 sps:$4 sm:$0xff]  }
  0x6a   : > { %v2275_v50 = vld [vmem:[%s2809_s23 + $0xa0] ss:$8 sps:$4 sm:$0xff]   ;;  %v2277_v52 = vld [vmem:[%s2809_s23 + $0xb4] ss:$8 sps:$4 sm:$0xff]   ;;  %v2281_v54 = vld [vmem:[%s2809_s23 + $0xb0] ss:$8 sps:$4 sm:$0xff]  }
  0x6b   : > { %1638 = vmatpush1.bf16.msra.mxu1 %v2233_v22  ;;  %1724 = vmatpush1.bf16.msra.mxu0 %v2234_v23  ;;  %v2276_v51 = vld [vmem:[%s2809_s23 + $0x2a0] ss:$8 sps:$4 sm:$0xff]   ;;  %v2279_v53 = vld [vmem:[%s2809_s23 + $0x2b4] ss:$8 sps:$4 sm:$0xff]   ;;  %v2282_v55 = vld [vmem:[%s2809_s23 + $0x2b0] ss:$8 sps:$4 sm:$0xff]  }
  0x6c   : > { %1639 = vmatprep.subr.bf16.mxu1 %v2235_v24  ;;  %1725 = vmatprep.subr.bf16.mxu0 %v2237_v25  ;;  %v2283_v56 = vld [vmem:[%s2809_s23 + $0xc4] ss:$8 sps:$4 sm:$0xff]   ;;  %v2287_v58 = vld [vmem:[%s2809_s23 + $0xc0] ss:$8 sps:$4 sm:$0xff]   ;;  %v2289_v60 = vld [vmem:[%s2809_s23 + $0xd4] ss:$8 sps:$4 sm:$0xff]  }
  0x6d   : > { %v2285_v57 = vld [vmem:[%s2809_s23 + $0x2c4] ss:$8 sps:$4 sm:$0xff]   ;;  %v2288_v59 = vld [vmem:[%s2809_s23 + $0x2c0] ss:$8 sps:$4 sm:$0xff]   ;;  %v2291_v61 = vld [vmem:[%s2809_s23 + $0x2d4] ss:$8 sps:$4 sm:$0xff]  }
  0x6e   : > { %v2293_v62 = vld [vmem:[%s2809_s23 + $0xd0] ss:$8 sps:$4 sm:$0xff]   ;;  %v2295_v4 = vld [vmem:[%s2809_s23 + $0xe4] ss:$8 sps:$4 sm:$0xff]   ;;  %v2299_v8 = vld [vmem:[%s2809_s23 + $0xe0] ss:$8 sps:$4 sm:$0xff]  }
  0x6f   : > { %1640 = vmatpush1.bf16.msra.mxu1 %v2239_v26  ;;  %1726 = vmatpush1.bf16.msra.mxu0 %v2240_v27  ;;  %v2294_v63 = vld [vmem:[%s2809_s23 + $0x2d0] ss:$8 sps:$4 sm:$0xff]   ;;  %v2297_v7 = vld [vmem:[%s2809_s23 + $0x2e4] ss:$8 sps:$4 sm:$0xff]   ;;  %v2300_v9 = vld [vmem:[%s2809_s23 + $0x2e0] ss:$8 sps:$4 sm:$0xff]  }
  0x70   : > { %1641 = vmatprep.subr.bf16.mxu1 %v2241_v28  ;;  %1727 = vmatprep.subr.bf16.mxu0 %v2243_v29  ;;  %v2301_v10 = vld [vmem:[%s2809_s23 + $0xf4] ss:$8 sps:$4 sm:$0xff]   ;;  %v2305_v12 = vld [vmem:[%s2809_s23 + $0xf0] ss:$8 sps:$4 sm:$0xff]   ;;  %v2309_v14 = vld [vmem:[%s2809_s23 + $0x104] ss:$8 sps:$4 sm:$0xff]  }
  0x71   : > { %v2303_v11 = vld [vmem:[%s2809_s23 + $0x2f4] ss:$8 sps:$4 sm:$0xff]   ;;  %v2306_v13 = vld [vmem:[%s2809_s23 + $0x2f0] ss:$8 sps:$4 sm:$0xff]   ;;  %v2312_v15 = vld [vmem:[%s2809_s23 + $0x304] ss:$8 sps:$4 sm:$0xff]  }
  0x72   : > { %v2880_v16 = vld [vmem:[%s3003_s0 + $0x8] sm:$0xff]  ;;  %v2315_v20 = vld [vmem:[%s2809_s23 + $0x114] ss:$8 sps:$4 sm:$0xff]   ;;  %v2313_v23 = vld [vmem:[%s2809_s23 + $0x110] ss:$8 sps:$4 sm:$0xff]   ;;  %s3016_s9 = smov (!%p804_p11, %s2010_s9), 3 }
  0x73   : > { %1642 = vmatpush1.bf16.msra.mxu1 %v2245_v30  ;;  %1728 = vmatpush1.bf16.msra.mxu0 %v2246_v31  ;;  %v2885_v17 = vld [vmem:[%s3003_s0 + $0x28] sm:$0xff]  ;;  %v2318_v21 = vld [vmem:[%s2809_s23 + $0x314] ss:$8 sps:$4 sm:$0xff]   ;;  %v2316_v24 = vld [vmem:[%s2809_s23 + $0x310] ss:$8 sps:$4 sm:$0xff]   ;;  %s806_s12 = scalar_lea.vmem %s3005_s2, %s3016_s9  ;;  %s811_s21 = scalar_lea.vmem %s3006_s3, %s3016_s9 }
  0x74   : > { %1643 = vmatprep.subr.bf16.mxu1 %v2247_v32  ;;  %1729 = vmatprep.subr.bf16.mxu0 %v2249_v33  ;;  %v2307_v18 = vld [vmem:[%s2809_s23 + $0x100] ss:$8 sps:$4 sm:$0xff]   ;;  %v2015_v22 = vcombine.high %v2880_v16, %v2885_v17  ;;  %v2321_v25 = vld [vmem:[%s2809_s23 + $0x124] ss:$8 sps:$4 sm:$0xff]   ;;  %v2327_v2 = vld [vmem:[%s2809_s23 + $0x134] ss:$8 sps:$4 sm:$0xff]  }
  0x75   : > { %v2310_v19 = vld [vmem:[%s2809_s23 + $0x300] ss:$8 sps:$4 sm:$0xff]   ;;  %v2324_v26 = vld [vmem:[%s2809_s23 + $0x324] ss:$8 sps:$4 sm:$0xff]   ;;  %v2325_v5 = vld [vmem:[%s2809_s23 + $0x130] ss:$8 sps:$4 sm:$0xff]  }
  0x76   : > { %v2319_v0 = vld [vmem:[%s2809_s23 + $0x120] ss:$8 sps:$4 sm:$0xff]   ;;  %v2333_v27 = vld [vmem:[%s2809_s23 + $0x144] ss:$8 sps:$4 sm:$0xff]   ;;  %v2339_v31 = vld [vmem:[%s2809_s23 + $0x154] ss:$8 sps:$4 sm:$0xff]  }
  0x77   : > { %1644 = vmatpush1.bf16.msra.mxu1 %v2251_v34  ;;  %1730 = vmatpush1.bf16.msra.mxu0 %v2252_v35  ;;  %v2322_v1 = vld [vmem:[%s2809_s23 + $0x320] ss:$8 sps:$4 sm:$0xff]   ;;  %v2336_v28 = vld [vmem:[%s2809_s23 + $0x344] ss:$8 sps:$4 sm:$0xff]   ;;  %v2342_v32 = vld [vmem:[%s2809_s23 + $0x354] ss:$8 sps:$4 sm:$0xff]  }
  0x78   : > { %1645 = vmatprep.subr.bf16.mxu1 %v2253_v36  ;;  %1731 = vmatprep.subr.bf16.mxu0 %v2255_v37  ;;  %v2331_v29 = vld [vmem:[%s2809_s23 + $0x140] ss:$8 sps:$4 sm:$0xff]   ;;  %v2337_v33 = vld [vmem:[%s2809_s23 + $0x150] ss:$8 sps:$4 sm:$0xff]   ;;  %v2345_v36 = vld [vmem:[%s2809_s23 + $0x164] ss:$8 sps:$4 sm:$0xff]  }
  0x79   : > { %v2334_v30 = vld [vmem:[%s2809_s23 + $0x340] ss:$8 sps:$4 sm:$0xff]   ;;  %v2919_v34 = vld [vmem:[%s3003_s0 + $0x18] sm:$0xff]  ;;  %v2348_v37 = vld [vmem:[%s2809_s23 + $0x364] ss:$8 sps:$4 sm:$0xff]   ;;  %s2009_s22 = sshll.u32 %s757_s7, 4 }
  0x7a   : > { %v2340_v35 = vld [vmem:[%s2809_s23 + $0x350] ss:$8 sps:$4 sm:$0xff]   ;;  %s2158_s26 = sshll.u32 (%p2503_p6), %s2433_s17, 3 }
  0x7b   : > { %1646 = vmatpush1.bf16.msra.mxu1 %v2257_v38  ;;  %1732 = vmatpush1.bf16.msra.mxu0 %v2258_v39  ;;  %v2927_v38 = vld [vmem:[%s3003_s0 + $0x38] sm:$0xff]  ;;  %s1861_s27 = scalar_lea.vmem (%p2503_p6), %s3007_s4, %s2158_s26 }
  0x7c   : > { %1647 = vmatprep.subr.bf16.mxu1 %v2259_v40  ;;  %1733 = vmatprep.subr.bf16.mxu0 %v2261_v41  ;;  %v2019_v39 = vcombine.high %v2919_v34, %v2927_v38  ;;  %v2343_v40 = vld [vmem:[%s2809_s23 + $0x160] ss:$8 sps:$4 sm:$0xff]  }
  0x7d   : > { %v2346_v41 = vld [vmem:[%s2809_s23 + $0x360] ss:$8 sps:$4 sm:$0xff]  }
  0x7f   : > { %1648 = vmatpush1.bf16.msra.mxu1 %v2263_v42  ;;  %1734 = vmatpush1.bf16.msra.mxu0 %v2264_v43  ;;  %v2351_v42 = vld [vmem:[%s2809_s23 + $0x174] ss:$8 sps:$4 sm:$0xff]  }
  0x80   : > { %1649 = vmatprep.subr.bf16.mxu1 %v2265_v44  ;;  %1735 = vmatprep.subr.bf16.mxu0 %v2267_v45  ;;  %v2354_v43 = vld [vmem:[%s2809_s23 + $0x374] ss:$8 sps:$4 sm:$0xff]   ;;  %v2349_v44 = vld [vmem:[%s2809_s23 + $0x170] ss:$8 sps:$4 sm:$0xff]  }
  0x81   : > { %v2352_v45 = vld [vmem:[%s2809_s23 + $0x370] ss:$8 sps:$4 sm:$0xff]  }
  0x83   : > { %1650 = vmatpush1.bf16.msra.mxu1 %v2269_v46  ;;  %1736 = vmatpush1.bf16.msra.mxu0 %v2270_v47  ;;  %v2357_v46 = vld [vmem:[%s2809_s23 + $0x184] ss:$8 sps:$4 sm:$0xff]  }
  0x84   : > { %1651 = vmatprep.subr.bf16.mxu1 %v2271_v48  ;;  %1737 = vmatprep.subr.bf16.mxu0 %v2273_v49  ;;  %v2360_v47 = vld [vmem:[%s2809_s23 + $0x384] ss:$8 sps:$4 sm:$0xff]   ;;  %v2355_v48 = vld [vmem:[%s2809_s23 + $0x180] ss:$8 sps:$4 sm:$0xff]  }
  0x85   : > { %v2358_v49 = vld [vmem:[%s2809_s23 + $0x380] ss:$8 sps:$4 sm:$0xff]  }
  0x87   : > { %1652 = vmatpush1.bf16.msra.mxu1 %v2275_v50  ;;  %1738 = vmatpush1.bf16.msra.mxu0 %v2276_v51  ;;  %v2363_v50 = vld [vmem:[%s2809_s23 + $0x194] ss:$8 sps:$4 sm:$0xff]  }
  0x88   : > { %1653 = vmatprep.subr.bf16.mxu1 %v2277_v52  ;;  %1739 = vmatprep.subr.bf16.mxu0 %v2279_v53  ;;  %v2366_v51 = vld [vmem:[%s2809_s23 + $0x394] ss:$8 sps:$4 sm:$0xff]   ;;  %v2361_v52 = vld [vmem:[%s2809_s23 + $0x190] ss:$8 sps:$4 sm:$0xff]  }
  0x89   : > { %v2364_v53 = vld [vmem:[%s2809_s23 + $0x390] ss:$8 sps:$4 sm:$0xff]  }
  0x8b   : > { %1654 = vmatpush1.bf16.msra.mxu1 %v2281_v54  ;;  %1740 = vmatpush1.bf16.msra.mxu0 %v2282_v55  ;;  %v2369_v54 = vld [vmem:[%s2809_s23 + $0x1a4] ss:$8 sps:$4 sm:$0xff]  }
  0x8c   : > { %1655 = vmatprep.subr.bf16.mxu1 %v2283_v56  ;;  %1741 = vmatprep.subr.bf16.mxu0 %v2285_v57  ;;  %v2372_v55 = vld [vmem:[%s2809_s23 + $0x3a4] ss:$8 sps:$4 sm:$0xff]   ;;  %v2367_v56 = vld [vmem:[%s2809_s23 + $0x1a0] ss:$8 sps:$4 sm:$0xff]  }
  0x8d   : > { %v2370_v57 = vld [vmem:[%s2809_s23 + $0x3a0] ss:$8 sps:$4 sm:$0xff]  }
  0x8f   : > { %1656 = vmatpush1.bf16.msra.mxu1 %v2287_v58  ;;  %1742 = vmatpush1.bf16.msra.mxu0 %v2288_v59  ;;  %v2375_v58 = vld [vmem:[%s2809_s23 + $0x1b4] ss:$8 sps:$4 sm:$0xff]  }
  0x90   : > { %1657 = vmatprep.subr.bf16.mxu1 %v2289_v60  ;;  %1743 = vmatprep.subr.bf16.mxu0 %v2291_v61  ;;  %v2378_v59 = vld [vmem:[%s2809_s23 + $0x3b4] ss:$8 sps:$4 sm:$0xff]   ;;  %v2373_v60 = vld [vmem:[%s2809_s23 + $0x1b0] ss:$8 sps:$4 sm:$0xff]  }
  0x91   : > { %v2376_v61 = vld [vmem:[%s2809_s23 + $0x3b0] ss:$8 sps:$4 sm:$0xff]  }
  0x93   : > { %1658 = vmatpush1.bf16.msra.mxu1 %v2293_v62  ;;  %1744 = vmatpush1.bf16.msra.mxu0 %v2294_v63  ;;  %v2381_v62 = vld [vmem:[%s2809_s23 + $0x1c4] ss:$8 sps:$4 sm:$0xff]  }
  0x94   : > { %1659 = vmatprep.subr.bf16.mxu1 %v2295_v4  ;;  %1745 = vmatprep.subr.bf16.mxu0 %v2297_v7  ;;  %v2384_v63 = vld [vmem:[%s2809_s23 + $0x3c4] ss:$8 sps:$4 sm:$0xff]   ;;  %v2379_v4 = vld [vmem:[%s2809_s23 + $0x1c0] ss:$8 sps:$4 sm:$0xff]  }
  0x95   : > { %v2382_v7 = vld [vmem:[%s2809_s23 + $0x3c0] ss:$8 sps:$4 sm:$0xff]  }
  0x97   : > { %1660 = vmatpush1.bf16.msra.mxu1 %v2299_v8  ;;  %1746 = vmatpush1.bf16.msra.mxu0 %v2300_v9  ;;  %v2387_v8 = vld [vmem:[%s2809_s23 + $0x1d4] ss:$8 sps:$4 sm:$0xff]  }
  0x98   : > { %1661 = vmatprep.subr.bf16.mxu1 %v2301_v10  ;;  %1747 = vmatprep.subr.bf16.mxu0 %v2303_v11  ;;  %v2390_v9 = vld [vmem:[%s2809_s23 + $0x3d4] ss:$8 sps:$4 sm:$0xff]   ;;  %v2385_v10 = vld [vmem:[%s2809_s23 + $0x1d0] ss:$8 sps:$4 sm:$0xff]  }
  0x99   : > { %v2388_v11 = vld [vmem:[%s2809_s23 + $0x3d0] ss:$8 sps:$4 sm:$0xff]  }
  0x9b   : > { %1662 = vmatpush1.bf16.msra.mxu1 %v2305_v12  ;;  %1748 = vmatpush1.bf16.msra.mxu0 %v2306_v13  ;;  %v2393_v12 = vld [vmem:[%s2809_s23 + $0x1e4] ss:$8 sps:$4 sm:$0xff]  }
  0x9c   : > { %1674 = vmatprep.subr.bf16.mxu1 %v2309_v14  ;;  %1760 = vmatprep.subr.bf16.mxu0 %v2312_v15  ;;  %v2396_v13 = vld [vmem:[%s2809_s23 + $0x3e4] ss:$8 sps:$4 sm:$0xff]   ;;  %v2391_v14 = vld [vmem:[%s2809_s23 + $0x1e0] ss:$8 sps:$4 sm:$0xff]  }
  0x9d   : > { %v2394_v15 = vld [vmem:[%s2809_s23 + $0x3e0] ss:$8 sps:$4 sm:$0xff]  }
  0x9e   : > { %1664 = vmatmul.mubr.bf16.vlgmr.msra.gmra.mrb[0].mxu1 %v2012_v3  ;;  %1750 = vmatmul.mubr.bf16.vlgmr.msra.gmra.mrb[0].mxu0 %v2016_v6  ;;  %v2330_v3 = vld [vmem:[%s2809_s23 + $0x334] ss:$8 sps:$4 sm:$0xff]   ;;  %v2328_v6 = vld [vmem:[%s2809_s23 + $0x330] ss:$8 sps:$4 sm:$0xff]  }
  0x9f   : > { %1675 = vmatpush1.bf16.msra.mxu1 %v2307_v18  ;;  %1761 = vmatpush1.bf16.msra.mxu0 %v2310_v19  ;;  %v2399_v18 = vld [vmem:[%s2809_s23 + $0x1f4] ss:$8 sps:$4 sm:$0xff]  }
  0xa0   : > { %1676 = vmatprep.subr.bf16.mxu1 %v2315_v20  ;;  %1762 = vmatprep.subr.bf16.mxu0 %v2318_v21  ;;  %v2402_v19 = vld [vmem:[%s2809_s23 + $0x3f4] ss:$8 sps:$4 sm:$0xff]   ;;  %v2397_v20 = vld [vmem:[%s2809_s23 + $0x1f0] ss:$8 sps:$4 sm:$0xff]  }
  0xa1   : > { %1706 = vmatprep.mubr.bf16.mxu1 %v2015_v22  ;;  %1792 = vmatprep.mubr.bf16.mxu0 %v2019_v39  ;;  %v2400_v21 = vld [vmem:[%s2809_s23 + $0x3f0] ss:$8 sps:$4 sm:$0xff]   ;;  %v2014_v22 = vcombine.low %v2880_v16, %v2885_v17  ;;  %v1803_v17 = vld [vmem:[%s806_s12] sm:$0x3]  ;;  %s794_s23 = scalar_lea.vmem [#allocation3], %s2009_s22 }
  0xa3   : > { %1677 = vmatpush1.bf16.msra.mxu1 %v2313_v23  ;;  %1763 = vmatpush1.bf16.msra.mxu0 %v2316_v24  ;;  %v2018_v23 = vcombine.low %v2919_v34, %v2927_v38  ;;  %v1805_v24 = vlaneseq }
  0xa4   : > { %1678 = vmatprep.subr.bf16.mxu1 %v2321_v25  ;;  %1764 = vmatprep.subr.bf16.mxu0 %v2324_v26 }
  0xa5   : > { %v1806_v25 = vshrl.u32 %v1805_v24, 7 }
  0xa7   : > { %1679 = vmatpush1.bf16.msra.mxu1 %v2319_v0  ;;  %1765 = vmatpush1.bf16.msra.mxu0 %v2322_v1  ;;  %v1807_v16 = vsub.s32 0, %v1806_v25  ;;  %v1811_v26 = vsub.s32 1, %v1806_v25  ;;  %v1819_v0 = vld [vmem:[%s811_s21] sm:$0x3] }
  0xa8   : > { %1680 = vmatprep.subr.bf16.mxu1 %v2327_v2  ;;  %1766 = vmatprep.subr.bf16.mxu0 %v2330_v3 }
  0xa9   : > { %v1808_v1 = vrot.slane %v1803_v17, %v1807_v16 }
  0xab   : > { %1681 = vmatpush1.bf16.msra.mxu1 %v2325_v5  ;;  %1767 = vmatpush1.bf16.msra.mxu0 %v2328_v6  ;;  %v1812_v5 = vrot.slane %v1803_v17, %v1811_v26 }
  0xac   : > { %1682 = vmatprep.subr.bf16.mxu1 %v2333_v27  ;;  %1768 = vmatprep.subr.bf16.mxu0 %v2336_v28  ;;  %v1824_v27 = vrot.slane %v1819_v0, %v1807_v16 }
  0xaf   : > { %1683 = vmatpush1.bf16.msra.mxu1 %v2331_v29  ;;  %1769 = vmatpush1.bf16.msra.mxu0 %v2334_v30 }
  0xb0   : > { %1684 = vmatprep.subr.bf16.mxu1 %v2339_v31  ;;  %1770 = vmatprep.subr.bf16.mxu0 %v2342_v32  ;;  %v1828_v31 = vrot.slane %v1819_v0, %v1811_v26 }
  0xb3   : > { %1685 = vmatpush1.bf16.msra.mxu1 %v2337_v33  ;;  %1771 = vmatpush1.bf16.msra.mxu0 %v2340_v35 }
  0xb4   : > { %1686 = vmatprep.subr.bf16.mxu1 %v2345_v36  ;;  %1772 = vmatprep.subr.bf16.mxu0 %v2348_v37 }
  0xb7   : > { %1687 = vmatpush1.bf16.msra.mxu1 %v2343_v40  ;;  %1773 = vmatpush1.bf16.msra.mxu0 %v2346_v41 }
  0xb8   : > { %1688 = vmatprep.subr.bf16.mxu1 %v2351_v42  ;;  %1774 = vmatprep.subr.bf16.mxu0 %v2354_v43 }
  0xbb   : > { %1689 = vmatpush1.bf16.msra.mxu1 %v2349_v44  ;;  %1775 = vmatpush1.bf16.msra.mxu0 %v2352_v45 }
  0xbc   : > { %1690 = vmatprep.subr.bf16.mxu1 %v2357_v46  ;;  %1776 = vmatprep.subr.bf16.mxu0 %v2360_v47 }
  0xbf   : > { %1691 = vmatpush1.bf16.msra.mxu1 %v2355_v48  ;;  %1777 = vmatpush1.bf16.msra.mxu0 %v2358_v49 }
  0xc0   : > { %1692 = vmatprep.subr.bf16.mxu1 %v2363_v50  ;;  %1778 = vmatprep.subr.bf16.mxu0 %v2366_v51 }
  0xc3   : > { %1693 = vmatpush1.bf16.msra.mxu1 %v2361_v52  ;;  %1779 = vmatpush1.bf16.msra.mxu0 %v2364_v53 }
  0xc4   : > { %1694 = vmatprep.subr.bf16.mxu1 %v2369_v54  ;;  %1780 = vmatprep.subr.bf16.mxu0 %v2372_v55 }
  0xc7   : > { %1695 = vmatpush1.bf16.msra.mxu1 %v2367_v56  ;;  %1781 = vmatpush1.bf16.msra.mxu0 %v2370_v57 }
  0xc8   : > { %1696 = vmatprep.subr.bf16.mxu1 %v2375_v58  ;;  %1782 = vmatprep.subr.bf16.mxu0 %v2378_v59 }
  0xcb   : > { %1697 = vmatpush1.bf16.msra.mxu1 %v2373_v60  ;;  %1783 = vmatpush1.bf16.msra.mxu0 %v2376_v61 }
  0xcc   : > { %1698 = vmatprep.subr.bf16.mxu1 %v2381_v62  ;;  %1784 = vmatprep.subr.bf16.mxu0 %v2384_v63 }
  0xcf   : > { %1699 = vmatpush1.bf16.msra.mxu1 %v2379_v4  ;;  %1785 = vmatpush1.bf16.msra.mxu0 %v2382_v7 }
  0xd0   : > { %1700 = vmatprep.subr.bf16.mxu1 %v2387_v8  ;;  %1786 = vmatprep.subr.bf16.mxu0 %v2390_v9 }
  0xd3   : > { %1701 = vmatpush1.bf16.msra.mxu1 %v2385_v10  ;;  %1787 = vmatpush1.bf16.msra.mxu0 %v2388_v11 }
  0xd4   : > { %1702 = vmatprep.subr.bf16.mxu1 %v2393_v12  ;;  %1788 = vmatprep.subr.bf16.mxu0 %v2396_v13 }
  0xd7   : > { %1703 = vmatpush1.bf16.msra.mxu1 %v2391_v14  ;;  %1789 = vmatpush1.bf16.msra.mxu0 %v2394_v15 }
  0xd8   : > { %1704 = vmatprep.subr.bf16.mxu1 %v2399_v18  ;;  %1790 = vmatprep.subr.bf16.mxu0 %v2402_v19 }
  0xdb   : > { %1705 = vmatpush1.bf16.msra.mxu1 %v2397_v20  ;;  %1791 = vmatpush1.bf16.msra.mxu0 %v2400_v21 }
  0xde   : > { %1707 = vmatmul.mubr.bf16.vlgmr.msra.gmra.mrb[0].mxu1 %v2014_v22  ;;  %1793 = vmatmul.mubr.bf16.vlgmr.msra.gmra.mrb[0].mxu0 %v2018_v23 }
 0x1b1   : > { %v1708_v2 = vpop.f32.mrb[0].mxu1  ;;  %v1794_v3 = vpop.f32.mrb[0].mxu0 }
 0x1b2   : > { %v2159_v6 = vadd.f32 %v1794_v3, %v1708_v2  ;;  %v1710_v28 = vpop.f32.mrb[1].mxu1  ;;  %v1796_v29 = vpop.f32.mrb[1].mxu0 }
 0x1b3   : > { %v2160_v30 = vadd.f32 %v1796_v29, %v1710_v28  ;;  %v1712_v32 = vpop.f32.mrb[2].mxu1  ;;  %v1798_v33 = vpop.f32.mrb[2].mxu0 }
 0x1b4   : > { %v1815_v34 = vmul.f32 %v2159_v6, %v1808_v1  ;;  %v2161_v35 = vadd.f32 %v1798_v33, %v1712_v32  ;;  %v1714_v36 = vpop.f32.mrb[3].mxu1  ;;  %v1800_v37 = vpop.f32.mrb[3].mxu0 }
 0x1b5   : > { %v1816_v38 = vmul.f32 %v2160_v30, %v1812_v5  ;;  %v2162_v39 = vadd.f32 %v1800_v37, %v1714_v36 }
 0x1b6   : > { %v1831_v40 = vadd.f32 %v1824_v27, %v1815_v34  ;;  %v1817_v41 = vmul.f32 %v2161_v35, %v1808_v1 }
 0x1b7   : > { %v1832_v42 = vadd.f32 %v1828_v31, %v1816_v38  ;;  %v1818_v43 = vmul.f32 %v2162_v39, %v1812_v5  ;;  %1855 = sbr.rel (!%p2503_p6) target bundleno = 454 (0x1c6), region = 78 }
 0x1b8   : > { %v1833_v44 = vadd.f32 %v1824_v27, %v1817_v41 }
 0x1b9   : > { %v2156_v45 = vpack.c.bf16 %v1832_v42, %v1831_v40  ;;  %v1834_v46 = vadd.f32 %v1828_v31, %v1818_v43 }
 0x1bb   : > { %1847 = vst [vmem:[%s794_s23] sm:$0xff] %v2156_v45  ;;  %v2157_v47 = vpack.c.bf16 %v1834_v46, %v1833_v44 }
 0x1bd   : > { %1848 = vst [vmem:[%s794_s23 + $0x8] sm:$0xff] %v2157_v47 }
 0x1c2   : > { %v1891_v48 = vld [vmem:[%s794_s23] sm:$0xff] }
 0x1c3   : > { %1892 = vst [vmem:[%s1861_s27] sm:$0xff] %v1891_v48 }
 0x1c4   : > { %v1893_v49 = vld [vmem:[%s794_s23 + $0x8] sm:$0xff] }
 0x1c5   : > { %1894 = vst [vmem:[%s1861_s27 + $0x10] sm:$0xff] %v1893_v49 }
 0x1c6 PF: > { %s14_s19 = sadd.s32 1, %s2441_s19   ;;  %s3009_s15 = smov %s2429_s16 }
 0x1c7   : > { %p11_p12 = scmp.ge.s32.totalorder %s14_s19, 4   ;;  %s3010_s16 = smov %s2508_s25 }
 0x1c8   : > { %s3011_s17 = smov %s2437_s18  ;;  %s3012_s18 = smov %s3014_s20 }
 0x1c9   :  { %13 = sbr.rel (!%p11_p12) target bundleno = 3 (0x3), region = 156 }

// kernel: tile.33
= control target key start
LH: loop header
LB: loop body
LE: loop exit
PB: predicated region body
PF: predicated region fallthrough
CT: control target
= control target key end

     0   :  { %s22_s0 = inlined_call_operand.vmem [shape: f32[64], index: 0, kind: input, shape index: {}]   ;;  %s23_s1 = inlined_call_operand.vmem [shape: f32[4,64], index: 1, kind: output, shape index: {}]  }
   0x1   :  { %v4_v0 = vld [vmem:[%s22_s0] ss:$0 sm:$0xff] }
   0x2   :  { %5 = vst [vmem:[%s23_s1] sm:$0xf] %v4_v0 }

// kernel: tile.34
= control target key start
LH: loop header
LB: loop body
LE: loop exit
PB: predicated region body
PF: predicated region fallthrough
CT: control target
= control target key end

     0   :  { %s6_s8 = smov 3  ;;  %vm8_vm0 = vcmask 523264   ;;  %s30_s9 = smov 64   ;;  %vm15_vm1 = vcmask 1048064   ;;  %s50_s0 = inlined_call_operand.vmem [shape: f32[4,64], index: 0, kind: input, shape index: {}]   ;;  %s51_s1 = inlined_call_operand.vmem [shape: f32[1,256], index: 1, kind: output, shape index: {}]  }
   0x1   :  { %v4_v0 = vld [vmem:[%s50_s0] sm:$0xf]  ;;  %s11_s0 = smov 3 }
   0x2   :  { %5 = vst [vmem:[#allocation1] sm:$0xf] %v4_v0 }
   0x9   :  { %v12_v1 = vld [vmem:[#allocation1 + $0x1] ss:$2 sm:%s11_s0]   ;;  %v7_v2 = vld [vmem:[#allocation1] ss:$2 sm:%s6_s8]  }
   0xa   :  { %13 = vrot.lane.b32.xlu0 %v12_v1, %s30_s9  ;;  %9 = vst.msk [vmem:[#allocation0] ss:$8 sm:$0x3] %vm8_vm0, %v7_v2  }
  0x7c   :  { %v14_v3 = vpop.permute.xlu0 %13  }
  0x7d   :  { %16 = vst.msk [vmem:[#allocation0] ss:$8 sm:$0x3] %vm15_vm1, %v14_v3  }
  0x84   :  { %v20_v4 = vld [vmem:[#allocation0] sm:$0x1]  ;;  %v24_v5 = vld [vmem:[#allocation0 + $0x8] sm:$0x1] }
  0x85   :  { %22 = vst [vmem:[%s51_s1] sm:$0x1] %v20_v4  ;;  %28 = vst [vmem:[%s51_s1 + $0x1] sm:$0x1] %v24_v5 }

// kernel: autoencoder_forward.15
= control target key start
LH: loop header
LB: loop body
LE: loop exit
PB: predicated region body
PF: predicated region fallthrough
CT: control target
= control target key end

     0   :  { %s1441_s15 = smov 0   ;;  %s1443_s16 = smov 0   ;;  %s1715_s0 = inlined_call_operand.vmem [shape: bf16[32,512], index: 0, kind: input, shape index: {}]   ;;  %s1716_s1 = inlined_call_operand.vmem [shape: bf16[512,256], index: 1, kind: input, shape index: {}]   ;;  %s1717_s2 = inlined_call_operand.vmem [shape: f32[1,256], index: 2, kind: input, shape index: {}]   ;;  %s1718_s3 = inlined_call_operand.vmem [shape: f32[1,256], index: 3, kind: input, shape index: {}]   ;;  %s1719_s4 = inlined_call_operand.vmem [shape: bf16[32,256], index: 4, kind: output, shape index: {}]  }
   0x1   :  { %s1445_s17 = smov 0   ;;  %s1447_s18 = smov 0  }
   0x2   :  { %s1449_s19 = smov 0  }
   0x3 LB: > { %s23_s20 = sadd.s32 1, %s1410_s18  ;;  %s1161_s21 = sadd.s32 4294967295, %s1414_s19   ;;  %s1414_s19 = sphi %s1449_s19, %s14_s19   ;;  %s1410_s18 = sphi %s1447_s18, %s1724_s18   ;;  %s1406_s17 = sphi %s1445_s17, %s1723_s17   ;;  %s1402_s16 = sphi %s1443_s16, %s1722_s16   ;;  %s1398_s15 = sphi %s1441_s15, %s1721_s15  }
   0x4   : > { %p24_p0 = scmp.ge.s32.totalorder %s23_s20, 2  ;;  %p66_p1 = scmp.ne.s32.totalorder %s1402_s16, %s1398_s15 }
   0x5   : > { %p67_p2 = scmp.eq.s32.totalorder %s1414_s19, 0  ;;  %p150_p4 = scmp.eq.s32.totalorder %s1161_s21, 1 }
   0x6   : > { %s1726_s20 = smov (%p24_p0, %s23_s20), 0  ;;  %s59_s23 = sadd.s32 1, %s1402_s16 }
   0x7   : > { %p68_p3 = por %p67_p2, %p66_p1  ;;  %s56_s22 = ssub.s32 %s1410_s18, %s1726_s20 }
   0x8   : > { %p57_p5 = scmp.eq.s32.totalorder %s56_s22, 0  ;;  %p1476_p6 = por %p150_p4, %p66_p1 }
   0x9   : > { %p1165_p7 = scmp.ge.s32.totalorder %s1414_s19, 2 }
   0xa   : > { %s1481_s25 = scalar_select %p57_p5, %s1402_s16, %s59_s23  }
   0xb   : > { %182 = sbr.rel (%p1165_p7) target bundleno = 64 (0x40), region = 20 }
  0x12   : > { %185 = sbr.rel (!%p68_p3) target bundleno = 64 (0x40), region = 24  ;;  %s187_s26 = sand.u32 (%p68_p3), 1, %s1402_s16  }
  0x13   : > { %s1167_s27 = sshll.u32 (%p68_p3), %s1410_s18, 2  ;;  %s1166_s28 = sshll.u32 (%p68_p3), %s187_s26, 8 }
  0x14   : > { %s1489_s5 = scalar_lea.vmem (%p68_p3), %s1716_s1, %s1167_s27  ;;  %s1493_s6 = scalar_lea.vmem (%p68_p3), [#allocation2], %s1166_s28 }
  0x15   : > { %v207_v0 = vld [vmem:[%s1489_s5] sm:$0xf] (%p68_p3)  ;;  %v209_v1 = vld [vmem:[%s1489_s5 + $0x8] sm:$0xf] (%p68_p3)  ;;  %v211_v2 = vld [vmem:[%s1489_s5 + $0x10] sm:$0xf] (%p68_p3) }
  0x16   : > { %208 = vst [vmem:[%s1493_s6] sm:$0xf] (%p68_p3), %v207_v0  ;;  %210 = vst [vmem:[%s1493_s6 + $0x4] sm:$0xf] (%p68_p3), %v209_v1  ;;  %v213_v3 = vld [vmem:[%s1489_s5 + $0x18] sm:$0xf] (%p68_p3) }
  0x17   : > { %v215_v4 = vld [vmem:[%s1489_s5 + $0x20] sm:$0xf] (%p68_p3)  ;;  %212 = vst [vmem:[%s1493_s6 + $0x8] sm:$0xf] (%p68_p3), %v211_v2  ;;  %214 = vst [vmem:[%s1493_s6 + $0xc] sm:$0xf] (%p68_p3), %v213_v3 }
  0x18   : > { %216 = vst [vmem:[%s1493_s6 + $0x10] sm:$0xf] (%p68_p3), %v215_v4  ;;  %v217_v5 = vld [vmem:[%s1489_s5 + $0x28] sm:$0xf] (%p68_p3)  ;;  %v219_v6 = vld [vmem:[%s1489_s5 + $0x30] sm:$0xf] (%p68_p3) }
  0x19   : > { %v221_v7 = vld [vmem:[%s1489_s5 + $0x38] sm:$0xf]  ;;  %218 = vst [vmem:[%s1493_s6 + $0x14] sm:$0xf] %v217_v5  ;;  %220 = vst [vmem:[%s1493_s6 + $0x18] sm:$0xf] %v219_v6 }
  0x1a   : > { %222 = vst [vmem:[%s1493_s6 + $0x1c] sm:$0xf] %v221_v7  ;;  %v223_v8 = vld [vmem:[%s1489_s5 + $0x40] sm:$0xf]  ;;  %v225_v9 = vld [vmem:[%s1489_s5 + $0x48] sm:$0xf] }
  0x1b   : > { %v227_v10 = vld [vmem:[%s1489_s5 + $0x50] sm:$0xf]  ;;  %224 = vst [vmem:[%s1493_s6 + $0x20] sm:$0xf] %v223_v8  ;;  %226 = vst [vmem:[%s1493_s6 + $0x24] sm:$0xf] %v225_v9 }
  0x1c   : > { %228 = vst [vmem:[%s1493_s6 + $0x28] sm:$0xf] %v227_v10  ;;  %v229_v11 = vld [vmem:[%s1489_s5 + $0x58] sm:$0xf]  ;;  %v231_v12 = vld [vmem:[%s1489_s5 + $0x60] sm:$0xf] }
  0x1d   : > { %v233_v13 = vld [vmem:[%s1489_s5 + $0x68] sm:$0xf]  ;;  %230 = vst [vmem:[%s1493_s6 + $0x2c] sm:$0xf] %v229_v11  ;;  %232 = vst [vmem:[%s1493_s6 + $0x30] sm:$0xf] %v231_v12 }
  0x1e   : > { %234 = vst [vmem:[%s1493_s6 + $0x34] sm:$0xf] %v233_v13  ;;  %v235_v14 = vld [vmem:[%s1489_s5 + $0x70] sm:$0xf]  ;;  %v237_v15 = vld [vmem:[%s1489_s5 + $0x78] sm:$0xf] }
  0x1f   : > { %v239_v16 = vld [vmem:[%s1489_s5 + $0x80] sm:$0xf]  ;;  %236 = vst [vmem:[%s1493_s6 + $0x38] sm:$0xf] %v235_v14  ;;  %238 = vst [vmem:[%s1493_s6 + $0x3c] sm:$0xf] %v237_v15 }
  0x20   : > { %240 = vst [vmem:[%s1493_s6 + $0x40] sm:$0xf] %v239_v16  ;;  %v241_v17 = vld [vmem:[%s1489_s5 + $0x88] sm:$0xf]  ;;  %v243_v18 = vld [vmem:[%s1489_s5 + $0x90] sm:$0xf] }
  0x21   : > { %v245_v19 = vld [vmem:[%s1489_s5 + $0x98] sm:$0xf]  ;;  %242 = vst [vmem:[%s1493_s6 + $0x44] sm:$0xf] %v241_v17  ;;  %244 = vst [vmem:[%s1493_s6 + $0x48] sm:$0xf] %v243_v18 }
  0x22   : > { %246 = vst [vmem:[%s1493_s6 + $0x4c] sm:$0xf] %v245_v19  ;;  %v247_v20 = vld [vmem:[%s1489_s5 + $0xa0] sm:$0xf]  ;;  %v249_v21 = vld [vmem:[%s1489_s5 + $0xa8] sm:$0xf] }
  0x23   : > { %v251_v22 = vld [vmem:[%s1489_s5 + $0xb0] sm:$0xf]  ;;  %248 = vst [vmem:[%s1493_s6 + $0x50] sm:$0xf] %v247_v20  ;;  %250 = vst [vmem:[%s1493_s6 + $0x54] sm:$0xf] %v249_v21 }
  0x24   : > { %252 = vst [vmem:[%s1493_s6 + $0x58] sm:$0xf] %v251_v22  ;;  %v253_v23 = vld [vmem:[%s1489_s5 + $0xb8] sm:$0xf]  ;;  %v255_v24 = vld [vmem:[%s1489_s5 + $0xc0] sm:$0xf] }
  0x25   : > { %v257_v25 = vld [vmem:[%s1489_s5 + $0xc8] sm:$0xf]  ;;  %254 = vst [vmem:[%s1493_s6 + $0x5c] sm:$0xf] %v253_v23  ;;  %256 = vst [vmem:[%s1493_s6 + $0x60] sm:$0xf] %v255_v24 }
  0x26   : > { %258 = vst [vmem:[%s1493_s6 + $0x64] sm:$0xf] %v257_v25  ;;  %v259_v26 = vld [vmem:[%s1489_s5 + $0xd0] sm:$0xf]  ;;  %v261_v27 = vld [vmem:[%s1489_s5 + $0xd8] sm:$0xf] }
  0x27   : > { %v263_v28 = vld [vmem:[%s1489_s5 + $0xe0] sm:$0xf]  ;;  %260 = vst [vmem:[%s1493_s6 + $0x68] sm:$0xf] %v259_v26  ;;  %262 = vst [vmem:[%s1493_s6 + $0x6c] sm:$0xf] %v261_v27 }
  0x28   : > { %264 = vst [vmem:[%s1493_s6 + $0x70] sm:$0xf] %v263_v28  ;;  %v265_v29 = vld [vmem:[%s1489_s5 + $0xe8] sm:$0xf]  ;;  %v267_v30 = vld [vmem:[%s1489_s5 + $0xf0] sm:$0xf] }
  0x29   : > { %v269_v31 = vld [vmem:[%s1489_s5 + $0xf8] sm:$0xf]  ;;  %266 = vst [vmem:[%s1493_s6 + $0x74] sm:$0xf] %v265_v29  ;;  %268 = vst [vmem:[%s1493_s6 + $0x78] sm:$0xf] %v267_v30 }
  0x2a   : > { %270 = vst [vmem:[%s1493_s6 + $0x7c] sm:$0xf] %v269_v31  ;;  %v271_v32 = vld [vmem:[%s1489_s5 + $0x100] sm:$0xf]  ;;  %v273_v33 = vld [vmem:[%s1489_s5 + $0x108] sm:$0xf] }
  0x2b   : > { %v275_v34 = vld [vmem:[%s1489_s5 + $0x110] sm:$0xf]  ;;  %272 = vst [vmem:[%s1493_s6 + $0x80] sm:$0xf] %v271_v32  ;;  %274 = vst [vmem:[%s1493_s6 + $0x84] sm:$0xf] %v273_v33 }
  0x2c   : > { %276 = vst [vmem:[%s1493_s6 + $0x88] sm:$0xf] %v275_v34  ;;  %v277_v35 = vld [vmem:[%s1489_s5 + $0x118] sm:$0xf]  ;;  %v279_v36 = vld [vmem:[%s1489_s5 + $0x120] sm:$0xf] }
  0x2d   : > { %v281_v37 = vld [vmem:[%s1489_s5 + $0x128] sm:$0xf]  ;;  %278 = vst [vmem:[%s1493_s6 + $0x8c] sm:$0xf] %v277_v35  ;;  %280 = vst [vmem:[%s1493_s6 + $0x90] sm:$0xf] %v279_v36 }
  0x2e   : > { %282 = vst [vmem:[%s1493_s6 + $0x94] sm:$0xf] %v281_v37  ;;  %v283_v38 = vld [vmem:[%s1489_s5 + $0x130] sm:$0xf]  ;;  %v285_v39 = vld [vmem:[%s1489_s5 + $0x138] sm:$0xf] }
  0x2f   : > { %v287_v40 = vld [vmem:[%s1489_s5 + $0x140] sm:$0xf]  ;;  %284 = vst [vmem:[%s1493_s6 + $0x98] sm:$0xf] %v283_v38  ;;  %286 = vst [vmem:[%s1493_s6 + $0x9c] sm:$0xf] %v285_v39 }
  0x30   : > { %288 = vst [vmem:[%s1493_s6 + $0xa0] sm:$0xf] %v287_v40  ;;  %v289_v41 = vld [vmem:[%s1489_s5 + $0x148] sm:$0xf]  ;;  %v291_v42 = vld [vmem:[%s1489_s5 + $0x150] sm:$0xf] }
  0x31   : > { %v293_v43 = vld [vmem:[%s1489_s5 + $0x158] sm:$0xf]  ;;  %290 = vst [vmem:[%s1493_s6 + $0xa4] sm:$0xf] %v289_v41  ;;  %292 = vst [vmem:[%s1493_s6 + $0xa8] sm:$0xf] %v291_v42 }
  0x32   : > { %294 = vst [vmem:[%s1493_s6 + $0xac] sm:$0xf] %v293_v43  ;;  %v295_v44 = vld [vmem:[%s1489_s5 + $0x160] sm:$0xf]  ;;  %v297_v45 = vld [vmem:[%s1489_s5 + $0x168] sm:$0xf] }
  0x33   : > { %v299_v46 = vld [vmem:[%s1489_s5 + $0x170] sm:$0xf]  ;;  %296 = vst [vmem:[%s1493_s6 + $0xb0] sm:$0xf] %v295_v44  ;;  %298 = vst [vmem:[%s1493_s6 + $0xb4] sm:$0xf] %v297_v45 }
  0x34   : > { %300 = vst [vmem:[%s1493_s6 + $0xb8] sm:$0xf] %v299_v46  ;;  %v301_v47 = vld [vmem:[%s1489_s5 + $0x178] sm:$0xf]  ;;  %v303_v48 = vld [vmem:[%s1489_s5 + $0x180] sm:$0xf] }
  0x35   : > { %v305_v49 = vld [vmem:[%s1489_s5 + $0x188] sm:$0xf]  ;;  %302 = vst [vmem:[%s1493_s6 + $0xbc] sm:$0xf] %v301_v47  ;;  %304 = vst [vmem:[%s1493_s6 + $0xc0] sm:$0xf] %v303_v48 }
  0x36   : > { %306 = vst [vmem:[%s1493_s6 + $0xc4] sm:$0xf] %v305_v49  ;;  %v307_v50 = vld [vmem:[%s1489_s5 + $0x190] sm:$0xf]  ;;  %v309_v51 = vld [vmem:[%s1489_s5 + $0x198] sm:$0xf] }
  0x37   : > { %v311_v52 = vld [vmem:[%s1489_s5 + $0x1a0] sm:$0xf]  ;;  %308 = vst [vmem:[%s1493_s6 + $0xc8] sm:$0xf] %v307_v50  ;;  %310 = vst [vmem:[%s1493_s6 + $0xcc] sm:$0xf] %v309_v51 }
  0x38   : > { %312 = vst [vmem:[%s1493_s6 + $0xd0] sm:$0xf] %v311_v52  ;;  %v313_v53 = vld [vmem:[%s1489_s5 + $0x1a8] sm:$0xf]  ;;  %v315_v54 = vld [vmem:[%s1489_s5 + $0x1b0] sm:$0xf] }
  0x39   : > { %v317_v55 = vld [vmem:[%s1489_s5 + $0x1b8] sm:$0xf]  ;;  %314 = vst [vmem:[%s1493_s6 + $0xd4] sm:$0xf] %v313_v53  ;;  %316 = vst [vmem:[%s1493_s6 + $0xd8] sm:$0xf] %v315_v54 }
  0x3a   : > { %318 = vst [vmem:[%s1493_s6 + $0xdc] sm:$0xf] %v317_v55  ;;  %v319_v56 = vld [vmem:[%s1489_s5 + $0x1c0] sm:$0xf]  ;;  %v321_v57 = vld [vmem:[%s1489_s5 + $0x1c8] sm:$0xf] }
  0x3b   : > { %v323_v58 = vld [vmem:[%s1489_s5 + $0x1d0] sm:$0xf]  ;;  %320 = vst [vmem:[%s1493_s6 + $0xe0] sm:$0xf] %v319_v56  ;;  %322 = vst [vmem:[%s1493_s6 + $0xe4] sm:$0xf] %v321_v57 }
  0x3c   : > { %324 = vst [vmem:[%s1493_s6 + $0xe8] sm:$0xf] %v323_v58  ;;  %v325_v59 = vld [vmem:[%s1489_s5 + $0x1d8] sm:$0xf]  ;;  %v327_v60 = vld [vmem:[%s1489_s5 + $0x1e0] sm:$0xf] }
  0x3d   : > { %v329_v61 = vld [vmem:[%s1489_s5 + $0x1e8] sm:$0xf]  ;;  %326 = vst [vmem:[%s1493_s6 + $0xec] sm:$0xf] %v325_v59  ;;  %328 = vst [vmem:[%s1493_s6 + $0xf0] sm:$0xf] %v327_v60 }
  0x3e   : > { %330 = vst [vmem:[%s1493_s6 + $0xf4] sm:$0xf] %v329_v61  ;;  %v331_v62 = vld [vmem:[%s1489_s5 + $0x1f0] sm:$0xf]  ;;  %v333_v63 = vld [vmem:[%s1489_s5 + $0x1f8] sm:$0xf] }
  0x3f   : > { %332 = vst [vmem:[%s1493_s6 + $0xf8] sm:$0xf] %v331_v62  ;;  %334 = vst [vmem:[%s1493_s6 + $0xfc] sm:$0xf] %v333_v63 }
  0x40 PF: > { %p1168_p8 = scmp.ge.s32.totalorder %s1414_s19, 1  ;;  %p496_p9 = scmp.lt.s32.totalorder %s1414_s19, 3 }
  0x42   : > { %p497_p10 = pnand %p1168_p8, %p496_p9 }
  0x43   : > { %s503_s7 = sand.u32 (!%p497_p10), 1, %s1398_s15   ;;  %v1366_v0 = vld [vmem:[%s1715_s0 + $0x4] ss:$16 sps:$4 sm:$0xff] (!%p497_p10)   ;;  %v1369_v1 = vld [vmem:[%s1715_s0 + $0xc] ss:$16 sps:$4 sm:$0xff] (!%p497_p10)   ;;  %p546_p11 = scmp.lt.s32.totalorder (!%p497_p10), %s1406_s17, 1 }
  0x44   : > { %500 = sbr.rel (%p497_p10) target bundleno = 347 (0x15b), region = 73  ;;  %s1169_s8 = sshll.u32 (!%p497_p10), %s503_s7, 8  ;;  %890 = vmatprep.mubr.bf16.mxu0 (!%p497_p10), %v1366_v0  ;;  %939 = vmatprep.mubr.bf16.mxu1 (!%p497_p10), %v1369_v1  ;;  %v1364_v32 = vld [vmem:[%s1715_s0] ss:$16 sps:$4 sm:$0xff] (!%p497_p10)   ;;  %v1367_v34 = vld [vmem:[%s1715_s0 + $0x8] ss:$16 sps:$4 sm:$0xff] (!%p497_p10)  }
  0x45   : > { %s1632_s13 = scalar_lea.vmem (!%p497_p10), [#allocation2], %s1169_s8  ;;  %v1370_v36 = vld [vmem:[%s1715_s0 + $0x24] ss:$16 sps:$4 sm:$0xff] (!%p497_p10)   ;;  %v1372_v37 = vld [vmem:[%s1715_s0 + $0x2c] ss:$16 sps:$4 sm:$0xff] (!%p497_p10)   ;;  %s1170_s22 = sshll.u32 (!%p497_p10), %s503_s7, 4 }
  0x46   : > { %v1332_v2 = vld [vmem:[%s1632_s13 + $0x40] sm:$0xff] (!%p497_p10)   ;;  %v1336_v6 = vld [vmem:[%s1632_s13 + $0x48] sm:$0xff] (!%p497_p10)   ;;  %v1340_v10 = vld [vmem:[%s1632_s13 + $0x50] sm:$0xff] (!%p497_p10)   ;;  %s538_s23 = scalar_lea.vmem (!%p497_p10), [#allocation3], %s1170_s22 }
  0x47   : > { %v1333_v3 = vld [vmem:[%s1632_s13 + $0xc0] sm:$0xff] (!%p497_p10)   ;;  %1236 = vmatprep.subr.bf16.mxu0 (!%p497_p10), %v1332_v2  ;;  %v1337_v7 = vld [vmem:[%s1632_s13 + $0xc8] sm:$0xff] (!%p497_p10)   ;;  %v1341_v11 = vld [vmem:[%s1632_s13 + $0xd0] sm:$0xff] (!%p497_p10)  }
  0x48   : > { %v1334_v4 = vld [vmem:[%s1632_s13] sm:$0xff] (!%p497_p10)   ;;  %1264 = vmatprep.subr.bf16.mxu1 (!%p497_p10), %v1333_v3  ;;  %v1338_v8 = vld [vmem:[%s1632_s13 + $0x8] sm:$0xff] (!%p497_p10)   ;;  %v1342_v12 = vld [vmem:[%s1632_s13 + $0x10] sm:$0xff] (!%p497_p10)  }
  0x49   : > { %v1335_v5 = vld [vmem:[%s1632_s13 + $0x80] sm:$0xff] (!%p497_p10)   ;;  %1237 = vmatpush3.bf16.msra.mxu0 (!%p497_p10), %v1334_v4  ;;  %v1339_v9 = vld [vmem:[%s1632_s13 + $0x88] sm:$0xff] (!%p497_p10)   ;;  %v1343_v13 = vld [vmem:[%s1632_s13 + $0x90] sm:$0xff] (!%p497_p10)  }
  0x4a   : > { %1265 = vmatpush3.bf16.msra.mxu1 (!%p497_p10), %v1335_v5  ;;  %1238 = vmatprep.subr.bf16.mxu0 (!%p497_p10), %v1336_v6  ;;  %v1344_v14 = vld [vmem:[%s1632_s13 + $0x58] sm:$0xff] (!%p497_p10)   ;;  %v1348_v18 = vld [vmem:[%s1632_s13 + $0x60] sm:$0xff] (!%p497_p10)   ;;  %v1352_v22 = vld [vmem:[%s1632_s13 + $0x68] sm:$0xff] (!%p497_p10)  }
  0x4b   : > { %1266 = vmatprep.subr.bf16.mxu1 %v1337_v7  ;;  %v1345_v15 = vld [vmem:[%s1632_s13 + $0xd8] sm:$0xff]   ;;  %v1349_v19 = vld [vmem:[%s1632_s13 + $0xe0] sm:$0xff]   ;;  %v1353_v23 = vld [vmem:[%s1632_s13 + $0xe8] sm:$0xff]   ;;  %s547_s9 = scalar_select %p546_p11, %s1406_s17, 1 }
  0x4c   : > { %v1346_v16 = vld [vmem:[%s1632_s13 + $0x18] sm:$0xff]   ;;  %v1350_v20 = vld [vmem:[%s1632_s13 + $0x20] sm:$0xff]   ;;  %v1354_v24 = vld [vmem:[%s1632_s13 + $0x28] sm:$0xff]   ;;  %s1218_s15 = sshll.u32 (%p1476_p6), %s1406_s17, 2 }
  0x4d   : > { %1239 = vmatpush3.bf16.msra.mxu0 %v1338_v8  ;;  %v1347_v17 = vld [vmem:[%s1632_s13 + $0x98] sm:$0xff]   ;;  %v1351_v21 = vld [vmem:[%s1632_s13 + $0xa0] sm:$0xff]   ;;  %v1355_v25 = vld [vmem:[%s1632_s13 + $0xa8] sm:$0xff]   ;;  %s548_s12 = scalar_lea.vmem %s1717_s2, %s547_s9  ;;  %s551_s21 = scalar_lea.vmem %s1718_s3, %s547_s9 }
  0x4e   : > { %1267 = vmatpush3.bf16.msra.mxu1 %v1339_v9  ;;  %1240 = vmatprep.subr.bf16.mxu0 %v1340_v10  ;;  %v1356_v26 = vld [vmem:[%s1632_s13 + $0x70] sm:$0xff]   ;;  %v1360_v30 = vld [vmem:[%s1632_s13 + $0x78] sm:$0xff]   ;;  %v1211_v49 = vld [vmem:[%s548_s12] ss:$0 sm:$0xff]  ;;  %s1009_s27 = scalar_lea.vmem (%p1476_p6), %s1719_s4, %s1218_s15 }
  0x4f   : > { %1268 = vmatprep.subr.bf16.mxu1 %v1341_v11  ;;  %v1357_v27 = vld [vmem:[%s1632_s13 + $0xf0] sm:$0xff]   ;;  %v1361_v31 = vld [vmem:[%s1632_s13 + $0xf8] sm:$0xff]   ;;  %v1212_v56 = vld [vmem:[%s551_s21] ss:$0 sm:$0xff] }
  0x50   : > { %v1358_v28 = vld [vmem:[%s1632_s13 + $0x30] sm:$0xff]   ;;  %v1362_v33 = vld [vmem:[%s1632_s13 + $0x38] sm:$0xff]  }
  0x51   : > { %1241 = vmatpush3.bf16.msra.mxu0 %v1342_v12  ;;  %v1359_v29 = vld [vmem:[%s1632_s13 + $0xb0] sm:$0xff]   ;;  %v1363_v35 = vld [vmem:[%s1632_s13 + $0xb8] sm:$0xff]  }
  0x52   : > { %1269 = vmatpush3.bf16.msra.mxu1 %v1343_v13  ;;  %1242 = vmatprep.subr.bf16.mxu0 %v1344_v14  ;;  %v1374_v38 = vld [vmem:[%s1715_s0 + $0x20] ss:$16 sps:$4 sm:$0xff]   ;;  %v1375_v39 = vld [vmem:[%s1715_s0 + $0x28] ss:$16 sps:$4 sm:$0xff]  }
  0x53   : > { %1270 = vmatprep.subr.bf16.mxu1 %v1345_v15 }
  0x55   : > { %1243 = vmatpush3.bf16.msra.mxu0 %v1346_v16 }
  0x56   : > { %1271 = vmatpush3.bf16.msra.mxu1 %v1347_v17  ;;  %1244 = vmatprep.subr.bf16.mxu0 %v1348_v18 }
  0x57   : > { %1272 = vmatprep.subr.bf16.mxu1 %v1349_v19 }
  0x59   : > { %1245 = vmatpush3.bf16.msra.mxu0 %v1350_v20 }
  0x5a   : > { %1273 = vmatpush3.bf16.msra.mxu1 %v1351_v21  ;;  %1246 = vmatprep.subr.bf16.mxu0 %v1352_v22 }
  0x5b   : > { %1274 = vmatprep.subr.bf16.mxu1 %v1353_v23 }
  0x5d   : > { %1247 = vmatpush3.bf16.msra.mxu0 %v1354_v24 }
  0x5e   : > { %1275 = vmatpush3.bf16.msra.mxu1 %v1355_v25  ;;  %1248 = vmatprep.subr.bf16.mxu0 %v1356_v26 }
  0x5f   : > { %1276 = vmatprep.subr.bf16.mxu1 %v1357_v27 }
  0x61   : > { %1249 = vmatpush3.bf16.msra.mxu0 %v1358_v28 }
  0x62   : > { %1277 = vmatpush3.bf16.msra.mxu1 %v1359_v29  ;;  %1250 = vmatprep.subr.bf16.mxu0 %v1360_v30 }
  0x63   : > { %1278 = vmatprep.subr.bf16.mxu1 %v1361_v31 }
  0x65   : > { %1251 = vmatpush3.bf16.msra.mxu0 %v1362_v33 }
  0x66   : > { %1279 = vmatpush3.bf16.msra.mxu1 %v1363_v35 }
  0x68   : > { %891 = vmatmul.mubr.bf16.vlgmr.msra.gmra.mrb[0].mxu0 %v1364_v32 }
  0x69   : > { %940 = vmatmul.mubr.bf16.vlgmr.msra.gmra.mrb[0].mxu1 %v1367_v34  ;;  %898 = vmatprep.mubr.bf16.mxu0 %v1370_v36 }
  0x6a   : > { %947 = vmatprep.mubr.bf16.mxu1 %v1372_v37 }
  0x70   : > { %899 = vmatmul.mubr.bf16.gmra.mrb[4].mxu0 %v1374_v38 }
  0x71   : > { %948 = vmatmul.mubr.bf16.gmra.mrb[4].mxu1 %v1375_v39 }
 0x13b   : > { %v1252_v40 = vpop.f32.mrb[0].mxu0 }
 0x13c   : > { %v1280_v41 = vpop.f32.mrb[0].mxu1  ;;  %v1253_v42 = vpop.f32.mrb[1].mxu0 }
 0x13d   : > { %v1254_v43 = vadd.f32 %v1253_v42, %v1252_v40  ;;  %v1281_v44 = vpop.f32.mrb[1].mxu1  ;;  %v1255_v45 = vpop.f32.mrb[2].mxu0 }
 0x13e   : > { %v1282_v46 = vadd.f32 %v1281_v44, %v1280_v41  ;;  %v1283_v47 = vpop.f32.mrb[2].mxu1  ;;  %v1256_v48 = vpop.f32.mrb[3].mxu0 }
 0x13f   : > { %v1257_v50 = vadd.f32 %v1256_v48, %v1255_v45  ;;  %v1284_v51 = vpop.f32.mrb[3].mxu1 }
 0x140   : > { %v942_v52 = vadd.f32 %v1282_v46, %v1254_v43  ;;  %v1285_v53 = vadd.f32 %v1284_v51, %v1283_v47 }
 0x142   : > { %v963_v54 = vmul.f32 %v1211_v49, %v942_v52  ;;  %v945_v55 = vadd.f32 %v1285_v53, %v1257_v50 }
 0x143   : > { %v1258_v57 = vpop.f32.mrb[4].mxu0 }
 0x144   : > { %v964_v58 = vmul.f32 %v1211_v49, %v945_v55  ;;  %v1286_v59 = vpop.f32.mrb[4].mxu1  ;;  %v1259_v60 = vpop.f32.mrb[5].mxu0  ;;  %v974_v0 = vadd.f32 %v1212_v56, %v963_v54 }
 0x145   : > { %v1260_v61 = vadd.f32 %v1259_v60, %v1258_v57  ;;  %v1287_v62 = vpop.f32.mrb[5].mxu1  ;;  %v1261_v63 = vpop.f32.mrb[6].mxu0 }
 0x146   : > { %v975_v1 = vadd.f32 %v1212_v56, %v964_v58  ;;  %v1288_v2 = vadd.f32 %v1287_v62, %v1286_v59  ;;  %v1289_v3 = vpop.f32.mrb[6].mxu1  ;;  %v1262_v4 = vpop.f32.mrb[7].mxu0 }
 0x147   : > { %v1263_v5 = vadd.f32 %v1262_v4, %v1261_v63  ;;  %v1290_v6 = vpop.f32.mrb[7].mxu1 }
 0x148   : > { %v1228_v7 = vpack.c.bf16 %v975_v1, %v974_v0  ;;  %v950_v8 = vadd.f32 %v1288_v2, %v1260_v61  ;;  %v1291_v9 = vadd.f32 %v1290_v6, %v1289_v3 }
 0x14a   : > { %1229 = vst [vmem:[%s538_s23] sm:$0xff] %v1228_v7   ;;  %v965_v10 = vmul.f32 %v1211_v49, %v950_v8  ;;  %v953_v11 = vadd.f32 %v1291_v9, %v1263_v5 }
 0x14c   : > { %v966_v12 = vmul.f32 %v1211_v49, %v953_v11  ;;  %v976_v13 = vadd.f32 %v1212_v56, %v965_v10  ;;  %1004 = sbr.rel (!%p1476_p6) target bundleno = 347 (0x15b), region = 81 }
 0x14e   : > { %v977_v14 = vadd.f32 %v1212_v56, %v966_v12 }
 0x150   : > { %v1233_v15 = vpack.c.bf16 %v977_v14, %v976_v13 }
 0x151   : > { %v1025_v16 = vld [vmem:[%s538_s23] sm:$0xf] (%p1476_p6)  ;;  %v1027_v17 = vld [vmem:[%s538_s23 + $0x4] sm:$0xf] (%p1476_p6) }
 0x152   : > { %1235 = vst [vmem:[%s538_s23 + $0x8] sm:$0xff] %v1233_v15   ;;  %1026 = vst [vmem:[%s1009_s27] sm:$0xf] (%p1476_p6), %v1025_v16 }
 0x153   : > { %1028 = vst [vmem:[%s1009_s27 + $0x8] sm:$0xf] %v1027_v17 }
 0x159   : > { %v1029_v18 = vld [vmem:[%s538_s23 + $0x8] sm:$0xf]  ;;  %v1031_v19 = vld [vmem:[%s538_s23 + $0xc] sm:$0xf] }
 0x15a   : > { %1030 = vst [vmem:[%s1009_s27 + $0x10] sm:$0xf] %v1029_v18  ;;  %1032 = vst [vmem:[%s1009_s27 + $0x18] sm:$0xf] %v1031_v19 }
 0x15b PF: > { %s14_s19 = sadd.s32 1, %s1414_s19   ;;  %s1721_s15 = smov %s1402_s16 }
 0x15c   : > { %p11_p12 = scmp.ge.s32.totalorder %s14_s19, 4   ;;  %s1722_s16 = smov %s1481_s25 }
 0x15d   : > { %s1723_s17 = smov %s1410_s18  ;;  %s1724_s18 = smov %s1726_s20 }
 0x15e   :  { %13 = sbr.rel (!%p11_p12) target bundleno = 3 (0x3), region = 162 }

// kernel: tile.38
= control target key start
LH: loop header
LB: loop body
LE: loop exit
PB: predicated region body
PF: predicated region fallthrough
CT: control target
= control target key end

     0   :  { %s22_s0 = inlined_call_operand.vmem [shape: f32[32], index: 0, kind: input, shape index: {}]   ;;  %s23_s1 = inlined_call_operand.vmem [shape: f32[4,32], index: 1, kind: output, shape index: {}]  }
   0x1   :  { %v4_v0 = vld [vmem:[%s22_s0] ss:$0 sm:$0xff] }
   0x2   :  { %5 = vst [vmem:[%s23_s1] sm:$0xf] %v4_v0 }

// kernel: tile.39
= control target key start
LH: loop header
LB: loop body
LE: loop exit
PB: predicated region body
PF: predicated region fallthrough
CT: control target
= control target key end

     0   :  { %vm7_vm0 = vcmask 261120   ;;  %s37_s8 = smov 32   ;;  %s38_s9 = smov 64   ;;  %vm13_vm1 = vcmask 1048320   ;;  %vm19_vm2 = vcmask 785920   ;;  %vm25_vm3 = vcmask 523520   ;;  %s55_s0 = inlined_call_operand.vmem [shape: f32[4,32], index: 0, kind: input, shape index: {}]   ;;  %s56_s1 = inlined_call_operand.vmem [shape: f32[1,128], index: 1, kind: output, shape index: {}]  }
   0x1   :  { %v4_v0 = vld [vmem:[%s55_s0] sm:$0xf]  ;;  %s36_s0 = smov 96  }
   0x2   :  { %5 = vst [vmem:[#allocation1] sm:$0xf] %v4_v0 }
   0x9   :  { %v10_v1 = vld [vmem:[#allocation1 + $0x3] sm:$0x1]   ;;  %v22_v2 = vld [vmem:[#allocation1 + $0x1] sm:$0x1]   ;;  %v6_v3 = vld [vmem:[#allocation1] sm:$0x1]  }
   0xa   :  { %11 = vrot.lane.b32.xlu0 %v10_v1, %s36_s0  ;;  %23 = vrot.lane.b32.xlu1 %v22_v2, %s37_s8  ;;  %v16_v4 = vld [vmem:[#allocation1 + $0x2] sm:$0x1]   ;;  %8 = vst.msk [vmem:[#allocation0] sm:$0x1] %vm7_vm0, %v6_v3  }
   0xe   :  { %17 = vrot.lane.b32.xlu0 %v16_v4, %s38_s9 }
  0x7c   :  { %v12_v5 = vpop.permute.xlu0 %11   ;;  %v24_v6 = vpop.permute.xlu1 %23  }
  0x7d   :  { %14 = vst.msk [vmem:[#allocation0] sm:$0x1] %vm13_vm1, %v12_v5  }
  0x80   :  { %v18_v7 = vpop.permute.xlu0 %17  }
  0x81   :  { %20 = vst.msk [vmem:[#allocation0] sm:$0x1] %vm19_vm2, %v18_v7  }
  0x82   :  { %26 = vst.msk [vmem:[#allocation0] sm:$0x1] %vm25_vm3, %v24_v6  }
  0x89   :  { %v30_v8 = vld [vmem:[#allocation0] sm:$0x1] }
  0x8a   :  { %32 = vst [vmem:[%s56_s1] sm:$0x1] %v30_v8 }

// kernel: autoencoder_forward.16
= control target key start
LH: loop header
LB: loop body
LE: loop exit
PB: predicated region body
PF: predicated region fallthrough
CT: control target
= control target key end

     0   :  { %s933_s15 = smov 0   ;;  %s935_s16 = smov 0   ;;  %s1034_s0 = inlined_call_operand.vmem [shape: bf16[128,256], index: 0, kind: input, shape index: {}]   ;;  %s1035_s1 = inlined_call_operand.vmem [shape: bf16[256,128], index: 1, kind: input, shape index: {}]   ;;  %s1036_s2 = inlined_call_operand.vmem [shape: f32[1,128], index: 2, kind: input, shape index: {}]   ;;  %s1037_s3 = inlined_call_operand.vmem [shape: f32[1,128], index: 3, kind: input, shape index: {}]   ;;  %s1038_s4 = inlined_call_operand.vmem [shape: bf16[128,128], index: 4, kind: output, shape index: {}]  }
   0x1   :  { %s937_s17 = smov 0  }
   0x2 LB: > { %s26_s18 = sadd.s32 1, %s902_s16  ;;  %p702_p0 = scmp.ge.s32.totalorder %s906_s17, 1  ;;  %s906_s17 = sphi %s937_s17, %s14_s17   ;;  %s902_s16 = sphi %s935_s16, %s1040_s16   ;;  %s898_s15 = sphi %s933_s15, %s1039_s15  }
   0x3   : > { %p28_p1 = scmp.ge.s32.totalorder %s26_s18, 2  ;;  %p203_p2 = scmp.lt.s32.totalorder %s906_s17, 3 }
   0x5   : > { %s1042_s18 = smov (%p28_p1, %s26_s18), 0  ;;  %p204_p3 = pnand %p702_p0, %p203_p2 }
   0x6   : > { %v856_v0 = vld [vmem:[%s1035_s1 + $0x40] sm:$0xff] (!%p204_p3)   ;;  %s703_s21 = sshll.u32 (!%p204_p3), %s898_s15, 3  ;;  %v858_v2 = vld [vmem:[%s1035_s1 + $0x48] sm:$0xff] (!%p204_p3)   ;;  %v860_v4 = vld [vmem:[%s1035_s1 + $0x50] sm:$0xff] (!%p204_p3)  }
   0x7   : > { %207 = sbr.rel (%p204_p3) target bundleno = 272 (0x110), region = 36  ;;  %v857_v1 = vld [vmem:[%s1035_s1] sm:$0xff] (!%p204_p3)   ;;  %776 = vmatprep.subr.bf16.mxu0 (!%p204_p3), %v856_v0  ;;  %816 = vmatprep.subr.bf16.mxu1 (!%p204_p3), %v856_v0  ;;  %v859_v3 = vld [vmem:[%s1035_s1 + $0x8] sm:$0xff] (!%p204_p3)   ;;  %p244_p4 = scmp.lt.s32.totalorder (!%p204_p3), %s703_s21, 15  ;;  %v861_v5 = vld [vmem:[%s1035_s1 + $0x10] sm:$0xff] (!%p204_p3)  }
   0x8   : > { %777 = vmatpush3.bf16.msra.mxu0 (!%p204_p3), %v857_v1  ;;  %824 = vmatpush3.bf16.msra.mxu1 (!%p204_p3), %v857_v1  ;;  %v862_v6 = vld [vmem:[%s1035_s1 + $0x58] sm:$0xff] (!%p204_p3)   ;;  %v864_v8 = vld [vmem:[%s1035_s1 + $0x60] sm:$0xff] (!%p204_p3)   ;;  %v866_v10 = vld [vmem:[%s1035_s1 + $0x68] sm:$0xff] (!%p204_p3)  }
   0x9   : > { %778 = vmatprep.subr.bf16.mxu0 (!%p204_p3), %v858_v2  ;;  %817 = vmatprep.subr.bf16.mxu1 (!%p204_p3), %v858_v2  ;;  %v863_v7 = vld [vmem:[%s1035_s1 + $0x18] sm:$0xff] (!%p204_p3)   ;;  %v865_v9 = vld [vmem:[%s1035_s1 + $0x20] sm:$0xff] (!%p204_p3)   ;;  %v867_v13 = vld [vmem:[%s1035_s1 + $0x28] sm:$0xff] (!%p204_p3)  }
   0xa   : > { %v868_v14 = vld [vmem:[%s1035_s1 + $0x70] sm:$0xff] (!%p204_p3)   ;;  %v870_v16 = vld [vmem:[%s1035_s1 + $0x78] sm:$0xff] (!%p204_p3)   ;;  %v732_v27 = vld [vmem:[%s1036_s2] ss:$0 sm:$0xff] (!%p204_p3) }
   0xb   : > { %v869_v15 = vld [vmem:[%s1035_s1 + $0x30] sm:$0xff] (!%p204_p3)   ;;  %v871_v17 = vld [vmem:[%s1035_s1 + $0x38] sm:$0xff] (!%p204_p3)   ;;  %v733_v39 = vld [vmem:[%s1037_s3] ss:$0 sm:$0xff] (!%p204_p3) }
   0xc   : > { %779 = vmatpush3.bf16.msra.mxu0 (!%p204_p3), %v859_v3  ;;  %825 = vmatpush3.bf16.msra.mxu1 (!%p204_p3), %v859_v3 }
   0xd   : > { %780 = vmatprep.subr.bf16.mxu0 (!%p204_p3), %v860_v4  ;;  %818 = vmatprep.subr.bf16.mxu1 (!%p204_p3), %v860_v4 }
   0xe   : > { %s1044_s21 = smov (!%p244_p4, %s703_s21), 15 }
   0xf   : > { %s744_s10 = sshll.u32 %s1044_s21, 3  ;;  %s707_s12 = sshll.u32 %s1044_s21, 2 }
  0x10   : > { %781 = vmatpush3.bf16.msra.mxu0 %v861_v5  ;;  %826 = vmatpush3.bf16.msra.mxu1 %v861_v5  ;;  %s984_s15 = scalar_lea.vmem %s1034_s0, %s744_s10 }
  0x11   : > { %782 = vmatprep.subr.bf16.mxu0 %v862_v6  ;;  %819 = vmatprep.subr.bf16.mxu1 %v862_v6  ;;  %v874_v11 = vld [vmem:[%s984_s15 + $0x4] ss:$8 sps:$4 sm:$0xff]   ;;  %v872_v18 = vld [vmem:[%s984_s15] ss:$8 sps:$4 sm:$0xff]   ;;  %v878_v20 = vld [vmem:[%s984_s15 + $0x14] ss:$8 sps:$4 sm:$0xff]  }
  0x12   : > { %v877_v12 = vld [vmem:[%s984_s15 + $0x24] ss:$8 sps:$4 sm:$0xff]   ;;  %478 = vmatprep.mubr.bf16.mxu0 %v874_v11  ;;  %v875_v19 = vld [vmem:[%s984_s15 + $0x20] ss:$8 sps:$4 sm:$0xff]   ;;  %v880_v21 = vld [vmem:[%s984_s15 + $0x34] ss:$8 sps:$4 sm:$0xff]  }
  0x13   : > { %494 = vmatprep.mubr.bf16.mxu1 %v877_v12  ;;  %v882_v22 = vld [vmem:[%s984_s15 + $0x10] ss:$8 sps:$4 sm:$0xff]  }
  0x14   : > { %783 = vmatpush3.bf16.msra.mxu0 %v863_v7  ;;  %827 = vmatpush3.bf16.msra.mxu1 %v863_v7  ;;  %v883_v23 = vld [vmem:[%s984_s15 + $0x30] ss:$8 sps:$4 sm:$0xff]   ;;  %s267_s15 = scalar_lea.vmem %s1038_s4, %s707_s12 }
  0x15   : > { %784 = vmatprep.subr.bf16.mxu0 %v864_v8  ;;  %820 = vmatprep.subr.bf16.mxu1 %v864_v8 }
  0x18   : > { %785 = vmatpush3.bf16.msra.mxu0 %v865_v9  ;;  %828 = vmatpush3.bf16.msra.mxu1 %v865_v9 }
  0x19   : > { %786 = vmatprep.subr.bf16.mxu0 %v866_v10  ;;  %821 = vmatprep.subr.bf16.mxu1 %v866_v10 }
  0x1c   : > { %787 = vmatpush3.bf16.msra.mxu0 %v867_v13  ;;  %829 = vmatpush3.bf16.msra.mxu1 %v867_v13 }
  0x1d   : > { %788 = vmatprep.subr.bf16.mxu0 %v868_v14  ;;  %822 = vmatprep.subr.bf16.mxu1 %v868_v14 }
  0x20   : > { %789 = vmatpush3.bf16.msra.mxu0 %v869_v15  ;;  %830 = vmatpush3.bf16.msra.mxu1 %v869_v15 }
  0x21   : > { %790 = vmatprep.subr.bf16.mxu0 %v870_v16  ;;  %823 = vmatprep.subr.bf16.mxu1 %v870_v16 }
  0x24   : > { %791 = vmatpush3.bf16.msra.mxu0 %v871_v17  ;;  %831 = vmatpush3.bf16.msra.mxu1 %v871_v17 }
  0x27   : > { %479 = vmatmul.mubr.bf16.vlgmr.msra.gmra.mrb[0].mxu0 %v872_v18  ;;  %495 = vmatmul.mubr.bf16.vlgmr.msra.gmra.mrb[0].mxu1 %v875_v19 }
  0x28   : > { %486 = vmatprep.mubr.bf16.mxu0 %v878_v20  ;;  %502 = vmatprep.mubr.bf16.mxu1 %v880_v21 }
  0x2f   : > { %487 = vmatmul.mubr.bf16.gmra.mrb[4].mxu0 %v882_v22  ;;  %503 = vmatmul.mubr.bf16.gmra.mrb[4].mxu1 %v883_v23 }
  0xfa   : > { %v792_v24 = vpop.f32.mrb[0].mxu0  ;;  %v804_v25 = vpop.f32.mrb[0].mxu1 }
  0xfb   : > { %v793_v26 = vpop.f32.mrb[1].mxu0  ;;  %v805_v28 = vpop.f32.mrb[1].mxu1 }
  0xfc   : > { %v794_v29 = vadd.f32 %v793_v26, %v792_v24  ;;  %v806_v30 = vadd.f32 %v805_v28, %v804_v25  ;;  %v795_v31 = vpop.f32.mrb[2].mxu0  ;;  %v807_v32 = vpop.f32.mrb[2].mxu1 }
  0xfd   : > { %v796_v33 = vpop.f32.mrb[3].mxu0  ;;  %v808_v34 = vpop.f32.mrb[3].mxu1 }
  0xfe   : > { %v518_v35 = vmul.f32 %v794_v29, %v732_v27  ;;  %v522_v36 = vmul.f32 %v806_v30, %v732_v27  ;;  %v797_v37 = vadd.f32 %v796_v33, %v795_v31  ;;  %v809_v38 = vadd.f32 %v808_v34, %v807_v32 }
 0x100   : > { %v519_v40 = vmul.f32 %v797_v37, %v732_v27  ;;  %v523_v41 = vmul.f32 %v809_v38, %v732_v27  ;;  %v533_v42 = vadd.f32 %v733_v39, %v518_v35  ;;  %v537_v43 = vadd.f32 %v733_v39, %v522_v36 }
 0x102   : > { %v534_v44 = vadd.f32 %v733_v39, %v519_v40  ;;  %v538_v45 = vadd.f32 %v733_v39, %v523_v41  ;;  %v798_v46 = vpop.f32.mrb[4].mxu0  ;;  %v810_v47 = vpop.f32.mrb[4].mxu1 }
 0x103   : > { %v799_v48 = vpop.f32.mrb[5].mxu0  ;;  %v811_v49 = vpop.f32.mrb[5].mxu1 }
 0x104   : > { %v756_v50 = vpack.c.bf16 %v534_v44, %v533_v42  ;;  %v766_v51 = vpack.c.bf16 %v538_v45, %v537_v43  ;;  %v800_v52 = vadd.f32 %v799_v48, %v798_v46  ;;  %v812_v53 = vadd.f32 %v811_v49, %v810_v47  ;;  %v801_v54 = vpop.f32.mrb[6].mxu0  ;;  %v813_v55 = vpop.f32.mrb[6].mxu1 }
 0x105   : > { %v802_v56 = vpop.f32.mrb[7].mxu0  ;;  %v814_v57 = vpop.f32.mrb[7].mxu1 }
 0x106   : > { %757 = vst [vmem:[%s267_s15] sm:$0xff] %v756_v50   ;;  %774 = vst [vmem:[%s267_s15 + $0x10] sm:$0xff] %v766_v51   ;;  %v520_v58 = vmul.f32 %v800_v52, %v732_v27  ;;  %v524_v59 = vmul.f32 %v812_v53, %v732_v27  ;;  %v803_v60 = vadd.f32 %v802_v56, %v801_v54 }
 0x107   : > { %v815_v61 = vadd.f32 %v814_v57, %v813_v55 }
 0x108   : > { %v521_v62 = vmul.f32 %v803_v60, %v732_v27  ;;  %v535_v0 = vadd.f32 %v733_v39, %v520_v58  ;;  %v539_v1 = vadd.f32 %v733_v39, %v524_v59 }
 0x109   : > { %v525_v63 = vmul.f32 %v815_v61, %v732_v27 }
 0x10a   : > { %v536_v2 = vadd.f32 %v733_v39, %v521_v62 }
 0x10b   : > { %v540_v3 = vadd.f32 %v733_v39, %v525_v63 }
 0x10c   : > { %v761_v4 = vpack.c.bf16 %v536_v2, %v535_v0 }
 0x10d   : > { %v771_v5 = vpack.c.bf16 %v540_v3, %v539_v1 }
 0x10e   : > { %773 = vst [vmem:[%s267_s15 + $0x8] sm:$0xff] %v761_v4  }
 0x10f   : > { %775 = vst [vmem:[%s267_s15 + $0x18] sm:$0xff] %v771_v5  }
 0x110 PF: > { %s14_s17 = sadd.s32 1, %s906_s17   ;;  %s1039_s15 = smov %s902_s16 }
 0x111   : > { %p11_p5 = scmp.ge.s32.totalorder %s14_s17, 4   ;;  %s1040_s16 = smov %s1042_s18 }
 0x113   :  { %13 = sbr.rel (!%p11_p5) target bundleno = 2 (0x2), region = 75 }

// kernel: autoencoder_forward.17
= control target key start
LH: loop header
LB: loop body
LE: loop exit
PB: predicated region body
PF: predicated region fallthrough
CT: control target
= control target key end

     0   :  { %s1778_s15 = smov 0   ;;  %s1780_s16 = smov 0   ;;  %s2075_s0 = inlined_call_operand.vmem [shape: bf16[512,384], index: 0, kind: input, shape index: {}]   ;;  %s2076_s1 = inlined_call_operand.vmem [shape: bf16[384,128], index: 1, kind: input, shape index: {}]   ;;  %s2077_s2 = inlined_call_operand.vmem [shape: f32[1,128], index: 2, kind: input, shape index: {}]   ;;  %s2078_s3 = inlined_call_operand.vmem [shape: f32[1,128], index: 3, kind: input, shape index: {}]   ;;  %s2079_s4 = inlined_call_operand.vmem [shape: f32[512,128], index: 4, kind: output, shape index: {}]  }
   0x1   :  { %s1782_s17 = smov 0  }
   0x2 LB: > { %s26_s18 = sadd.s32 1, %s1747_s16  ;;  %p1335_p0 = scmp.ge.s32.totalorder %s1751_s17, 1  ;;  %s1751_s17 = sphi %s1782_s17, %s14_s17   ;;  %s1747_s16 = sphi %s1780_s16, %s2081_s16   ;;  %s1743_s15 = sphi %s1778_s15, %s2080_s15  }
   0x3   : > { %p28_p1 = scmp.ge.s32.totalorder %s26_s18, 2  ;;  %p203_p2 = scmp.lt.s32.totalorder %s1751_s17, 3 }
   0x5   : > { %s2083_s18 = smov (%p28_p1, %s26_s18), 0  ;;  %p204_p3 = pnand %p1335_p0, %p203_p2 }
   0x6   : > { %v1641_v0 = vld [vmem:[%s2076_s1 + $0x40] sm:$0xff] (!%p204_p3)   ;;  %s1336_s21 = sshll.u32 (!%p204_p3), %s1743_s15, 5  ;;  %v1643_v2 = vld [vmem:[%s2076_s1 + $0x48] sm:$0xff] (!%p204_p3)   ;;  %v1645_v4 = vld [vmem:[%s2076_s1 + $0x50] sm:$0xff] (!%p204_p3)  }
   0x7   : > { %207 = sbr.rel (%p204_p3) target bundleno = 351 (0x15f), region = 36  ;;  %v1642_v1 = vld [vmem:[%s2076_s1] sm:$0xff] (!%p204_p3)   ;;  %1416 = vmatprep.subr.bf16.mxu0 (!%p204_p3), %v1641_v0  ;;  %1600 = vmatprep.subr.bf16.mxu1 (!%p204_p3), %v1641_v0  ;;  %p244_p4 = scmp.lt.s32.totalorder (!%p204_p3), %s1336_s21, 63  ;;  %v1644_v3 = vld [vmem:[%s2076_s1 + $0x8] sm:$0xff] (!%p204_p3)   ;;  %v1646_v5 = vld [vmem:[%s2076_s1 + $0x10] sm:$0xff] (!%p204_p3)  }
   0x8   : > { %1417 = vmatpush3.bf16.msra.mxu0 (!%p204_p3), %v1642_v1  ;;  %1608 = vmatpush3.bf16.msra.mxu1 (!%p204_p3), %v1642_v1  ;;  %v1647_v6 = vld [vmem:[%s2076_s1 + $0x58] sm:$0xff] (!%p204_p3)   ;;  %v1649_v8 = vld [vmem:[%s2076_s1 + $0x60] sm:$0xff] (!%p204_p3)   ;;  %v1651_v10 = vld [vmem:[%s2076_s1 + $0x68] sm:$0xff] (!%p204_p3)  }
   0x9   : > { %1418 = vmatprep.subr.bf16.mxu0 (!%p204_p3), %v1643_v2  ;;  %1601 = vmatprep.subr.bf16.mxu1 (!%p204_p3), %v1643_v2  ;;  %v1648_v7 = vld [vmem:[%s2076_s1 + $0x18] sm:$0xff] (!%p204_p3)   ;;  %v1650_v9 = vld [vmem:[%s2076_s1 + $0x20] sm:$0xff] (!%p204_p3)   ;;  %v1652_v13 = vld [vmem:[%s2076_s1 + $0x28] sm:$0xff] (!%p204_p3)  }
   0xa   : > { %v1653_v14 = vld [vmem:[%s2076_s1 + $0x70] sm:$0xff] (!%p204_p3)   ;;  %v1655_v16 = vld [vmem:[%s2076_s1 + $0x78] sm:$0xff] (!%p204_p3)   ;;  %v1663_v18 = vld [vmem:[%s2076_s1 + $0x80] sm:$0xff] (!%p204_p3)  }
   0xb   : > { %v1654_v15 = vld [vmem:[%s2076_s1 + $0x30] sm:$0xff] (!%p204_p3)   ;;  %v1656_v17 = vld [vmem:[%s2076_s1 + $0x38] sm:$0xff] (!%p204_p3)   ;;  %v1664_v22 = vld [vmem:[%s2076_s1 + $0x88] sm:$0xff] (!%p204_p3)  }
   0xc   : > { %1419 = vmatpush3.bf16.msra.mxu0 (!%p204_p3), %v1644_v3  ;;  %1609 = vmatpush3.bf16.msra.mxu1 (!%p204_p3), %v1644_v3  ;;  %v1671_v25 = vld [vmem:[%s2076_s1 + $0x90] sm:$0xff] (!%p204_p3)   ;;  %v1672_v27 = vld [vmem:[%s2076_s1 + $0x98] sm:$0xff] (!%p204_p3)   ;;  %v1679_v30 = vld [vmem:[%s2076_s1 + $0xa0] sm:$0xff] (!%p204_p3)  }
   0xd   : > { %1420 = vmatprep.subr.bf16.mxu0 (!%p204_p3), %v1645_v4  ;;  %1602 = vmatprep.subr.bf16.mxu1 (!%p204_p3), %v1645_v4  ;;  %v1680_v33 = vld [vmem:[%s2076_s1 + $0xa8] sm:$0xff] (!%p204_p3)   ;;  %v1687_v36 = vld [vmem:[%s2076_s1 + $0xb0] sm:$0xff] (!%p204_p3)   ;;  %v1688_v40 = vld [vmem:[%s2076_s1 + $0xb8] sm:$0xff] (!%p204_p3)  }
   0xe   : > { %s2085_s21 = smov (!%p244_p4, %s1336_s21), 63 }
   0xf   : > { %s1616_s8 = smul.u32 12, %s2085_s21  ;;  %s1339_s30 = sshll.u32 %s2085_s21, 3 }
  0x10   : > { %1421 = vmatpush3.bf16.msra.mxu0 %v1646_v5  ;;  %1610 = vmatpush3.bf16.msra.mxu1 %v1646_v5  ;;  %s1955_s21 = scalar_lea.vmem %s2079_s4, %s1339_s30 }
  0x11   : > { %1422 = vmatprep.subr.bf16.mxu0 %v1647_v6  ;;  %1603 = vmatprep.subr.bf16.mxu1 %v1647_v6  ;;  %s1829_s15 = scalar_lea.vmem %s2075_s0, %s1616_s8 }
  0x12   : > { %v1659_v11 = vld [vmem:[%s1829_s15 + $0x4] ss:$12 sps:$4 sm:$0xff]   ;;  %v1657_v19 = vld [vmem:[%s1829_s15] ss:$12 sps:$4 sm:$0xff]   ;;  %v1665_v21 = vld [vmem:[%s1829_s15 + $0x1c] ss:$12 sps:$4 sm:$0xff]  }
  0x13   : > { %v1662_v12 = vld [vmem:[%s1829_s15 + $0x124] ss:$12 sps:$4 sm:$0xff]   ;;  %814 = vmatprep.mubr.bf16.mxu0 %v1659_v11  ;;  %v1660_v20 = vld [vmem:[%s1829_s15 + $0x120] ss:$12 sps:$4 sm:$0xff]   ;;  %v1667_v23 = vld [vmem:[%s1829_s15 + $0x13c] ss:$12 sps:$4 sm:$0xff]  }
  0x14   : > { %1423 = vmatpush3.bf16.msra.mxu0 %v1648_v7  ;;  %1611 = vmatpush3.bf16.msra.mxu1 %v1648_v7  ;;  %v1669_v24 = vld [vmem:[%s1829_s15 + $0x18] ss:$12 sps:$4 sm:$0xff]   ;;  %v1673_v28 = vld [vmem:[%s1829_s15 + $0x34] ss:$12 sps:$4 sm:$0xff]   ;;  %v1677_v31 = vld [vmem:[%s1829_s15 + $0x30] ss:$12 sps:$4 sm:$0xff]  }
  0x15   : > { %1424 = vmatprep.subr.bf16.mxu0 %v1649_v8  ;;  %1604 = vmatprep.subr.bf16.mxu1 %v1649_v8  ;;  %v1670_v26 = vld [vmem:[%s1829_s15 + $0x138] ss:$12 sps:$4 sm:$0xff]   ;;  %v1675_v29 = vld [vmem:[%s1829_s15 + $0x154] ss:$12 sps:$4 sm:$0xff]   ;;  %v1678_v32 = vld [vmem:[%s1829_s15 + $0x150] ss:$12 sps:$4 sm:$0xff]  }
  0x16   : > { %910 = vmatprep.mubr.bf16.mxu1 %v1662_v12  ;;  %v1681_v34 = vld [vmem:[%s1829_s15 + $0x4c] ss:$12 sps:$4 sm:$0xff]   ;;  %v1685_v37 = vld [vmem:[%s1829_s15 + $0x48] ss:$12 sps:$4 sm:$0xff]   ;;  %v1689_v39 = vld [vmem:[%s1829_s15 + $0x64] ss:$12 sps:$4 sm:$0xff]  }
  0x17   : > { %v1683_v35 = vld [vmem:[%s1829_s15 + $0x16c] ss:$12 sps:$4 sm:$0xff]   ;;  %v1686_v38 = vld [vmem:[%s1829_s15 + $0x168] ss:$12 sps:$4 sm:$0xff]   ;;  %v1698_v47 = vld [vmem:[%s1829_s15 + $0x50] ss:$12 sps:$4 sm:$0xff]  }
  0x18   : > { %1425 = vmatpush3.bf16.msra.mxu0 %v1650_v9  ;;  %1612 = vmatpush3.bf16.msra.mxu1 %v1650_v9  ;;  %v1691_v41 = vld [vmem:[%s1829_s15 + $0x8] ss:$12 sps:$4 sm:$0xff]   ;;  %v1692_v42 = vld [vmem:[%s1829_s15 + $0x60] ss:$12 sps:$4 sm:$0xff]   ;;  %v1696_v45 = vld [vmem:[%s1829_s15 + $0x38] ss:$12 sps:$4 sm:$0xff]  }
  0x19   : > { %1426 = vmatprep.subr.bf16.mxu0 %v1651_v10  ;;  %1605 = vmatprep.subr.bf16.mxu1 %v1651_v10  ;;  %v1693_v43 = vld [vmem:[%s1829_s15 + $0x20] ss:$12 sps:$4 sm:$0xff]   ;;  %v1694_v44 = vld [vmem:[%s1829_s15 + $0x7c] ss:$12 sps:$4 sm:$0xff]   ;;  %v1697_v46 = vld [vmem:[%s1829_s15 + $0x78] ss:$12 sps:$4 sm:$0xff]  }
  0x1a   : > { %v1699_v48 = vld [vmem:[%s1829_s15 + $0x94] ss:$12 sps:$4 sm:$0xff]   ;;  %v1702_v50 = vld [vmem:[%s1829_s15 + $0x90] ss:$12 sps:$4 sm:$0xff]   ;;  %v1704_v52 = vld [vmem:[%s1829_s15 + $0xac] ss:$12 sps:$4 sm:$0xff]  }
  0x1b   : > { %v1701_v49 = vld [vmem:[%s1829_s15 + $0x68] ss:$12 sps:$4 sm:$0xff]   ;;  %v1703_v51 = vld [vmem:[%s1829_s15 + $0x80] ss:$12 sps:$4 sm:$0xff]   ;;  %v1706_v53 = vld [vmem:[%s1829_s15 + $0x98] ss:$12 sps:$4 sm:$0xff]  }
  0x1c   : > { %1427 = vmatpush3.bf16.msra.mxu0 %v1652_v13  ;;  %1613 = vmatpush3.bf16.msra.mxu1 %v1652_v13  ;;  %v1707_v54 = vld [vmem:[%s1829_s15 + $0xa8] ss:$12 sps:$4 sm:$0xff]   ;;  %v1708_v55 = vld [vmem:[%s1829_s15 + $0xb0] ss:$12 sps:$4 sm:$0xff]   ;;  %v1712_v58 = vld [vmem:[%s1829_s15 + $0xc0] ss:$12 sps:$4 sm:$0xff]  }
  0x1d   : > { %1428 = vmatprep.subr.bf16.mxu0 %v1653_v14  ;;  %1606 = vmatprep.subr.bf16.mxu1 %v1653_v14  ;;  %v1709_v56 = vld [vmem:[%s1829_s15 + $0xc4] ss:$12 sps:$4 sm:$0xff]   ;;  %v1711_v57 = vld [vmem:[%s1829_s15 + $0xc8] ss:$12 sps:$4 sm:$0xff]   ;;  %v1713_v59 = vld [vmem:[%s1829_s15 + $0xe0] ss:$12 sps:$4 sm:$0xff]  }
  0x1e   : > { %v1714_v60 = vld [vmem:[%s1829_s15 + $0xdc] ss:$12 sps:$4 sm:$0xff]   ;;  %v1716_v61 = vld [vmem:[%s1829_s15 + $0xf8] ss:$12 sps:$4 sm:$0xff]   ;;  %v1719_v0 = vld [vmem:[%s1829_s15 + $0xf4] ss:$12 sps:$4 sm:$0xff]  }
  0x1f   : > { %v1717_v62 = vld [vmem:[%s1829_s15 + $0xd8] ss:$12 sps:$4 sm:$0xff]   ;;  %v1718_v63 = vld [vmem:[%s1829_s15 + $0x110] ss:$12 sps:$4 sm:$0xff]   ;;  %v1721_v1 = vld [vmem:[%s1829_s15 + $0x128] ss:$12 sps:$4 sm:$0xff]  }
  0x20   : > { %1429 = vmatpush3.bf16.msra.mxu0 %v1654_v15  ;;  %1614 = vmatpush3.bf16.msra.mxu1 %v1654_v15  ;;  %v1722_v2 = vld [vmem:[%s1829_s15 + $0xf0] ss:$12 sps:$4 sm:$0xff]   ;;  %v1723_v3 = vld [vmem:[%s1829_s15 + $0x140] ss:$12 sps:$4 sm:$0xff]   ;;  %v1726_v5 = vld [vmem:[%s1829_s15 + $0x158] ss:$12 sps:$4 sm:$0xff]  }
  0x21   : > { %1430 = vmatprep.subr.bf16.mxu0 %v1655_v16  ;;  %1607 = vmatprep.subr.bf16.mxu1 %v1655_v16  ;;  %v1724_v4 = vld [vmem:[%s1829_s15 + $0x10c] ss:$12 sps:$4 sm:$0xff]   ;;  %v1727_v6 = vld [vmem:[%s1829_s15 + $0x108] ss:$12 sps:$4 sm:$0xff]   ;;  %v1728_v7 = vld [vmem:[%s1829_s15 + $0x170] ss:$12 sps:$4 sm:$0xff]  }
  0x24   : > { %1431 = vmatpush3.bf16.msra.mxu0 %v1656_v17  ;;  %1615 = vmatpush3.bf16.msra.mxu1 %v1656_v17 }
  0x25   : > { %1552 = vmatprep.subr.bf16.mxu1 %v1663_v18 }
  0x27   : > { %815 = vmatmul.mubr.bf16.vlgmr.msra.gmra.mrb[0].mxu0 %v1657_v19  ;;  %911 = vmatmul.mubr.bf16.vlgmr.msra.gmra.mrb[0].mxu1 %v1660_v20 }
  0x28   : > { %1553 = vmatpush3.bf16.msra.mxu1 %v1663_v18  ;;  %822 = vmatprep.mubr.bf16.mxu0 %v1665_v21 }
  0x29   : > { %1554 = vmatprep.subr.bf16.mxu1 %v1664_v22  ;;  %918 = vmatprep.mubr.bf16.mxu1 %v1667_v23 }
  0x2c   : > { %1555 = vmatpush3.bf16.msra.mxu1 %v1664_v22 }
  0x2d   : > { %1556 = vmatprep.subr.bf16.mxu1 %v1671_v25 }
  0x2f   : > { %823 = vmatmul.mubr.bf16.gmra.mrb[4].mxu0 %v1669_v24  ;;  %919 = vmatmul.mubr.bf16.gmra.mrb[4].mxu1 %v1670_v26 }
  0x30   : > { %1557 = vmatpush3.bf16.msra.mxu1 %v1671_v25  ;;  %830 = vmatprep.mubr.bf16.mxu0 %v1673_v28 }
  0x31   : > { %1558 = vmatprep.subr.bf16.mxu1 %v1672_v27  ;;  %926 = vmatprep.mubr.bf16.mxu1 %v1675_v29 }
  0x34   : > { %1559 = vmatpush3.bf16.msra.mxu1 %v1672_v27 }
  0x35   : > { %1560 = vmatprep.subr.bf16.mxu1 %v1679_v30 }
  0x37   : > { %831 = vmatmul.mubr.bf16.gmra.mrb[8].mxu0 %v1677_v31  ;;  %927 = vmatmul.mubr.bf16.gmra.mrb[8].mxu1 %v1678_v32 }
  0x38   : > { %1561 = vmatpush3.bf16.msra.mxu1 %v1679_v30  ;;  %838 = vmatprep.mubr.bf16.mxu0 %v1681_v34 }
  0x39   : > { %1562 = vmatprep.subr.bf16.mxu1 %v1680_v33  ;;  %934 = vmatprep.mubr.bf16.mxu1 %v1683_v35 }
  0x3c   : > { %1563 = vmatpush3.bf16.msra.mxu1 %v1680_v33 }
  0x3d   : > { %1564 = vmatprep.subr.bf16.mxu1 %v1687_v36 }
  0x3f   : > { %839 = vmatmul.mubr.bf16.gmra.mrb[12].mxu0 %v1685_v37  ;;  %935 = vmatmul.mubr.bf16.gmra.mrb[12].mxu1 %v1686_v38 }
  0x40   : > { %1565 = vmatpush3.bf16.msra.mxu1 %v1687_v36  ;;  %846 = vmatprep.mubr.bf16.mxu0 %v1689_v39 }
  0x41   : > { %1566 = vmatprep.subr.bf16.mxu1 %v1688_v40  ;;  %1568 = vmatprep.mubr.bf16.mxu1 %v1691_v41 }
  0x44   : > { %1567 = vmatpush3.bf16.msra.mxu1 %v1688_v40 }
  0x47   : > { %847 = vmatmul.mubr.bf16.gmra.mrb[16].mxu0 %v1692_v42  ;;  %1569 = vmatmul.mubr.bf16.vlgmr.msra.gmra.mrb[16].mxu1 %v1693_v43 }
  0x48   : > { %854 = vmatprep.mubr.bf16.mxu0 %v1694_v44  ;;  %1572 = vmatprep.mubr.bf16.mxu1 %v1696_v45 }
  0x4f   : > { %855 = vmatmul.mubr.bf16.gmra.mrb[20].mxu0 %v1697_v46  ;;  %1573 = vmatmul.mubr.bf16.gmra.mrb[20].mxu1 %v1698_v47 }
  0x50   : > { %862 = vmatprep.mubr.bf16.mxu0 %v1699_v48  ;;  %1576 = vmatprep.mubr.bf16.mxu1 %v1701_v49 }
  0x57   : > { %863 = vmatmul.mubr.bf16.gmra.mrb[24].mxu0 %v1702_v50  ;;  %1577 = vmatmul.mubr.bf16.gmra.mrb[24].mxu1 %v1703_v51 }
  0x58   : > { %870 = vmatprep.mubr.bf16.mxu0 %v1704_v52  ;;  %1580 = vmatprep.mubr.bf16.mxu1 %v1706_v53 }
  0x5f   : > { %871 = vmatmul.mubr.bf16.gmra.mrb[28].mxu0 %v1707_v54  ;;  %1581 = vmatmul.mubr.bf16.gmra.mrb[28].mxu1 %v1708_v55 }
  0x60   : > { %878 = vmatprep.mubr.bf16.mxu0 %v1709_v56  ;;  %1584 = vmatprep.mubr.bf16.mxu1 %v1711_v57 }
  0x67   : > { %879 = vmatmul.mubr.bf16.gmra.mrb[32].mxu0 %v1712_v58  ;;  %1585 = vmatmul.mubr.bf16.gmra.mrb[32].mxu1 %v1713_v59  ;;  %v1943_v58 = vld [vmem:[%s2077_s2] ss:$0 sm:$0xff] }
  0x68   : > { %886 = vmatprep.mubr.bf16.mxu0 %v1714_v60  ;;  %1588 = vmatprep.mubr.bf16.mxu1 %v1716_v61 }
  0x6f   : > { %887 = vmatmul.mubr.bf16.gmra.mrb[36].mxu0 %v1717_v62  ;;  %1589 = vmatmul.mubr.bf16.gmra.mrb[36].mxu1 %v1718_v63  ;;  %v1949_v62 = vld [vmem:[%s2078_s3] ss:$0 sm:$0xff] }
  0x70   : > { %894 = vmatprep.mubr.bf16.mxu0 %v1719_v0  ;;  %1592 = vmatprep.mubr.bf16.mxu1 %v1721_v1 }
  0x77   : > { %895 = vmatmul.mubr.bf16.gmra.mrb[40].mxu0 %v1722_v2  ;;  %1593 = vmatmul.mubr.bf16.gmra.mrb[40].mxu1 %v1723_v3 }
  0x78   : > { %902 = vmatprep.mubr.bf16.mxu0 %v1724_v4  ;;  %1596 = vmatprep.mubr.bf16.mxu1 %v1726_v5 }
  0x7f   : > { %903 = vmatmul.mubr.bf16.gmra.mrb[44].mxu0 %v1727_v6  ;;  %1597 = vmatmul.mubr.bf16.gmra.mrb[44].mxu1 %v1728_v7 }
  0xfa   : > { %v1432_v8 = vpop.f32.mrb[0].mxu0  ;;  %v1504_v9 = vpop.f32.mrb[0].mxu1 }
  0xfb   : > { %v1433_v10 = vpop.f32.mrb[1].mxu0  ;;  %v1505_v11 = vpop.f32.mrb[1].mxu1 }
  0xfc   : > { %v1434_v12 = vadd.f32 %v1433_v10, %v1432_v8  ;;  %v1924_v13 = vadd.f32 %v1505_v11, %v1504_v9  ;;  %v1435_v14 = vpop.f32.mrb[2].mxu0  ;;  %v1507_v15 = vpop.f32.mrb[2].mxu1 }
  0xfd   : > { %v1436_v16 = vpop.f32.mrb[3].mxu0  ;;  %v1508_v17 = vpop.f32.mrb[3].mxu1 }
  0xfe   : > { %v1437_v18 = vadd.f32 %v1436_v16, %v1435_v14  ;;  %v1926_v19 = vadd.f32 %v1508_v17, %v1507_v15 }
 0x102   : > { %v1438_v20 = vpop.f32.mrb[4].mxu0  ;;  %v1510_v21 = vpop.f32.mrb[4].mxu1 }
 0x103   : > { %v1439_v22 = vpop.f32.mrb[5].mxu0  ;;  %v1511_v23 = vpop.f32.mrb[5].mxu1 }
 0x104   : > { %v1440_v24 = vadd.f32 %v1439_v22, %v1438_v20  ;;  %v1928_v25 = vadd.f32 %v1511_v23, %v1510_v21  ;;  %v1441_v26 = vpop.f32.mrb[6].mxu0  ;;  %v1513_v27 = vpop.f32.mrb[6].mxu1 }
 0x105   : > { %v1442_v28 = vpop.f32.mrb[7].mxu0  ;;  %v1514_v29 = vpop.f32.mrb[7].mxu1 }
 0x106   : > { %v1443_v30 = vadd.f32 %v1442_v28, %v1441_v26  ;;  %v1930_v31 = vadd.f32 %v1514_v29, %v1513_v27 }
 0x10a   : > { %v1444_v32 = vpop.f32.mrb[8].mxu0  ;;  %v1516_v33 = vpop.f32.mrb[8].mxu1 }
 0x10b   : > { %v1445_v34 = vpop.f32.mrb[9].mxu0  ;;  %v1517_v35 = vpop.f32.mrb[9].mxu1 }
 0x10c   : > { %v1446_v36 = vadd.f32 %v1445_v34, %v1444_v32  ;;  %v1932_v37 = vadd.f32 %v1517_v35, %v1516_v33  ;;  %v1447_v38 = vpop.f32.mrb[10].mxu0  ;;  %v1519_v39 = vpop.f32.mrb[10].mxu1 }
 0x10d   : > { %v1448_v40 = vpop.f32.mrb[11].mxu0  ;;  %v1520_v41 = vpop.f32.mrb[11].mxu1 }
 0x10e   : > { %v1449_v42 = vadd.f32 %v1448_v40, %v1447_v38  ;;  %v1934_v43 = vadd.f32 %v1520_v41, %v1519_v39 }
 0x112   : > { %v1450_v44 = vpop.f32.mrb[12].mxu0  ;;  %v1522_v45 = vpop.f32.mrb[12].mxu1 }
 0x113   : > { %v1451_v46 = vpop.f32.mrb[13].mxu0  ;;  %v1523_v47 = vpop.f32.mrb[13].mxu1 }
 0x114   : > { %v1452_v48 = vadd.f32 %v1451_v46, %v1450_v44  ;;  %v1936_v49 = vadd.f32 %v1523_v47, %v1522_v45  ;;  %v1453_v50 = vpop.f32.mrb[14].mxu0  ;;  %v1525_v51 = vpop.f32.mrb[14].mxu1 }
 0x115   : > { %v1454_v52 = vpop.f32.mrb[15].mxu0  ;;  %v1526_v53 = vpop.f32.mrb[15].mxu1 }
 0x116   : > { %v1455_v54 = vadd.f32 %v1454_v52, %v1453_v50  ;;  %v1938_v55 = vadd.f32 %v1526_v53, %v1525_v51 }
 0x11a   : > { %v1456_v56 = vpop.f32.mrb[16].mxu0  ;;  %v1570_v57 = vpop.f32.mrb[16].mxu1 }
 0x11b   : > { %v986_v59 = vadd.f32 %v1570_v57, %v1440_v24  ;;  %v1457_v60 = vpop.f32.mrb[17].mxu0  ;;  %v977_v61 = vpop.f32.mrb[17].mxu1 }
 0x11c   : > { %v1458_v63 = vadd.f32 %v1457_v60, %v1456_v56  ;;  %v978_v0 = vadd.f32 %v1434_v12, %v977_v61  ;;  %v1459_v1 = vpop.f32.mrb[18].mxu0  ;;  %v1571_v2 = vpop.f32.mrb[18].mxu1 }
 0x11d   : > { %v1113_v3 = vmul.f32 %v1943_v58, %v986_v59  ;;  %v989_v4 = vadd.f32 %v1571_v2, %v1443_v30  ;;  %v1460_v5 = vpop.f32.mrb[19].mxu0  ;;  %v980_v6 = vpop.f32.mrb[19].mxu1 }
 0x11e   : > { %v1111_v7 = vmul.f32 %v1943_v58, %v978_v0  ;;  %v1461_v8 = vadd.f32 %v1460_v5, %v1459_v1  ;;  %v981_v9 = vadd.f32 %v1437_v18, %v980_v6 }
 0x11f   : > { %v1152_v10 = vadd.f32 %v1949_v62, %v1113_v3  ;;  %v1114_v11 = vmul.f32 %v1943_v58, %v989_v4 }
 0x120   : > { %v1150_v12 = vadd.f32 %v1949_v62, %v1111_v7  ;;  %v1112_v14 = vmul.f32 %v1943_v58, %v981_v9 }
 0x121   : > { %1184 = vst [vmem:[%s1955_s21 + $0x10] sm:$0xff] %v1152_v10  ;;  %v1153_v15 = vadd.f32 %v1949_v62, %v1114_v11 }
 0x122   : > { %1182 = vst [vmem:[%s1955_s21] sm:$0xff] %v1150_v12  ;;  %v1151_v16 = vadd.f32 %v1949_v62, %v1112_v14  ;;  %v1462_v17 = vpop.f32.mrb[20].mxu0  ;;  %v1574_v20 = vpop.f32.mrb[20].mxu1 }
 0x123   : > { %1185 = vst [vmem:[%s1955_s21 + $0x18] sm:$0xff] %v1153_v15  ;;  %v1002_v21 = vadd.f32 %v1574_v20, %v1452_v48  ;;  %v1463_v22 = vpop.f32.mrb[21].mxu0  ;;  %v993_v18 = vpop.f32.mrb[21].mxu1 }
 0x124   : > { %1183 = vst [vmem:[%s1955_s21 + $0x8] sm:$0xff] %v1151_v16  ;;  %v1464_v23 = vadd.f32 %v1463_v22, %v1462_v17  ;;  %v994_v24 = vadd.f32 %v1446_v36, %v993_v18  ;;  %v1465_v26 = vpop.f32.mrb[22].mxu0  ;;  %v1575_v27 = vpop.f32.mrb[22].mxu1 }
 0x125   : > { %v1117_v28 = vmul.f32 %v1943_v58, %v1002_v21  ;;  %v1005_v29 = vadd.f32 %v1575_v27, %v1455_v54  ;;  %v1466_v30 = vpop.f32.mrb[23].mxu0  ;;  %v996_v32 = vpop.f32.mrb[23].mxu1 }
 0x126   : > { %v1115_v33 = vmul.f32 %v1943_v58, %v994_v24  ;;  %v1467_v34 = vadd.f32 %v1466_v30, %v1465_v26  ;;  %v997_v35 = vadd.f32 %v1449_v42, %v996_v32 }
 0x127   : > { %v1156_v38 = vadd.f32 %v1949_v62, %v1117_v28  ;;  %v1118_v39 = vmul.f32 %v1943_v58, %v1005_v29 }
 0x128   : > { %v1154_v36 = vadd.f32 %v1949_v62, %v1115_v33  ;;  %v1116_v40 = vmul.f32 %v1943_v58, %v997_v35 }
 0x129   : > { %1188 = vst [vmem:[%s1955_s21 + $0x30] sm:$0xff] %v1156_v38  ;;  %v1157_v41 = vadd.f32 %v1949_v62, %v1118_v39 }
 0x12a   : > { %1186 = vst [vmem:[%s1955_s21 + $0x20] sm:$0xff] %v1154_v36  ;;  %v1155_v44 = vadd.f32 %v1949_v62, %v1116_v40  ;;  %v1468_v45 = vpop.f32.mrb[24].mxu0  ;;  %v1578_v46 = vpop.f32.mrb[24].mxu1 }
 0x12b   : > { %1189 = vst [vmem:[%s1955_s21 + $0x38] sm:$0xff] %v1157_v41  ;;  %v1018_v47 = vadd.f32 %v1578_v46, %v1464_v23  ;;  %v1469_v48 = vpop.f32.mrb[25].mxu0  ;;  %v1009_v42 = vpop.f32.mrb[25].mxu1 }
 0x12c   : > { %1187 = vst [vmem:[%s1955_s21 + $0x28] sm:$0xff] %v1155_v44  ;;  %v1470_v50 = vadd.f32 %v1469_v48, %v1468_v45  ;;  %v1010_v51 = vadd.f32 %v1458_v63, %v1009_v42  ;;  %v1471_v52 = vpop.f32.mrb[26].mxu0  ;;  %v1579_v53 = vpop.f32.mrb[26].mxu1 }
 0x12d   : > { %v1121_v54 = vmul.f32 %v1943_v58, %v1018_v47  ;;  %v1021_v56 = vadd.f32 %v1579_v53, %v1467_v34  ;;  %v1472_v57 = vpop.f32.mrb[27].mxu0  ;;  %v1012_v59 = vpop.f32.mrb[27].mxu1 }
 0x12e   : > { %v1119_v60 = vmul.f32 %v1943_v58, %v1010_v51  ;;  %v1473_v61 = vadd.f32 %v1472_v57, %v1471_v52  ;;  %v1013_v0 = vadd.f32 %v1461_v8, %v1012_v59 }
 0x12f   : > { %v1160_v1 = vadd.f32 %v1949_v62, %v1121_v54  ;;  %v1122_v2 = vmul.f32 %v1943_v58, %v1021_v56 }
 0x130   : > { %v1158_v63 = vadd.f32 %v1949_v62, %v1119_v60  ;;  %v1120_v3 = vmul.f32 %v1943_v58, %v1013_v0 }
 0x131   : > { %1192 = vst [vmem:[%s1955_s21 + $0x50] sm:$0xff] %v1160_v1  ;;  %v1161_v4 = vadd.f32 %v1949_v62, %v1122_v2 }
 0x132   : > { %1190 = vst [vmem:[%s1955_s21 + $0x40] sm:$0xff] %v1158_v63  ;;  %v1159_v5 = vadd.f32 %v1949_v62, %v1120_v3  ;;  %v1474_v6 = vpop.f32.mrb[28].mxu0  ;;  %v1582_v7 = vpop.f32.mrb[28].mxu1 }
 0x133   : > { %1193 = vst [vmem:[%s1955_s21 + $0x58] sm:$0xff] %v1161_v4  ;;  %v1475_v9 = vpop.f32.mrb[29].mxu0  ;;  %v1025_v10 = vpop.f32.mrb[29].mxu1 }
 0x134   : > { %1191 = vst [vmem:[%s1955_s21 + $0x48] sm:$0xff] %v1159_v5  ;;  %v1476_v8 = vadd.f32 %v1475_v9, %v1474_v6  ;;  %v1026_v11 = vadd.f32 %v1470_v50, %v1025_v10  ;;  %v1477_v12 = vpop.f32.mrb[30].mxu0  ;;  %v1583_v14 = vpop.f32.mrb[30].mxu1 }
 0x135   : > { %v1478_v15 = vpop.f32.mrb[31].mxu0  ;;  %v1028_v16 = vpop.f32.mrb[31].mxu1 }
 0x136   : > { %v1034_v17 = vadd.f32 %v1582_v7, %v1476_v8  ;;  %v1123_v20 = vmul.f32 %v1943_v58, %v1026_v11  ;;  %v1479_v21 = vadd.f32 %v1478_v15, %v1477_v12  ;;  %v1029_v22 = vadd.f32 %v1473_v61, %v1028_v16 }
 0x138   : > { %v1125_v18 = vmul.f32 %v1943_v58, %v1034_v17  ;;  %v1162_v23 = vadd.f32 %v1949_v62, %v1123_v20  ;;  %v1037_v24 = vadd.f32 %v1583_v14, %v1479_v21  ;;  %v1124_v26 = vmul.f32 %v1943_v58, %v1029_v22 }
 0x13a   : > { %v1164_v27 = vadd.f32 %v1949_v62, %v1125_v18  ;;  %1194 = vst [vmem:[%s1955_s21 + $0x60] sm:$0xff] %v1162_v23  ;;  %v1126_v28 = vmul.f32 %v1943_v58, %v1037_v24  ;;  %v1163_v29 = vadd.f32 %v1949_v62, %v1124_v26  ;;  %v1480_v30 = vpop.f32.mrb[32].mxu0  ;;  %v1586_v32 = vpop.f32.mrb[32].mxu1 }
 0x13b   : > { %v1481_v33 = vpop.f32.mrb[33].mxu0  ;;  %v1041_v34 = vpop.f32.mrb[33].mxu1 }
 0x13c   : > { %1196 = vst [vmem:[%s1955_s21 + $0x70] sm:$0xff] %v1164_v27  ;;  %v1165_v35 = vadd.f32 %v1949_v62, %v1126_v28  ;;  %1195 = vst [vmem:[%s1955_s21 + $0x68] sm:$0xff] %v1163_v29  ;;  %v1482_v38 = vadd.f32 %v1481_v33, %v1480_v30  ;;  %v1483_v39 = vpop.f32.mrb[34].mxu0  ;;  %v1587_v36 = vpop.f32.mrb[34].mxu1 }
 0x13d   : > { %v1484_v40 = vpop.f32.mrb[35].mxu0  ;;  %v1044_v41 = vpop.f32.mrb[35].mxu1 }
 0x13e   : > { %1197 = vst [vmem:[%s1955_s21 + $0x78] sm:$0xff] %v1165_v35  ;;  %v1042_v44 = vadd.f32 %v1482_v38, %v1041_v34  ;;  %v1485_v45 = vadd.f32 %v1484_v40, %v1483_v39 }
 0x140   : > { %v1127_v46 = vmul.f32 %v1943_v58, %v1042_v44  ;;  %v1045_v47 = vadd.f32 %v1485_v45, %v1044_v41 }
 0x142   : > { %v1166_v48 = vadd.f32 %v1949_v62, %v1127_v46  ;;  %v1128_v42 = vmul.f32 %v1943_v58, %v1045_v47  ;;  %v1486_v50 = vpop.f32.mrb[36].mxu0  ;;  %v2007_v51 = vpop.f32.mrb[36].mxu1 }
 0x143   : > { %v1487_v52 = vpop.f32.mrb[37].mxu0  ;;  %v1057_v53 = vpop.f32.mrb[37].mxu1 }
 0x144   : > { %1198 = vst [vmem:[%s1955_s21 + $0x80] sm:$0xff] %v1166_v48  ;;  %v1167_v54 = vadd.f32 %v1949_v62, %v1128_v42  ;;  %v1488_v56 = vadd.f32 %v1487_v52, %v1486_v50  ;;  %v1489_v57 = vpop.f32.mrb[38].mxu0  ;;  %v2011_v59 = vpop.f32.mrb[38].mxu1 }
 0x145   : > { %v1490_v60 = vpop.f32.mrb[39].mxu0  ;;  %v1060_v61 = vpop.f32.mrb[39].mxu1 }
 0x146   : > { %1199 = vst [vmem:[%s1955_s21 + $0x88] sm:$0xff] %v1167_v54  ;;  %v1050_v0 = vadd.f32 %v1586_v32, %v1488_v56  ;;  %v1491_v1 = vadd.f32 %v1490_v60, %v1489_v57 }
 0x148   : > { %v1129_v2 = vmul.f32 %v1943_v58, %v1050_v0  ;;  %v1053_v63 = vadd.f32 %v1587_v36, %v1491_v1 }
 0x14a   : > { %v1168_v3 = vadd.f32 %v1949_v62, %v1129_v2  ;;  %v1130_v4 = vmul.f32 %v1943_v58, %v1053_v63  ;;  %v1492_v5 = vpop.f32.mrb[40].mxu0  ;;  %v1594_v6 = vpop.f32.mrb[40].mxu1 }
 0x14b   : > { %v1082_v7 = vadd.f32 %v1594_v6, %v1928_v25  ;;  %v1493_v9 = vpop.f32.mrb[41].mxu0  ;;  %v1073_v10 = vpop.f32.mrb[41].mxu1 }
 0x14c   : > { %1200 = vst [vmem:[%s1955_s21 + $0x90] sm:$0xff] %v1168_v3  ;;  %v1169_v8 = vadd.f32 %v1949_v62, %v1130_v4  ;;  %v1494_v11 = vadd.f32 %v1493_v9, %v1492_v5  ;;  %v1074_v12 = vadd.f32 %v1924_v13, %v1073_v10  ;;  %v1495_v14 = vpop.f32.mrb[42].mxu0  ;;  %v1595_v15 = vpop.f32.mrb[42].mxu1 }
 0x14d   : > { %v1137_v16 = vmul.f32 %v1943_v58, %v1082_v7  ;;  %v1085_v17 = vadd.f32 %v1595_v15, %v1930_v31  ;;  %v1496_v20 = vpop.f32.mrb[43].mxu0  ;;  %v1076_v21 = vpop.f32.mrb[43].mxu1 }
 0x14e   : > { %1201 = vst [vmem:[%s1955_s21 + $0x98] sm:$0xff] %v1169_v8  ;;  %v1058_v25 = vadd.f32 %v1494_v11, %v1057_v53  ;;  %v1135_v22 = vmul.f32 %v1943_v58, %v1074_v12  ;;  %v1497_v18 = vadd.f32 %v1496_v20, %v1495_v14  ;;  %v1077_v23 = vadd.f32 %v1926_v19, %v1076_v21 }
 0x14f   : > { %v1176_v13 = vadd.f32 %v1949_v62, %v1137_v16  ;;  %v1138_v24 = vmul.f32 %v1943_v58, %v1085_v17 }
 0x150   : > { %v1131_v26 = vmul.f32 %v1943_v58, %v1058_v25  ;;  %v1174_v31 = vadd.f32 %v1949_v62, %v1135_v22  ;;  %v1061_v27 = vadd.f32 %v1497_v18, %v1060_v61  ;;  %v1136_v28 = vmul.f32 %v1943_v58, %v1077_v23 }
 0x151   : > { %1208 = vst [vmem:[%s1955_s21 + $0xd0] sm:$0xff] %v1176_v13  ;;  %v1177_v29 = vadd.f32 %v1949_v62, %v1138_v24 }
 0x152   : > { %v1170_v30 = vadd.f32 %v1949_v62, %v1131_v26  ;;  %1206 = vst [vmem:[%s1955_s21 + $0xc0] sm:$0xff] %v1174_v31  ;;  %v1132_v19 = vmul.f32 %v1943_v58, %v1061_v27  ;;  %v1175_v32 = vadd.f32 %v1949_v62, %v1136_v28  ;;  %v1498_v33 = vpop.f32.mrb[44].mxu0  ;;  %v1598_v34 = vpop.f32.mrb[44].mxu1 }
 0x153   : > { %1209 = vst [vmem:[%s1955_s21 + $0xd8] sm:$0xff] %v1177_v29  ;;  %v1098_v35 = vadd.f32 %v1598_v34, %v1936_v49  ;;  %v1499_v38 = vpop.f32.mrb[45].mxu0  ;;  %v1089_v39 = vpop.f32.mrb[45].mxu1 }
 0x154   : > { %1202 = vst [vmem:[%s1955_s21 + $0xa0] sm:$0xff] %v1170_v30  ;;  %v1171_v36 = vadd.f32 %v1949_v62, %v1132_v19  ;;  %1207 = vst [vmem:[%s1955_s21 + $0xc8] sm:$0xff] %v1175_v32  ;;  %v1500_v40 = vadd.f32 %v1499_v38, %v1498_v33  ;;  %v1090_v41 = vadd.f32 %v1932_v37, %v1089_v39  ;;  %v1501_v44 = vpop.f32.mrb[46].mxu0  ;;  %v1599_v45 = vpop.f32.mrb[46].mxu1 }
 0x155   : > { %v1141_v46 = vmul.f32 %v1943_v58, %v1098_v35  ;;  %v1101_v47 = vadd.f32 %v1599_v45, %v1938_v55  ;;  %v1502_v48 = vpop.f32.mrb[47].mxu0  ;;  %v1092_v42 = vpop.f32.mrb[47].mxu1 }
 0x156   : > { %1203 = vst [vmem:[%s1955_s21 + $0xa8] sm:$0xff] %v1171_v36  ;;  %v1066_v49 = vadd.f32 %v2007_v51, %v1500_v40  ;;  %v1139_v50 = vmul.f32 %v1943_v58, %v1090_v41  ;;  %v1503_v52 = vadd.f32 %v1502_v48, %v1501_v44  ;;  %v1093_v37 = vadd.f32 %v1934_v43, %v1092_v42 }
 0x157   : > { %v1180_v53 = vadd.f32 %v1949_v62, %v1141_v46  ;;  %v1142_v54 = vmul.f32 %v1943_v58, %v1101_v47 }
 0x158   : > { %v1133_v55 = vmul.f32 %v1943_v58, %v1066_v49  ;;  %v1178_v56 = vadd.f32 %v1949_v62, %v1139_v50  ;;  %v1069_v57 = vadd.f32 %v2011_v59, %v1503_v52  ;;  %v1140_v51 = vmul.f32 %v1943_v58, %v1093_v37 }
 0x159   : > { %1212 = vst [vmem:[%s1955_s21 + $0xf0] sm:$0xff] %v1180_v53  ;;  %v1181_v60 = vadd.f32 %v1949_v62, %v1142_v54 }
 0x15a   : > { %v1172_v61 = vadd.f32 %v1949_v62, %v1133_v55  ;;  %1210 = vst [vmem:[%s1955_s21 + $0xe0] sm:$0xff] %v1178_v56  ;;  %v1134_v43 = vmul.f32 %v1943_v58, %v1069_v57  ;;  %v1179_v0 = vadd.f32 %v1949_v62, %v1140_v51 }
 0x15b   : > { %1213 = vst [vmem:[%s1955_s21 + $0xf8] sm:$0xff] %v1181_v60 }
 0x15c   : > { %1204 = vst [vmem:[%s1955_s21 + $0xb0] sm:$0xff] %v1172_v61  ;;  %v1173_v1 = vadd.f32 %v1949_v62, %v1134_v43  ;;  %1211 = vst [vmem:[%s1955_s21 + $0xe8] sm:$0xff] %v1179_v0 }
 0x15e   : > { %1205 = vst [vmem:[%s1955_s21 + $0xb8] sm:$0xff] %v1173_v1 }
 0x15f PF: > { %s14_s17 = sadd.s32 1, %s1751_s17   ;;  %s2080_s15 = smov %s1747_s16 }
 0x160   : > { %p11_p5 = scmp.ge.s32.totalorder %s14_s17, 4   ;;  %s2081_s16 = smov %s2083_s18 }
 0x162   :  { %13 = sbr.rel (!%p11_p5) target bundleno = 2 (0x2), region = 75 }

</bundles_post_ra>
